<compile_context>
chip_gen: v7x
topology: tpu7x:2x2x1
jax: 0.10.0
libtpu: 0.0.40
codegen_flags: <defaults>
</compile_context>

<pallas_src>
import jax
import jax.numpy as jnp
from jax.experimental import pallas as pl
from jax.experimental.pallas import tpu as pltpu  # noqa: F401  (TPU backend assumed)

# Shapes pinned by the PyTorch module.
L_IN = 50                    # conv input length (Linear(6200) forces 50)
K_CONV = 20                  # Conv1d kernel size
C_CONV = 200                 # Conv1d out channels
T_CONV = L_IN - K_CONV + 1   # 31
S_GAME = 50                  # input2 sequence length (Linear(6450) forces 50)
D_GAME_IN = 64
D_GAME_H = 512
D_GAME_OUT = 128
G_FEAT = S_GAME * D_GAME_OUT  # 6400
E_FEAT = 50
H_COMB = 100
N_OUT = 2


# ------------------------------ fused kernel -------------------------------


def _fused_kernel(x1_ref, x2_ref,
                  cw_ref, cb_ref,
                  ew1_ref, eb1_ref, ew2_ref, eb2_ref,
                  gw1_ref, gb1_ref, gw2_ref, gb2_ref, gw3_ref, gb3_ref,
                  cwg_ref, cwe_ref, cb1_ref, cw2_ref, cb2_ref,
                  o_ref):
    """Whole forward pass in one launch.

    x1:(B,50) f32, x2:(S*B,64) f32 (s-major rows: index = s*B + b).
    ew1:(31,200,50) bf16 (NTC-permuted), cwg:(50,128,100) bf16, game weights bf16,
    everything else f32.  Output o:(B,2) f32.
    """
    f32 = jnp.float32
    bf16 = jnp.bfloat16
    B = x1_ref.shape[0]

    # ---- evl branch: Conv1d+ReLU folded into the Linear(6200->50) reduction ----
    x1 = x1_ref[...]                                    # (B, 50) f32
    cw = cw_ref[...]                                    # (20, 200) f32
    cb = cb_ref[...]                                    # (1, 200)  f32
    e = jnp.zeros((B, E_FEAT), f32)
    for t in range(T_CONV):                             # static unroll (31)
        # conv output at position t, on the MXU
        row = jnp.dot(x1[:, t:t + K_CONV], cw, preferred_element_type=f32) + cb
        row = jnp.maximum(row, 0.0).astype(bf16)        # (B, 200)
        # fold flatten + Linear(6200->50): accumulate against the 200-row slice
        e = e + jnp.dot(row, ew1_ref[t], preferred_element_type=f32)
    e = jnp.maximum(e + eb1_ref[...], 0.0)
    e = jnp.maximum(jnp.dot(e, ew2_ref[...], preferred_element_type=f32)
                    + eb2_ref[...], 0.0)                # (B, 50) f32, stays resident

    # ---- game branch: 3 x (Linear + ReLU), M = S*B rows on the MXU ----
    g = x2_ref[...].astype(bf16)                        # (S*B, 64)
    g = jnp.maximum(jnp.dot(g, gw1_ref[...], preferred_element_type=f32)
                    + gb1_ref[...], 0.0).astype(bf16)
    g = jnp.maximum(jnp.dot(g, gw2_ref[...], preferred_element_type=f32)
                    + gb2_ref[...], 0.0).astype(bf16)
    g = jnp.maximum(jnp.dot(g, gw3_ref[...], preferred_element_type=f32)
                    + gb3_ref[...], 0.0)                # (S*B, 128) f32

    # ---- combine layer 1: cat((g_flat, e)) @ W1 == sum_s g_s @ Wg[s] + e @ We ----
    h = jnp.dot(e, cwe_ref[...], preferred_element_type=f32) + cb1_ref[...]
    for s in range(S_GAME):                             # static unroll (50)
        g_s = g[s * B:(s + 1) * B, :].astype(bf16)      # contiguous static row slice
        h = h + jnp.dot(g_s, cwg_ref[s], preferred_element_type=f32)
    h = jnp.maximum(h, 0.0)                             # (B, 100)

    # ---- combine layer 2 (no ReLU) ----
    o_ref[...] = jnp.dot(h, cw2_ref[...], preferred_element_type=f32) + cb2_ref[...]


# -------------------------------- forward ----------------------------------


@jax.jit
def game_eval_input(params, input1, input2):
    """input1: (B, 1, 50) f32 (NCL); input2: (B, 50, 64) f32.  Returns (B, 2) f32."""
    B = input1.shape[0]
    S = input2.shape[1]
    x1 = input1[:, 0, :]                                            # (B, 50)
    # s-major rows (index s*B + b): inside the kernel, the per-s combine slice
    # g[s*B:(s+1)*B] is then a contiguous static row slice (no (B,6400) relayout).
    x2 = jnp.swapaxes(input2, 0, 1).reshape(S * B, input2.shape[2])  # (S*B, 64)

    p = params
    return pl.pallas_call(
        _fused_kernel,
        out_shape=jax.ShapeDtypeStruct((B, N_OUT), jnp.float32),
    )(x1, x2,
      p["conv_w"], p["conv_b"],
      p["evl_w1"], p["evl_b1"], p["evl_w2"], p["evl_b2"],
      p["game_w1"], p["game_b1"], p["game_w2"], p["game_b2"],
      p["game_w3"], p["game_b3"],
      p["comb_w1_g"], p["comb_w1_e"], p["comb_b1"], p["comb_w2"], p["comb_b2"])


# --------------------------- parameter handling -----------------------------


def _init(key, shape, fan_in):
    bound = 1.0 / (fan_in ** 0.5)
    return jax.random.uniform(key, shape, jnp.float32, -bound, bound)


def init_raw_params(key):
    """PyTorch-equivalent layout: Linears stored as (in, out) = W.T; evl_w1 rows in
    torch Flatten order (index = c*31 + t); comb_w1 unsplit."""
    ks = jax.random.split(key, 16)
    p = {}
    p["conv_w"] = _init(ks[0], (K_CONV, C_CONV), K_CONV)            # (20, 200)
    p["conv_b"] = _init(ks[1], (C_CONV,), K_CONV)
    p["evl_w1"] = _init(ks[2], (C_CONV * T_CONV, E_FEAT), 6200)
    p["evl_b1"] = _init(ks[3], (E_FEAT,), 6200)
    p["evl_w2"] = _init(ks[4], (E_FEAT, E_FEAT), E_FEAT)
    p["evl_b2"] = _init(ks[5], (E_FEAT,), E_FEAT)
    p["game_w1"] = _init(ks[6], (D_GAME_IN, D_GAME_H), D_GAME_IN)
    p["game_b1"] = _init(ks[7], (D_GAME_H,), D_GAME_IN)
    p["game_w2"] = _init(ks[8], (D_GAME_H, D_GAME_OUT), D_GAME_H)
    p["game_b2"] = _init(ks[9], (D_GAME_OUT,), D_GAME_H)
    p["game_w3"] = _init(ks[10], (D_GAME_OUT, D_GAME_OUT), D_GAME_OUT)
    p["game_b3"] = _init(ks[11], (D_GAME_OUT,), D_GAME_OUT)
    p["comb_w1"] = _init(ks[12], (G_FEAT + E_FEAT, H_COMB), G_FEAT + E_FEAT)
    p["comb_b1"] = _init(ks[13], (H_COMB,), G_FEAT + E_FEAT)
    p["comb_w2"] = _init(ks[14], (H_COMB, N_OUT), H_COMB)
    p["comb_b2"] = _init(ks[15], (N_OUT,), H_COMB)
    return p


def prepare_params(raw):
    """One-time transform to kernel-ready layout: NTC-permuted (31,200,50) bf16
    evl_w1, split + (50,128,100)-shaped bf16 comb_w1_g, bf16 game weights,
    (1, N) biases."""
    bf16 = jnp.bfloat16
    p = {}
    p["conv_w"] = raw["conv_w"]                                     # (20, 200) f32
    p["conv_b"] = raw["conv_b"].reshape(1, C_CONV)
    # evl_w1: torch flatten row c*T + t  ->  [t, c, :]  (NTC order, 200-row blocks).
    w1 = raw["evl_w1"].reshape(C_CONV, T_CONV, E_FEAT)
    p["evl_w1"] = jnp.transpose(w1, (1, 0, 2)).astype(bf16)         # (31, 200, 50)
    p["evl_b1"] = raw["evl_b1"].reshape(1, E_FEAT)
    p["evl_w2"] = raw["evl_w2"]
    p["evl_b2"] = raw["evl_b2"].reshape(1, E_FEAT)
    p["game_w1"] = raw["game_w1"].astype(bf16)
    p["game_b1"] = raw["game_b1"].reshape(1, D_GAME_H)
    p["game_w2"] = raw["game_w2"].astype(bf16)
    p["game_b2"] = raw["game_b2"].reshape(1, D_GAME_OUT)
    p["game_w3"] = raw["game_w3"].astype(bf16)
    p["game_b3"] = raw["game_b3"].reshape(1, D_GAME_OUT)
    # comb_w1: split to fold the concat (torch.cat puts g first, then e); g-block
    # reshaped so cwg[s] == comb_w1[s*128:(s+1)*128, :]  (g's flatten index s*128+d).
    p["comb_w1_g"] = raw["comb_w1"][:G_FEAT].reshape(
        S_GAME, D_GAME_OUT, H_COMB).astype(bf16)                    # (50, 128, 100)
    p["comb_w1_e"] = raw["comb_w1"][G_FEAT:]                        # (50, 100) f32
    p["comb_b1"] = raw["comb_b1"].reshape(1, H_COMB)
    p["comb_w2"] = raw["comb_w2"]
    p["comb_b2"] = raw["comb_b2"].reshape(1, N_OUT)
    return p


# ------------------------- pure-JAX f32 reference ---------------------------


def reference_forward(raw, input1, input2):
    B = input1.shape[0]
    x1 = input1[:, 0, :]
    cols = jnp.stack([x1[:, k:k + T_CONV] for k in range(K_CONV)], axis=-1)  # (B,T,K)
    conv = jnp.einsum("btk,kc->btc", cols, raw["conv_w"]) + raw["conv_b"]
    conv = jnp.maximum(conv, 0.0)                                            # (B,T,C)
    conv_flat = jnp.transpose(conv, (0, 2, 1)).reshape(B, -1)                # torch order
    e = jnp.maximum(conv_flat @ raw["evl_w1"] + raw["evl_b1"], 0.0)
    e = jnp.maximum(e @ raw["evl_w2"] + raw["evl_b2"], 0.0)
    g = jnp.maximum(input2 @ raw["game_w1"] + raw["game_b1"], 0.0)
    g = jnp.maximum(g @ raw["game_w2"] + raw["game_b2"], 0.0)
    g = jnp.maximum(g @ raw["game_w3"] + raw["game_b3"], 0.0)                # (B,S,128)
    combined = jnp.concatenate([g.reshape(B, -1), e], axis=1)                # (B,6450)
    h = jnp.maximum(combined @ raw["comb_w1"] + raw["comb_b1"], 0.0)
    return h @ raw["comb_w2"] + raw["comb_b2"]


# ---------------------------------- main ------------------------------------


if __name__ == "__main__":
    key = jax.random.PRNGKey(0)
    kp, k1, k2 = jax.random.split(key, 3)
    raw_params = init_raw_params(kp)
    params = prepare_params(raw_params)

    B = 2
    # Shapes pinned by the module: Linear(6200) forces conv input length 50;
    # Linear(6450) forces input2 = (B, 50, 64) so that 50*128 + 50 = 6450.
    input1 = jax.random.normal(k1, (B, 1, L_IN), jnp.float32)
    input2 = jax.random.normal(k2, (B, S_GAME, D_GAME_IN), jnp.float32)

    out = game_eval_input(params, input1, input2)
    jax.block_until_ready(out)
    assert out.shape == (B, N_OUT) and out.dtype == jnp.float32

    # Validate the fused/bf16 path against a full-f32 reference (loose tol for the
    # bf16-weight/activation matmuls with f32 accumulation).
    ref = reference_forward(raw_params, input1, input2)
    max_err = float(jnp.max(jnp.abs(out - ref)))
    assert max_err < 5e-2, f"mismatch vs f32 reference: max abs err {max_err}"

    print("KERNEL_OK")
</pallas_src>

<mosaic_0001>
module attributes {stable_mosaic.version = 11 : i64} {
  func.func @_fused_kernel(%arg0: memref<2x50xf32, #tpu.memory_space<vmem>>, %arg1: memref<100x64xf32, #tpu.memory_space<vmem>>, %arg2: memref<20x200xf32, #tpu.memory_space<vmem>>, %arg3: memref<1x200xf32, #tpu.memory_space<vmem>>, %arg4: memref<31x200x50xbf16, #tpu.memory_space<vmem>>, %arg5: memref<1x50xf32, #tpu.memory_space<vmem>>, %arg6: memref<50x50xf32, #tpu.memory_space<vmem>>, %arg7: memref<1x50xf32, #tpu.memory_space<vmem>>, %arg8: memref<64x512xbf16, #tpu.memory_space<vmem>>, %arg9: memref<1x512xf32, #tpu.memory_space<vmem>>, %arg10: memref<512x128xbf16, #tpu.memory_space<vmem>>, %arg11: memref<1x128xf32, #tpu.memory_space<vmem>>, %arg12: memref<128x128xbf16, #tpu.memory_space<vmem>>, %arg13: memref<1x128xf32, #tpu.memory_space<vmem>>, %arg14: memref<50x128x100xbf16, #tpu.memory_space<vmem>>, %arg15: memref<50x100xf32, #tpu.memory_space<vmem>>, %arg16: memref<1x100xf32, #tpu.memory_space<vmem>>, %arg17: memref<100x2xf32, #tpu.memory_space<vmem>>, %arg18: memref<1x2xf32, #tpu.memory_space<vmem>>, %arg19: memref<2x2xf32, #tpu.memory_space<vmem>>) attributes {dimension_semantics = [], scalar_prefetch = 0 : i64, scratch_operands = 0 : i64, tpu.core_type = #tpu.core_type<tc>} {
    %c0 = arith.constant 0 : index
    %c0_0 = arith.constant 0 : index
    %0 = vector.load %arg0[%c0, %c0_0] : memref<2x50xf32, #tpu.memory_space<vmem>>, vector<2x50xf32>
    %c0_1 = arith.constant 0 : index
    %c0_2 = arith.constant 0 : index
    %1 = vector.load %arg2[%c0_1, %c0_2] : memref<20x200xf32, #tpu.memory_space<vmem>>, vector<20x200xf32>
    %c0_3 = arith.constant 0 : index
    %c0_4 = arith.constant 0 : index
    %2 = vector.load %arg3[%c0_3, %c0_4] : memref<1x200xf32, #tpu.memory_space<vmem>>, vector<1x200xf32>
    %cst = arith.constant 0.000000e+00 : f32
    %3 = vector.broadcast %cst : f32 to vector<2x50xf32>
    %4 = vector.extract_strided_slice %0 {offsets = [0, 0], sizes = [2, 20], strides = [1, 1]} : vector<2x50xf32> to vector<2x20xf32>
    %cst_5 = arith.constant dense<0.000000e+00> : vector<2x200xf32>
    %5 = tpu.matmul %4, %1, %cst_5 {dimension_numbers = #tpu.dot_dimension_numbers<[1], [0], [0], [1], [0, 0, 1, 1], [], []>} : vector<2x20xf32>, vector<20x200xf32>, vector<2x200xf32> -> vector<2x200xf32>
    %6 = vector.broadcast %2 : vector<1x200xf32> to vector<2x200xf32>
    %7 = arith.addf %5, %6 : vector<2x200xf32>
    %cst_6 = arith.constant 0.000000e+00 : f32
    %8 = vector.broadcast %cst_6 : f32 to vector<2x200xf32>
    %9 = arith.maximumf %7, %8 : vector<2x200xf32>
    %10 = arith.truncf %9 : vector<2x200xf32> to vector<2x200xbf16>
    %c0_7 = arith.constant 0 : index
    %c0_8 = arith.constant 0 : index
    %c0_9 = arith.constant 0 : index
    %11 = vector.load %arg4[%c0_7, %c0_8, %c0_9] : memref<31x200x50xbf16, #tpu.memory_space<vmem>>, vector<1x200x50xbf16>
    %12 = vector.shape_cast %11 : vector<1x200x50xbf16> to vector<200x50xbf16>
    %cst_10 = arith.constant dense<0.000000e+00> : vector<2x50xf32>
    %13 = tpu.matmul %10, %12, %cst_10 {dimension_numbers = #tpu.dot_dimension_numbers<[1], [0], [0], [1], [0, 0, 1, 1], [], []>} : vector<2x200xbf16>, vector<200x50xbf16>, vector<2x50xf32> -> vector<2x50xf32>
    %14 = arith.addf %3, %13 : vector<2x50xf32>
    %15 = vector.extract_strided_slice %0 {offsets = [0, 1], sizes = [2, 20], strides = [1, 1]} : vector<2x50xf32> to vector<2x20xf32>
    %cst_11 = arith.constant dense<0.000000e+00> : vector<2x200xf32>
    %16 = tpu.matmul %15, %1, %cst_11 {dimension_numbers = #tpu.dot_dimension_numbers<[1], [0], [0], [1], [0, 0, 1, 1], [], []>} : vector<2x20xf32>, vector<20x200xf32>, vector<2x200xf32> -> vector<2x200xf32>
    %17 = vector.broadcast %2 : vector<1x200xf32> to vector<2x200xf32>
    %18 = arith.addf %16, %17 : vector<2x200xf32>
    %cst_12 = arith.constant 0.000000e+00 : f32
    %19 = vector.broadcast %cst_12 : f32 to vector<2x200xf32>
    %20 = arith.maximumf %18, %19 : vector<2x200xf32>
    %21 = arith.truncf %20 : vector<2x200xf32> to vector<2x200xbf16>
    %c1 = arith.constant 1 : index
    %c0_13 = arith.constant 0 : index
    %c0_14 = arith.constant 0 : index
    %22 = vector.load %arg4[%c1, %c0_13, %c0_14] : memref<31x200x50xbf16, #tpu.memory_space<vmem>>, vector<1x200x50xbf16>
    %23 = vector.shape_cast %22 : vector<1x200x50xbf16> to vector<200x50xbf16>
    %cst_15 = arith.constant dense<0.000000e+00> : vector<2x50xf32>
    %24 = tpu.matmul %21, %23, %cst_15 {dimension_numbers = #tpu.dot_dimension_numbers<[1], [0], [0], [1], [0, 0, 1, 1], [], []>} : vector<2x200xbf16>, vector<200x50xbf16>, vector<2x50xf32> -> vector<2x50xf32>
    %25 = arith.addf %14, %24 : vector<2x50xf32>
    %26 = vector.extract_strided_slice %0 {offsets = [0, 2], sizes = [2, 20], strides = [1, 1]} : vector<2x50xf32> to vector<2x20xf32>
    %cst_16 = arith.constant dense<0.000000e+00> : vector<2x200xf32>
    %27 = tpu.matmul %26, %1, %cst_16 {dimension_numbers = #tpu.dot_dimension_numbers<[1], [0], [0], [1], [0, 0, 1, 1], [], []>} : vector<2x20xf32>, vector<20x200xf32>, vector<2x200xf32> -> vector<2x200xf32>
    %28 = vector.broadcast %2 : vector<1x200xf32> to vector<2x200xf32>
    %29 = arith.addf %27, %28 : vector<2x200xf32>
    %cst_17 = arith.constant 0.000000e+00 : f32
    %30 = vector.broadcast %cst_17 : f32 to vector<2x200xf32>
    %31 = arith.maximumf %29, %30 : vector<2x200xf32>
    %32 = arith.truncf %31 : vector<2x200xf32> to vector<2x200xbf16>
    %c2 = arith.constant 2 : index
    %c0_18 = arith.constant 0 : index
    %c0_19 = arith.constant 0 : index
    %33 = vector.load %arg4[%c2, %c0_18, %c0_19] : memref<31x200x50xbf16, #tpu.memory_space<vmem>>, vector<1x200x50xbf16>
    %34 = vector.shape_cast %33 : vector<1x200x50xbf16> to vector<200x50xbf16>
    %cst_20 = arith.constant dense<0.000000e+00> : vector<2x50xf32>
    %35 = tpu.matmul %32, %34, %cst_20 {dimension_numbers = #tpu.dot_dimension_numbers<[1], [0], [0], [1], [0, 0, 1, 1], [], []>} : vector<2x200xbf16>, vector<200x50xbf16>, vector<2x50xf32> -> vector<2x50xf32>
    %36 = arith.addf %25, %35 : vector<2x50xf32>
    %37 = vector.extract_strided_slice %0 {offsets = [0, 3], sizes = [2, 20], strides = [1, 1]} : vector<2x50xf32> to vector<2x20xf32>
    %cst_21 = arith.constant dense<0.000000e+00> : vector<2x200xf32>
    %38 = tpu.matmul %37, %1, %cst_21 {dimension_numbers = #tpu.dot_dimension_numbers<[1], [0], [0], [1], [0, 0, 1, 1], [], []>} : vector<2x20xf32>, vector<20x200xf32>, vector<2x200xf32> -> vector<2x200xf32>
    %39 = vector.broadcast %2 : vector<1x200xf32> to vector<2x200xf32>
    %40 = arith.addf %38, %39 : vector<2x200xf32>
    %cst_22 = arith.constant 0.000000e+00 : f32
    %41 = vector.broadcast %cst_22 : f32 to vector<2x200xf32>
    %42 = arith.maximumf %40, %41 : vector<2x200xf32>
    %43 = arith.truncf %42 : vector<2x200xf32> to vector<2x200xbf16>
    %c3 = arith.constant 3 : index
    %c0_23 = arith.constant 0 : index
    %c0_24 = arith.constant 0 : index
    %44 = vector.load %arg4[%c3, %c0_23, %c0_24] : memref<31x200x50xbf16, #tpu.memory_space<vmem>>, vector<1x200x50xbf16>
    %45 = vector.shape_cast %44 : vector<1x200x50xbf16> to vector<200x50xbf16>
    %cst_25 = arith.constant dense<0.000000e+00> : vector<2x50xf32>
    %46 = tpu.matmul %43, %45, %cst_25 {dimension_numbers = #tpu.dot_dimension_numbers<[1], [0], [0], [1], [0, 0, 1, 1], [], []>} : vector<2x200xbf16>, vector<200x50xbf16>, vector<2x50xf32> -> vector<2x50xf32>
    %47 = arith.addf %36, %46 : vector<2x50xf32>
    %48 = vector.extract_strided_slice %0 {offsets = [0, 4], sizes = [2, 20], strides = [1, 1]} : vector<2x50xf32> to vector<2x20xf32>
    %cst_26 = arith.constant dense<0.000000e+00> : vector<2x200xf32>
    %49 = tpu.matmul %48, %1, %cst_26 {dimension_numbers = #tpu.dot_dimension_numbers<[1], [0], [0], [1], [0, 0, 1, 1], [], []>} : vector<2x20xf32>, vector<20x200xf32>, vector<2x200xf32> -> vector<2x200xf32>
    %50 = vector.broadcast %2 : vector<1x200xf32> to vector<2x200xf32>
    %51 = arith.addf %49, %50 : vector<2x200xf32>
    %cst_27 = arith.constant 0.000000e+00 : f32
    %52 = vector.broadcast %cst_27 : f32 to vector<2x200xf32>
    %53 = arith.maximumf %51, %52 : vector<2x200xf32>
    %54 = arith.truncf %53 : vector<2x200xf32> to vector<2x200xbf16>
    %c4 = arith.constant 4 : index
    %c0_28 = arith.constant 0 : index
    %c0_29 = arith.constant 0 : index
    %55 = vector.load %arg4[%c4, %c0_28, %c0_29] : memref<31x200x50xbf16, #tpu.memory_space<vmem>>, vector<1x200x50xbf16>
    %56 = vector.shape_cast %55 : vector<1x200x50xbf16> to vector<200x50xbf16>
    %cst_30 = arith.constant dense<0.000000e+00> : vector<2x50xf32>
    %57 = tpu.matmul %54, %56, %cst_30 {dimension_numbers = #tpu.dot_dimension_numbers<[1], [0], [0], [1], [0, 0, 1, 1], [], []>} : vector<2x200xbf16>, vector<200x50xbf16>, vector<2x50xf32> -> vector<2x50xf32>
    %58 = arith.addf %47, %57 : vector<2x50xf32>
    %59 = vector.extract_strided_slice %0 {offsets = [0, 5], sizes = [2, 20], strides = [1, 1]} : vector<2x50xf32> to vector<2x20xf32>
    %cst_31 = arith.constant dense<0.000000e+00> : vector<2x200xf32>
    %60 = tpu.matmul %59, %1, %cst_31 {dimension_numbers = #tpu.dot_dimension_numbers<[1], [0], [0], [1], [0, 0, 1, 1], [], []>} : vector<2x20xf32>, vector<20x200xf32>, vector<2x200xf32> -> vector<2x200xf32>
    %61 = vector.broadcast %2 : vector<1x200xf32> to vector<2x200xf32>
    %62 = arith.addf %60, %61 : vector<2x200xf32>
    %cst_32 = arith.constant 0.000000e+00 : f32
    %63 = vector.broadcast %cst_32 : f32 to vector<2x200xf32>
    %64 = arith.maximumf %62, %63 : vector<2x200xf32>
    %65 = arith.truncf %64 : vector<2x200xf32> to vector<2x200xbf16>
    %c5 = arith.constant 5 : index
    %c0_33 = arith.constant 0 : index
    %c0_34 = arith.constant 0 : index
    %66 = vector.load %arg4[%c5, %c0_33, %c0_34] : memref<31x200x50xbf16, #tpu.memory_space<vmem>>, vector<1x200x50xbf16>
    %67 = vector.shape_cast %66 : vector<1x200x50xbf16> to vector<200x50xbf16>
    %cst_35 = arith.constant dense<0.000000e+00> : vector<2x50xf32>
    %68 = tpu.matmul %65, %67, %cst_35 {dimension_numbers = #tpu.dot_dimension_numbers<[1], [0], [0], [1], [0, 0, 1, 1], [], []>} : vector<2x200xbf16>, vector<200x50xbf16>, vector<2x50xf32> -> vector<2x50xf32>
    %69 = arith.addf %58, %68 : vector<2x50xf32>
    %70 = vector.extract_strided_slice %0 {offsets = [0, 6], sizes = [2, 20], strides = [1, 1]} : vector<2x50xf32> to vector<2x20xf32>
    %cst_36 = arith.constant dense<0.000000e+00> : vector<2x200xf32>
    %71 = tpu.matmul %70, %1, %cst_36 {dimension_numbers = #tpu.dot_dimension_numbers<[1], [0], [0], [1], [0, 0, 1, 1], [], []>} : vector<2x20xf32>, vector<20x200xf32>, vector<2x200xf32> -> vector<2x200xf32>
    %72 = vector.broadcast %2 : vector<1x200xf32> to vector<2x200xf32>
    %73 = arith.addf %71, %72 : vector<2x200xf32>
    %cst_37 = arith.constant 0.000000e+00 : f32
    %74 = vector.broadcast %cst_37 : f32 to vector<2x200xf32>
    %75 = arith.maximumf %73, %74 : vector<2x200xf32>
    %76 = arith.truncf %75 : vector<2x200xf32> to vector<2x200xbf16>
    %c6 = arith.constant 6 : index
    %c0_38 = arith.constant 0 : index
    %c0_39 = arith.constant 0 : index
    %77 = vector.load %arg4[%c6, %c0_38, %c0_39] : memref<31x200x50xbf16, #tpu.memory_space<vmem>>, vector<1x200x50xbf16>
    %78 = vector.shape_cast %77 : vector<1x200x50xbf16> to vector<200x50xbf16>
    %cst_40 = arith.constant dense<0.000000e+00> : vector<2x50xf32>
    %79 = tpu.matmul %76, %78, %cst_40 {dimension_numbers = #tpu.dot_dimension_numbers<[1], [0], [0], [1], [0, 0, 1, 1], [], []>} : vector<2x200xbf16>, vector<200x50xbf16>, vector<2x50xf32> -> vector<2x50xf32>
    %80 = arith.addf %69, %79 : vector<2x50xf32>
    %81 = vector.extract_strided_slice %0 {offsets = [0, 7], sizes = [2, 20], strides = [1, 1]} : vector<2x50xf32> to vector<2x20xf32>
    %cst_41 = arith.constant dense<0.000000e+00> : vector<2x200xf32>
    %82 = tpu.matmul %81, %1, %cst_41 {dimension_numbers = #tpu.dot_dimension_numbers<[1], [0], [0], [1], [0, 0, 1, 1], [], []>} : vector<2x20xf32>, vector<20x200xf32>, vector<2x200xf32> -> vector<2x200xf32>
    %83 = vector.broadcast %2 : vector<1x200xf32> to vector<2x200xf32>
    %84 = arith.addf %82, %83 : vector<2x200xf32>
    %cst_42 = arith.constant 0.000000e+00 : f32
    %85 = vector.broadcast %cst_42 : f32 to vector<2x200xf32>
    %86 = arith.maximumf %84, %85 : vector<2x200xf32>
    %87 = arith.truncf %86 : vector<2x200xf32> to vector<2x200xbf16>
    %c7 = arith.constant 7 : index
    %c0_43 = arith.constant 0 : index
    %c0_44 = arith.constant 0 : index
    %88 = vector.load %arg4[%c7, %c0_43, %c0_44] : memref<31x200x50xbf16, #tpu.memory_space<vmem>>, vector<1x200x50xbf16>
    %89 = vector.shape_cast %88 : vector<1x200x50xbf16> to vector<200x50xbf16>
    %cst_45 = arith.constant dense<0.000000e+00> : vector<2x50xf32>
    %90 = tpu.matmul %87, %89, %cst_45 {dimension_numbers = #tpu.dot_dimension_numbers<[1], [0], [0], [1], [0, 0, 1, 1], [], []>} : vector<2x200xbf16>, vector<200x50xbf16>, vector<2x50xf32> -> vector<2x50xf32>
    %91 = arith.addf %80, %90 : vector<2x50xf32>
    %92 = vector.extract_strided_slice %0 {offsets = [0, 8], sizes = [2, 20], strides = [1, 1]} : vector<2x50xf32> to vector<2x20xf32>
    %cst_46 = arith.constant dense<0.000000e+00> : vector<2x200xf32>
    %93 = tpu.matmul %92, %1, %cst_46 {dimension_numbers = #tpu.dot_dimension_numbers<[1], [0], [0], [1], [0, 0, 1, 1], [], []>} : vector<2x20xf32>, vector<20x200xf32>, vector<2x200xf32> -> vector<2x200xf32>
    %94 = vector.broadcast %2 : vector<1x200xf32> to vector<2x200xf32>
    %95 = arith.addf %93, %94 : vector<2x200xf32>
    %cst_47 = arith.constant 0.000000e+00 : f32
    %96 = vector.broadcast %cst_47 : f32 to vector<2x200xf32>
    %97 = arith.maximumf %95, %96 : vector<2x200xf32>
    %98 = arith.truncf %97 : vector<2x200xf32> to vector<2x200xbf16>
    %c8 = arith.constant 8 : index
    %c0_48 = arith.constant 0 : index
    %c0_49 = arith.constant 0 : index
    %99 = vector.load %arg4[%c8, %c0_48, %c0_49] : memref<31x200x50xbf16, #tpu.memory_space<vmem>>, vector<1x200x50xbf16>
    %100 = vector.shape_cast %99 : vector<1x200x50xbf16> to vector<200x50xbf16>
    %cst_50 = arith.constant dense<0.000000e+00> : vector<2x50xf32>
    %101 = tpu.matmul %98, %100, %cst_50 {dimension_numbers = #tpu.dot_dimension_numbers<[1], [0], [0], [1], [0, 0, 1, 1], [], []>} : vector<2x200xbf16>, vector<200x50xbf16>, vector<2x50xf32> -> vector<2x50xf32>
    %102 = arith.addf %91, %101 : vector<2x50xf32>
    %103 = vector.extract_strided_slice %0 {offsets = [0, 9], sizes = [2, 20], strides = [1, 1]} : vector<2x50xf32> to vector<2x20xf32>
    %cst_51 = arith.constant dense<0.000000e+00> : vector<2x200xf32>
    %104 = tpu.matmul %103, %1, %cst_51 {dimension_numbers = #tpu.dot_dimension_numbers<[1], [0], [0], [1], [0, 0, 1, 1], [], []>} : vector<2x20xf32>, vector<20x200xf32>, vector<2x200xf32> -> vector<2x200xf32>
    %105 = vector.broadcast %2 : vector<1x200xf32> to vector<2x200xf32>
    %106 = arith.addf %104, %105 : vector<2x200xf32>
    %cst_52 = arith.constant 0.000000e+00 : f32
    %107 = vector.broadcast %cst_52 : f32 to vector<2x200xf32>
    %108 = arith.maximumf %106, %107 : vector<2x200xf32>
    %109 = arith.truncf %108 : vector<2x200xf32> to vector<2x200xbf16>
    %c9 = arith.constant 9 : index
    %c0_53 = arith.constant 0 : index
    %c0_54 = arith.constant 0 : index
    %110 = vector.load %arg4[%c9, %c0_53, %c0_54] : memref<31x200x50xbf16, #tpu.memory_space<vmem>>, vector<1x200x50xbf16>
    %111 = vector.shape_cast %110 : vector<1x200x50xbf16> to vector<200x50xbf16>
    %cst_55 = arith.constant dense<0.000000e+00> : vector<2x50xf32>
    %112 = tpu.matmul %109, %111, %cst_55 {dimension_numbers = #tpu.dot_dimension_numbers<[1], [0], [0], [1], [0, 0, 1, 1], [], []>} : vector<2x200xbf16>, vector<200x50xbf16>, vector<2x50xf32> -> vector<2x50xf32>
    %113 = arith.addf %102, %112 : vector<2x50xf32>
    %114 = vector.extract_strided_slice %0 {offsets = [0, 10], sizes = [2, 20], strides = [1, 1]} : vector<2x50xf32> to vector<2x20xf32>
    %cst_56 = arith.constant dense<0.000000e+00> : vector<2x200xf32>
    %115 = tpu.matmul %114, %1, %cst_56 {dimension_numbers = #tpu.dot_dimension_numbers<[1], [0], [0], [1], [0, 0, 1, 1], [], []>} : vector<2x20xf32>, vector<20x200xf32>, vector<2x200xf32> -> vector<2x200xf32>
    %116 = vector.broadcast %2 : vector<1x200xf32> to vector<2x200xf32>
    %117 = arith.addf %115, %116 : vector<2x200xf32>
    %cst_57 = arith.constant 0.000000e+00 : f32
    %118 = vector.broadcast %cst_57 : f32 to vector<2x200xf32>
    %119 = arith.maximumf %117, %118 : vector<2x200xf32>
    %120 = arith.truncf %119 : vector<2x200xf32> to vector<2x200xbf16>
    %c10 = arith.constant 10 : index
    %c0_58 = arith.constant 0 : index
    %c0_59 = arith.constant 0 : index
    %121 = vector.load %arg4[%c10, %c0_58, %c0_59] : memref<31x200x50xbf16, #tpu.memory_space<vmem>>, vector<1x200x50xbf16>
    %122 = vector.shape_cast %121 : vector<1x200x50xbf16> to vector<200x50xbf16>
    %cst_60 = arith.constant dense<0.000000e+00> : vector<2x50xf32>
    %123 = tpu.matmul %120, %122, %cst_60 {dimension_numbers = #tpu.dot_dimension_numbers<[1], [0], [0], [1], [0, 0, 1, 1], [], []>} : vector<2x200xbf16>, vector<200x50xbf16>, vector<2x50xf32> -> vector<2x50xf32>
    %124 = arith.addf %113, %123 : vector<2x50xf32>
    %125 = vector.extract_strided_slice %0 {offsets = [0, 11], sizes = [2, 20], strides = [1, 1]} : vector<2x50xf32> to vector<2x20xf32>
    %cst_61 = arith.constant dense<0.000000e+00> : vector<2x200xf32>
    %126 = tpu.matmul %125, %1, %cst_61 {dimension_numbers = #tpu.dot_dimension_numbers<[1], [0], [0], [1], [0, 0, 1, 1], [], []>} : vector<2x20xf32>, vector<20x200xf32>, vector<2x200xf32> -> vector<2x200xf32>
    %127 = vector.broadcast %2 : vector<1x200xf32> to vector<2x200xf32>
    %128 = arith.addf %126, %127 : vector<2x200xf32>
    %cst_62 = arith.constant 0.000000e+00 : f32
    %129 = vector.broadcast %cst_62 : f32 to vector<2x200xf32>
    %130 = arith.maximumf %128, %129 : vector<2x200xf32>
    %131 = arith.truncf %130 : vector<2x200xf32> to vector<2x200xbf16>
    %c11 = arith.constant 11 : index
    %c0_63 = arith.constant 0 : index
    %c0_64 = arith.constant 0 : index
    %132 = vector.load %arg4[%c11, %c0_63, %c0_64] : memref<31x200x50xbf16, #tpu.memory_space<vmem>>, vector<1x200x50xbf16>
    %133 = vector.shape_cast %132 : vector<1x200x50xbf16> to vector<200x50xbf16>
    %cst_65 = arith.constant dense<0.000000e+00> : vector<2x50xf32>
    %134 = tpu.matmul %131, %133, %cst_65 {dimension_numbers = #tpu.dot_dimension_numbers<[1], [0], [0], [1], [0, 0, 1, 1], [], []>} : vector<2x200xbf16>, vector<200x50xbf16>, vector<2x50xf32> -> vector<2x50xf32>
    %135 = arith.addf %124, %134 : vector<2x50xf32>
    %136 = vector.extract_strided_slice %0 {offsets = [0, 12], sizes = [2, 20], strides = [1, 1]} : vector<2x50xf32> to vector<2x20xf32>
    %cst_66 = arith.constant dense<0.000000e+00> : vector<2x200xf32>
    %137 = tpu.matmul %136, %1, %cst_66 {dimension_numbers = #tpu.dot_dimension_numbers<[1], [0], [0], [1], [0, 0, 1, 1], [], []>} : vector<2x20xf32>, vector<20x200xf32>, vector<2x200xf32> -> vector<2x200xf32>
    %138 = vector.broadcast %2 : vector<1x200xf32> to vector<2x200xf32>
    %139 = arith.addf %137, %138 : vector<2x200xf32>
    %cst_67 = arith.constant 0.000000e+00 : f32
    %140 = vector.broadcast %cst_67 : f32 to vector<2x200xf32>
    %141 = arith.maximumf %139, %140 : vector<2x200xf32>
    %142 = arith.truncf %141 : vector<2x200xf32> to vector<2x200xbf16>
    %c12 = arith.constant 12 : index
    %c0_68 = arith.constant 0 : index
    %c0_69 = arith.constant 0 : index
    %143 = vector.load %arg4[%c12, %c0_68, %c0_69] : memref<31x200x50xbf16, #tpu.memory_space<vmem>>, vector<1x200x50xbf16>
    %144 = vector.shape_cast %143 : vector<1x200x50xbf16> to vector<200x50xbf16>
    %cst_70 = arith.constant dense<0.000000e+00> : vector<2x50xf32>
    %145 = tpu.matmul %142, %144, %cst_70 {dimension_numbers = #tpu.dot_dimension_numbers<[1], [0], [0], [1], [0, 0, 1, 1], [], []>} : vector<2x200xbf16>, vector<200x50xbf16>, vector<2x50xf32> -> vector<2x50xf32>
    %146 = arith.addf %135, %145 : vector<2x50xf32>
    %147 = vector.extract_strided_slice %0 {offsets = [0, 13], sizes = [2, 20], strides = [1, 1]} : vector<2x50xf32> to vector<2x20xf32>
    %cst_71 = arith.constant dense<0.000000e+00> : vector<2x200xf32>
    %148 = tpu.matmul %147, %1, %cst_71 {dimension_numbers = #tpu.dot_dimension_numbers<[1], [0], [0], [1], [0, 0, 1, 1], [], []>} : vector<2x20xf32>, vector<20x200xf32>, vector<2x200xf32> -> vector<2x200xf32>
    %149 = vector.broadcast %2 : vector<1x200xf32> to vector<2x200xf32>
    %150 = arith.addf %148, %149 : vector<2x200xf32>
    %cst_72 = arith.constant 0.000000e+00 : f32
    %151 = vector.broadcast %cst_72 : f32 to vector<2x200xf32>
    %152 = arith.maximumf %150, %151 : vector<2x200xf32>
    %153 = arith.truncf %152 : vector<2x200xf32> to vector<2x200xbf16>
    %c13 = arith.constant 13 : index
    %c0_73 = arith.constant 0 : index
    %c0_74 = arith.constant 0 : index
    %154 = vector.load %arg4[%c13, %c0_73, %c0_74] : memref<31x200x50xbf16, #tpu.memory_space<vmem>>, vector<1x200x50xbf16>
    %155 = vector.shape_cast %154 : vector<1x200x50xbf16> to vector<200x50xbf16>
    %cst_75 = arith.constant dense<0.000000e+00> : vector<2x50xf32>
    %156 = tpu.matmul %153, %155, %cst_75 {dimension_numbers = #tpu.dot_dimension_numbers<[1], [0], [0], [1], [0, 0, 1, 1], [], []>} : vector<2x200xbf16>, vector<200x50xbf16>, vector<2x50xf32> -> vector<2x50xf32>
    %157 = arith.addf %146, %156 : vector<2x50xf32>
    %158 = vector.extract_strided_slice %0 {offsets = [0, 14], sizes = [2, 20], strides = [1, 1]} : vector<2x50xf32> to vector<2x20xf32>
    %cst_76 = arith.constant dense<0.000000e+00> : vector<2x200xf32>
    %159 = tpu.matmul %158, %1, %cst_76 {dimension_numbers = #tpu.dot_dimension_numbers<[1], [0], [0], [1], [0, 0, 1, 1], [], []>} : vector<2x20xf32>, vector<20x200xf32>, vector<2x200xf32> -> vector<2x200xf32>
    %160 = vector.broadcast %2 : vector<1x200xf32> to vector<2x200xf32>
    %161 = arith.addf %159, %160 : vector<2x200xf32>
    %cst_77 = arith.constant 0.000000e+00 : f32
    %162 = vector.broadcast %cst_77 : f32 to vector<2x200xf32>
    %163 = arith.maximumf %161, %162 : vector<2x200xf32>
    %164 = arith.truncf %163 : vector<2x200xf32> to vector<2x200xbf16>
    %c14 = arith.constant 14 : index
    %c0_78 = arith.constant 0 : index
    %c0_79 = arith.constant 0 : index
    %165 = vector.load %arg4[%c14, %c0_78, %c0_79] : memref<31x200x50xbf16, #tpu.memory_space<vmem>>, vector<1x200x50xbf16>
    %166 = vector.shape_cast %165 : vector<1x200x50xbf16> to vector<200x50xbf16>
    %cst_80 = arith.constant dense<0.000000e+00> : vector<2x50xf32>
    %167 = tpu.matmul %164, %166, %cst_80 {dimension_numbers = #tpu.dot_dimension_numbers<[1], [0], [0], [1], [0, 0, 1, 1], [], []>} : vector<2x200xbf16>, vector<200x50xbf16>, vector<2x50xf32> -> vector<2x50xf32>
    %168 = arith.addf %157, %167 : vector<2x50xf32>
    %169 = vector.extract_strided_slice %0 {offsets = [0, 15], sizes = [2, 20], strides = [1, 1]} : vector<2x50xf32> to vector<2x20xf32>
    %cst_81 = arith.constant dense<0.000000e+00> : vector<2x200xf32>
    %170 = tpu.matmul %169, %1, %cst_81 {dimension_numbers = #tpu.dot_dimension_numbers<[1], [0], [0], [1], [0, 0, 1, 1], [], []>} : vector<2x20xf32>, vector<20x200xf32>, vector<2x200xf32> -> vector<2x200xf32>
    %171 = vector.broadcast %2 : vector<1x200xf32> to vector<2x200xf32>
    %172 = arith.addf %170, %171 : vector<2x200xf32>
    %cst_82 = arith.constant 0.000000e+00 : f32
    %173 = vector.broadcast %cst_82 : f32 to vector<2x200xf32>
    %174 = arith.maximumf %172, %173 : vector<2x200xf32>
    %175 = arith.truncf %174 : vector<2x200xf32> to vector<2x200xbf16>
    %c15 = arith.constant 15 : index
    %c0_83 = arith.constant 0 : index
    %c0_84 = arith.constant 0 : index
    %176 = vector.load %arg4[%c15, %c0_83, %c0_84] : memref<31x200x50xbf16, #tpu.memory_space<vmem>>, vector<1x200x50xbf16>
    %177 = vector.shape_cast %176 : vector<1x200x50xbf16> to vector<200x50xbf16>
    %cst_85 = arith.constant dense<0.000000e+00> : vector<2x50xf32>
    %178 = tpu.matmul %175, %177, %cst_85 {dimension_numbers = #tpu.dot_dimension_numbers<[1], [0], [0], [1], [0, 0, 1, 1], [], []>} : vector<2x200xbf16>, vector<200x50xbf16>, vector<2x50xf32> -> vector<2x50xf32>
    %179 = arith.addf %168, %178 : vector<2x50xf32>
    %180 = vector.extract_strided_slice %0 {offsets = [0, 16], sizes = [2, 20], strides = [1, 1]} : vector<2x50xf32> to vector<2x20xf32>
    %cst_86 = arith.constant dense<0.000000e+00> : vector<2x200xf32>
    %181 = tpu.matmul %180, %1, %cst_86 {dimension_numbers = #tpu.dot_dimension_numbers<[1], [0], [0], [1], [0, 0, 1, 1], [], []>} : vector<2x20xf32>, vector<20x200xf32>, vector<2x200xf32> -> vector<2x200xf32>
    %182 = vector.broadcast %2 : vector<1x200xf32> to vector<2x200xf32>
    %183 = arith.addf %181, %182 : vector<2x200xf32>
    %cst_87 = arith.constant 0.000000e+00 : f32
    %184 = vector.broadcast %cst_87 : f32 to vector<2x200xf32>
    %185 = arith.maximumf %183, %184 : vector<2x200xf32>
    %186 = arith.truncf %185 : vector<2x200xf32> to vector<2x200xbf16>
    %c16 = arith.constant 16 : index
    %c0_88 = arith.constant 0 : index
    %c0_89 = arith.constant 0 : index
    %187 = vector.load %arg4[%c16, %c0_88, %c0_89] : memref<31x200x50xbf16, #tpu.memory_space<vmem>>, vector<1x200x50xbf16>
    %188 = vector.shape_cast %187 : vector<1x200x50xbf16> to vector<200x50xbf16>
    %cst_90 = arith.constant dense<0.000000e+00> : vector<2x50xf32>
    %189 = tpu.matmul %186, %188, %cst_90 {dimension_numbers = #tpu.dot_dimension_numbers<[1], [0], [0], [1], [0, 0, 1, 1], [], []>} : vector<2x200xbf16>, vector<200x50xbf16>, vector<2x50xf32> -> vector<2x50xf32>
    %190 = arith.addf %179, %189 : vector<2x50xf32>
    %191 = vector.extract_strided_slice %0 {offsets = [0, 17], sizes = [2, 20], strides = [1, 1]} : vector<2x50xf32> to vector<2x20xf32>
    %cst_91 = arith.constant dense<0.000000e+00> : vector<2x200xf32>
    %192 = tpu.matmul %191, %1, %cst_91 {dimension_numbers = #tpu.dot_dimension_numbers<[1], [0], [0], [1], [0, 0, 1, 1], [], []>} : vector<2x20xf32>, vector<20x200xf32>, vector<2x200xf32> -> vector<2x200xf32>
    %193 = vector.broadcast %2 : vector<1x200xf32> to vector<2x200xf32>
    %194 = arith.addf %192, %193 : vector<2x200xf32>
    %cst_92 = arith.constant 0.000000e+00 : f32
    %195 = vector.broadcast %cst_92 : f32 to vector<2x200xf32>
    %196 = arith.maximumf %194, %195 : vector<2x200xf32>
    %197 = arith.truncf %196 : vector<2x200xf32> to vector<2x200xbf16>
    %c17 = arith.constant 17 : index
    %c0_93 = arith.constant 0 : index
    %c0_94 = arith.constant 0 : index
    %198 = vector.load %arg4[%c17, %c0_93, %c0_94] : memref<31x200x50xbf16, #tpu.memory_space<vmem>>, vector<1x200x50xbf16>
    %199 = vector.shape_cast %198 : vector<1x200x50xbf16> to vector<200x50xbf16>
    %cst_95 = arith.constant dense<0.000000e+00> : vector<2x50xf32>
    %200 = tpu.matmul %197, %199, %cst_95 {dimension_numbers = #tpu.dot_dimension_numbers<[1], [0], [0], [1], [0, 0, 1, 1], [], []>} : vector<2x200xbf16>, vector<200x50xbf16>, vector<2x50xf32> -> vector<2x50xf32>
    %201 = arith.addf %190, %200 : vector<2x50xf32>
    %202 = vector.extract_strided_slice %0 {offsets = [0, 18], sizes = [2, 20], strides = [1, 1]} : vector<2x50xf32> to vector<2x20xf32>
    %cst_96 = arith.constant dense<0.000000e+00> : vector<2x200xf32>
    %203 = tpu.matmul %202, %1, %cst_96 {dimension_numbers = #tpu.dot_dimension_numbers<[1], [0], [0], [1], [0, 0, 1, 1], [], []>} : vector<2x20xf32>, vector<20x200xf32>, vector<2x200xf32> -> vector<2x200xf32>
    %204 = vector.broadcast %2 : vector<1x200xf32> to vector<2x200xf32>
    %205 = arith.addf %203, %204 : vector<2x200xf32>
    %cst_97 = arith.constant 0.000000e+00 : f32
    %206 = vector.broadcast %cst_97 : f32 to vector<2x200xf32>
    %207 = arith.maximumf %205, %206 : vector<2x200xf32>
    %208 = arith.truncf %207 : vector<2x200xf32> to vector<2x200xbf16>
    %c18 = arith.constant 18 : index
    %c0_98 = arith.constant 0 : index
    %c0_99 = arith.constant 0 : index
    %209 = vector.load %arg4[%c18, %c0_98, %c0_99] : memref<31x200x50xbf16, #tpu.memory_space<vmem>>, vector<1x200x50xbf16>
    %210 = vector.shape_cast %209 : vector<1x200x50xbf16> to vector<200x50xbf16>
    %cst_100 = arith.constant dense<0.000000e+00> : vector<2x50xf32>
    %211 = tpu.matmul %208, %210, %cst_100 {dimension_numbers = #tpu.dot_dimension_numbers<[1], [0], [0], [1], [0, 0, 1, 1], [], []>} : vector<2x200xbf16>, vector<200x50xbf16>, vector<2x50xf32> -> vector<2x50xf32>
    %212 = arith.addf %201, %211 : vector<2x50xf32>
    %213 = vector.extract_strided_slice %0 {offsets = [0, 19], sizes = [2, 20], strides = [1, 1]} : vector<2x50xf32> to vector<2x20xf32>
    %cst_101 = arith.constant dense<0.000000e+00> : vector<2x200xf32>
    %214 = tpu.matmul %213, %1, %cst_101 {dimension_numbers = #tpu.dot_dimension_numbers<[1], [0], [0], [1], [0, 0, 1, 1], [], []>} : vector<2x20xf32>, vector<20x200xf32>, vector<2x200xf32> -> vector<2x200xf32>
    %215 = vector.broadcast %2 : vector<1x200xf32> to vector<2x200xf32>
    %216 = arith.addf %214, %215 : vector<2x200xf32>
    %cst_102 = arith.constant 0.000000e+00 : f32
    %217 = vector.broadcast %cst_102 : f32 to vector<2x200xf32>
    %218 = arith.maximumf %216, %217 : vector<2x200xf32>
    %219 = arith.truncf %218 : vector<2x200xf32> to vector<2x200xbf16>
    %c19 = arith.constant 19 : index
    %c0_103 = arith.constant 0 : index
    %c0_104 = arith.constant 0 : index
    %220 = vector.load %arg4[%c19, %c0_103, %c0_104] : memref<31x200x50xbf16, #tpu.memory_space<vmem>>, vector<1x200x50xbf16>
    %221 = vector.shape_cast %220 : vector<1x200x50xbf16> to vector<200x50xbf16>
    %cst_105 = arith.constant dense<0.000000e+00> : vector<2x50xf32>
    %222 = tpu.matmul %219, %221, %cst_105 {dimension_numbers = #tpu.dot_dimension_numbers<[1], [0], [0], [1], [0, 0, 1, 1], [], []>} : vector<2x200xbf16>, vector<200x50xbf16>, vector<2x50xf32> -> vector<2x50xf32>
    %223 = arith.addf %212, %222 : vector<2x50xf32>
    %224 = vector.extract_strided_slice %0 {offsets = [0, 20], sizes = [2, 20], strides = [1, 1]} : vector<2x50xf32> to vector<2x20xf32>
    %cst_106 = arith.constant dense<0.000000e+00> : vector<2x200xf32>
    %225 = tpu.matmul %224, %1, %cst_106 {dimension_numbers = #tpu.dot_dimension_numbers<[1], [0], [0], [1], [0, 0, 1, 1], [], []>} : vector<2x20xf32>, vector<20x200xf32>, vector<2x200xf32> -> vector<2x200xf32>
    %226 = vector.broadcast %2 : vector<1x200xf32> to vector<2x200xf32>
    %227 = arith.addf %225, %226 : vector<2x200xf32>
    %cst_107 = arith.constant 0.000000e+00 : f32
    %228 = vector.broadcast %cst_107 : f32 to vector<2x200xf32>
    %229 = arith.maximumf %227, %228 : vector<2x200xf32>
    %230 = arith.truncf %229 : vector<2x200xf32> to vector<2x200xbf16>
    %c20 = arith.constant 20 : index
    %c0_108 = arith.constant 0 : index
    %c0_109 = arith.constant 0 : index
    %231 = vector.load %arg4[%c20, %c0_108, %c0_109] : memref<31x200x50xbf16, #tpu.memory_space<vmem>>, vector<1x200x50xbf16>
    %232 = vector.shape_cast %231 : vector<1x200x50xbf16> to vector<200x50xbf16>
    %cst_110 = arith.constant dense<0.000000e+00> : vector<2x50xf32>
    %233 = tpu.matmul %230, %232, %cst_110 {dimension_numbers = #tpu.dot_dimension_numbers<[1], [0], [0], [1], [0, 0, 1, 1], [], []>} : vector<2x200xbf16>, vector<200x50xbf16>, vector<2x50xf32> -> vector<2x50xf32>
    %234 = arith.addf %223, %233 : vector<2x50xf32>
    %235 = vector.extract_strided_slice %0 {offsets = [0, 21], sizes = [2, 20], strides = [1, 1]} : vector<2x50xf32> to vector<2x20xf32>
    %cst_111 = arith.constant dense<0.000000e+00> : vector<2x200xf32>
    %236 = tpu.matmul %235, %1, %cst_111 {dimension_numbers = #tpu.dot_dimension_numbers<[1], [0], [0], [1], [0, 0, 1, 1], [], []>} : vector<2x20xf32>, vector<20x200xf32>, vector<2x200xf32> -> vector<2x200xf32>
    %237 = vector.broadcast %2 : vector<1x200xf32> to vector<2x200xf32>
    %238 = arith.addf %236, %237 : vector<2x200xf32>
    %cst_112 = arith.constant 0.000000e+00 : f32
    %239 = vector.broadcast %cst_112 : f32 to vector<2x200xf32>
    %240 = arith.maximumf %238, %239 : vector<2x200xf32>
    %241 = arith.truncf %240 : vector<2x200xf32> to vector<2x200xbf16>
    %c21 = arith.constant 21 : index
    %c0_113 = arith.constant 0 : index
    %c0_114 = arith.constant 0 : index
    %242 = vector.load %arg4[%c21, %c0_113, %c0_114] : memref<31x200x50xbf16, #tpu.memory_space<vmem>>, vector<1x200x50xbf16>
    %243 = vector.shape_cast %242 : vector<1x200x50xbf16> to vector<200x50xbf16>
    %cst_115 = arith.constant dense<0.000000e+00> : vector<2x50xf32>
    %244 = tpu.matmul %241, %243, %cst_115 {dimension_numbers = #tpu.dot_dimension_numbers<[1], [0], [0], [1], [0, 0, 1, 1], [], []>} : vector<2x200xbf16>, vector<200x50xbf16>, vector<2x50xf32> -> vector<2x50xf32>
    %245 = arith.addf %234, %244 : vector<2x50xf32>
    %246 = vector.extract_strided_slice %0 {offsets = [0, 22], sizes = [2, 20], strides = [1, 1]} : vector<2x50xf32> to vector<2x20xf32>
    %cst_116 = arith.constant dense<0.000000e+00> : vector<2x200xf32>
    %247 = tpu.matmul %246, %1, %cst_116 {dimension_numbers = #tpu.dot_dimension_numbers<[1], [0], [0], [1], [0, 0, 1, 1], [], []>} : vector<2x20xf32>, vector<20x200xf32>, vector<2x200xf32> -> vector<2x200xf32>
    %248 = vector.broadcast %2 : vector<1x200xf32> to vector<2x200xf32>
    %249 = arith.addf %247, %248 : vector<2x200xf32>
    %cst_117 = arith.constant 0.000000e+00 : f32
    %250 = vector.broadcast %cst_117 : f32 to vector<2x200xf32>
    %251 = arith.maximumf %249, %250 : vector<2x200xf32>
    %252 = arith.truncf %251 : vector<2x200xf32> to vector<2x200xbf16>
    %c22 = arith.constant 22 : index
    %c0_118 = arith.constant 0 : index
    %c0_119 = arith.constant 0 : index
    %253 = vector.load %arg4[%c22, %c0_118, %c0_119] : memref<31x200x50xbf16, #tpu.memory_space<vmem>>, vector<1x200x50xbf16>
    %254 = vector.shape_cast %253 : vector<1x200x50xbf16> to vector<200x50xbf16>
    %cst_120 = arith.constant dense<0.000000e+00> : vector<2x50xf32>
    %255 = tpu.matmul %252, %254, %cst_120 {dimension_numbers = #tpu.dot_dimension_numbers<[1], [0], [0], [1], [0, 0, 1, 1], [], []>} : vector<2x200xbf16>, vector<200x50xbf16>, vector<2x50xf32> -> vector<2x50xf32>
    %256 = arith.addf %245, %255 : vector<2x50xf32>
    %257 = vector.extract_strided_slice %0 {offsets = [0, 23], sizes = [2, 20], strides = [1, 1]} : vector<2x50xf32> to vector<2x20xf32>
    %cst_121 = arith.constant dense<0.000000e+00> : vector<2x200xf32>
    %258 = tpu.matmul %257, %1, %cst_121 {dimension_numbers = #tpu.dot_dimension_numbers<[1], [0], [0], [1], [0, 0, 1, 1], [], []>} : vector<2x20xf32>, vector<20x200xf32>, vector<2x200xf32> -> vector<2x200xf32>
    %259 = vector.broadcast %2 : vector<1x200xf32> to vector<2x200xf32>
    %260 = arith.addf %258, %259 : vector<2x200xf32>
    %cst_122 = arith.constant 0.000000e+00 : f32
    %261 = vector.broadcast %cst_122 : f32 to vector<2x200xf32>
    %262 = arith.maximumf %260, %261 : vector<2x200xf32>
    %263 = arith.truncf %262 : vector<2x200xf32> to vector<2x200xbf16>
    %c23 = arith.constant 23 : index
    %c0_123 = arith.constant 0 : index
    %c0_124 = arith.constant 0 : index
    %264 = vector.load %arg4[%c23, %c0_123, %c0_124] : memref<31x200x50xbf16, #tpu.memory_space<vmem>>, vector<1x200x50xbf16>
    %265 = vector.shape_cast %264 : vector<1x200x50xbf16> to vector<200x50xbf16>
    %cst_125 = arith.constant dense<0.000000e+00> : vector<2x50xf32>
    %266 = tpu.matmul %263, %265, %cst_125 {dimension_numbers = #tpu.dot_dimension_numbers<[1], [0], [0], [1], [0, 0, 1, 1], [], []>} : vector<2x200xbf16>, vector<200x50xbf16>, vector<2x50xf32> -> vector<2x50xf32>
    %267 = arith.addf %256, %266 : vector<2x50xf32>
    %268 = vector.extract_strided_slice %0 {offsets = [0, 24], sizes = [2, 20], strides = [1, 1]} : vector<2x50xf32> to vector<2x20xf32>
    %cst_126 = arith.constant dense<0.000000e+00> : vector<2x200xf32>
    %269 = tpu.matmul %268, %1, %cst_126 {dimension_numbers = #tpu.dot_dimension_numbers<[1], [0], [0], [1], [0, 0, 1, 1], [], []>} : vector<2x20xf32>, vector<20x200xf32>, vector<2x200xf32> -> vector<2x200xf32>
    %270 = vector.broadcast %2 : vector<1x200xf32> to vector<2x200xf32>
    %271 = arith.addf %269, %270 : vector<2x200xf32>
    %cst_127 = arith.constant 0.000000e+00 : f32
    %272 = vector.broadcast %cst_127 : f32 to vector<2x200xf32>
    %273 = arith.maximumf %271, %272 : vector<2x200xf32>
    %274 = arith.truncf %273 : vector<2x200xf32> to vector<2x200xbf16>
    %c24 = arith.constant 24 : index
    %c0_128 = arith.constant 0 : index
    %c0_129 = arith.constant 0 : index
    %275 = vector.load %arg4[%c24, %c0_128, %c0_129] : memref<31x200x50xbf16, #tpu.memory_space<vmem>>, vector<1x200x50xbf16>
    %276 = vector.shape_cast %275 : vector<1x200x50xbf16> to vector<200x50xbf16>
    %cst_130 = arith.constant dense<0.000000e+00> : vector<2x50xf32>
    %277 = tpu.matmul %274, %276, %cst_130 {dimension_numbers = #tpu.dot_dimension_numbers<[1], [0], [0], [1], [0, 0, 1, 1], [], []>} : vector<2x200xbf16>, vector<200x50xbf16>, vector<2x50xf32> -> vector<2x50xf32>
    %278 = arith.addf %267, %277 : vector<2x50xf32>
    %279 = vector.extract_strided_slice %0 {offsets = [0, 25], sizes = [2, 20], strides = [1, 1]} : vector<2x50xf32> to vector<2x20xf32>
    %cst_131 = arith.constant dense<0.000000e+00> : vector<2x200xf32>
    %280 = tpu.matmul %279, %1, %cst_131 {dimension_numbers = #tpu.dot_dimension_numbers<[1], [0], [0], [1], [0, 0, 1, 1], [], []>} : vector<2x20xf32>, vector<20x200xf32>, vector<2x200xf32> -> vector<2x200xf32>
    %281 = vector.broadcast %2 : vector<1x200xf32> to vector<2x200xf32>
    %282 = arith.addf %280, %281 : vector<2x200xf32>
    %cst_132 = arith.constant 0.000000e+00 : f32
    %283 = vector.broadcast %cst_132 : f32 to vector<2x200xf32>
    %284 = arith.maximumf %282, %283 : vector<2x200xf32>
    %285 = arith.truncf %284 : vector<2x200xf32> to vector<2x200xbf16>
    %c25 = arith.constant 25 : index
    %c0_133 = arith.constant 0 : index
    %c0_134 = arith.constant 0 : index
    %286 = vector.load %arg4[%c25, %c0_133, %c0_134] : memref<31x200x50xbf16, #tpu.memory_space<vmem>>, vector<1x200x50xbf16>
    %287 = vector.shape_cast %286 : vector<1x200x50xbf16> to vector<200x50xbf16>
    %cst_135 = arith.constant dense<0.000000e+00> : vector<2x50xf32>
    %288 = tpu.matmul %285, %287, %cst_135 {dimension_numbers = #tpu.dot_dimension_numbers<[1], [0], [0], [1], [0, 0, 1, 1], [], []>} : vector<2x200xbf16>, vector<200x50xbf16>, vector<2x50xf32> -> vector<2x50xf32>
    %289 = arith.addf %278, %288 : vector<2x50xf32>
    %290 = vector.extract_strided_slice %0 {offsets = [0, 26], sizes = [2, 20], strides = [1, 1]} : vector<2x50xf32> to vector<2x20xf32>
    %cst_136 = arith.constant dense<0.000000e+00> : vector<2x200xf32>
    %291 = tpu.matmul %290, %1, %cst_136 {dimension_numbers = #tpu.dot_dimension_numbers<[1], [0], [0], [1], [0, 0, 1, 1], [], []>} : vector<2x20xf32>, vector<20x200xf32>, vector<2x200xf32> -> vector<2x200xf32>
    %292 = vector.broadcast %2 : vector<1x200xf32> to vector<2x200xf32>
    %293 = arith.addf %291, %292 : vector<2x200xf32>
    %cst_137 = arith.constant 0.000000e+00 : f32
    %294 = vector.broadcast %cst_137 : f32 to vector<2x200xf32>
    %295 = arith.maximumf %293, %294 : vector<2x200xf32>
    %296 = arith.truncf %295 : vector<2x200xf32> to vector<2x200xbf16>
    %c26 = arith.constant 26 : index
    %c0_138 = arith.constant 0 : index
    %c0_139 = arith.constant 0 : index
    %297 = vector.load %arg4[%c26, %c0_138, %c0_139] : memref<31x200x50xbf16, #tpu.memory_space<vmem>>, vector<1x200x50xbf16>
    %298 = vector.shape_cast %297 : vector<1x200x50xbf16> to vector<200x50xbf16>
    %cst_140 = arith.constant dense<0.000000e+00> : vector<2x50xf32>
    %299 = tpu.matmul %296, %298, %cst_140 {dimension_numbers = #tpu.dot_dimension_numbers<[1], [0], [0], [1], [0, 0, 1, 1], [], []>} : vector<2x200xbf16>, vector<200x50xbf16>, vector<2x50xf32> -> vector<2x50xf32>
    %300 = arith.addf %289, %299 : vector<2x50xf32>
    %301 = vector.extract_strided_slice %0 {offsets = [0, 27], sizes = [2, 20], strides = [1, 1]} : vector<2x50xf32> to vector<2x20xf32>
    %cst_141 = arith.constant dense<0.000000e+00> : vector<2x200xf32>
    %302 = tpu.matmul %301, %1, %cst_141 {dimension_numbers = #tpu.dot_dimension_numbers<[1], [0], [0], [1], [0, 0, 1, 1], [], []>} : vector<2x20xf32>, vector<20x200xf32>, vector<2x200xf32> -> vector<2x200xf32>
    %303 = vector.broadcast %2 : vector<1x200xf32> to vector<2x200xf32>
    %304 = arith.addf %302, %303 : vector<2x200xf32>
    %cst_142 = arith.constant 0.000000e+00 : f32
    %305 = vector.broadcast %cst_142 : f32 to vector<2x200xf32>
    %306 = arith.maximumf %304, %305 : vector<2x200xf32>
    %307 = arith.truncf %306 : vector<2x200xf32> to vector<2x200xbf16>
    %c27 = arith.constant 27 : index
    %c0_143 = arith.constant 0 : index
    %c0_144 = arith.constant 0 : index
    %308 = vector.load %arg4[%c27, %c0_143, %c0_144] : memref<31x200x50xbf16, #tpu.memory_space<vmem>>, vector<1x200x50xbf16>
    %309 = vector.shape_cast %308 : vector<1x200x50xbf16> to vector<200x50xbf16>
    %cst_145 = arith.constant dense<0.000000e+00> : vector<2x50xf32>
    %310 = tpu.matmul %307, %309, %cst_145 {dimension_numbers = #tpu.dot_dimension_numbers<[1], [0], [0], [1], [0, 0, 1, 1], [], []>} : vector<2x200xbf16>, vector<200x50xbf16>, vector<2x50xf32> -> vector<2x50xf32>
    %311 = arith.addf %300, %310 : vector<2x50xf32>
    %312 = vector.extract_strided_slice %0 {offsets = [0, 28], sizes = [2, 20], strides = [1, 1]} : vector<2x50xf32> to vector<2x20xf32>
    %cst_146 = arith.constant dense<0.000000e+00> : vector<2x200xf32>
    %313 = tpu.matmul %312, %1, %cst_146 {dimension_numbers = #tpu.dot_dimension_numbers<[1], [0], [0], [1], [0, 0, 1, 1], [], []>} : vector<2x20xf32>, vector<20x200xf32>, vector<2x200xf32> -> vector<2x200xf32>
    %314 = vector.broadcast %2 : vector<1x200xf32> to vector<2x200xf32>
    %315 = arith.addf %313, %314 : vector<2x200xf32>
    %cst_147 = arith.constant 0.000000e+00 : f32
    %316 = vector.broadcast %cst_147 : f32 to vector<2x200xf32>
    %317 = arith.maximumf %315, %316 : vector<2x200xf32>
    %318 = arith.truncf %317 : vector<2x200xf32> to vector<2x200xbf16>
    %c28 = arith.constant 28 : index
    %c0_148 = arith.constant 0 : index
    %c0_149 = arith.constant 0 : index
    %319 = vector.load %arg4[%c28, %c0_148, %c0_149] : memref<31x200x50xbf16, #tpu.memory_space<vmem>>, vector<1x200x50xbf16>
    %320 = vector.shape_cast %319 : vector<1x200x50xbf16> to vector<200x50xbf16>
    %cst_150 = arith.constant dense<0.000000e+00> : vector<2x50xf32>
    %321 = tpu.matmul %318, %320, %cst_150 {dimension_numbers = #tpu.dot_dimension_numbers<[1], [0], [0], [1], [0, 0, 1, 1], [], []>} : vector<2x200xbf16>, vector<200x50xbf16>, vector<2x50xf32> -> vector<2x50xf32>
    %322 = arith.addf %311, %321 : vector<2x50xf32>
    %323 = vector.extract_strided_slice %0 {offsets = [0, 29], sizes = [2, 20], strides = [1, 1]} : vector<2x50xf32> to vector<2x20xf32>
    %cst_151 = arith.constant dense<0.000000e+00> : vector<2x200xf32>
    %324 = tpu.matmul %323, %1, %cst_151 {dimension_numbers = #tpu.dot_dimension_numbers<[1], [0], [0], [1], [0, 0, 1, 1], [], []>} : vector<2x20xf32>, vector<20x200xf32>, vector<2x200xf32> -> vector<2x200xf32>
    %325 = vector.broadcast %2 : vector<1x200xf32> to vector<2x200xf32>
    %326 = arith.addf %324, %325 : vector<2x200xf32>
    %cst_152 = arith.constant 0.000000e+00 : f32
    %327 = vector.broadcast %cst_152 : f32 to vector<2x200xf32>
    %328 = arith.maximumf %326, %327 : vector<2x200xf32>
    %329 = arith.truncf %328 : vector<2x200xf32> to vector<2x200xbf16>
    %c29 = arith.constant 29 : index
    %c0_153 = arith.constant 0 : index
    %c0_154 = arith.constant 0 : index
    %330 = vector.load %arg4[%c29, %c0_153, %c0_154] : memref<31x200x50xbf16, #tpu.memory_space<vmem>>, vector<1x200x50xbf16>
    %331 = vector.shape_cast %330 : vector<1x200x50xbf16> to vector<200x50xbf16>
    %cst_155 = arith.constant dense<0.000000e+00> : vector<2x50xf32>
    %332 = tpu.matmul %329, %331, %cst_155 {dimension_numbers = #tpu.dot_dimension_numbers<[1], [0], [0], [1], [0, 0, 1, 1], [], []>} : vector<2x200xbf16>, vector<200x50xbf16>, vector<2x50xf32> -> vector<2x50xf32>
    %333 = arith.addf %322, %332 : vector<2x50xf32>
    %334 = vector.extract_strided_slice %0 {offsets = [0, 30], sizes = [2, 20], strides = [1, 1]} : vector<2x50xf32> to vector<2x20xf32>
    %cst_156 = arith.constant dense<0.000000e+00> : vector<2x200xf32>
    %335 = tpu.matmul %334, %1, %cst_156 {dimension_numbers = #tpu.dot_dimension_numbers<[1], [0], [0], [1], [0, 0, 1, 1], [], []>} : vector<2x20xf32>, vector<20x200xf32>, vector<2x200xf32> -> vector<2x200xf32>
    %336 = vector.broadcast %2 : vector<1x200xf32> to vector<2x200xf32>
    %337 = arith.addf %335, %336 : vector<2x200xf32>
    %cst_157 = arith.constant 0.000000e+00 : f32
    %338 = vector.broadcast %cst_157 : f32 to vector<2x200xf32>
    %339 = arith.maximumf %337, %338 : vector<2x200xf32>
    %340 = arith.truncf %339 : vector<2x200xf32> to vector<2x200xbf16>
    %c30 = arith.constant 30 : index
    %c0_158 = arith.constant 0 : index
    %c0_159 = arith.constant 0 : index
    %341 = vector.load %arg4[%c30, %c0_158, %c0_159] : memref<31x200x50xbf16, #tpu.memory_space<vmem>>, vector<1x200x50xbf16>
    %342 = vector.shape_cast %341 : vector<1x200x50xbf16> to vector<200x50xbf16>
    %cst_160 = arith.constant dense<0.000000e+00> : vector<2x50xf32>
    %343 = tpu.matmul %340, %342, %cst_160 {dimension_numbers = #tpu.dot_dimension_numbers<[1], [0], [0], [1], [0, 0, 1, 1], [], []>} : vector<2x200xbf16>, vector<200x50xbf16>, vector<2x50xf32> -> vector<2x50xf32>
    %344 = arith.addf %333, %343 : vector<2x50xf32>
    %c0_161 = arith.constant 0 : index
    %c0_162 = arith.constant 0 : index
    %345 = vector.load %arg5[%c0_161, %c0_162] : memref<1x50xf32, #tpu.memory_space<vmem>>, vector<1x50xf32>
    %346 = vector.broadcast %345 : vector<1x50xf32> to vector<2x50xf32>
    %347 = arith.addf %344, %346 : vector<2x50xf32>
    %cst_163 = arith.constant 0.000000e+00 : f32
    %348 = vector.broadcast %cst_163 : f32 to vector<2x50xf32>
    %349 = arith.maximumf %347, %348 : vector<2x50xf32>
    %c0_164 = arith.constant 0 : index
    %c0_165 = arith.constant 0 : index
    %350 = vector.load %arg6[%c0_164, %c0_165] : memref<50x50xf32, #tpu.memory_space<vmem>>, vector<50x50xf32>
    %cst_166 = arith.constant dense<0.000000e+00> : vector<2x50xf32>
    %351 = tpu.matmul %349, %350, %cst_166 {dimension_numbers = #tpu.dot_dimension_numbers<[1], [0], [0], [1], [0, 0, 1, 1], [], []>} : vector<2x50xf32>, vector<50x50xf32>, vector<2x50xf32> -> vector<2x50xf32>
    %c0_167 = arith.constant 0 : index
    %c0_168 = arith.constant 0 : index
    %352 = vector.load %arg7[%c0_167, %c0_168] : memref<1x50xf32, #tpu.memory_space<vmem>>, vector<1x50xf32>
    %353 = vector.broadcast %352 : vector<1x50xf32> to vector<2x50xf32>
    %354 = arith.addf %351, %353 : vector<2x50xf32>
    %cst_169 = arith.constant 0.000000e+00 : f32
    %355 = vector.broadcast %cst_169 : f32 to vector<2x50xf32>
    %356 = arith.maximumf %354, %355 : vector<2x50xf32>
    %c0_170 = arith.constant 0 : index
    %c0_171 = arith.constant 0 : index
    %357 = vector.load %arg1[%c0_170, %c0_171] : memref<100x64xf32, #tpu.memory_space<vmem>>, vector<100x64xf32>
    %358 = arith.truncf %357 : vector<100x64xf32> to vector<100x64xbf16>
    %c0_172 = arith.constant 0 : index
    %c0_173 = arith.constant 0 : index
    %359 = vector.load %arg8[%c0_172, %c0_173] : memref<64x512xbf16, #tpu.memory_space<vmem>>, vector<64x512xbf16>
    %cst_174 = arith.constant dense<0.000000e+00> : vector<100x512xf32>
    %360 = tpu.matmul %358, %359, %cst_174 {dimension_numbers = #tpu.dot_dimension_numbers<[1], [0], [0], [1], [0, 0, 1, 1], [], []>} : vector<100x64xbf16>, vector<64x512xbf16>, vector<100x512xf32> -> vector<100x512xf32>
    %c0_175 = arith.constant 0 : index
    %c0_176 = arith.constant 0 : index
    %361 = vector.load %arg9[%c0_175, %c0_176] : memref<1x512xf32, #tpu.memory_space<vmem>>, vector<1x512xf32>
    %362 = vector.broadcast %361 : vector<1x512xf32> to vector<100x512xf32>
    %363 = arith.addf %360, %362 : vector<100x512xf32>
    %cst_177 = arith.constant 0.000000e+00 : f32
    %364 = vector.broadcast %cst_177 : f32 to vector<100x512xf32>
    %365 = arith.maximumf %363, %364 : vector<100x512xf32>
    %366 = arith.truncf %365 : vector<100x512xf32> to vector<100x512xbf16>
    %c0_178 = arith.constant 0 : index
    %c0_179 = arith.constant 0 : index
    %367 = vector.load %arg10[%c0_178, %c0_179] : memref<512x128xbf16, #tpu.memory_space<vmem>>, vector<512x128xbf16>
    %cst_180 = arith.constant dense<0.000000e+00> : vector<100x128xf32>
    %368 = tpu.matmul %366, %367, %cst_180 {dimension_numbers = #tpu.dot_dimension_numbers<[1], [0], [0], [1], [0, 0, 1, 1], [], []>} : vector<100x512xbf16>, vector<512x128xbf16>, vector<100x128xf32> -> vector<100x128xf32>
    %c0_181 = arith.constant 0 : index
    %c0_182 = arith.constant 0 : index
    %369 = vector.load %arg11[%c0_181, %c0_182] : memref<1x128xf32, #tpu.memory_space<vmem>>, vector<1x128xf32>
    %370 = vector.broadcast %369 : vector<1x128xf32> to vector<100x128xf32>
    %371 = arith.addf %368, %370 : vector<100x128xf32>
    %cst_183 = arith.constant 0.000000e+00 : f32
    %372 = vector.broadcast %cst_183 : f32 to vector<100x128xf32>
    %373 = arith.maximumf %371, %372 : vector<100x128xf32>
    %374 = arith.truncf %373 : vector<100x128xf32> to vector<100x128xbf16>
    %c0_184 = arith.constant 0 : index
    %c0_185 = arith.constant 0 : index
    %375 = vector.load %arg12[%c0_184, %c0_185] : memref<128x128xbf16, #tpu.memory_space<vmem>>, vector<128x128xbf16>
    %cst_186 = arith.constant dense<0.000000e+00> : vector<100x128xf32>
    %376 = tpu.matmul %374, %375, %cst_186 {dimension_numbers = #tpu.dot_dimension_numbers<[1], [0], [0], [1], [0, 0, 1, 1], [], []>} : vector<100x128xbf16>, vector<128x128xbf16>, vector<100x128xf32> -> vector<100x128xf32>
    %c0_187 = arith.constant 0 : index
    %c0_188 = arith.constant 0 : index
    %377 = vector.load %arg13[%c0_187, %c0_188] : memref<1x128xf32, #tpu.memory_space<vmem>>, vector<1x128xf32>
    %378 = vector.broadcast %377 : vector<1x128xf32> to vector<100x128xf32>
    %379 = arith.addf %376, %378 : vector<100x128xf32>
    %cst_189 = arith.constant 0.000000e+00 : f32
    %380 = vector.broadcast %cst_189 : f32 to vector<100x128xf32>
    %381 = arith.maximumf %379, %380 : vector<100x128xf32>
    %c0_190 = arith.constant 0 : index
    %c0_191 = arith.constant 0 : index
    %382 = vector.load %arg15[%c0_190, %c0_191] : memref<50x100xf32, #tpu.memory_space<vmem>>, vector<50x100xf32>
    %cst_192 = arith.constant dense<0.000000e+00> : vector<2x100xf32>
    %383 = tpu.matmul %356, %382, %cst_192 {dimension_numbers = #tpu.dot_dimension_numbers<[1], [0], [0], [1], [0, 0, 1, 1], [], []>} : vector<2x50xf32>, vector<50x100xf32>, vector<2x100xf32> -> vector<2x100xf32>
    %c0_193 = arith.constant 0 : index
    %c0_194 = arith.constant 0 : index
    %384 = vector.load %arg16[%c0_193, %c0_194] : memref<1x100xf32, #tpu.memory_space<vmem>>, vector<1x100xf32>
    %385 = vector.broadcast %384 : vector<1x100xf32> to vector<2x100xf32>
    %386 = arith.addf %383, %385 : vector<2x100xf32>
    %387 = vector.extract_strided_slice %381 {offsets = [0, 0], sizes = [2, 128], strides = [1, 1]} : vector<100x128xf32> to vector<2x128xf32>
    %388 = arith.truncf %387 : vector<2x128xf32> to vector<2x128xbf16>
    %c0_195 = arith.constant 0 : index
    %c0_196 = arith.constant 0 : index
    %c0_197 = arith.constant 0 : index
    %389 = vector.load %arg14[%c0_195, %c0_196, %c0_197] : memref<50x128x100xbf16, #tpu.memory_space<vmem>>, vector<1x128x100xbf16>
    %390 = vector.shape_cast %389 : vector<1x128x100xbf16> to vector<128x100xbf16>
    %cst_198 = arith.constant dense<0.000000e+00> : vector<2x100xf32>
    %391 = tpu.matmul %388, %390, %cst_198 {dimension_numbers = #tpu.dot_dimension_numbers<[1], [0], [0], [1], [0, 0, 1, 1], [], []>} : vector<2x128xbf16>, vector<128x100xbf16>, vector<2x100xf32> -> vector<2x100xf32>
    %392 = arith.addf %386, %391 : vector<2x100xf32>
    %393 = vector.extract_strided_slice %381 {offsets = [2, 0], sizes = [2, 128], strides = [1, 1]} : vector<100x128xf32> to vector<2x128xf32>
    %394 = arith.truncf %393 : vector<2x128xf32> to vector<2x128xbf16>
    %c1_199 = arith.constant 1 : index
    %c0_200 = arith.constant 0 : index
    %c0_201 = arith.constant 0 : index
    %395 = vector.load %arg14[%c1_199, %c0_200, %c0_201] : memref<50x128x100xbf16, #tpu.memory_space<vmem>>, vector<1x128x100xbf16>
    %396 = vector.shape_cast %395 : vector<1x128x100xbf16> to vector<128x100xbf16>
    %cst_202 = arith.constant dense<0.000000e+00> : vector<2x100xf32>
    %397 = tpu.matmul %394, %396, %cst_202 {dimension_numbers = #tpu.dot_dimension_numbers<[1], [0], [0], [1], [0, 0, 1, 1], [], []>} : vector<2x128xbf16>, vector<128x100xbf16>, vector<2x100xf32> -> vector<2x100xf32>
    %398 = arith.addf %392, %397 : vector<2x100xf32>
    %399 = vector.extract_strided_slice %381 {offsets = [4, 0], sizes = [2, 128], strides = [1, 1]} : vector<100x128xf32> to vector<2x128xf32>
    %400 = arith.truncf %399 : vector<2x128xf32> to vector<2x128xbf16>
    %c2_203 = arith.constant 2 : index
    %c0_204 = arith.constant 0 : index
    %c0_205 = arith.constant 0 : index
    %401 = vector.load %arg14[%c2_203, %c0_204, %c0_205] : memref<50x128x100xbf16, #tpu.memory_space<vmem>>, vector<1x128x100xbf16>
    %402 = vector.shape_cast %401 : vector<1x128x100xbf16> to vector<128x100xbf16>
    %cst_206 = arith.constant dense<0.000000e+00> : vector<2x100xf32>
    %403 = tpu.matmul %400, %402, %cst_206 {dimension_numbers = #tpu.dot_dimension_numbers<[1], [0], [0], [1], [0, 0, 1, 1], [], []>} : vector<2x128xbf16>, vector<128x100xbf16>, vector<2x100xf32> -> vector<2x100xf32>
    %404 = arith.addf %398, %403 : vector<2x100xf32>
    %405 = vector.extract_strided_slice %381 {offsets = [6, 0], sizes = [2, 128], strides = [1, 1]} : vector<100x128xf32> to vector<2x128xf32>
    %406 = arith.truncf %405 : vector<2x128xf32> to vector<2x128xbf16>
    %c3_207 = arith.constant 3 : index
    %c0_208 = arith.constant 0 : index
    %c0_209 = arith.constant 0 : index
    %407 = vector.load %arg14[%c3_207, %c0_208, %c0_209] : memref<50x128x100xbf16, #tpu.memory_space<vmem>>, vector<1x128x100xbf16>
    %408 = vector.shape_cast %407 : vector<1x128x100xbf16> to vector<128x100xbf16>
    %cst_210 = arith.constant dense<0.000000e+00> : vector<2x100xf32>
    %409 = tpu.matmul %406, %408, %cst_210 {dimension_numbers = #tpu.dot_dimension_numbers<[1], [0], [0], [1], [0, 0, 1, 1], [], []>} : vector<2x128xbf16>, vector<128x100xbf16>, vector<2x100xf32> -> vector<2x100xf32>
    %410 = arith.addf %404, %409 : vector<2x100xf32>
    %411 = vector.extract_strided_slice %381 {offsets = [8, 0], sizes = [2, 128], strides = [1, 1]} : vector<100x128xf32> to vector<2x128xf32>
    %412 = arith.truncf %411 : vector<2x128xf32> to vector<2x128xbf16>
    %c4_211 = arith.constant 4 : index
    %c0_212 = arith.constant 0 : index
    %c0_213 = arith.constant 0 : index
    %413 = vector.load %arg14[%c4_211, %c0_212, %c0_213] : memref<50x128x100xbf16, #tpu.memory_space<vmem>>, vector<1x128x100xbf16>
    %414 = vector.shape_cast %413 : vector<1x128x100xbf16> to vector<128x100xbf16>
    %cst_214 = arith.constant dense<0.000000e+00> : vector<2x100xf32>
    %415 = tpu.matmul %412, %414, %cst_214 {dimension_numbers = #tpu.dot_dimension_numbers<[1], [0], [0], [1], [0, 0, 1, 1], [], []>} : vector<2x128xbf16>, vector<128x100xbf16>, vector<2x100xf32> -> vector<2x100xf32>
    %416 = arith.addf %410, %415 : vector<2x100xf32>
    %417 = vector.extract_strided_slice %381 {offsets = [10, 0], sizes = [2, 128], strides = [1, 1]} : vector<100x128xf32> to vector<2x128xf32>
    %418 = arith.truncf %417 : vector<2x128xf32> to vector<2x128xbf16>
    %c5_215 = arith.constant 5 : index
    %c0_216 = arith.constant 0 : index
    %c0_217 = arith.constant 0 : index
    %419 = vector.load %arg14[%c5_215, %c0_216, %c0_217] : memref<50x128x100xbf16, #tpu.memory_space<vmem>>, vector<1x128x100xbf16>
    %420 = vector.shape_cast %419 : vector<1x128x100xbf16> to vector<128x100xbf16>
    %cst_218 = arith.constant dense<0.000000e+00> : vector<2x100xf32>
    %421 = tpu.matmul %418, %420, %cst_218 {dimension_numbers = #tpu.dot_dimension_numbers<[1], [0], [0], [1], [0, 0, 1, 1], [], []>} : vector<2x128xbf16>, vector<128x100xbf16>, vector<2x100xf32> -> vector<2x100xf32>
    %422 = arith.addf %416, %421 : vector<2x100xf32>
    %423 = vector.extract_strided_slice %381 {offsets = [12, 0], sizes = [2, 128], strides = [1, 1]} : vector<100x128xf32> to vector<2x128xf32>
    %424 = arith.truncf %423 : vector<2x128xf32> to vector<2x128xbf16>
    %c6_219 = arith.constant 6 : index
    %c0_220 = arith.constant 0 : index
    %c0_221 = arith.constant 0 : index
    %425 = vector.load %arg14[%c6_219, %c0_220, %c0_221] : memref<50x128x100xbf16, #tpu.memory_space<vmem>>, vector<1x128x100xbf16>
    %426 = vector.shape_cast %425 : vector<1x128x100xbf16> to vector<128x100xbf16>
    %cst_222 = arith.constant dense<0.000000e+00> : vector<2x100xf32>
    %427 = tpu.matmul %424, %426, %cst_222 {dimension_numbers = #tpu.dot_dimension_numbers<[1], [0], [0], [1], [0, 0, 1, 1], [], []>} : vector<2x128xbf16>, vector<128x100xbf16>, vector<2x100xf32> -> vector<2x100xf32>
    %428 = arith.addf %422, %427 : vector<2x100xf32>
    %429 = vector.extract_strided_slice %381 {offsets = [14, 0], sizes = [2, 128], strides = [1, 1]} : vector<100x128xf32> to vector<2x128xf32>
    %430 = arith.truncf %429 : vector<2x128xf32> to vector<2x128xbf16>
    %c7_223 = arith.constant 7 : index
    %c0_224 = arith.constant 0 : index
    %c0_225 = arith.constant 0 : index
    %431 = vector.load %arg14[%c7_223, %c0_224, %c0_225] : memref<50x128x100xbf16, #tpu.memory_space<vmem>>, vector<1x128x100xbf16>
    %432 = vector.shape_cast %431 : vector<1x128x100xbf16> to vector<128x100xbf16>
    %cst_226 = arith.constant dense<0.000000e+00> : vector<2x100xf32>
    %433 = tpu.matmul %430, %432, %cst_226 {dimension_numbers = #tpu.dot_dimension_numbers<[1], [0], [0], [1], [0, 0, 1, 1], [], []>} : vector<2x128xbf16>, vector<128x100xbf16>, vector<2x100xf32> -> vector<2x100xf32>
    %434 = arith.addf %428, %433 : vector<2x100xf32>
    %435 = vector.extract_strided_slice %381 {offsets = [16, 0], sizes = [2, 128], strides = [1, 1]} : vector<100x128xf32> to vector<2x128xf32>
    %436 = arith.truncf %435 : vector<2x128xf32> to vector<2x128xbf16>
    %c8_227 = arith.constant 8 : index
    %c0_228 = arith.constant 0 : index
    %c0_229 = arith.constant 0 : index
    %437 = vector.load %arg14[%c8_227, %c0_228, %c0_229] : memref<50x128x100xbf16, #tpu.memory_space<vmem>>, vector<1x128x100xbf16>
    %438 = vector.shape_cast %437 : vector<1x128x100xbf16> to vector<128x100xbf16>
    %cst_230 = arith.constant dense<0.000000e+00> : vector<2x100xf32>
    %439 = tpu.matmul %436, %438, %cst_230 {dimension_numbers = #tpu.dot_dimension_numbers<[1], [0], [0], [1], [0, 0, 1, 1], [], []>} : vector<2x128xbf16>, vector<128x100xbf16>, vector<2x100xf32> -> vector<2x100xf32>
    %440 = arith.addf %434, %439 : vector<2x100xf32>
    %441 = vector.extract_strided_slice %381 {offsets = [18, 0], sizes = [2, 128], strides = [1, 1]} : vector<100x128xf32> to vector<2x128xf32>
    %442 = arith.truncf %441 : vector<2x128xf32> to vector<2x128xbf16>
    %c9_231 = arith.constant 9 : index
    %c0_232 = arith.constant 0 : index
    %c0_233 = arith.constant 0 : index
    %443 = vector.load %arg14[%c9_231, %c0_232, %c0_233] : memref<50x128x100xbf16, #tpu.memory_space<vmem>>, vector<1x128x100xbf16>
    %444 = vector.shape_cast %443 : vector<1x128x100xbf16> to vector<128x100xbf16>
    %cst_234 = arith.constant dense<0.000000e+00> : vector<2x100xf32>
    %445 = tpu.matmul %442, %444, %cst_234 {dimension_numbers = #tpu.dot_dimension_numbers<[1], [0], [0], [1], [0, 0, 1, 1], [], []>} : vector<2x128xbf16>, vector<128x100xbf16>, vector<2x100xf32> -> vector<2x100xf32>
    %446 = arith.addf %440, %445 : vector<2x100xf32>
    %447 = vector.extract_strided_slice %381 {offsets = [20, 0], sizes = [2, 128], strides = [1, 1]} : vector<100x128xf32> to vector<2x128xf32>
    %448 = arith.truncf %447 : vector<2x128xf32> to vector<2x128xbf16>
    %c10_235 = arith.constant 10 : index
    %c0_236 = arith.constant 0 : index
    %c0_237 = arith.constant 0 : index
    %449 = vector.load %arg14[%c10_235, %c0_236, %c0_237] : memref<50x128x100xbf16, #tpu.memory_space<vmem>>, vector<1x128x100xbf16>
    %450 = vector.shape_cast %449 : vector<1x128x100xbf16> to vector<128x100xbf16>
    %cst_238 = arith.constant dense<0.000000e+00> : vector<2x100xf32>
    %451 = tpu.matmul %448, %450, %cst_238 {dimension_numbers = #tpu.dot_dimension_numbers<[1], [0], [0], [1], [0, 0, 1, 1], [], []>} : vector<2x128xbf16>, vector<128x100xbf16>, vector<2x100xf32> -> vector<2x100xf32>
    %452 = arith.addf %446, %451 : vector<2x100xf32>
    %453 = vector.extract_strided_slice %381 {offsets = [22, 0], sizes = [2, 128], strides = [1, 1]} : vector<100x128xf32> to vector<2x128xf32>
    %454 = arith.truncf %453 : vector<2x128xf32> to vector<2x128xbf16>
    %c11_239 = arith.constant 11 : index
    %c0_240 = arith.constant 0 : index
    %c0_241 = arith.constant 0 : index
    %455 = vector.load %arg14[%c11_239, %c0_240, %c0_241] : memref<50x128x100xbf16, #tpu.memory_space<vmem>>, vector<1x128x100xbf16>
    %456 = vector.shape_cast %455 : vector<1x128x100xbf16> to vector<128x100xbf16>
    %cst_242 = arith.constant dense<0.000000e+00> : vector<2x100xf32>
    %457 = tpu.matmul %454, %456, %cst_242 {dimension_numbers = #tpu.dot_dimension_numbers<[1], [0], [0], [1], [0, 0, 1, 1], [], []>} : vector<2x128xbf16>, vector<128x100xbf16>, vector<2x100xf32> -> vector<2x100xf32>
    %458 = arith.addf %452, %457 : vector<2x100xf32>
    %459 = vector.extract_strided_slice %381 {offsets = [24, 0], sizes = [2, 128], strides = [1, 1]} : vector<100x128xf32> to vector<2x128xf32>
    %460 = arith.truncf %459 : vector<2x128xf32> to vector<2x128xbf16>
    %c12_243 = arith.constant 12 : index
    %c0_244 = arith.constant 0 : index
    %c0_245 = arith.constant 0 : index
    %461 = vector.load %arg14[%c12_243, %c0_244, %c0_245] : memref<50x128x100xbf16, #tpu.memory_space<vmem>>, vector<1x128x100xbf16>
    %462 = vector.shape_cast %461 : vector<1x128x100xbf16> to vector<128x100xbf16>
    %cst_246 = arith.constant dense<0.000000e+00> : vector<2x100xf32>
    %463 = tpu.matmul %460, %462, %cst_246 {dimension_numbers = #tpu.dot_dimension_numbers<[1], [0], [0], [1], [0, 0, 1, 1], [], []>} : vector<2x128xbf16>, vector<128x100xbf16>, vector<2x100xf32> -> vector<2x100xf32>
    %464 = arith.addf %458, %463 : vector<2x100xf32>
    %465 = vector.extract_strided_slice %381 {offsets = [26, 0], sizes = [2, 128], strides = [1, 1]} : vector<100x128xf32> to vector<2x128xf32>
    %466 = arith.truncf %465 : vector<2x128xf32> to vector<2x128xbf16>
    %c13_247 = arith.constant 13 : index
    %c0_248 = arith.constant 0 : index
    %c0_249 = arith.constant 0 : index
    %467 = vector.load %arg14[%c13_247, %c0_248, %c0_249] : memref<50x128x100xbf16, #tpu.memory_space<vmem>>, vector<1x128x100xbf16>
    %468 = vector.shape_cast %467 : vector<1x128x100xbf16> to vector<128x100xbf16>
    %cst_250 = arith.constant dense<0.000000e+00> : vector<2x100xf32>
    %469 = tpu.matmul %466, %468, %cst_250 {dimension_numbers = #tpu.dot_dimension_numbers<[1], [0], [0], [1], [0, 0, 1, 1], [], []>} : vector<2x128xbf16>, vector<128x100xbf16>, vector<2x100xf32> -> vector<2x100xf32>
    %470 = arith.addf %464, %469 : vector<2x100xf32>
    %471 = vector.extract_strided_slice %381 {offsets = [28, 0], sizes = [2, 128], strides = [1, 1]} : vector<100x128xf32> to vector<2x128xf32>
    %472 = arith.truncf %471 : vector<2x128xf32> to vector<2x128xbf16>
    %c14_251 = arith.constant 14 : index
    %c0_252 = arith.constant 0 : index
    %c0_253 = arith.constant 0 : index
    %473 = vector.load %arg14[%c14_251, %c0_252, %c0_253] : memref<50x128x100xbf16, #tpu.memory_space<vmem>>, vector<1x128x100xbf16>
    %474 = vector.shape_cast %473 : vector<1x128x100xbf16> to vector<128x100xbf16>
    %cst_254 = arith.constant dense<0.000000e+00> : vector<2x100xf32>
    %475 = tpu.matmul %472, %474, %cst_254 {dimension_numbers = #tpu.dot_dimension_numbers<[1], [0], [0], [1], [0, 0, 1, 1], [], []>} : vector<2x128xbf16>, vector<128x100xbf16>, vector<2x100xf32> -> vector<2x100xf32>
    %476 = arith.addf %470, %475 : vector<2x100xf32>
    %477 = vector.extract_strided_slice %381 {offsets = [30, 0], sizes = [2, 128], strides = [1, 1]} : vector<100x128xf32> to vector<2x128xf32>
    %478 = arith.truncf %477 : vector<2x128xf32> to vector<2x128xbf16>
    %c15_255 = arith.constant 15 : index
    %c0_256 = arith.constant 0 : index
    %c0_257 = arith.constant 0 : index
    %479 = vector.load %arg14[%c15_255, %c0_256, %c0_257] : memref<50x128x100xbf16, #tpu.memory_space<vmem>>, vector<1x128x100xbf16>
    %480 = vector.shape_cast %479 : vector<1x128x100xbf16> to vector<128x100xbf16>
    %cst_258 = arith.constant dense<0.000000e+00> : vector<2x100xf32>
    %481 = tpu.matmul %478, %480, %cst_258 {dimension_numbers = #tpu.dot_dimension_numbers<[1], [0], [0], [1], [0, 0, 1, 1], [], []>} : vector<2x128xbf16>, vector<128x100xbf16>, vector<2x100xf32> -> vector<2x100xf32>
    %482 = arith.addf %476, %481 : vector<2x100xf32>
    %483 = vector.extract_strided_slice %381 {offsets = [32, 0], sizes = [2, 128], strides = [1, 1]} : vector<100x128xf32> to vector<2x128xf32>
    %484 = arith.truncf %483 : vector<2x128xf32> to vector<2x128xbf16>
    %c16_259 = arith.constant 16 : index
    %c0_260 = arith.constant 0 : index
    %c0_261 = arith.constant 0 : index
    %485 = vector.load %arg14[%c16_259, %c0_260, %c0_261] : memref<50x128x100xbf16, #tpu.memory_space<vmem>>, vector<1x128x100xbf16>
    %486 = vector.shape_cast %485 : vector<1x128x100xbf16> to vector<128x100xbf16>
    %cst_262 = arith.constant dense<0.000000e+00> : vector<2x100xf32>
    %487 = tpu.matmul %484, %486, %cst_262 {dimension_numbers = #tpu.dot_dimension_numbers<[1], [0], [0], [1], [0, 0, 1, 1], [], []>} : vector<2x128xbf16>, vector<128x100xbf16>, vector<2x100xf32> -> vector<2x100xf32>
    %488 = arith.addf %482, %487 : vector<2x100xf32>
    %489 = vector.extract_strided_slice %381 {offsets = [34, 0], sizes = [2, 128], strides = [1, 1]} : vector<100x128xf32> to vector<2x128xf32>
    %490 = arith.truncf %489 : vector<2x128xf32> to vector<2x128xbf16>
    %c17_263 = arith.constant 17 : index
    %c0_264 = arith.constant 0 : index
    %c0_265 = arith.constant 0 : index
    %491 = vector.load %arg14[%c17_263, %c0_264, %c0_265] : memref<50x128x100xbf16, #tpu.memory_space<vmem>>, vector<1x128x100xbf16>
    %492 = vector.shape_cast %491 : vector<1x128x100xbf16> to vector<128x100xbf16>
    %cst_266 = arith.constant dense<0.000000e+00> : vector<2x100xf32>
    %493 = tpu.matmul %490, %492, %cst_266 {dimension_numbers = #tpu.dot_dimension_numbers<[1], [0], [0], [1], [0, 0, 1, 1], [], []>} : vector<2x128xbf16>, vector<128x100xbf16>, vector<2x100xf32> -> vector<2x100xf32>
    %494 = arith.addf %488, %493 : vector<2x100xf32>
    %495 = vector.extract_strided_slice %381 {offsets = [36, 0], sizes = [2, 128], strides = [1, 1]} : vector<100x128xf32> to vector<2x128xf32>
    %496 = arith.truncf %495 : vector<2x128xf32> to vector<2x128xbf16>
    %c18_267 = arith.constant 18 : index
    %c0_268 = arith.constant 0 : index
    %c0_269 = arith.constant 0 : index
    %497 = vector.load %arg14[%c18_267, %c0_268, %c0_269] : memref<50x128x100xbf16, #tpu.memory_space<vmem>>, vector<1x128x100xbf16>
    %498 = vector.shape_cast %497 : vector<1x128x100xbf16> to vector<128x100xbf16>
    %cst_270 = arith.constant dense<0.000000e+00> : vector<2x100xf32>
    %499 = tpu.matmul %496, %498, %cst_270 {dimension_numbers = #tpu.dot_dimension_numbers<[1], [0], [0], [1], [0, 0, 1, 1], [], []>} : vector<2x128xbf16>, vector<128x100xbf16>, vector<2x100xf32> -> vector<2x100xf32>
    %500 = arith.addf %494, %499 : vector<2x100xf32>
    %501 = vector.extract_strided_slice %381 {offsets = [38, 0], sizes = [2, 128], strides = [1, 1]} : vector<100x128xf32> to vector<2x128xf32>
    %502 = arith.truncf %501 : vector<2x128xf32> to vector<2x128xbf16>
    %c19_271 = arith.constant 19 : index
    %c0_272 = arith.constant 0 : index
    %c0_273 = arith.constant 0 : index
    %503 = vector.load %arg14[%c19_271, %c0_272, %c0_273] : memref<50x128x100xbf16, #tpu.memory_space<vmem>>, vector<1x128x100xbf16>
    %504 = vector.shape_cast %503 : vector<1x128x100xbf16> to vector<128x100xbf16>
    %cst_274 = arith.constant dense<0.000000e+00> : vector<2x100xf32>
    %505 = tpu.matmul %502, %504, %cst_274 {dimension_numbers = #tpu.dot_dimension_numbers<[1], [0], [0], [1], [0, 0, 1, 1], [], []>} : vector<2x128xbf16>, vector<128x100xbf16>, vector<2x100xf32> -> vector<2x100xf32>
    %506 = arith.addf %500, %505 : vector<2x100xf32>
    %507 = vector.extract_strided_slice %381 {offsets = [40, 0], sizes = [2, 128], strides = [1, 1]} : vector<100x128xf32> to vector<2x128xf32>
    %508 = arith.truncf %507 : vector<2x128xf32> to vector<2x128xbf16>
    %c20_275 = arith.constant 20 : index
    %c0_276 = arith.constant 0 : index
    %c0_277 = arith.constant 0 : index
    %509 = vector.load %arg14[%c20_275, %c0_276, %c0_277] : memref<50x128x100xbf16, #tpu.memory_space<vmem>>, vector<1x128x100xbf16>
    %510 = vector.shape_cast %509 : vector<1x128x100xbf16> to vector<128x100xbf16>
    %cst_278 = arith.constant dense<0.000000e+00> : vector<2x100xf32>
    %511 = tpu.matmul %508, %510, %cst_278 {dimension_numbers = #tpu.dot_dimension_numbers<[1], [0], [0], [1], [0, 0, 1, 1], [], []>} : vector<2x128xbf16>, vector<128x100xbf16>, vector<2x100xf32> -> vector<2x100xf32>
    %512 = arith.addf %506, %511 : vector<2x100xf32>
    %513 = vector.extract_strided_slice %381 {offsets = [42, 0], sizes = [2, 128], strides = [1, 1]} : vector<100x128xf32> to vector<2x128xf32>
    %514 = arith.truncf %513 : vector<2x128xf32> to vector<2x128xbf16>
    %c21_279 = arith.constant 21 : index
    %c0_280 = arith.constant 0 : index
    %c0_281 = arith.constant 0 : index
    %515 = vector.load %arg14[%c21_279, %c0_280, %c0_281] : memref<50x128x100xbf16, #tpu.memory_space<vmem>>, vector<1x128x100xbf16>
    %516 = vector.shape_cast %515 : vector<1x128x100xbf16> to vector<128x100xbf16>
    %cst_282 = arith.constant dense<0.000000e+00> : vector<2x100xf32>
    %517 = tpu.matmul %514, %516, %cst_282 {dimension_numbers = #tpu.dot_dimension_numbers<[1], [0], [0], [1], [0, 0, 1, 1], [], []>} : vector<2x128xbf16>, vector<128x100xbf16>, vector<2x100xf32> -> vector<2x100xf32>
    %518 = arith.addf %512, %517 : vector<2x100xf32>
    %519 = vector.extract_strided_slice %381 {offsets = [44, 0], sizes = [2, 128], strides = [1, 1]} : vector<100x128xf32> to vector<2x128xf32>
    %520 = arith.truncf %519 : vector<2x128xf32> to vector<2x128xbf16>
    %c22_283 = arith.constant 22 : index
    %c0_284 = arith.constant 0 : index
    %c0_285 = arith.constant 0 : index
    %521 = vector.load %arg14[%c22_283, %c0_284, %c0_285] : memref<50x128x100xbf16, #tpu.memory_space<vmem>>, vector<1x128x100xbf16>
    %522 = vector.shape_cast %521 : vector<1x128x100xbf16> to vector<128x100xbf16>
    %cst_286 = arith.constant dense<0.000000e+00> : vector<2x100xf32>
    %523 = tpu.matmul %520, %522, %cst_286 {dimension_numbers = #tpu.dot_dimension_numbers<[1], [0], [0], [1], [0, 0, 1, 1], [], []>} : vector<2x128xbf16>, vector<128x100xbf16>, vector<2x100xf32> -> vector<2x100xf32>
    %524 = arith.addf %518, %523 : vector<2x100xf32>
    %525 = vector.extract_strided_slice %381 {offsets = [46, 0], sizes = [2, 128], strides = [1, 1]} : vector<100x128xf32> to vector<2x128xf32>
    %526 = arith.truncf %525 : vector<2x128xf32> to vector<2x128xbf16>
    %c23_287 = arith.constant 23 : index
    %c0_288 = arith.constant 0 : index
    %c0_289 = arith.constant 0 : index
    %527 = vector.load %arg14[%c23_287, %c0_288, %c0_289] : memref<50x128x100xbf16, #tpu.memory_space<vmem>>, vector<1x128x100xbf16>
    %528 = vector.shape_cast %527 : vector<1x128x100xbf16> to vector<128x100xbf16>
    %cst_290 = arith.constant dense<0.000000e+00> : vector<2x100xf32>
    %529 = tpu.matmul %526, %528, %cst_290 {dimension_numbers = #tpu.dot_dimension_numbers<[1], [0], [0], [1], [0, 0, 1, 1], [], []>} : vector<2x128xbf16>, vector<128x100xbf16>, vector<2x100xf32> -> vector<2x100xf32>
    %530 = arith.addf %524, %529 : vector<2x100xf32>
    %531 = vector.extract_strided_slice %381 {offsets = [48, 0], sizes = [2, 128], strides = [1, 1]} : vector<100x128xf32> to vector<2x128xf32>
    %532 = arith.truncf %531 : vector<2x128xf32> to vector<2x128xbf16>
    %c24_291 = arith.constant 24 : index
    %c0_292 = arith.constant 0 : index
    %c0_293 = arith.constant 0 : index
    %533 = vector.load %arg14[%c24_291, %c0_292, %c0_293] : memref<50x128x100xbf16, #tpu.memory_space<vmem>>, vector<1x128x100xbf16>
    %534 = vector.shape_cast %533 : vector<1x128x100xbf16> to vector<128x100xbf16>
    %cst_294 = arith.constant dense<0.000000e+00> : vector<2x100xf32>
    %535 = tpu.matmul %532, %534, %cst_294 {dimension_numbers = #tpu.dot_dimension_numbers<[1], [0], [0], [1], [0, 0, 1, 1], [], []>} : vector<2x128xbf16>, vector<128x100xbf16>, vector<2x100xf32> -> vector<2x100xf32>
    %536 = arith.addf %530, %535 : vector<2x100xf32>
    %537 = vector.extract_strided_slice %381 {offsets = [50, 0], sizes = [2, 128], strides = [1, 1]} : vector<100x128xf32> to vector<2x128xf32>
    %538 = arith.truncf %537 : vector<2x128xf32> to vector<2x128xbf16>
    %c25_295 = arith.constant 25 : index
    %c0_296 = arith.constant 0 : index
    %c0_297 = arith.constant 0 : index
    %539 = vector.load %arg14[%c25_295, %c0_296, %c0_297] : memref<50x128x100xbf16, #tpu.memory_space<vmem>>, vector<1x128x100xbf16>
    %540 = vector.shape_cast %539 : vector<1x128x100xbf16> to vector<128x100xbf16>
    %cst_298 = arith.constant dense<0.000000e+00> : vector<2x100xf32>
    %541 = tpu.matmul %538, %540, %cst_298 {dimension_numbers = #tpu.dot_dimension_numbers<[1], [0], [0], [1], [0, 0, 1, 1], [], []>} : vector<2x128xbf16>, vector<128x100xbf16>, vector<2x100xf32> -> vector<2x100xf32>
    %542 = arith.addf %536, %541 : vector<2x100xf32>
    %543 = vector.extract_strided_slice %381 {offsets = [52, 0], sizes = [2, 128], strides = [1, 1]} : vector<100x128xf32> to vector<2x128xf32>
    %544 = arith.truncf %543 : vector<2x128xf32> to vector<2x128xbf16>
    %c26_299 = arith.constant 26 : index
    %c0_300 = arith.constant 0 : index
    %c0_301 = arith.constant 0 : index
    %545 = vector.load %arg14[%c26_299, %c0_300, %c0_301] : memref<50x128x100xbf16, #tpu.memory_space<vmem>>, vector<1x128x100xbf16>
    %546 = vector.shape_cast %545 : vector<1x128x100xbf16> to vector<128x100xbf16>
    %cst_302 = arith.constant dense<0.000000e+00> : vector<2x100xf32>
    %547 = tpu.matmul %544, %546, %cst_302 {dimension_numbers = #tpu.dot_dimension_numbers<[1], [0], [0], [1], [0, 0, 1, 1], [], []>} : vector<2x128xbf16>, vector<128x100xbf16>, vector<2x100xf32> -> vector<2x100xf32>
    %548 = arith.addf %542, %547 : vector<2x100xf32>
    %549 = vector.extract_strided_slice %381 {offsets = [54, 0], sizes = [2, 128], strides = [1, 1]} : vector<100x128xf32> to vector<2x128xf32>
    %550 = arith.truncf %549 : vector<2x128xf32> to vector<2x128xbf16>
    %c27_303 = arith.constant 27 : index
    %c0_304 = arith.constant 0 : index
    %c0_305 = arith.constant 0 : index
    %551 = vector.load %arg14[%c27_303, %c0_304, %c0_305] : memref<50x128x100xbf16, #tpu.memory_space<vmem>>, vector<1x128x100xbf16>
    %552 = vector.shape_cast %551 : vector<1x128x100xbf16> to vector<128x100xbf16>
    %cst_306 = arith.constant dense<0.000000e+00> : vector<2x100xf32>
    %553 = tpu.matmul %550, %552, %cst_306 {dimension_numbers = #tpu.dot_dimension_numbers<[1], [0], [0], [1], [0, 0, 1, 1], [], []>} : vector<2x128xbf16>, vector<128x100xbf16>, vector<2x100xf32> -> vector<2x100xf32>
    %554 = arith.addf %548, %553 : vector<2x100xf32>
    %555 = vector.extract_strided_slice %381 {offsets = [56, 0], sizes = [2, 128], strides = [1, 1]} : vector<100x128xf32> to vector<2x128xf32>
    %556 = arith.truncf %555 : vector<2x128xf32> to vector<2x128xbf16>
    %c28_307 = arith.constant 28 : index
    %c0_308 = arith.constant 0 : index
    %c0_309 = arith.constant 0 : index
    %557 = vector.load %arg14[%c28_307, %c0_308, %c0_309] : memref<50x128x100xbf16, #tpu.memory_space<vmem>>, vector<1x128x100xbf16>
    %558 = vector.shape_cast %557 : vector<1x128x100xbf16> to vector<128x100xbf16>
    %cst_310 = arith.constant dense<0.000000e+00> : vector<2x100xf32>
    %559 = tpu.matmul %556, %558, %cst_310 {dimension_numbers = #tpu.dot_dimension_numbers<[1], [0], [0], [1], [0, 0, 1, 1], [], []>} : vector<2x128xbf16>, vector<128x100xbf16>, vector<2x100xf32> -> vector<2x100xf32>
    %560 = arith.addf %554, %559 : vector<2x100xf32>
    %561 = vector.extract_strided_slice %381 {offsets = [58, 0], sizes = [2, 128], strides = [1, 1]} : vector<100x128xf32> to vector<2x128xf32>
    %562 = arith.truncf %561 : vector<2x128xf32> to vector<2x128xbf16>
    %c29_311 = arith.constant 29 : index
    %c0_312 = arith.constant 0 : index
    %c0_313 = arith.constant 0 : index
    %563 = vector.load %arg14[%c29_311, %c0_312, %c0_313] : memref<50x128x100xbf16, #tpu.memory_space<vmem>>, vector<1x128x100xbf16>
    %564 = vector.shape_cast %563 : vector<1x128x100xbf16> to vector<128x100xbf16>
    %cst_314 = arith.constant dense<0.000000e+00> : vector<2x100xf32>
    %565 = tpu.matmul %562, %564, %cst_314 {dimension_numbers = #tpu.dot_dimension_numbers<[1], [0], [0], [1], [0, 0, 1, 1], [], []>} : vector<2x128xbf16>, vector<128x100xbf16>, vector<2x100xf32> -> vector<2x100xf32>
    %566 = arith.addf %560, %565 : vector<2x100xf32>
    %567 = vector.extract_strided_slice %381 {offsets = [60, 0], sizes = [2, 128], strides = [1, 1]} : vector<100x128xf32> to vector<2x128xf32>
    %568 = arith.truncf %567 : vector<2x128xf32> to vector<2x128xbf16>
    %c30_315 = arith.constant 30 : index
    %c0_316 = arith.constant 0 : index
    %c0_317 = arith.constant 0 : index
    %569 = vector.load %arg14[%c30_315, %c0_316, %c0_317] : memref<50x128x100xbf16, #tpu.memory_space<vmem>>, vector<1x128x100xbf16>
    %570 = vector.shape_cast %569 : vector<1x128x100xbf16> to vector<128x100xbf16>
    %cst_318 = arith.constant dense<0.000000e+00> : vector<2x100xf32>
    %571 = tpu.matmul %568, %570, %cst_318 {dimension_numbers = #tpu.dot_dimension_numbers<[1], [0], [0], [1], [0, 0, 1, 1], [], []>} : vector<2x128xbf16>, vector<128x100xbf16>, vector<2x100xf32> -> vector<2x100xf32>
    %572 = arith.addf %566, %571 : vector<2x100xf32>
    %573 = vector.extract_strided_slice %381 {offsets = [62, 0], sizes = [2, 128], strides = [1, 1]} : vector<100x128xf32> to vector<2x128xf32>
    %574 = arith.truncf %573 : vector<2x128xf32> to vector<2x128xbf16>
    %c31 = arith.constant 31 : index
    %c0_319 = arith.constant 0 : index
    %c0_320 = arith.constant 0 : index
    %575 = vector.load %arg14[%c31, %c0_319, %c0_320] : memref<50x128x100xbf16, #tpu.memory_space<vmem>>, vector<1x128x100xbf16>
    %576 = vector.shape_cast %575 : vector<1x128x100xbf16> to vector<128x100xbf16>
    %cst_321 = arith.constant dense<0.000000e+00> : vector<2x100xf32>
    %577 = tpu.matmul %574, %576, %cst_321 {dimension_numbers = #tpu.dot_dimension_numbers<[1], [0], [0], [1], [0, 0, 1, 1], [], []>} : vector<2x128xbf16>, vector<128x100xbf16>, vector<2x100xf32> -> vector<2x100xf32>
    %578 = arith.addf %572, %577 : vector<2x100xf32>
    %579 = vector.extract_strided_slice %381 {offsets = [64, 0], sizes = [2, 128], strides = [1, 1]} : vector<100x128xf32> to vector<2x128xf32>
    %580 = arith.truncf %579 : vector<2x128xf32> to vector<2x128xbf16>
    %c32 = arith.constant 32 : index
    %c0_322 = arith.constant 0 : index
    %c0_323 = arith.constant 0 : index
    %581 = vector.load %arg14[%c32, %c0_322, %c0_323] : memref<50x128x100xbf16, #tpu.memory_space<vmem>>, vector<1x128x100xbf16>
    %582 = vector.shape_cast %581 : vector<1x128x100xbf16> to vector<128x100xbf16>
    %cst_324 = arith.constant dense<0.000000e+00> : vector<2x100xf32>
    %583 = tpu.matmul %580, %582, %cst_324 {dimension_numbers = #tpu.dot_dimension_numbers<[1], [0], [0], [1], [0, 0, 1, 1], [], []>} : vector<2x128xbf16>, vector<128x100xbf16>, vector<2x100xf32> -> vector<2x100xf32>
    %584 = arith.addf %578, %583 : vector<2x100xf32>
    %585 = vector.extract_strided_slice %381 {offsets = [66, 0], sizes = [2, 128], strides = [1, 1]} : vector<100x128xf32> to vector<2x128xf32>
    %586 = arith.truncf %585 : vector<2x128xf32> to vector<2x128xbf16>
    %c33 = arith.constant 33 : index
    %c0_325 = arith.constant 0 : index
    %c0_326 = arith.constant 0 : index
    %587 = vector.load %arg14[%c33, %c0_325, %c0_326] : memref<50x128x100xbf16, #tpu.memory_space<vmem>>, vector<1x128x100xbf16>
    %588 = vector.shape_cast %587 : vector<1x128x100xbf16> to vector<128x100xbf16>
    %cst_327 = arith.constant dense<0.000000e+00> : vector<2x100xf32>
    %589 = tpu.matmul %586, %588, %cst_327 {dimension_numbers = #tpu.dot_dimension_numbers<[1], [0], [0], [1], [0, 0, 1, 1], [], []>} : vector<2x128xbf16>, vector<128x100xbf16>, vector<2x100xf32> -> vector<2x100xf32>
    %590 = arith.addf %584, %589 : vector<2x100xf32>
    %591 = vector.extract_strided_slice %381 {offsets = [68, 0], sizes = [2, 128], strides = [1, 1]} : vector<100x128xf32> to vector<2x128xf32>
    %592 = arith.truncf %591 : vector<2x128xf32> to vector<2x128xbf16>
    %c34 = arith.constant 34 : index
    %c0_328 = arith.constant 0 : index
    %c0_329 = arith.constant 0 : index
    %593 = vector.load %arg14[%c34, %c0_328, %c0_329] : memref<50x128x100xbf16, #tpu.memory_space<vmem>>, vector<1x128x100xbf16>
    %594 = vector.shape_cast %593 : vector<1x128x100xbf16> to vector<128x100xbf16>
    %cst_330 = arith.constant dense<0.000000e+00> : vector<2x100xf32>
    %595 = tpu.matmul %592, %594, %cst_330 {dimension_numbers = #tpu.dot_dimension_numbers<[1], [0], [0], [1], [0, 0, 1, 1], [], []>} : vector<2x128xbf16>, vector<128x100xbf16>, vector<2x100xf32> -> vector<2x100xf32>
    %596 = arith.addf %590, %595 : vector<2x100xf32>
    %597 = vector.extract_strided_slice %381 {offsets = [70, 0], sizes = [2, 128], strides = [1, 1]} : vector<100x128xf32> to vector<2x128xf32>
    %598 = arith.truncf %597 : vector<2x128xf32> to vector<2x128xbf16>
    %c35 = arith.constant 35 : index
    %c0_331 = arith.constant 0 : index
    %c0_332 = arith.constant 0 : index
    %599 = vector.load %arg14[%c35, %c0_331, %c0_332] : memref<50x128x100xbf16, #tpu.memory_space<vmem>>, vector<1x128x100xbf16>
    %600 = vector.shape_cast %599 : vector<1x128x100xbf16> to vector<128x100xbf16>
    %cst_333 = arith.constant dense<0.000000e+00> : vector<2x100xf32>
    %601 = tpu.matmul %598, %600, %cst_333 {dimension_numbers = #tpu.dot_dimension_numbers<[1], [0], [0], [1], [0, 0, 1, 1], [], []>} : vector<2x128xbf16>, vector<128x100xbf16>, vector<2x100xf32> -> vector<2x100xf32>
    %602 = arith.addf %596, %601 : vector<2x100xf32>
    %603 = vector.extract_strided_slice %381 {offsets = [72, 0], sizes = [2, 128], strides = [1, 1]} : vector<100x128xf32> to vector<2x128xf32>
    %604 = arith.truncf %603 : vector<2x128xf32> to vector<2x128xbf16>
    %c36 = arith.constant 36 : index
    %c0_334 = arith.constant 0 : index
    %c0_335 = arith.constant 0 : index
    %605 = vector.load %arg14[%c36, %c0_334, %c0_335] : memref<50x128x100xbf16, #tpu.memory_space<vmem>>, vector<1x128x100xbf16>
    %606 = vector.shape_cast %605 : vector<1x128x100xbf16> to vector<128x100xbf16>
    %cst_336 = arith.constant dense<0.000000e+00> : vector<2x100xf32>
    %607 = tpu.matmul %604, %606, %cst_336 {dimension_numbers = #tpu.dot_dimension_numbers<[1], [0], [0], [1], [0, 0, 1, 1], [], []>} : vector<2x128xbf16>, vector<128x100xbf16>, vector<2x100xf32> -> vector<2x100xf32>
    %608 = arith.addf %602, %607 : vector<2x100xf32>
    %609 = vector.extract_strided_slice %381 {offsets = [74, 0], sizes = [2, 128], strides = [1, 1]} : vector<100x128xf32> to vector<2x128xf32>
    %610 = arith.truncf %609 : vector<2x128xf32> to vector<2x128xbf16>
    %c37 = arith.constant 37 : index
    %c0_337 = arith.constant 0 : index
    %c0_338 = arith.constant 0 : index
    %611 = vector.load %arg14[%c37, %c0_337, %c0_338] : memref<50x128x100xbf16, #tpu.memory_space<vmem>>, vector<1x128x100xbf16>
    %612 = vector.shape_cast %611 : vector<1x128x100xbf16> to vector<128x100xbf16>
    %cst_339 = arith.constant dense<0.000000e+00> : vector<2x100xf32>
    %613 = tpu.matmul %610, %612, %cst_339 {dimension_numbers = #tpu.dot_dimension_numbers<[1], [0], [0], [1], [0, 0, 1, 1], [], []>} : vector<2x128xbf16>, vector<128x100xbf16>, vector<2x100xf32> -> vector<2x100xf32>
    %614 = arith.addf %608, %613 : vector<2x100xf32>
    %615 = vector.extract_strided_slice %381 {offsets = [76, 0], sizes = [2, 128], strides = [1, 1]} : vector<100x128xf32> to vector<2x128xf32>
    %616 = arith.truncf %615 : vector<2x128xf32> to vector<2x128xbf16>
    %c38 = arith.constant 38 : index
    %c0_340 = arith.constant 0 : index
    %c0_341 = arith.constant 0 : index
    %617 = vector.load %arg14[%c38, %c0_340, %c0_341] : memref<50x128x100xbf16, #tpu.memory_space<vmem>>, vector<1x128x100xbf16>
    %618 = vector.shape_cast %617 : vector<1x128x100xbf16> to vector<128x100xbf16>
    %cst_342 = arith.constant dense<0.000000e+00> : vector<2x100xf32>
    %619 = tpu.matmul %616, %618, %cst_342 {dimension_numbers = #tpu.dot_dimension_numbers<[1], [0], [0], [1], [0, 0, 1, 1], [], []>} : vector<2x128xbf16>, vector<128x100xbf16>, vector<2x100xf32> -> vector<2x100xf32>
    %620 = arith.addf %614, %619 : vector<2x100xf32>
    %621 = vector.extract_strided_slice %381 {offsets = [78, 0], sizes = [2, 128], strides = [1, 1]} : vector<100x128xf32> to vector<2x128xf32>
    %622 = arith.truncf %621 : vector<2x128xf32> to vector<2x128xbf16>
    %c39 = arith.constant 39 : index
    %c0_343 = arith.constant 0 : index
    %c0_344 = arith.constant 0 : index
    %623 = vector.load %arg14[%c39, %c0_343, %c0_344] : memref<50x128x100xbf16, #tpu.memory_space<vmem>>, vector<1x128x100xbf16>
    %624 = vector.shape_cast %623 : vector<1x128x100xbf16> to vector<128x100xbf16>
    %cst_345 = arith.constant dense<0.000000e+00> : vector<2x100xf32>
    %625 = tpu.matmul %622, %624, %cst_345 {dimension_numbers = #tpu.dot_dimension_numbers<[1], [0], [0], [1], [0, 0, 1, 1], [], []>} : vector<2x128xbf16>, vector<128x100xbf16>, vector<2x100xf32> -> vector<2x100xf32>
    %626 = arith.addf %620, %625 : vector<2x100xf32>
    %627 = vector.extract_strided_slice %381 {offsets = [80, 0], sizes = [2, 128], strides = [1, 1]} : vector<100x128xf32> to vector<2x128xf32>
    %628 = arith.truncf %627 : vector<2x128xf32> to vector<2x128xbf16>
    %c40 = arith.constant 40 : index
    %c0_346 = arith.constant 0 : index
    %c0_347 = arith.constant 0 : index
    %629 = vector.load %arg14[%c40, %c0_346, %c0_347] : memref<50x128x100xbf16, #tpu.memory_space<vmem>>, vector<1x128x100xbf16>
    %630 = vector.shape_cast %629 : vector<1x128x100xbf16> to vector<128x100xbf16>
    %cst_348 = arith.constant dense<0.000000e+00> : vector<2x100xf32>
    %631 = tpu.matmul %628, %630, %cst_348 {dimension_numbers = #tpu.dot_dimension_numbers<[1], [0], [0], [1], [0, 0, 1, 1], [], []>} : vector<2x128xbf16>, vector<128x100xbf16>, vector<2x100xf32> -> vector<2x100xf32>
    %632 = arith.addf %626, %631 : vector<2x100xf32>
    %633 = vector.extract_strided_slice %381 {offsets = [82, 0], sizes = [2, 128], strides = [1, 1]} : vector<100x128xf32> to vector<2x128xf32>
    %634 = arith.truncf %633 : vector<2x128xf32> to vector<2x128xbf16>
    %c41 = arith.constant 41 : index
    %c0_349 = arith.constant 0 : index
    %c0_350 = arith.constant 0 : index
    %635 = vector.load %arg14[%c41, %c0_349, %c0_350] : memref<50x128x100xbf16, #tpu.memory_space<vmem>>, vector<1x128x100xbf16>
    %636 = vector.shape_cast %635 : vector<1x128x100xbf16> to vector<128x100xbf16>
    %cst_351 = arith.constant dense<0.000000e+00> : vector<2x100xf32>
    %637 = tpu.matmul %634, %636, %cst_351 {dimension_numbers = #tpu.dot_dimension_numbers<[1], [0], [0], [1], [0, 0, 1, 1], [], []>} : vector<2x128xbf16>, vector<128x100xbf16>, vector<2x100xf32> -> vector<2x100xf32>
    %638 = arith.addf %632, %637 : vector<2x100xf32>
    %639 = vector.extract_strided_slice %381 {offsets = [84, 0], sizes = [2, 128], strides = [1, 1]} : vector<100x128xf32> to vector<2x128xf32>
    %640 = arith.truncf %639 : vector<2x128xf32> to vector<2x128xbf16>
    %c42 = arith.constant 42 : index
    %c0_352 = arith.constant 0 : index
    %c0_353 = arith.constant 0 : index
    %641 = vector.load %arg14[%c42, %c0_352, %c0_353] : memref<50x128x100xbf16, #tpu.memory_space<vmem>>, vector<1x128x100xbf16>
    %642 = vector.shape_cast %641 : vector<1x128x100xbf16> to vector<128x100xbf16>
    %cst_354 = arith.constant dense<0.000000e+00> : vector<2x100xf32>
    %643 = tpu.matmul %640, %642, %cst_354 {dimension_numbers = #tpu.dot_dimension_numbers<[1], [0], [0], [1], [0, 0, 1, 1], [], []>} : vector<2x128xbf16>, vector<128x100xbf16>, vector<2x100xf32> -> vector<2x100xf32>
    %644 = arith.addf %638, %643 : vector<2x100xf32>
    %645 = vector.extract_strided_slice %381 {offsets = [86, 0], sizes = [2, 128], strides = [1, 1]} : vector<100x128xf32> to vector<2x128xf32>
    %646 = arith.truncf %645 : vector<2x128xf32> to vector<2x128xbf16>
    %c43 = arith.constant 43 : index
    %c0_355 = arith.constant 0 : index
    %c0_356 = arith.constant 0 : index
    %647 = vector.load %arg14[%c43, %c0_355, %c0_356] : memref<50x128x100xbf16, #tpu.memory_space<vmem>>, vector<1x128x100xbf16>
    %648 = vector.shape_cast %647 : vector<1x128x100xbf16> to vector<128x100xbf16>
    %cst_357 = arith.constant dense<0.000000e+00> : vector<2x100xf32>
    %649 = tpu.matmul %646, %648, %cst_357 {dimension_numbers = #tpu.dot_dimension_numbers<[1], [0], [0], [1], [0, 0, 1, 1], [], []>} : vector<2x128xbf16>, vector<128x100xbf16>, vector<2x100xf32> -> vector<2x100xf32>
    %650 = arith.addf %644, %649 : vector<2x100xf32>
    %651 = vector.extract_strided_slice %381 {offsets = [88, 0], sizes = [2, 128], strides = [1, 1]} : vector<100x128xf32> to vector<2x128xf32>
    %652 = arith.truncf %651 : vector<2x128xf32> to vector<2x128xbf16>
    %c44 = arith.constant 44 : index
    %c0_358 = arith.constant 0 : index
    %c0_359 = arith.constant 0 : index
    %653 = vector.load %arg14[%c44, %c0_358, %c0_359] : memref<50x128x100xbf16, #tpu.memory_space<vmem>>, vector<1x128x100xbf16>
    %654 = vector.shape_cast %653 : vector<1x128x100xbf16> to vector<128x100xbf16>
    %cst_360 = arith.constant dense<0.000000e+00> : vector<2x100xf32>
    %655 = tpu.matmul %652, %654, %cst_360 {dimension_numbers = #tpu.dot_dimension_numbers<[1], [0], [0], [1], [0, 0, 1, 1], [], []>} : vector<2x128xbf16>, vector<128x100xbf16>, vector<2x100xf32> -> vector<2x100xf32>
    %656 = arith.addf %650, %655 : vector<2x100xf32>
    %657 = vector.extract_strided_slice %381 {offsets = [90, 0], sizes = [2, 128], strides = [1, 1]} : vector<100x128xf32> to vector<2x128xf32>
    %658 = arith.truncf %657 : vector<2x128xf32> to vector<2x128xbf16>
    %c45 = arith.constant 45 : index
    %c0_361 = arith.constant 0 : index
    %c0_362 = arith.constant 0 : index
    %659 = vector.load %arg14[%c45, %c0_361, %c0_362] : memref<50x128x100xbf16, #tpu.memory_space<vmem>>, vector<1x128x100xbf16>
    %660 = vector.shape_cast %659 : vector<1x128x100xbf16> to vector<128x100xbf16>
    %cst_363 = arith.constant dense<0.000000e+00> : vector<2x100xf32>
    %661 = tpu.matmul %658, %660, %cst_363 {dimension_numbers = #tpu.dot_dimension_numbers<[1], [0], [0], [1], [0, 0, 1, 1], [], []>} : vector<2x128xbf16>, vector<128x100xbf16>, vector<2x100xf32> -> vector<2x100xf32>
    %662 = arith.addf %656, %661 : vector<2x100xf32>
    %663 = vector.extract_strided_slice %381 {offsets = [92, 0], sizes = [2, 128], strides = [1, 1]} : vector<100x128xf32> to vector<2x128xf32>
    %664 = arith.truncf %663 : vector<2x128xf32> to vector<2x128xbf16>
    %c46 = arith.constant 46 : index
    %c0_364 = arith.constant 0 : index
    %c0_365 = arith.constant 0 : index
    %665 = vector.load %arg14[%c46, %c0_364, %c0_365] : memref<50x128x100xbf16, #tpu.memory_space<vmem>>, vector<1x128x100xbf16>
    %666 = vector.shape_cast %665 : vector<1x128x100xbf16> to vector<128x100xbf16>
    %cst_366 = arith.constant dense<0.000000e+00> : vector<2x100xf32>
    %667 = tpu.matmul %664, %666, %cst_366 {dimension_numbers = #tpu.dot_dimension_numbers<[1], [0], [0], [1], [0, 0, 1, 1], [], []>} : vector<2x128xbf16>, vector<128x100xbf16>, vector<2x100xf32> -> vector<2x100xf32>
    %668 = arith.addf %662, %667 : vector<2x100xf32>
    %669 = vector.extract_strided_slice %381 {offsets = [94, 0], sizes = [2, 128], strides = [1, 1]} : vector<100x128xf32> to vector<2x128xf32>
    %670 = arith.truncf %669 : vector<2x128xf32> to vector<2x128xbf16>
    %c47 = arith.constant 47 : index
    %c0_367 = arith.constant 0 : index
    %c0_368 = arith.constant 0 : index
    %671 = vector.load %arg14[%c47, %c0_367, %c0_368] : memref<50x128x100xbf16, #tpu.memory_space<vmem>>, vector<1x128x100xbf16>
    %672 = vector.shape_cast %671 : vector<1x128x100xbf16> to vector<128x100xbf16>
    %cst_369 = arith.constant dense<0.000000e+00> : vector<2x100xf32>
    %673 = tpu.matmul %670, %672, %cst_369 {dimension_numbers = #tpu.dot_dimension_numbers<[1], [0], [0], [1], [0, 0, 1, 1], [], []>} : vector<2x128xbf16>, vector<128x100xbf16>, vector<2x100xf32> -> vector<2x100xf32>
    %674 = arith.addf %668, %673 : vector<2x100xf32>
    %675 = vector.extract_strided_slice %381 {offsets = [96, 0], sizes = [2, 128], strides = [1, 1]} : vector<100x128xf32> to vector<2x128xf32>
    %676 = arith.truncf %675 : vector<2x128xf32> to vector<2x128xbf16>
    %c48 = arith.constant 48 : index
    %c0_370 = arith.constant 0 : index
    %c0_371 = arith.constant 0 : index
    %677 = vector.load %arg14[%c48, %c0_370, %c0_371] : memref<50x128x100xbf16, #tpu.memory_space<vmem>>, vector<1x128x100xbf16>
    %678 = vector.shape_cast %677 : vector<1x128x100xbf16> to vector<128x100xbf16>
    %cst_372 = arith.constant dense<0.000000e+00> : vector<2x100xf32>
    %679 = tpu.matmul %676, %678, %cst_372 {dimension_numbers = #tpu.dot_dimension_numbers<[1], [0], [0], [1], [0, 0, 1, 1], [], []>} : vector<2x128xbf16>, vector<128x100xbf16>, vector<2x100xf32> -> vector<2x100xf32>
    %680 = arith.addf %674, %679 : vector<2x100xf32>
    %681 = vector.extract_strided_slice %381 {offsets = [98, 0], sizes = [2, 128], strides = [1, 1]} : vector<100x128xf32> to vector<2x128xf32>
    %682 = arith.truncf %681 : vector<2x128xf32> to vector<2x128xbf16>
    %c49 = arith.constant 49 : index
    %c0_373 = arith.constant 0 : index
    %c0_374 = arith.constant 0 : index
    %683 = vector.load %arg14[%c49, %c0_373, %c0_374] : memref<50x128x100xbf16, #tpu.memory_space<vmem>>, vector<1x128x100xbf16>
    %684 = vector.shape_cast %683 : vector<1x128x100xbf16> to vector<128x100xbf16>
    %cst_375 = arith.constant dense<0.000000e+00> : vector<2x100xf32>
    %685 = tpu.matmul %682, %684, %cst_375 {dimension_numbers = #tpu.dot_dimension_numbers<[1], [0], [0], [1], [0, 0, 1, 1], [], []>} : vector<2x128xbf16>, vector<128x100xbf16>, vector<2x100xf32> -> vector<2x100xf32>
    %686 = arith.addf %680, %685 : vector<2x100xf32>
    %cst_376 = arith.constant 0.000000e+00 : f32
    %687 = vector.broadcast %cst_376 : f32 to vector<2x100xf32>
    %688 = arith.maximumf %686, %687 : vector<2x100xf32>
    %c0_377 = arith.constant 0 : index
    %c0_378 = arith.constant 0 : index
    %689 = vector.load %arg17[%c0_377, %c0_378] : memref<100x2xf32, #tpu.memory_space<vmem>>, vector<100x2xf32>
    %cst_379 = arith.constant dense<0.000000e+00> : vector<2x2xf32>
    %690 = tpu.matmul %688, %689, %cst_379 {dimension_numbers = #tpu.dot_dimension_numbers<[1], [0], [0], [1], [0, 0, 1, 1], [], []>} : vector<2x100xf32>, vector<100x2xf32>, vector<2x2xf32> -> vector<2x2xf32>
    %c0_380 = arith.constant 0 : index
    %c0_381 = arith.constant 0 : index
    %691 = vector.load %arg18[%c0_380, %c0_381] : memref<1x2xf32, #tpu.memory_space<vmem>>, vector<1x2xf32>
    %692 = vector.broadcast %691 : vector<1x2xf32> to vector<2x2xf32>
    %693 = arith.addf %690, %692 : vector<2x2xf32>
    %c0_382 = arith.constant 0 : index
    %c0_383 = arith.constant 0 : index
    %694 = vector.load %arg19[%c0_382, %c0_383] : memref<2x2xf32, #tpu.memory_space<vmem>>, vector<2x2xf32>
    tpu.vector_store %arg19[%c0_382, %c0_383], %693 {strides = array<i32>} : memref<2x2xf32, #tpu.memory_space<vmem>>, vector<2x2xf32>,
    return
  }
}

</mosaic_0001>

<bundles_post_ra>
// kernel: game_eval_input.1
= control target key start
LH: loop header
LB: loop body
LE: loop exit
PB: predicated region body
PF: predicated region fallthrough
CT: control target
= control target key end

     0   :  { %s24119_s0 = inlined_call_operand.vmem [shape: f32[2,50], index: 0, kind: input, shape index: {}]   ;;  %s24120_s1 = inlined_call_operand.vmem [shape: f32[100,64], index: 1, kind: input, shape index: {}]   ;;  %s24121_s2 = inlined_call_operand.vmem [shape: f32[20,200], index: 2, kind: input, shape index: {}]   ;;  %s24122_s3 = inlined_call_operand.vmem [shape: f32[1,200], index: 3, kind: input, shape index: {}]   ;;  %s24123_s4 = inlined_call_operand.vmem [shape: bf16[31,200,50], index: 4, kind: input, shape index: {}]   ;;  %s24124_s5 = inlined_call_operand.vmem [shape: f32[1,50], index: 5, kind: input, shape index: {}]   ;;  %s24125_s6 = inlined_call_operand.vmem [shape: f32[50,50], index: 6, kind: input, shape index: {}]   ;;  %s24126_s7 = inlined_call_operand.vmem [shape: f32[1,50], index: 7, kind: input, shape index: {}]   ;;  %s24127_s8 = inlined_call_operand.vmem [shape: bf16[64,512], index: 8, kind: input, shape index: {}]   ;;  %s24128_s9 = inlined_call_operand.vmem [shape: f32[1,512], index: 9, kind: input, shape index: {}]   ;;  %s24129_s10 = inlined_call_operand.vmem [shape: bf16[512,128], index: 10, kind: input, shape index: {}]   ;;  %s24130_s11 = inlined_call_operand.vmem [shape: f32[1,128], index: 11, kind: input, shape index: {}]   ;;  %s24131_s12 = inlined_call_operand.vmem [shape: bf16[128,128], index: 12, kind: input, shape index: {}]   ;;  %s24132_s13 = inlined_call_operand.vmem [shape: f32[1,128], index: 13, kind: input, shape index: {}]   ;;  %s24133_s14 = inlined_call_operand.vmem [shape: bf16[50,128,100], index: 14, kind: input, shape index: {}]   ;;  %s24134_s15 = inlined_call_operand.vmem [shape: f32[50,100], index: 15, kind: input, shape index: {}]   ;;  %s24135_s16 = inlined_call_operand.vmem [shape: f32[1,100], index: 16, kind: input, shape index: {}]   ;;  %s24136_s17 = inlined_call_operand.vmem [shape: f32[100,2], index: 17, kind: input, shape index: {}]   ;;  %s24137_s18 = inlined_call_operand.vmem [shape: f32[1,2], index: 18, kind: input, shape index: {}]   ;;  %s24138_s19 = inlined_call_operand.hbm [shape: f32[2,2], index: 19, kind: output, shape index: {}]  }
   0x1   :  { %24142 = sst [smem:[#allocation5_spill]] %s24119_s0 }
   0x2   :  { %24143 = sst [smem:[#allocation6_spill]] %s24120_s1 }
   0x3   :  { %24144 = sst [smem:[#allocation7_spill]] %s24121_s2 }
   0x4   :  { %24145 = sst [smem:[#allocation8_spill]] %s24122_s3 }
   0x5   :  { %24146 = sst [smem:[#allocation9_spill]] %s24132_s13 }
   0x6   :  { %s24147_s20 = sld [smem:[#allocation5_spill]]  ;;  %s24148_s13 = sld [smem:[#allocation7_spill]]  ;;  %vm87_vm0 = vcmask 1043456   ;;  %v19459_v8 = vmov 0.0   ;;  %v18552_v9 = vld [vmem:[%s24123_s4] sm:$0xff]   ;;  %v19461_v10 = vmov 0   ;;  %v73_v15 = vlaneseq }
   0x7   :  { %s19458_s23 = smov 127   ;;  %158 = vmatprep.mubr.f32.mxu0 %v19459_v8  ;;  %s19460_s30 = smov 125   ;;  %502 = vmatprep.subr.bf16.mxu1 %v19461_v10  ;;  %vm83_vm1 = vcmask 162816   ;;  %v18553_v12 = vld [vmem:[%s24123_s4 + $0x8] sm:$0xff]   ;;  %v18554_v13 = vld [vmem:[%s24123_s4 + $0x10] sm:$0xff]   ;;  %v18556_v14 = vld [vmem:[%s24123_s4 + $0x18] sm:$0xff]  }
   0x8   :  { %s19462_s22 = smov 126   ;;  %503 = vmatpush1.bf16.msra.mxu1 %v18552_v9  ;;  %v18558_v16 = vld [vmem:[%s24123_s4 + $0x20] sm:$0xff]   ;;  %v18560_v17 = vld [vmem:[%s24123_s4 + $0x28] sm:$0xff]   ;;  %v19653_v18 = vshrl.u32 %v73_v15, 7  ;;  %v18562_v19 = vld [vmem:[%s24123_s4 + $0x30] sm:$0xff]   ;;  %vm374_vm2 = vcmask 588800  }
   0x9   :  { %504 = vmatprep.subr.bf16.mxu1 %v19461_v10  ;;  %v18564_v20 = vld [vmem:[%s24123_s4 + $0x38] sm:$0xff]   ;;  %v18566_v21 = vld [vmem:[%s24123_s4 + $0x40] sm:$0xff]   ;;  %v18568_v22 = vld [vmem:[%s24123_s4 + $0x48] sm:$0xff]   ;;  %s19464_s24 = smov 123   ;;  %s19465_s25 = smov 122  }
   0xa   :  { %v18570_v23 = vld [vmem:[%s24123_s4 + $0x50] sm:$0xff]   ;;  %v18572_v24 = vld [vmem:[%s24123_s4 + $0x58] sm:$0xff]   ;;  %v18574_v25 = vld [vmem:[%s24123_s4 + $0x60] ss:$0 sps:$4 sm:$0xff]   ;;  %v75_v26 = vsub.s32 0, %v19653_v18  ;;  %v79_v40 = vsub.s32 1, %v19653_v18 }
   0xb   :  { %v500_v27 = vsel %vm87_vm0, %v18574_v25, 0  ;;  %v18555_v28 = vld [vmem:[%s24123_s4 + $0x64] sm:$0xff]   ;;  %v18557_v30 = vld [vmem:[%s24123_s4 + $0x6c] sm:$0xff]   ;;  %v18559_v31 = vld [vmem:[%s24123_s4 + $0x74] sm:$0xff]  }
   0xc   :  { %v64_v0 = vld [vmem:[%s24147_s20] sm:$0x3]  ;;  %v66_v1 = vld [vmem:[%s24148_s13 + $0x8] sm:$0xff]  ;;  %v68_v2 = vld [vmem:[%s24148_s13 + $0x18] sm:$0xff]  ;;  %505 = vmatpush1.bf16.msra.mxu1 %v18553_v12 }
   0xd   :  { %194 = vrot.lane.b32.xlu0 %v64_v0, %s19458_s23  ;;  %v19602_v3 = vpack.c.bf16 %v68_v2, %v66_v1  ;;  %v65_v4 = vld [vmem:[%s24148_s13] sm:$0xff]  ;;  %v67_v5 = vld [vmem:[%s24148_s13 + $0x10] sm:$0xff]  ;;  %v70_v7 = vld [vmem:[%s24148_s13 + $0x28] sm:$0xf]  ;;  %506 = vmatprep.subr.bf16.mxu1 %v19461_v10 }
   0xe   :  { %v19610_v6 = vpack.c.bf16 %v67_v5, %v65_v4  ;;  %769 = vrot.lane.b32.xlu1 %v64_v0, %s19460_s30  ;;  %v69_v11 = vld [vmem:[%s24148_s13 + $0x20] sm:$0xf]  ;;  %v18563_v33 = vld [vmem:[%s24123_s4 + $0x84] sm:$0xff]   ;;  %v18565_v34 = vld [vmem:[%s24123_s4 + $0x8c] sm:$0xff]   ;;  %s24149_s30 = sld [smem:[#allocation8_spill]] }
   0xf   :  { %18165 = vmatprep.subr.bf16.mxu0 %v19602_v3  ;;  %v18561_v32 = vld [vmem:[%s24123_s4 + $0x7c] sm:$0xff]   ;;  %v18567_v35 = vld [vmem:[%s24123_s4 + $0x94] sm:$0xff]   ;;  %v18571_v37 = vld [vmem:[%s24123_s4 + $0xa4] sm:$0xff]  }
  0x10   :  { %18167 = vmatpush1.bf16.msra.mxu0 %v19610_v6  ;;  %507 = vmatpush1.bf16.msra.mxu1 %v18554_v13  ;;  %v18569_v36 = vld [vmem:[%s24123_s4 + $0x9c] sm:$0xff]   ;;  %v18573_v38 = vld [vmem:[%s24123_s4 + $0xac] sm:$0xff]   ;;  %v18575_v39 = vld [vmem:[%s24123_s4 + $0xb4] sm:$0xff]  }
  0x11   :  { %13903 = vmatprep.subr.msk.mxu0 %vm87_vm0, %v70_v7  ;;  %542 = vrot.lane.b32.xlu0 %v64_v0, %s19462_s22  ;;  %v18576_v41 = vld [vmem:[%s24123_s4 + $0xbc] sm:$0xff]   ;;  %v18577_v42 = vld [vmem:[%s24123_s4 + $0xc4] ss:$0 sps:$4 sm:$0xff]   ;;  %s19463_s22 = smov 124   ;;  %v18578_v54 = vld [vmem:[%s24123_s4 + $0xc8] sm:$0xff]  }
  0x12   :  { %508 = vmatprep.subr.bf16.mxu1 %v19461_v10  ;;  %v379_v43 = vsel %vm87_vm0, %v18577_v42, 0  ;;  %v19419_v52 = vld [vmem:[%s24147_s20] sm:$0x3]  ;;  %v18579_v57 = vld [vmem:[%s24123_s4 + $0xd0] sm:$0xff]   ;;  %v18581_v58 = vld [vmem:[%s24123_s4 + $0xd8] sm:$0xff]  }
  0x13   :  { %996 = vrot.lane.b32.xlu1 %v19419_v52, %s19463_s22  ;;  %v18583_v59 = vld [vmem:[%s24123_s4 + $0xe0] sm:$0xff]   ;;  %v18585_v60 = vld [vmem:[%s24123_s4 + $0xe8] sm:$0xff]   ;;  %v18587_v61 = vld [vmem:[%s24123_s4 + $0xf0] sm:$0xff]  }
  0x14   :  { %13904 = vmatpush1.msk.msra.mxu0 %vm87_vm0, %v69_v11  ;;  %509 = vmatpush1.bf16.msra.mxu1 %v18556_v14  ;;  %v71_v44 = vld [vmem:[%s24149_s30] sm:$0x3]  ;;  %v18589_v62 = vld [vmem:[%s24123_s4 + $0xf8] sm:$0xff]   ;;  %v19420_v13 = vld [vmem:[%s24148_s13 + $0x28] sm:$0xf] }
  0x15   :  { %13905 = vmatmul.mubr.msk.f32.vlgmr.msra.gmra.mrb[0].mxu0 %vm83_vm1, %v64_v0  ;;  %18169 = vmatprep.subr.bf16.mxu0 %v19602_v3  ;;  %v19747_v45 = vrot.slane %v71_v44, %v75_v26  ;;  %v19751_v46 = vrot.slane %v71_v44, %v79_v40  ;;  %v18591_v63 = vld [vmem:[%s24123_s4 + $0x100] sm:$0xff]   ;;  %v18593_v0 = vld [vmem:[%s24123_s4 + $0x108] sm:$0xff]  }
  0x16   :  { %18171 = vmatpush1.bf16.msra.mxu0 %v19610_v6  ;;  %262 = vmatprep.mubr.f32.mxu0 %v19459_v8  ;;  %v19421_v14 = vld [vmem:[%s24148_s13 + $0x20] sm:$0xf]  ;;  %v18594_v25 = vld [vmem:[%s24123_s4 + $0x164] sm:$0xff]  }
  0x17   :  { %13906 = vmatprep.subr.msk.mxu0 %vm87_vm0, %v70_v7  ;;  %510 = vmatprep.subr.bf16.mxu1 %v19461_v10 }
  0x18   :  { %511 = vmatpush1.bf16.msra.mxu1 %v18558_v16  ;;  %v18580_v16 = vld [vmem:[%s24123_s4 + $0x12c] sm:$0xff]  }
  0x19   :  { %512 = vmatprep.subr.bf16.mxu1 %v19461_v10 }
  0x1a   :  { %13907 = vmatpush1.msk.msra.mxu0 %vm87_vm0, %v69_v11 }
  0x1b   :  { %381 = vmatprep.subr.bf16.mxu0 %v19461_v10 }
  0x1c   :  { %513 = vmatpush1.bf16.msra.mxu1 %v18560_v17 }
  0x1d   :  { %514 = vmatprep.subr.bf16.mxu1 %v19461_v10 }
  0x20   :  { %515 = vmatpush1.bf16.msra.mxu1 %v18562_v19  ;;  %v18582_v19 = vld [vmem:[%s24123_s4 + $0x134] sm:$0xff]  }
  0x21   :  { %516 = vmatprep.subr.bf16.mxu1 %v19461_v10 }
  0x24   :  { %517 = vmatpush1.bf16.msra.mxu1 %v18564_v20  ;;  %v18584_v20 = vld [vmem:[%s24123_s4 + $0x13c] sm:$0xff]  }
  0x25   :  { %518 = vmatprep.subr.bf16.mxu1 %v19461_v10 }
  0x28   :  { %519 = vmatpush1.bf16.msra.mxu1 %v18566_v21  ;;  %v18586_v21 = vld [vmem:[%s24123_s4 + $0x144] sm:$0xff]  }
  0x29   :  { %520 = vmatprep.subr.bf16.mxu1 %v19461_v10 }
  0x2c   :  { %521 = vmatpush1.bf16.msra.mxu1 %v18568_v22  ;;  %v18588_v22 = vld [vmem:[%s24123_s4 + $0x14c] sm:$0xff]  }
  0x2d   :  { %522 = vmatprep.subr.bf16.mxu1 %v19461_v10 }
  0x30   :  { %523 = vmatpush1.bf16.msra.mxu1 %v18570_v23  ;;  %v18590_v23 = vld [vmem:[%s24123_s4 + $0x154] sm:$0xff]  }
  0x31   :  { %524 = vmatprep.subr.bf16.mxu1 %v19461_v10 }
  0x34   :  { %525 = vmatpush1.bf16.msra.mxu1 %v18572_v24  ;;  %v18592_v24 = vld [vmem:[%s24123_s4 + $0x15c] sm:$0xff]  }
  0x35   :  { %526 = vmatprep.subr.bf16.mxu1 %v19461_v10 }
  0x38   :  { %527 = vmatpush1.bf16.msra.mxu1 %v500_v27  ;;  %v18595_v27 = vld [vmem:[%s24123_s4 + $0x110] sm:$0xff]  }
  0x39   :  { %728 = vmatprep.subr.bf16.mxu1 %v19461_v10 }
  0x7f   :  { %v195_v29 = vpop.permute.xlu0 %194 }
  0x80   :  { %13908 = vmatmul.mubr.msk.f32.vlgmr.msra.gmra.mrb[2].mxu0 %vm83_vm1, %v195_v29  ;;  %v770_v17 = vpop.permute.xlu1 %769  ;;  %v18597_v29 = vld [vmem:[%s24123_s4 + $0x118] sm:$0xff]  }
  0x81   :  { %382 = vmatpush1.bf16.msra.mxu0 %v18555_v28  ;;  %v18596_v28 = vld [vmem:[%s24123_s4 + $0x16c] sm:$0xff]  }
  0x82   :  { %383 = vmatprep.subr.bf16.mxu0 %v19461_v10 }
  0x83   :  { %v543_v15 = vpop.permute.xlu0 %542 }
  0x85   :  { %384 = vmatpush1.bf16.msra.mxu0 %v18557_v30  ;;  %v18598_v30 = vld [vmem:[%s24123_s4 + $0x174] sm:$0xff]  }
  0x86   :  { %385 = vmatprep.subr.bf16.mxu0 %v19461_v10 }
  0x89   :  { %386 = vmatpush1.bf16.msra.mxu0 %v18559_v31  ;;  %v18599_v31 = vld [vmem:[%s24123_s4 + $0x120] sm:$0xff]  }
  0x8a   :  { %387 = vmatprep.subr.bf16.mxu0 %v19461_v10 }
  0x8d   :  { %388 = vmatpush1.bf16.msra.mxu0 %v18561_v32  ;;  %v18600_v32 = vld [vmem:[%s24123_s4 + $0x17c] sm:$0xff]  }
  0x8e   :  { %389 = vmatprep.subr.bf16.mxu0 %v19461_v10 }
  0x91   :  { %390 = vmatpush1.bf16.msra.mxu0 %v18563_v33  ;;  %v18601_v33 = vld [vmem:[%s24123_s4 + $0x128] ss:$0 sps:$4 sm:$0xff]  }
  0x92   :  { %391 = vmatprep.subr.bf16.mxu0 %v19461_v10 }
  0x95   :  { %392 = vmatpush1.bf16.msra.mxu0 %v18565_v34  ;;  %v726_v34 = vsel %vm87_vm0, %v18601_v33, 0 }
  0x96   :  { %393 = vmatprep.subr.bf16.mxu0 %v19461_v10 }
  0x99   :  { %394 = vmatpush1.bf16.msra.mxu0 %v18567_v35  ;;  %v18602_v35 = vld [vmem:[%s24123_s4 + $0x184] sm:$0xff]  }
  0x9a   :  { %395 = vmatprep.subr.bf16.mxu0 %v19461_v10 }
  0x9d   :  { %396 = vmatpush1.bf16.msra.mxu0 %v18569_v36  ;;  %v18603_v36 = vld [vmem:[%s24123_s4 + $0x18c] ss:$0 sps:$4 sm:$0xff]  }
  0x9e   :  { %397 = vmatprep.subr.bf16.mxu0 %v19461_v10 }
  0xa1   :  { %398 = vmatpush1.bf16.msra.mxu0 %v18571_v37  ;;  %v953_v37 = vsel %vm87_vm0, %v18603_v36, 0 }
  0xa2   :  { %399 = vmatprep.subr.bf16.mxu0 %v19461_v10 }
  0xa5   :  { %400 = vmatpush1.bf16.msra.mxu0 %v18573_v38 }
  0xa6   :  { %401 = vmatprep.subr.bf16.mxu0 %v19461_v10 }
  0xa9   :  { %402 = vmatpush1.bf16.msra.mxu0 %v18575_v39 }
  0xaa   :  { %403 = vmatprep.subr.bf16.mxu0 %v19461_v10 }
  0xad   :  { %404 = vmatpush1.bf16.msra.mxu0 %v18576_v41 }
  0xae   :  { %405 = vmatprep.subr.bf16.mxu0 %v19461_v10 }
  0xb1   :  { %406 = vmatpush1.bf16.msra.mxu0 %v379_v43  ;;  %v19889_v43 = vld [vmem:[%s24147_s20] sm:$0x3] }
  0xb2   :  { %18173 = vmatprep.subr.bf16.mxu0 %v19602_v3  ;;  %1223 = vrot.lane.b32.xlu0 %v19889_v43, %s19464_s24 }
  0xb3   :  { %1450 = vrot.lane.b32.xlu1 %v19889_v43, %s19465_s25 }
  0xe8   :  { %v160_v47 = vpop.f32.mrb[0].mxu0 }
  0xe9   :  { %v161_v48 = vadd.f32 %v160_v47, %v19747_v45  ;;  %v162_v49 = vpop.f32.mrb[1].mxu0 }
  0xea   :  { %v163_v50 = vadd.f32 %v162_v49, %v19751_v46 }
  0xeb   :  { %v165_v51 = vmax.f32 %v161_v48, 0.0 }
  0xec   :  { %v166_v53 = vmax.f32 %v163_v50, 0.0 }
  0xed   :  { %v167_v55 = vpack.c.bf16 %v165_v51, %v165_v51 }
  0xee   :  { %v168_v56 = vpack.c.bf16 %v166_v53, %v166_v53 }
  0xf0   :  { %13961 = vmatprep.mubr.msk.bf16.mxu1 %vm374_vm2, %v168_v56 }
  0xf1   :  { %535 = vmatmul.mubr.bf16.vlgmr.msra.gmra.mrb[0].mxu1 %v167_v55 }
  0xf2   :  { %729 = vmatpush1.bf16.msra.mxu1 %v18578_v54 }
  0xf3   :  { %730 = vmatprep.subr.bf16.mxu1 %v19461_v10 }
  0xf6   :  { %731 = vmatpush1.bf16.msra.mxu1 %v18579_v57 }
  0xf7   :  { %732 = vmatprep.subr.bf16.mxu1 %v19461_v10 }
  0xfa   :  { %733 = vmatpush1.bf16.msra.mxu1 %v18581_v58 }
  0xfb   :  { %734 = vmatprep.subr.bf16.mxu1 %v19461_v10 }
  0xfe   :  { %735 = vmatpush1.bf16.msra.mxu1 %v18583_v59 }
  0xff   :  { %736 = vmatprep.subr.bf16.mxu1 %v19461_v10 }
 0x102   :  { %737 = vmatpush1.bf16.msra.mxu1 %v18585_v60 }
 0x103   :  { %738 = vmatprep.subr.bf16.mxu1 %v19461_v10 }
 0x106   :  { %739 = vmatpush1.bf16.msra.mxu1 %v18587_v61 }
 0x107   :  { %740 = vmatprep.subr.bf16.mxu1 %v19461_v10 }
 0x10a   :  { %741 = vmatpush1.bf16.msra.mxu1 %v18589_v62 }
 0x10b   :  { %742 = vmatprep.subr.bf16.mxu1 %v19461_v10 }
 0x10e   :  { %743 = vmatpush1.bf16.msra.mxu1 %v18591_v63 }
 0x10f   :  { %744 = vmatprep.subr.bf16.mxu1 %v19461_v10 }
 0x112   :  { %745 = vmatpush1.bf16.msra.mxu1 %v18593_v0 }
 0x113   :  { %746 = vmatprep.subr.bf16.mxu1 %v19461_v10 }
 0x116   :  { %747 = vmatpush1.bf16.msra.mxu1 %v18595_v27 }
 0x117   :  { %748 = vmatprep.subr.bf16.mxu1 %v19461_v10 }
 0x11a   :  { %749 = vmatpush1.bf16.msra.mxu1 %v18597_v29 }
 0x11b   :  { %750 = vmatprep.subr.bf16.mxu1 %v19461_v10 }
 0x11e   :  { %751 = vmatpush1.bf16.msra.mxu1 %v18599_v31 }
 0x11f   :  { %752 = vmatprep.subr.bf16.mxu1 %v19461_v10 }
 0x122   :  { %753 = vmatpush1.bf16.msra.mxu1 %v726_v34 }
 0x123   :  { %18181 = vmatprep.subr.bf16.mxu1 %v19602_v3 }
 0x153   :  { %v264_v1 = vpop.f32.mrb[2].mxu0 }
 0x154   :  { %v265_v2 = vadd.f32 %v264_v1, %v19747_v45  ;;  %v266_v4 = vpop.f32.mrb[3].mxu0  ;;  %v18604_v1 = vld [vmem:[%s24123_s4 + $0x190] sm:$0xff]  }
 0x155   :  { %v267_v5 = vadd.f32 %v266_v4, %v19751_v46  ;;  %v19908_v4 = vld [vmem:[%s24148_s13 + $0x28] sm:$0xf] }
 0x156   :  { %v269_v7 = vmax.f32 %v265_v2, 0.0 }
 0x157   :  { %v270_v9 = vmax.f32 %v267_v5, 0.0 }
 0x158   :  { %v271_v12 = vpack.c.bf16 %v269_v7, %v269_v7  ;;  %v19916_v7 = vld [vmem:[%s24148_s13 + $0x20] sm:$0xf] }
 0x159   :  { %v272_v11 = vpack.c.bf16 %v270_v9, %v270_v9  ;;  %v997_v9 = vpop.permute.xlu1 %996 }
 0x15b   :  { %13947 = vmatprep.mubr.msk.bf16.mxu0 %vm374_vm2, %v272_v11  ;;  %v18605_v11 = vld [vmem:[%s24123_s4 + $0x198] sm:$0xff]  }
 0x15c   :  { %414 = vmatmul.mubr.bf16.vlgmr.msra.gmra.mrb[4].mxu0 %v271_v12  ;;  %v18606_v12 = vld [vmem:[%s24123_s4 + $0x1a0] sm:$0xff]  }
 0x15d   :  { %18175 = vmatpush1.bf16.msra.mxu0 %v19610_v6  ;;  %610 = vmatprep.mubr.f32.mxu0 %v19459_v8 }
 0x15e   :  { %13962 = vmatprep.subr.msk.mxu0 %vm87_vm0, %v19420_v13 }
 0x161   :  { %13963 = vmatpush1.msk.msra.mxu0 %vm87_vm0, %v19421_v14 }
 0x162   :  { %18177 = vmatprep.subr.bf16.mxu0 %v19602_v3 }
 0x164   :  { %13964 = vmatmul.mubr.msk.f32.vlgmr.msra.gmra.mrb[8].mxu0 %vm83_vm1, %v543_v15  ;;  %v18609_v15 = vld [vmem:[%s24123_s4 + $0x1b8] sm:$0xff]  }
 0x165   :  { %18179 = vmatpush1.bf16.msra.mxu0 %v19610_v6  ;;  %837 = vmatprep.mubr.f32.mxu0 %v19459_v8 }
 0x166   :  { %14004 = vmatprep.subr.msk.mxu0 %vm87_vm0, %v19420_v13  ;;  %v18607_v13 = vld [vmem:[%s24123_s4 + $0x1a8] sm:$0xff]  }
 0x169   :  { %14005 = vmatpush1.msk.msra.mxu0 %vm87_vm0, %v19421_v14  ;;  %v18608_v14 = vld [vmem:[%s24123_s4 + $0x1b0] sm:$0xff]  }
 0x16a   :  { %14006 = vmatmul.mubr.msk.f32.vlgmr.msra.gmra.mrb[10].mxu0 %vm83_vm1, %v770_v17  ;;  %955 = vmatprep.subr.bf16.mxu0 %v19461_v10 }
 0x16b   :  { %956 = vmatpush1.bf16.msra.mxu0 %v18580_v16 }
 0x16c   :  { %957 = vmatprep.subr.bf16.mxu0 %v19461_v10 }
 0x16f   :  { %958 = vmatpush1.bf16.msra.mxu0 %v18582_v19 }
 0x170   :  { %959 = vmatprep.subr.bf16.mxu0 %v19461_v10 }
 0x173   :  { %960 = vmatpush1.bf16.msra.mxu0 %v18584_v20 }
 0x174   :  { %961 = vmatprep.subr.bf16.mxu0 %v19461_v10 }
 0x177   :  { %962 = vmatpush1.bf16.msra.mxu0 %v18586_v21 }
 0x178   :  { %963 = vmatprep.subr.bf16.mxu0 %v19461_v10 }
 0x17b   :  { %964 = vmatpush1.bf16.msra.mxu0 %v18588_v22 }
 0x17c   :  { %965 = vmatprep.subr.bf16.mxu0 %v19461_v10 }
 0x17f   :  { %966 = vmatpush1.bf16.msra.mxu0 %v18590_v23 }
 0x180   :  { %967 = vmatprep.subr.bf16.mxu0 %v19461_v10 }
 0x183   :  { %968 = vmatpush1.bf16.msra.mxu0 %v18592_v24 }
 0x184   :  { %969 = vmatprep.subr.bf16.mxu0 %v19461_v10 }
 0x187   :  { %970 = vmatpush1.bf16.msra.mxu0 %v18594_v25 }
 0x188   :  { %971 = vmatprep.subr.bf16.mxu0 %v19461_v10 }
 0x18b   :  { %972 = vmatpush1.bf16.msra.mxu0 %v18596_v28 }
 0x18c   :  { %973 = vmatprep.subr.bf16.mxu0 %v19461_v10 }
 0x18f   :  { %974 = vmatpush1.bf16.msra.mxu0 %v18598_v30 }
 0x190   :  { %975 = vmatprep.subr.bf16.mxu0 %v19461_v10 }
 0x193   :  { %976 = vmatpush1.bf16.msra.mxu0 %v18600_v32 }
 0x194   :  { %977 = vmatprep.subr.bf16.mxu0 %v19461_v10 }
 0x197   :  { %978 = vmatpush1.bf16.msra.mxu0 %v18602_v35 }
 0x198   :  { %979 = vmatprep.subr.bf16.mxu0 %v19461_v10 }
 0x19b   :  { %980 = vmatpush1.bf16.msra.mxu0 %v953_v37 }
 0x19c   :  { %1182 = vmatprep.subr.bf16.mxu0 %v19461_v10 }
 0x1c4   :  { %v536_v38 = vpop.f32.mrb[0].mxu1 }
 0x1c5   :  { %v538_v39 = vpop.f32.mrb[1].mxu1 }
 0x1c6   :  { %v539_v41 = vpop.f32.mrb[2].mxu1 }
 0x1c7   :  { %v540_v42 = vpop.f32.mrb[3].mxu1 }
 0x22f   :  { %v415_v44 = vpop.f32.mrb[4].mxu0 }
 0x230   :  { %v417_v47 = vpop.f32.mrb[5].mxu0  ;;  %v19893_v48 = vadd.f32 %v536_v38, %v415_v44 }
 0x231   :  { %v418_v49 = vpop.f32.mrb[6].mxu0 }
 0x232   :  { %v419_v50 = vpop.f32.mrb[7].mxu0 }
 0x237   :  { %v612_v51 = vpop.f32.mrb[8].mxu0 }
 0x238   :  { %v613_v52 = vadd.f32 %v612_v51, %v19747_v45  ;;  %v614_v53 = vpop.f32.mrb[9].mxu0 }
 0x239   :  { %v615_v54 = vadd.f32 %v614_v53, %v19751_v46 }
 0x23a   :  { %v617_v55 = vmax.f32 %v613_v52, 0.0 }
 0x23b   :  { %v618_v56 = vmax.f32 %v615_v54, 0.0 }
 0x23c   :  { %v619_v59 = vpack.c.bf16 %v617_v55, %v617_v55 }
 0x23d   :  { %v620_v57 = vpack.c.bf16 %v618_v56, %v618_v56  ;;  %v839_v58 = vpop.f32.mrb[10].mxu0 }
 0x23e   :  { %v840_v60 = vadd.f32 %v839_v58, %v19747_v45  ;;  %v841_v61 = vpop.f32.mrb[11].mxu0 }
 0x23f   :  { %v842_v62 = vadd.f32 %v841_v61, %v19751_v46  ;;  %14003 = vmatprep.mubr.msk.bf16.mxu1 %vm374_vm2, %v620_v57 }
 0x240   :  { %v844_v63 = vmax.f32 %v840_v60, 0.0  ;;  %761 = vmatmul.mubr.bf16.vlgmr.msra.gmra.mrb[4].mxu1 %v619_v59 }
 0x241   :  { %v845_v0 = vmax.f32 %v842_v62, 0.0  ;;  %18183 = vmatpush1.bf16.msra.mxu1 %v19610_v6  ;;  %1064 = vmatprep.mubr.f32.mxu1 %v19459_v8 }
 0x242   :  { %v846_v2 = vpack.c.bf16 %v844_v63, %v844_v63  ;;  %14046 = vmatprep.subr.msk.mxu1 %vm87_vm0, %v19908_v4 }
 0x243   :  { %v847_v5 = vpack.c.bf16 %v845_v0, %v845_v0 }
 0x245   :  { %14045 = vmatprep.mubr.msk.bf16.mxu0 %vm374_vm2, %v847_v5  ;;  %14047 = vmatpush1.msk.msra.mxu1 %vm87_vm0, %v19916_v7 }
 0x246   :  { %988 = vmatmul.mubr.bf16.vlgmr.msra.gmra.mrb[12].mxu0 %v846_v2  ;;  %18189 = vmatprep.subr.bf16.mxu1 %v19602_v3 }
 0x247   :  { %1183 = vmatpush1.bf16.msra.mxu0 %v18604_v1 }
 0x248   :  { %14048 = vmatmul.mubr.msk.f32.vlgmr.msra.gmra.mrb[8].mxu1 %vm83_vm1, %v997_v9  ;;  %1184 = vmatprep.subr.bf16.mxu0 %v19461_v10 }
 0x249   :  { %18191 = vmatpush1.bf16.msra.mxu1 %v19610_v6  ;;  %1518 = vmatprep.mubr.f32.mxu1 %v19459_v8 }
 0x24a   :  { %14130 = vmatprep.subr.msk.mxu1 %vm87_vm0, %v19908_v4 }
 0x24b   :  { %1185 = vmatpush1.bf16.msra.mxu0 %v18605_v11 }
 0x24c   :  { %1186 = vmatprep.subr.bf16.mxu0 %v19461_v10 }
 0x24d   :  { %14131 = vmatpush1.msk.msra.mxu1 %vm87_vm0, %v19916_v7 }
 0x24e   :  { %18197 = vmatprep.subr.bf16.mxu1 %v19602_v3 }
 0x24f   :  { %1187 = vmatpush1.bf16.msra.mxu0 %v18606_v12 }
 0x250   :  { %1188 = vmatprep.subr.bf16.mxu0 %v19461_v10 }
 0x253   :  { %1189 = vmatpush1.bf16.msra.mxu0 %v18607_v13 }
 0x254   :  { %1190 = vmatprep.subr.bf16.mxu0 %v19461_v10 }
 0x257   :  { %1191 = vmatpush1.bf16.msra.mxu0 %v18608_v14 }
 0x258   :  { %1192 = vmatprep.subr.bf16.mxu0 %v19461_v10 }
 0x259   :  { %24 = vsyncpa [#allocation3], 0  ;;  %v18610_v16 = vld [vmem:[%s24123_s4 + $0x1c0] sm:$0xff]   ;;  %v18611_v17 = vld [vmem:[%s24123_s4 + $0x1c8] sm:$0xff]   ;;  %v1451_v25 = vpop.permute.xlu1 %1450  ;;  %s19466_s27 = smov 121   ;;  %s19467_s28 = smov 120  }
 0x25a   :  { %v18612_v19 = vld [vmem:[%s24123_s4 + $0x1d0] sm:$0xff]   ;;  %v18613_v20 = vld [vmem:[%s24123_s4 + $0x1d8] sm:$0xff]   ;;  %v18614_v21 = vld [vmem:[%s24123_s4 + $0x1e0] sm:$0xff]   ;;  %14132 = vmatmul.mubr.msk.f32.vlgmr.msra.gmra.mrb[10].mxu1 %vm83_vm1, %v1451_v25  ;;  %1677 = vrot.lane.b32.xlu0 %v19889_v43, %s19466_s27  ;;  %s19468_s29 = smov 119   ;;  %s19469_s26 = smov 118   ;;  %vm7152_vm3 = vcmask 1041408  }
 0x25b   :  { %1193 = vmatpush1.bf16.msra.mxu0 %v18609_v15  ;;  %v18615_v22 = vld [vmem:[%s24123_s4 + $0x1e8] sm:$0xff]   ;;  %v18616_v23 = vld [vmem:[%s24123_s4 + $0x1f0] ss:$0 sps:$4 sm:$0xff]   ;;  %18199 = vmatpush1.bf16.msra.mxu1 %v19610_v6  ;;  %v18617_v49 = vld [vmem:[%s24123_s4 + $0x1f4] sm:$0xff]   ;;  %s19470_s27 = smov 117   ;;  %s19471_s25 = smov 116  }
 0x25c   :  { %1194 = vmatprep.subr.bf16.mxu0 %v19461_v10  ;;  %v1180_v24 = vsel %vm87_vm0, %v18616_v23, 0  ;;  %1972 = vmatprep.mubr.f32.mxu1 %v19459_v8  ;;  %v18618_v50 = vld [vmem:[%s24123_s4 + $0x1fc] sm:$0xff]   ;;  %v18619_v51 = vld [vmem:[%s24123_s4 + $0x204] sm:$0xff]   ;;  %v18620_v52 = vld [vmem:[%s24123_s4 + $0x20c] sm:$0xff]   ;;  %s19478_s3 = smov 109   ;;  %s19479_s23 = smov 108  }
 0x25d   :  { %14214 = vmatprep.subr.msk.mxu1 %vm87_vm0, %v19908_v4  ;;  %v18621_v53 = vld [vmem:[%s24123_s4 + $0x214] sm:$0xff]   ;;  %v18622_v54 = vld [vmem:[%s24123_s4 + $0x21c] sm:$0xff]   ;;  %v18623_v55 = vld [vmem:[%s24123_s4 + $0x224] sm:$0xff]   ;;  %s19485_s22 = smov 102   ;;  %s19486_s1 = smov 101   ;;  %vm19491_vm4 = vmmov 0  }
 0x25e   :  { %v18624_v56 = vld [vmem:[%s24123_s4 + $0x22c] sm:$0xff]   ;;  %v18625_v57 = vld [vmem:[%s24123_s4 + $0x234] sm:$0xff]   ;;  %v18626_v58 = vld [vmem:[%s24123_s4 + $0x23c] sm:$0xff]   ;;  %vm7148_vm5 = vcmask 408576   ;;  %s24150_s30 = sld [smem:[#allocation6_spill]]  ;;  %vm7365_vm6 = vcmask 523264  }
 0x25f   :  { %1195 = vmatpush1.bf16.msra.mxu0 %v18610_v16  ;;  %14215 = vmatpush1.msk.msra.mxu1 %vm87_vm0, %v19916_v7  ;;  %v18627_v59 = vld [vmem:[%s24123_s4 + $0x244] sm:$0xff]   ;;  %v18628_v60 = vld [vmem:[%s24123_s4 + $0x24c] sm:$0xff]   ;;  %v18629_v61 = vld [vmem:[%s24123_s4 + $0x254] ss:$0 sps:$4 sm:$0xff]   ;;  %vm13810_vm7 = vcmask 818176   ;;  %vm13887_vm8 = vcmask 9216  }
 0x260   :  { %1196 = vmatprep.subr.bf16.mxu0 %v19461_v10  ;;  %18205 = vmatprep.subr.bf16.mxu1 %v19602_v3  ;;  %v20056_v62 = vld [vmem:[%s24147_s20] sm:$0x3]  ;;  %v1407_v63 = vsel %vm87_vm0, %v18629_v61, 0 }
 0x261   :  { %1904 = vrot.lane.b32.xlu1 %v20056_v62, %s19467_s28  ;;  %2131 = vrot.lane.b32.xlu0 %v20056_v62, %s19468_s29  ;;  %s19472_s29 = smov 115  }
 0x263   :  { %1197 = vmatpush1.bf16.msra.mxu0 %v18611_v17 }
 0x264   :  { %1198 = vmatprep.subr.bf16.mxu0 %v19461_v10 }
 0x265   :  { %2358 = vrot.lane.b32.xlu1 %v20056_v62, %s19469_s26  ;;  %2585 = vrot.lane.b32.xlu0 %v20056_v62, %s19470_s27  ;;  %s19473_s26 = smov 114   ;;  %s19474_s27 = smov 113  }
 0x267   :  { %1199 = vmatpush1.bf16.msra.mxu0 %v18612_v19 }
 0x268   :  { %1200 = vmatprep.subr.bf16.mxu0 %v19461_v10 }
 0x269   :  { %2812 = vrot.lane.b32.xlu1 %v20056_v62, %s19471_s25  ;;  %3039 = vrot.lane.b32.xlu0 %v20056_v62, %s19472_s29  ;;  %s19475_s25 = smov 112  }
 0x26b   :  { %1201 = vmatpush1.bf16.msra.mxu0 %v18613_v20 }
 0x26c   :  { %1202 = vmatprep.subr.bf16.mxu0 %v19461_v10 }
 0x26d   :  { %3266 = vrot.lane.b32.xlu1 %v20056_v62, %s19473_s26  ;;  %3493 = vrot.lane.b32.xlu0 %v20056_v62, %s19474_s27  ;;  %s19476_s27 = smov 111   ;;  %s24151_s26 = sld [smem:[#allocation9_spill]] }
 0x26f   :  { %1203 = vmatpush1.bf16.msra.mxu0 %v18614_v21 }
 0x270   :  { %1204 = vmatprep.subr.bf16.mxu0 %v19461_v10 }
 0x271   :  { %3720 = vrot.lane.b32.xlu1 %v20056_v62, %s19475_s25  ;;  %s19477_s25 = smov 110  }
 0x273   :  { %1205 = vmatpush1.bf16.msra.mxu0 %v18615_v22 }
 0x274   :  { %1206 = vmatprep.subr.bf16.mxu0 %v19461_v10 }
 0x277   :  { %1207 = vmatpush1.bf16.msra.mxu0 %v1180_v24  ;;  %v18630_v24 = vld [vmem:[%s24123_s4 + $0x258] sm:$0xff]  }
 0x278   :  { %18185 = vmatprep.subr.bf16.mxu0 %v19602_v3 }
 0x2d3   :  { %v1905_v2 = vpop.permute.xlu1 %1904 }
 0x2d4   :  { %14216 = vmatmul.mubr.msk.f32.vlgmr.msra.gmra.mrb[12].mxu1 %vm83_vm1, %v1905_v2 }
 0x2d5   :  { %18207 = vmatpush1.bf16.msra.mxu1 %v19610_v6  ;;  %2426 = vmatprep.mubr.f32.mxu1 %v19459_v8 }
 0x2d6   :  { %14298 = vmatprep.subr.msk.mxu1 %vm87_vm0, %v19908_v4 }
 0x2d9   :  { %14299 = vmatpush1.msk.msra.mxu1 %vm87_vm0, %v19916_v7 }
 0x2da   :  { %18213 = vmatprep.subr.bf16.mxu1 %v19602_v3 }
 0x313   :  { %v762_v27 = vpop.f32.mrb[4].mxu1 }
 0x314   :  { %v768_v28 = vadd.f32 %v762_v27, %v19893_v48  ;;  %v764_v29 = vpop.f32.mrb[5].mxu1  ;;  %v1224_v48 = vpop.permute.xlu0 %1223 }
 0x315   :  { %v765_v30 = vpop.f32.mrb[6].mxu1  ;;  %v18632_v29 = vld [vmem:[%s24123_s4 + $0x268] sm:$0xff]  }
 0x316   :  { %v766_v31 = vpop.f32.mrb[7].mxu1  ;;  %v18633_v30 = vld [vmem:[%s24123_s4 + $0x270] sm:$0xff]  }
 0x317   :  { %v18634_v31 = vld [vmem:[%s24123_s4 + $0x278] sm:$0xff]  }
 0x319   :  { %v989_v32 = vpop.f32.mrb[12].mxu0 }
 0x31a   :  { %v19989_v33 = vadd.f32 %v989_v32, %v768_v28  ;;  %v991_v34 = vpop.f32.mrb[13].mxu0  ;;  %v18631_v28 = vld [vmem:[%s24123_s4 + $0x260] sm:$0xff]  }
 0x31b   :  { %v1066_v35 = vpop.f32.mrb[8].mxu1  ;;  %v992_v36 = vpop.f32.mrb[14].mxu0  ;;  %v18635_v32 = vld [vmem:[%s24123_s4 + $0x280] sm:$0xff]   ;;  %v18637_v34 = vld [vmem:[%s24123_s4 + $0x290] sm:$0xff]  }
 0x31c   :  { %v1067_v37 = vadd.f32 %v1066_v35, %v19747_v45  ;;  %v1068_v38 = vpop.f32.mrb[9].mxu1  ;;  %v993_v39 = vpop.f32.mrb[15].mxu0  ;;  %v18638_v35 = vld [vmem:[%s24123_s4 + $0x298] sm:$0xff]   ;;  %v18639_v36 = vld [vmem:[%s24123_s4 + $0x2a0] sm:$0xff]  }
 0x31d   :  { %v1069_v41 = vadd.f32 %v1068_v38, %v19751_v46  ;;  %v18641_v38 = vld [vmem:[%s24123_s4 + $0x2b0] sm:$0xff]  }
 0x31e   :  { %v1071_v42 = vmax.f32 %v1067_v37, 0.0  ;;  %v18640_v37 = vld [vmem:[%s24123_s4 + $0x2a8] sm:$0xff]  }
 0x31f   :  { %v1072_v43 = vmax.f32 %v1069_v41, 0.0  ;;  %v18642_v41 = vld [vmem:[%s24123_s4 + $0x2b8] ss:$0 sps:$4 sm:$0xff]  }
 0x320   :  { %v1073_v47 = vpack.c.bf16 %v1071_v42, %v1071_v42 }
 0x321   :  { %v1074_v44 = vpack.c.bf16 %v1072_v43, %v1072_v43  ;;  %v1634_v43 = vsel %vm87_vm0, %v18642_v41, 0  ;;  %v18665_v41 = vld [vmem:[%s24123_s4 + $0x368] sm:$0xff]  }
 0x323   :  { %14087 = vmatprep.mubr.msk.bf16.mxu0 %vm374_vm2, %v1074_v44 }
 0x324   :  { %1215 = vmatmul.mubr.bf16.vlgmr.msra.gmra.mrb[16].mxu0 %v1073_v47  ;;  %v1678_v47 = vpop.permute.xlu0 %1677 }
 0x325   :  { %18187 = vmatpush1.bf16.msra.mxu0 %v19610_v6  ;;  %1291 = vmatprep.mubr.f32.mxu0 %v19459_v8 }
 0x326   :  { %14088 = vmatprep.subr.msk.mxu0 %vm87_vm0, %v19908_v4 }
 0x329   :  { %14089 = vmatpush1.msk.msra.mxu0 %vm87_vm0, %v19916_v7 }
 0x32a   :  { %1409 = vmatprep.subr.bf16.mxu0 %v19461_v10 }
 0x32c   :  { %14090 = vmatmul.mubr.msk.f32.vlgmr.msra.gmra.mrb[20].mxu0 %vm83_vm1, %v1224_v48  ;;  %v18643_v48 = vld [vmem:[%s24123_s4 + $0x2bc] sm:$0xff]  }
 0x32d   :  { %1410 = vmatpush1.bf16.msra.mxu0 %v18617_v49  ;;  %v1520_v0 = vpop.f32.mrb[10].mxu1  ;;  %v18644_v49 = vld [vmem:[%s24123_s4 + $0x2c4] sm:$0xff]  }
 0x32e   :  { %1411 = vmatprep.subr.bf16.mxu0 %v19461_v10  ;;  %v1522_v1 = vpop.f32.mrb[11].mxu1  ;;  %v1521_v39 = vadd.f32 %v1520_v0, %v19747_v45 }
 0x32f   :  { %v1523_v14 = vadd.f32 %v1522_v1, %v19751_v46 }
 0x330   :  { %v1525_v42 = vmax.f32 %v1521_v39, 0.0  ;;  %v18664_v39 = vld [vmem:[%s24123_s4 + $0x360] sm:$0xff]  }
 0x331   :  { %1412 = vmatpush1.bf16.msra.mxu0 %v18618_v50  ;;  %v1526_v20 = vmax.f32 %v1523_v14, 0.0  ;;  %v18645_v50 = vld [vmem:[%s24123_s4 + $0x2cc] sm:$0xff]  }
 0x332   :  { %1413 = vmatprep.subr.bf16.mxu0 %v19461_v10  ;;  %v1527_v44 = vpack.c.bf16 %v1525_v42, %v1525_v42  ;;  %v18666_v42 = vld [vmem:[%s24123_s4 + $0x370] sm:$0xff]  }
 0x333   :  { %v1528_v25 = vpack.c.bf16 %v1526_v20, %v1526_v20 }
 0x335   :  { %1414 = vmatpush1.bf16.msra.mxu0 %v18619_v51  ;;  %v18646_v51 = vld [vmem:[%s24123_s4 + $0x2d4] sm:$0xff]  }
 0x336   :  { %1415 = vmatprep.subr.bf16.mxu0 %v19461_v10 }
 0x339   :  { %1416 = vmatpush1.bf16.msra.mxu0 %v18620_v52  ;;  %v18647_v52 = vld [vmem:[%s24123_s4 + $0x2dc] sm:$0xff]  }
 0x33a   :  { %1417 = vmatprep.subr.bf16.mxu0 %v19461_v10 }
 0x33d   :  { %1418 = vmatpush1.bf16.msra.mxu0 %v18621_v53  ;;  %v18648_v53 = vld [vmem:[%s24123_s4 + $0x2e4] sm:$0xff]  }
 0x33e   :  { %1419 = vmatprep.subr.bf16.mxu0 %v19461_v10 }
 0x341   :  { %1420 = vmatpush1.bf16.msra.mxu0 %v18622_v54  ;;  %v18649_v54 = vld [vmem:[%s24123_s4 + $0x2ec] sm:$0xff]  }
 0x342   :  { %1421 = vmatprep.subr.bf16.mxu0 %v19461_v10 }
 0x345   :  { %1422 = vmatpush1.bf16.msra.mxu0 %v18623_v55  ;;  %v18650_v55 = vld [vmem:[%s24123_s4 + $0x2f4] sm:$0xff]  }
 0x346   :  { %1423 = vmatprep.subr.bf16.mxu0 %v19461_v10 }
 0x349   :  { %1424 = vmatpush1.bf16.msra.mxu0 %v18624_v56  ;;  %v18651_v56 = vld [vmem:[%s24123_s4 + $0x2fc] sm:$0xff]  }
 0x34a   :  { %1425 = vmatprep.subr.bf16.mxu0 %v19461_v10 }
 0x34d   :  { %1426 = vmatpush1.bf16.msra.mxu0 %v18625_v57  ;;  %v18652_v57 = vld [vmem:[%s24123_s4 + $0x304] sm:$0xff]  }
 0x34e   :  { %1427 = vmatprep.subr.bf16.mxu0 %v19461_v10 }
 0x351   :  { %1428 = vmatpush1.bf16.msra.mxu0 %v18626_v58  ;;  %v18653_v58 = vld [vmem:[%s24123_s4 + $0x30c] sm:$0xff]  }
 0x352   :  { %1429 = vmatprep.subr.bf16.mxu0 %v19461_v10 }
 0x355   :  { %1430 = vmatpush1.bf16.msra.mxu0 %v18627_v59  ;;  %v18654_v59 = vld [vmem:[%s24123_s4 + $0x314] sm:$0xff]  }
 0x356   :  { %1431 = vmatprep.subr.bf16.mxu0 %v19461_v10 }
 0x359   :  { %1432 = vmatpush1.bf16.msra.mxu0 %v18628_v60  ;;  %v18655_v60 = vld [vmem:[%s24123_s4 + $0x31c] ss:$0 sps:$4 sm:$0xff]  }
 0x35a   :  { %1433 = vmatprep.subr.bf16.mxu0 %v19461_v10  ;;  %v1861_v61 = vsel %vm87_vm0, %v18655_v60, 0  ;;  %v18677_v60 = vld [vmem:[%s24123_s4 + $0x3c4] sm:$0xff]  }
 0x35d   :  { %1434 = vmatpush1.bf16.msra.mxu0 %v1407_v63 }
 0x35e   :  { %1636 = vmatprep.subr.bf16.mxu0 %v19461_v10 }
 0x3a7   :  { %v20194_v63 = vpop.f32.mrb[12].mxu1 }
 0x3a8   :  { %v1976_v0 = vpop.f32.mrb[13].mxu1 }
 0x3f7   :  { %v1216_v5 = vpop.f32.mrb[16].mxu0 }
 0x3f8   :  { %v20065_v9 = vadd.f32 %v1216_v5, %v19989_v33  ;;  %v1218_v11 = vpop.f32.mrb[17].mxu0  ;;  %v18636_v33 = vld [vmem:[%s24123_s4 + $0x288] sm:$0xff]  }
 0x3f9   :  { %v1219_v12 = vpop.f32.mrb[18].mxu0 }
 0x3fa   :  { %v1220_v13 = vpop.f32.mrb[19].mxu0 }
 0x3fb   :  { %v2359_v13 = vpop.permute.xlu1 %2358 }
 0x3fc   :  { %14300 = vmatmul.mubr.msk.f32.vlgmr.msra.gmra.mrb[14].mxu1 %vm83_vm1, %v2359_v13 }
 0x3fd   :  { %18215 = vmatpush1.bf16.msra.mxu1 %v19610_v6  ;;  %2880 = vmatprep.mubr.f32.mxu1 %v19459_v8 }
 0x3fe   :  { %14382 = vmatprep.subr.msk.mxu1 %vm87_vm0, %v19908_v4 }
 0x3ff   :  { %v1293_v15 = vpop.f32.mrb[20].mxu0 }
 0x400   :  { %v1294_v16 = vadd.f32 %v1293_v15, %v19747_v45  ;;  %v1295_v17 = vpop.f32.mrb[21].mxu0 }
 0x401   :  { %v1296_v19 = vadd.f32 %v1295_v17, %v19751_v46  ;;  %14383 = vmatpush1.msk.msra.mxu1 %vm87_vm0, %v19916_v7 }
 0x402   :  { %v1298_v21 = vmax.f32 %v1294_v16, 0.0  ;;  %18221 = vmatprep.subr.bf16.mxu1 %v19602_v3 }
 0x403   :  { %v1299_v22 = vmax.f32 %v1296_v19, 0.0 }
 0x404   :  { %v1300_v27 = vpack.c.bf16 %v1298_v21, %v1298_v21 }
 0x405   :  { %v1301_v23 = vpack.c.bf16 %v1299_v22, %v1299_v22 }
 0x407   :  { %14129 = vmatprep.mubr.msk.bf16.mxu0 %vm374_vm2, %v1301_v23 }
 0x408   :  { %1442 = vmatmul.mubr.bf16.vlgmr.msra.gmra.mrb[24].mxu0 %v1300_v27 }
 0x409   :  { %1637 = vmatpush1.bf16.msra.mxu0 %v18630_v24  ;;  %14171 = vmatprep.mubr.msk.bf16.mxu0 %vm374_vm2, %v1528_v25 }
 0x40a   :  { %1638 = vmatprep.subr.bf16.mxu0 %v19461_v10 }
 0x40d   :  { %1639 = vmatpush1.bf16.msra.mxu0 %v18631_v28 }
 0x40e   :  { %1640 = vmatprep.subr.bf16.mxu0 %v19461_v10 }
 0x411   :  { %1641 = vmatpush1.bf16.msra.mxu0 %v18632_v29  ;;  %v18656_v29 = vld [vmem:[%s24123_s4 + $0x320] sm:$0xff]  }
 0x412   :  { %1642 = vmatprep.subr.bf16.mxu0 %v19461_v10 }
 0x415   :  { %1643 = vmatpush1.bf16.msra.mxu0 %v18633_v30 }
 0x416   :  { %1644 = vmatprep.subr.bf16.mxu0 %v19461_v10 }
 0x419   :  { %1645 = vmatpush1.bf16.msra.mxu0 %v18634_v31 }
 0x41a   :  { %1646 = vmatprep.subr.bf16.mxu0 %v19461_v10 }
 0x41d   :  { %1647 = vmatpush1.bf16.msra.mxu0 %v18635_v32  ;;  %v18657_v32 = vld [vmem:[%s24123_s4 + $0x328] sm:$0xff]  }
 0x41e   :  { %1648 = vmatprep.subr.bf16.mxu0 %v19461_v10 }
 0x421   :  { %1649 = vmatpush1.bf16.msra.mxu0 %v18636_v33  ;;  %v18658_v33 = vld [vmem:[%s24123_s4 + $0x330] sm:$0xff]  }
 0x422   :  { %1650 = vmatprep.subr.bf16.mxu0 %v19461_v10 }
 0x425   :  { %1651 = vmatpush1.bf16.msra.mxu0 %v18637_v34  ;;  %v18659_v34 = vld [vmem:[%s24123_s4 + $0x338] sm:$0xff]  }
 0x426   :  { %1652 = vmatprep.subr.bf16.mxu0 %v19461_v10 }
 0x429   :  { %1653 = vmatpush1.bf16.msra.mxu0 %v18638_v35  ;;  %v18660_v35 = vld [vmem:[%s24123_s4 + $0x340] sm:$0xff]  }
 0x42a   :  { %1654 = vmatprep.subr.bf16.mxu0 %v19461_v10 }
 0x42d   :  { %1655 = vmatpush1.bf16.msra.mxu0 %v18639_v36  ;;  %v18661_v36 = vld [vmem:[%s24123_s4 + $0x348] sm:$0xff]  }
 0x42e   :  { %1656 = vmatprep.subr.bf16.mxu0 %v19461_v10 }
 0x431   :  { %1657 = vmatpush1.bf16.msra.mxu0 %v18640_v37  ;;  %v18662_v37 = vld [vmem:[%s24123_s4 + $0x350] sm:$0xff]  }
 0x432   :  { %1658 = vmatprep.subr.bf16.mxu0 %v19461_v10 }
 0x435   :  { %1659 = vmatpush1.bf16.msra.mxu0 %v18641_v38  ;;  %v18663_v38 = vld [vmem:[%s24123_s4 + $0x358] sm:$0xff]  }
 0x436   :  { %1660 = vmatprep.subr.bf16.mxu0 %v19461_v10 }
 0x439   :  { %1661 = vmatpush1.bf16.msra.mxu0 %v1634_v43  ;;  %v18667_v43 = vld [vmem:[%s24123_s4 + $0x378] sm:$0xff]  }
 0x43a   :  { %18193 = vmatprep.subr.bf16.mxu0 %v19602_v3 }
 0x43c   :  { %1669 = vmatmul.mubr.bf16.vlgmr.msra.gmra.mrb[28].mxu0 %v1527_v44  ;;  %v1975_v44 = vadd.f32 %v20194_v63, %v19747_v45  ;;  %v18679_v63 = vld [vmem:[%s24123_s4 + $0x3d4] sm:$0xff]  }
 0x43d   :  { %18195 = vmatpush1.bf16.msra.mxu0 %v19610_v6  ;;  %1745 = vmatprep.mubr.f32.mxu0 %v19459_v8 }
 0x43e   :  { %14172 = vmatprep.subr.msk.mxu0 %vm87_vm0, %v19908_v4 }
 0x441   :  { %14173 = vmatpush1.msk.msra.mxu0 %vm87_vm0, %v19916_v7 }
 0x442   :  { %1863 = vmatprep.subr.bf16.mxu0 %v19461_v10 }
 0x444   :  { %14174 = vmatmul.mubr.msk.f32.vlgmr.msra.gmra.mrb[22].mxu0 %vm83_vm1, %v1678_v47  ;;  %v18668_v47 = vld [vmem:[%s24123_s4 + $0x380] ss:$0 sps:$4 sm:$0xff]  }
 0x445   :  { %1864 = vmatpush1.bf16.msra.mxu0 %v18643_v48  ;;  %v1979_v48 = vmax.f32 %v1975_v44, 0.0  ;;  %v18692_v44 = vld [vmem:[%s24123_s4 + $0x438] sm:$0xff]  }
 0x446   :  { %1865 = vmatprep.subr.bf16.mxu0 %v19461_v10 }
 0x449   :  { %1866 = vmatpush1.bf16.msra.mxu0 %v18644_v49  ;;  %v2088_v49 = vsel %vm87_vm0, %v18668_v47, 0  ;;  %v18693_v47 = vld [vmem:[%s24123_s4 + $0x440] sm:$0xff]  }
 0x44a   :  { %1867 = vmatprep.subr.bf16.mxu0 %v19461_v10 }
 0x44d   :  { %1868 = vmatpush1.bf16.msra.mxu0 %v18645_v50  ;;  %v1981_v50 = vpack.c.bf16 %v1979_v48, %v1979_v48 }
 0x44e   :  { %1869 = vmatprep.subr.bf16.mxu0 %v19461_v10 }
 0x451   :  { %1870 = vmatpush1.bf16.msra.mxu0 %v18646_v51  ;;  %v2132_v51 = vpop.permute.xlu0 %2131 }
 0x452   :  { %1871 = vmatprep.subr.bf16.mxu0 %v19461_v10 }
 0x455   :  { %1872 = vmatpush1.bf16.msra.mxu0 %v18647_v52  ;;  %v18669_v52 = vld [vmem:[%s24123_s4 + $0x384] sm:$0xff]  }
 0x456   :  { %1873 = vmatprep.subr.bf16.mxu0 %v19461_v10 }
 0x459   :  { %1874 = vmatpush1.bf16.msra.mxu0 %v18648_v53  ;;  %v18670_v53 = vld [vmem:[%s24123_s4 + $0x38c] sm:$0xff]  }
 0x45a   :  { %1875 = vmatprep.subr.bf16.mxu0 %v19461_v10 }
 0x45d   :  { %1876 = vmatpush1.bf16.msra.mxu0 %v18649_v54  ;;  %v18671_v54 = vld [vmem:[%s24123_s4 + $0x394] sm:$0xff]  }
 0x45e   :  { %1877 = vmatprep.subr.bf16.mxu0 %v19461_v10 }
 0x461   :  { %1878 = vmatpush1.bf16.msra.mxu0 %v18650_v55  ;;  %v18672_v55 = vld [vmem:[%s24123_s4 + $0x39c] sm:$0xff]  }
 0x462   :  { %1879 = vmatprep.subr.bf16.mxu0 %v19461_v10 }
 0x465   :  { %1880 = vmatpush1.bf16.msra.mxu0 %v18651_v56  ;;  %v18673_v56 = vld [vmem:[%s24123_s4 + $0x3a4] sm:$0xff]  }
 0x466   :  { %1881 = vmatprep.subr.bf16.mxu0 %v19461_v10 }
 0x469   :  { %1882 = vmatpush1.bf16.msra.mxu0 %v18652_v57  ;;  %v18674_v57 = vld [vmem:[%s24123_s4 + $0x3ac] sm:$0xff]  }
 0x46a   :  { %1883 = vmatprep.subr.bf16.mxu0 %v19461_v10 }
 0x46d   :  { %1884 = vmatpush1.bf16.msra.mxu0 %v18653_v58  ;;  %v18675_v58 = vld [vmem:[%s24123_s4 + $0x3b4] sm:$0xff]  }
 0x46e   :  { %1885 = vmatprep.subr.bf16.mxu0 %v19461_v10 }
 0x471   :  { %1886 = vmatpush1.bf16.msra.mxu0 %v18654_v59  ;;  %v18676_v59 = vld [vmem:[%s24123_s4 + $0x3bc] sm:$0xff]  }
 0x472   :  { %1887 = vmatprep.subr.bf16.mxu0 %v19461_v10 }
 0x475   :  { %1888 = vmatpush1.bf16.msra.mxu0 %v1861_v61  ;;  %v18678_v61 = vld [vmem:[%s24123_s4 + $0x3cc] sm:$0xff]  }
 0x476   :  { %2090 = vmatprep.subr.bf16.mxu0 %v19461_v10 }
 0x4db   :  { %v1443_v1 = vpop.f32.mrb[24].mxu0 }
 0x4dc   :  { %v1449_v2 = vadd.f32 %v1443_v1, %v20065_v9  ;;  %v1445_v5 = vpop.f32.mrb[25].mxu0  ;;  %v1977_v9 = vadd.f32 %v1976_v0, %v19751_v46  ;;  %v18680_v0 = vld [vmem:[%s24123_s4 + $0x3dc] sm:$0xff]   ;;  %v18681_v1 = vld [vmem:[%s24123_s4 + $0x3e4] ss:$0 sps:$4 sm:$0xff]  }
 0x4dd   :  { %v1446_v11 = vpop.f32.mrb[26].mxu0  ;;  %v20330_v5 = vpop.f32.mrb[14].mxu1 }
 0x4de   :  { %v1447_v12 = vpop.f32.mrb[27].mxu0  ;;  %v1980_v24 = vmax.f32 %v1977_v9, 0.0  ;;  %v2430_v11 = vpop.f32.mrb[15].mxu1  ;;  %v2429_v48 = vadd.f32 %v20330_v5, %v19747_v45  ;;  %v18705_v5 = vld [vmem:[%s24123_s4 + $0x49c] sm:$0xff]  }
 0x4e0   :  { %v1982_v30 = vpack.c.bf16 %v1980_v24, %v1980_v24 }
 0x50f   :  { %v1670_v14 = vpop.f32.mrb[28].mxu0 }
 0x510   :  { %v20202_v15 = vadd.f32 %v1670_v14, %v1449_v2  ;;  %v1672_v16 = vpop.f32.mrb[29].mxu0  ;;  %v2315_v2 = vsel %vm87_vm0, %v18681_v1, 0  ;;  %v18703_v1 = vld [vmem:[%s24123_s4 + $0x48c] sm:$0xff]  }
 0x511   :  { %v1673_v17 = vpop.f32.mrb[30].mxu0 }
 0x512   :  { %v1674_v19 = vpop.f32.mrb[31].mxu0 }
 0x513   :  { %v2813_v19 = vpop.permute.xlu1 %2812 }
 0x514   :  { %14384 = vmatmul.mubr.msk.f32.vlgmr.msra.gmra.mrb[16].mxu1 %vm83_vm1, %v2813_v19 }
 0x515   :  { %18223 = vmatpush1.bf16.msra.mxu1 %v19610_v6  ;;  %3334 = vmatprep.mubr.f32.mxu1 %v19459_v8 }
 0x516   :  { %14466 = vmatprep.subr.msk.mxu1 %vm87_vm0, %v19908_v4 }
 0x517   :  { %v1747_v20 = vpop.f32.mrb[22].mxu0 }
 0x518   :  { %v1748_v21 = vadd.f32 %v1747_v20, %v19747_v45  ;;  %v1749_v22 = vpop.f32.mrb[23].mxu0 }
 0x519   :  { %v1750_v23 = vadd.f32 %v1749_v22, %v19751_v46  ;;  %14467 = vmatpush1.msk.msra.mxu1 %vm87_vm0, %v19916_v7 }
 0x51a   :  { %v1752_v25 = vmax.f32 %v1748_v21, 0.0  ;;  %18229 = vmatprep.subr.bf16.mxu1 %v19602_v3 }
 0x51b   :  { %v1753_v27 = vmax.f32 %v1750_v23, 0.0 }
 0x51c   :  { %v1754_v31 = vpack.c.bf16 %v1752_v25, %v1752_v25 }
 0x51d   :  { %v1755_v28 = vpack.c.bf16 %v1753_v27, %v1753_v27 }
 0x51f   :  { %14213 = vmatprep.mubr.msk.bf16.mxu0 %vm374_vm2, %v1755_v28 }
 0x520   :  { %1896 = vmatmul.mubr.bf16.vlgmr.msra.gmra.mrb[32].mxu0 %v1754_v31 }
 0x521   :  { %2091 = vmatpush1.bf16.msra.mxu0 %v18656_v29  ;;  %14255 = vmatprep.mubr.msk.bf16.mxu0 %vm374_vm2, %v1982_v30 }
 0x522   :  { %2092 = vmatprep.subr.bf16.mxu0 %v19461_v10 }
 0x525   :  { %2093 = vmatpush1.bf16.msra.mxu0 %v18657_v32  ;;  %v18682_v32 = vld [vmem:[%s24123_s4 + $0x3e8] sm:$0xff]  }
 0x526   :  { %2094 = vmatprep.subr.bf16.mxu0 %v19461_v10 }
 0x529   :  { %2095 = vmatpush1.bf16.msra.mxu0 %v18658_v33 }
 0x52a   :  { %2096 = vmatprep.subr.bf16.mxu0 %v19461_v10 }
 0x52d   :  { %2097 = vmatpush1.bf16.msra.mxu0 %v18659_v34  ;;  %v18683_v34 = vld [vmem:[%s24123_s4 + $0x3f0] sm:$0xff]  }
 0x52e   :  { %2098 = vmatprep.subr.bf16.mxu0 %v19461_v10 }
 0x531   :  { %2099 = vmatpush1.bf16.msra.mxu0 %v18660_v35  ;;  %v18684_v35 = vld [vmem:[%s24123_s4 + $0x3f8] sm:$0xff]  }
 0x532   :  { %2100 = vmatprep.subr.bf16.mxu0 %v19461_v10 }
 0x535   :  { %2101 = vmatpush1.bf16.msra.mxu0 %v18661_v36  ;;  %v18685_v36 = vld [vmem:[%s24123_s4 + $0x400] sm:$0xff]  }
 0x536   :  { %2102 = vmatprep.subr.bf16.mxu0 %v19461_v10 }
 0x539   :  { %2103 = vmatpush1.bf16.msra.mxu0 %v18662_v37  ;;  %v18686_v37 = vld [vmem:[%s24123_s4 + $0x408] sm:$0xff]  }
 0x53a   :  { %2104 = vmatprep.subr.bf16.mxu0 %v19461_v10 }
 0x53d   :  { %2105 = vmatpush1.bf16.msra.mxu0 %v18663_v38  ;;  %v18687_v38 = vld [vmem:[%s24123_s4 + $0x410] sm:$0xff]  }
 0x53e   :  { %2106 = vmatprep.subr.bf16.mxu0 %v19461_v10 }
 0x541   :  { %2107 = vmatpush1.bf16.msra.mxu0 %v18664_v39  ;;  %v18688_v39 = vld [vmem:[%s24123_s4 + $0x418] sm:$0xff]  }
 0x542   :  { %2108 = vmatprep.subr.bf16.mxu0 %v19461_v10 }
 0x545   :  { %2109 = vmatpush1.bf16.msra.mxu0 %v18665_v41  ;;  %v18689_v41 = vld [vmem:[%s24123_s4 + $0x420] sm:$0xff]  }
 0x546   :  { %2110 = vmatprep.subr.bf16.mxu0 %v19461_v10 }
 0x549   :  { %2111 = vmatpush1.bf16.msra.mxu0 %v18666_v42  ;;  %v18690_v42 = vld [vmem:[%s24123_s4 + $0x428] sm:$0xff]  }
 0x54a   :  { %2112 = vmatprep.subr.bf16.mxu0 %v19461_v10 }
 0x54d   :  { %2113 = vmatpush1.bf16.msra.mxu0 %v18667_v43  ;;  %v18691_v43 = vld [vmem:[%s24123_s4 + $0x430] sm:$0xff]  }
 0x54e   :  { %2114 = vmatprep.subr.bf16.mxu0 %v19461_v10 }
 0x551   :  { %2115 = vmatpush1.bf16.msra.mxu0 %v2088_v49  ;;  %v18694_v49 = vld [vmem:[%s24123_s4 + $0x448] ss:$0 sps:$4 sm:$0xff]  }
 0x552   :  { %18201 = vmatprep.subr.bf16.mxu0 %v19602_v3 }
 0x554   :  { %2123 = vmatmul.mubr.bf16.vlgmr.msra.gmra.mrb[36].mxu0 %v1981_v50  ;;  %v2433_v50 = vmax.f32 %v2429_v48, 0.0  ;;  %v18716_v48 = vld [vmem:[%s24123_s4 + $0x4f0] sm:$0xff]  }
 0x555   :  { %18203 = vmatpush1.bf16.msra.mxu0 %v19610_v6  ;;  %2199 = vmatprep.mubr.f32.mxu0 %v19459_v8 }
 0x556   :  { %14256 = vmatprep.subr.msk.mxu0 %vm87_vm0, %v19908_v4 }
 0x559   :  { %14257 = vmatpush1.msk.msra.mxu0 %vm87_vm0, %v19916_v7 }
 0x55a   :  { %2317 = vmatprep.subr.bf16.mxu0 %v19461_v10 }
 0x55c   :  { %14258 = vmatmul.mubr.msk.f32.vlgmr.msra.gmra.mrb[40].mxu0 %vm83_vm1, %v2132_v51  ;;  %v2542_v51 = vsel %vm87_vm0, %v18694_v49, 0  ;;  %v18717_v49 = vld [vmem:[%s24123_s4 + $0x4f8] sm:$0xff]  }
 0x55d   :  { %2318 = vmatpush1.bf16.msra.mxu0 %v18669_v52  ;;  %v2435_v52 = vpack.c.bf16 %v2433_v50, %v2433_v50  ;;  %v18718_v50 = vld [vmem:[%s24123_s4 + $0x500] sm:$0xff]  }
 0x55e   :  { %2319 = vmatprep.subr.bf16.mxu0 %v19461_v10 }
 0x561   :  { %2320 = vmatpush1.bf16.msra.mxu0 %v18670_v53  ;;  %v20408_v53 = vld [vmem:[%s24148_s13 + $0x28] sm:$0xf] }
 0x562   :  { %2321 = vmatprep.subr.bf16.mxu0 %v19461_v10 }
 0x565   :  { %2322 = vmatpush1.bf16.msra.mxu0 %v18671_v54  ;;  %v20415_v54 = vld [vmem:[%s24148_s13 + $0x20] sm:$0xf] }
 0x566   :  { %2323 = vmatprep.subr.bf16.mxu0 %v19461_v10 }
 0x569   :  { %2324 = vmatpush1.bf16.msra.mxu0 %v18672_v55  ;;  %v2586_v55 = vpop.permute.xlu0 %2585 }
 0x56a   :  { %2325 = vmatprep.subr.bf16.mxu0 %v19461_v10 }
 0x56d   :  { %2326 = vmatpush1.bf16.msra.mxu0 %v18673_v56  ;;  %v18695_v56 = vld [vmem:[%s24123_s4 + $0x44c] sm:$0xff]  }
 0x56e   :  { %2327 = vmatprep.subr.bf16.mxu0 %v19461_v10 }
 0x571   :  { %2328 = vmatpush1.bf16.msra.mxu0 %v18674_v57  ;;  %v18696_v57 = vld [vmem:[%s24123_s4 + $0x454] sm:$0xff]  }
 0x572   :  { %2329 = vmatprep.subr.bf16.mxu0 %v19461_v10 }
 0x575   :  { %2330 = vmatpush1.bf16.msra.mxu0 %v18675_v58  ;;  %v18697_v58 = vld [vmem:[%s24123_s4 + $0x45c] sm:$0xff]  }
 0x576   :  { %2331 = vmatprep.subr.bf16.mxu0 %v19461_v10 }
 0x579   :  { %2332 = vmatpush1.bf16.msra.mxu0 %v18676_v59  ;;  %v18698_v59 = vld [vmem:[%s24123_s4 + $0x464] sm:$0xff]  }
 0x57a   :  { %2333 = vmatprep.subr.bf16.mxu0 %v19461_v10 }
 0x57d   :  { %2334 = vmatpush1.bf16.msra.mxu0 %v18677_v60  ;;  %v18699_v60 = vld [vmem:[%s24123_s4 + $0x46c] sm:$0xff]  }
 0x57e   :  { %2335 = vmatprep.subr.bf16.mxu0 %v19461_v10 }
 0x581   :  { %2336 = vmatpush1.bf16.msra.mxu0 %v18678_v61  ;;  %v18700_v61 = vld [vmem:[%s24123_s4 + $0x474] sm:$0xff]  }
 0x582   :  { %2337 = vmatprep.subr.bf16.mxu0 %v19461_v10 }
 0x585   :  { %2338 = vmatpush1.bf16.msra.mxu0 %v18679_v63  ;;  %v18701_v63 = vld [vmem:[%s24123_s4 + $0x47c] sm:$0xff]  }
 0x586   :  { %2339 = vmatprep.subr.bf16.mxu0 %v19461_v10 }
 0x589   :  { %2340 = vmatpush1.bf16.msra.mxu0 %v18680_v0  ;;  %v18702_v0 = vld [vmem:[%s24123_s4 + $0x484] sm:$0xff]  }
 0x58a   :  { %2341 = vmatprep.subr.bf16.mxu0 %v19461_v10 }
 0x58d   :  { %2342 = vmatpush1.bf16.msra.mxu0 %v2315_v2  ;;  %v18704_v2 = vld [vmem:[%s24123_s4 + $0x494] sm:$0xff]  }
 0x58e   :  { %2544 = vmatprep.subr.bf16.mxu0 %v19461_v10 }
 0x5f3   :  { %v1897_v12 = vpop.f32.mrb[32].mxu0 }
 0x5f4   :  { %v1899_v13 = vpop.f32.mrb[33].mxu0  ;;  %v1903_v14 = vadd.f32 %v1897_v12, %v20202_v15  ;;  %v2431_v15 = vadd.f32 %v2430_v11, %v19751_v46  ;;  %v18706_v11 = vld [vmem:[%s24123_s4 + $0x4a4] sm:$0xff]   ;;  %v18707_v12 = vld [vmem:[%s24123_s4 + $0x4ac] ss:$0 sps:$4 sm:$0xff]  }
 0x5f5   :  { %v1900_v16 = vpop.f32.mrb[34].mxu0  ;;  %v2769_v13 = vsel %vm87_vm0, %v18707_v12, 0  ;;  %v18729_v12 = vld [vmem:[%s24123_s4 + $0x554] sm:$0xff]  }
 0x5f6   :  { %v1901_v17 = vpop.f32.mrb[35].mxu0  ;;  %v2434_v29 = vmax.f32 %v2431_v15, 0.0 }
 0x5f8   :  { %v2436_v33 = vpack.c.bf16 %v2434_v29, %v2434_v29 }
 0x627   :  { %v2124_v9 = vpop.f32.mrb[36].mxu0 }
 0x628   :  { %v20338_v20 = vadd.f32 %v2124_v9, %v1903_v14  ;;  %v2126_v21 = vpop.f32.mrb[37].mxu0  ;;  %v20476_v14 = vpop.f32.mrb[16].mxu1 }
 0x629   :  { %v2127_v22 = vpop.f32.mrb[38].mxu0  ;;  %v2884_v16 = vpop.f32.mrb[17].mxu1 }
 0x62a   :  { %v2128_v23 = vpop.f32.mrb[39].mxu0 }
 0x62b   :  { %v3267_v23 = vpop.permute.xlu1 %3266 }
 0x62c   :  { %14468 = vmatmul.mubr.msk.f32.vlgmr.msra.gmra.mrb[18].mxu1 %vm83_vm1, %v3267_v23 }
 0x62d   :  { %18231 = vmatpush1.bf16.msra.mxu1 %v19610_v6  ;;  %3788 = vmatprep.mubr.f32.mxu1 %v19459_v8 }
 0x62e   :  { %14550 = vmatprep.subr.msk.mxu1 %vm87_vm0, %v20408_v53 }
 0x62f   :  { %v2201_v24 = vpop.f32.mrb[40].mxu0 }
 0x630   :  { %v2202_v25 = vadd.f32 %v2201_v24, %v19747_v45  ;;  %v2203_v27 = vpop.f32.mrb[41].mxu0 }
 0x631   :  { %v2204_v28 = vadd.f32 %v2203_v27, %v19751_v46  ;;  %14551 = vmatpush1.msk.msra.mxu1 %vm87_vm0, %v20415_v54 }
 0x632   :  { %v2206_v4 = vmax.f32 %v2202_v25, 0.0  ;;  %18237 = vmatprep.subr.bf16.mxu1 %v19602_v3 }
 0x633   :  { %v2207_v30 = vmax.f32 %v2204_v28, 0.0 }
 0x634   :  { %v2208_v7 = vpack.c.bf16 %v2206_v4, %v2206_v4 }
 0x635   :  { %v2209_v31 = vpack.c.bf16 %v2207_v30, %v2207_v30 }
 0x637   :  { %14297 = vmatprep.mubr.msk.bf16.mxu0 %vm374_vm2, %v2209_v31 }
 0x638   :  { %2350 = vmatmul.mubr.bf16.vlgmr.msra.gmra.mrb[44].mxu0 %v2208_v7 }
 0x639   :  { %2545 = vmatpush1.bf16.msra.mxu0 %v18682_v32  ;;  %14339 = vmatprep.mubr.msk.bf16.mxu0 %vm374_vm2, %v2436_v33 }
 0x63a   :  { %2546 = vmatprep.subr.bf16.mxu0 %v19461_v10 }
 0x63d   :  { %2547 = vmatpush1.bf16.msra.mxu0 %v18683_v34 }
 0x63e   :  { %2548 = vmatprep.subr.bf16.mxu0 %v19461_v10 }
 0x641   :  { %2549 = vmatpush1.bf16.msra.mxu0 %v18684_v35  ;;  %v18708_v35 = vld [vmem:[%s24123_s4 + $0x4b0] sm:$0xff]  }
 0x642   :  { %2550 = vmatprep.subr.bf16.mxu0 %v19461_v10 }
 0x645   :  { %2551 = vmatpush1.bf16.msra.mxu0 %v18685_v36 }
 0x646   :  { %2552 = vmatprep.subr.bf16.mxu0 %v19461_v10 }
 0x649   :  { %2553 = vmatpush1.bf16.msra.mxu0 %v18686_v37 }
 0x64a   :  { %2554 = vmatprep.subr.bf16.mxu0 %v19461_v10 }
 0x64d   :  { %2555 = vmatpush1.bf16.msra.mxu0 %v18687_v38  ;;  %v18709_v38 = vld [vmem:[%s24123_s4 + $0x4b8] sm:$0xff]  }
 0x64e   :  { %2556 = vmatprep.subr.bf16.mxu0 %v19461_v10 }
 0x651   :  { %2557 = vmatpush1.bf16.msra.mxu0 %v18688_v39  ;;  %v18710_v39 = vld [vmem:[%s24123_s4 + $0x4c0] sm:$0xff]  }
 0x652   :  { %2558 = vmatprep.subr.bf16.mxu0 %v19461_v10 }
 0x655   :  { %2559 = vmatpush1.bf16.msra.mxu0 %v18689_v41  ;;  %v18711_v41 = vld [vmem:[%s24123_s4 + $0x4c8] sm:$0xff]  }
 0x656   :  { %2560 = vmatprep.subr.bf16.mxu0 %v19461_v10 }
 0x659   :  { %2561 = vmatpush1.bf16.msra.mxu0 %v18690_v42  ;;  %v18712_v42 = vld [vmem:[%s24123_s4 + $0x4d0] sm:$0xff]  }
 0x65a   :  { %2562 = vmatprep.subr.bf16.mxu0 %v19461_v10 }
 0x65d   :  { %2563 = vmatpush1.bf16.msra.mxu0 %v18691_v43  ;;  %v18713_v43 = vld [vmem:[%s24123_s4 + $0x4d8] sm:$0xff]  }
 0x65e   :  { %2564 = vmatprep.subr.bf16.mxu0 %v19461_v10 }
 0x661   :  { %2565 = vmatpush1.bf16.msra.mxu0 %v18692_v44  ;;  %v18714_v44 = vld [vmem:[%s24123_s4 + $0x4e0] sm:$0xff]  }
 0x662   :  { %2566 = vmatprep.subr.bf16.mxu0 %v19461_v10 }
 0x665   :  { %2567 = vmatpush1.bf16.msra.mxu0 %v18693_v47  ;;  %v18715_v47 = vld [vmem:[%s24123_s4 + $0x4e8] sm:$0xff]  }
 0x666   :  { %2568 = vmatprep.subr.bf16.mxu0 %v19461_v10 }
 0x669   :  { %2569 = vmatpush1.bf16.msra.mxu0 %v2542_v51  ;;  %v18719_v51 = vld [vmem:[%s24123_s4 + $0x508] sm:$0xff]  }
 0x66a   :  { %18209 = vmatprep.subr.bf16.mxu0 %v19602_v3 }
 0x66c   :  { %2577 = vmatmul.mubr.bf16.vlgmr.msra.gmra.mrb[48].mxu0 %v2435_v52  ;;  %v2883_v52 = vadd.f32 %v20476_v14, %v19747_v45  ;;  %v18731_v14 = vld [vmem:[%s24123_s4 + $0x564] sm:$0xff]  }
 0x66d   :  { %18211 = vmatpush1.bf16.msra.mxu0 %v19610_v6  ;;  %2653 = vmatprep.mubr.f32.mxu0 %v19459_v8 }
 0x66e   :  { %14340 = vmatprep.subr.msk.mxu0 %vm87_vm0, %v20408_v53 }
 0x671   :  { %14341 = vmatpush1.msk.msra.mxu0 %vm87_vm0, %v20415_v54 }
 0x672   :  { %2771 = vmatprep.subr.bf16.mxu0 %v19461_v10 }
 0x674   :  { %14342 = vmatmul.mubr.msk.f32.vlgmr.msra.gmra.mrb[42].mxu0 %vm83_vm1, %v2586_v55  ;;  %v18720_v55 = vld [vmem:[%s24123_s4 + $0x510] ss:$0 sps:$4 sm:$0xff]  }
 0x675   :  { %2772 = vmatpush1.bf16.msra.mxu0 %v18695_v56  ;;  %v2887_v56 = vmax.f32 %v2883_v52, 0.0  ;;  %v18743_v52 = vld [vmem:[%s24123_s4 + $0x5c0] sm:$0xff]  }
 0x676   :  { %2773 = vmatprep.subr.bf16.mxu0 %v19461_v10 }
 0x679   :  { %2774 = vmatpush1.bf16.msra.mxu0 %v18696_v57  ;;  %v2996_v57 = vsel %vm87_vm0, %v18720_v55, 0  ;;  %v18744_v55 = vld [vmem:[%s24123_s4 + $0x5c8] sm:$0xff]  }
 0x67a   :  { %2775 = vmatprep.subr.bf16.mxu0 %v19461_v10 }
 0x67d   :  { %2776 = vmatpush1.bf16.msra.mxu0 %v18697_v58  ;;  %v2889_v58 = vpack.c.bf16 %v2887_v56, %v2887_v56  ;;  %v18745_v56 = vld [vmem:[%s24123_s4 + $0x5d0] sm:$0xff]  }
 0x67e   :  { %2777 = vmatprep.subr.bf16.mxu0 %v19461_v10 }
 0x681   :  { %2778 = vmatpush1.bf16.msra.mxu0 %v18698_v59  ;;  %v3040_v59 = vpop.permute.xlu0 %3039 }
 0x682   :  { %2779 = vmatprep.subr.bf16.mxu0 %v19461_v10 }
 0x685   :  { %2780 = vmatpush1.bf16.msra.mxu0 %v18699_v60  ;;  %v18721_v60 = vld [vmem:[%s24123_s4 + $0x514] sm:$0xff]  }
 0x686   :  { %2781 = vmatprep.subr.bf16.mxu0 %v19461_v10 }
 0x689   :  { %2782 = vmatpush1.bf16.msra.mxu0 %v18700_v61  ;;  %v18722_v61 = vld [vmem:[%s24123_s4 + $0x51c] sm:$0xff]  }
 0x68a   :  { %2783 = vmatprep.subr.bf16.mxu0 %v19461_v10 }
 0x68d   :  { %2784 = vmatpush1.bf16.msra.mxu0 %v18701_v63  ;;  %v18723_v63 = vld [vmem:[%s24123_s4 + $0x524] sm:$0xff]  }
 0x68e   :  { %2785 = vmatprep.subr.bf16.mxu0 %v19461_v10 }
 0x691   :  { %2786 = vmatpush1.bf16.msra.mxu0 %v18702_v0  ;;  %v18724_v0 = vld [vmem:[%s24123_s4 + $0x52c] sm:$0xff]  }
 0x692   :  { %2787 = vmatprep.subr.bf16.mxu0 %v19461_v10 }
 0x695   :  { %2788 = vmatpush1.bf16.msra.mxu0 %v18703_v1  ;;  %v18725_v1 = vld [vmem:[%s24123_s4 + $0x534] sm:$0xff]  }
 0x696   :  { %2789 = vmatprep.subr.bf16.mxu0 %v19461_v10 }
 0x699   :  { %2790 = vmatpush1.bf16.msra.mxu0 %v18704_v2  ;;  %v18726_v2 = vld [vmem:[%s24123_s4 + $0x53c] sm:$0xff]  }
 0x69a   :  { %2791 = vmatprep.subr.bf16.mxu0 %v19461_v10 }
 0x69d   :  { %2792 = vmatpush1.bf16.msra.mxu0 %v18705_v5  ;;  %v18727_v5 = vld [vmem:[%s24123_s4 + $0x544] sm:$0xff]  }
 0x69e   :  { %2793 = vmatprep.subr.bf16.mxu0 %v19461_v10 }
 0x6a1   :  { %2794 = vmatpush1.bf16.msra.mxu0 %v18706_v11  ;;  %v18728_v11 = vld [vmem:[%s24123_s4 + $0x54c] sm:$0xff]  }
 0x6a2   :  { %2795 = vmatprep.subr.bf16.mxu0 %v19461_v10 }
 0x6a5   :  { %2796 = vmatpush1.bf16.msra.mxu0 %v2769_v13  ;;  %v18730_v13 = vld [vmem:[%s24123_s4 + $0x55c] sm:$0xff]  }
 0x6a6   :  { %2998 = vmatprep.subr.bf16.mxu0 %v19461_v10 }
 0x70b   :  { %v2351_v17 = vpop.f32.mrb[44].mxu0 }
 0x70c   :  { %v2357_v19 = vadd.f32 %v2351_v17, %v20338_v20  ;;  %v2353_v9 = vpop.f32.mrb[45].mxu0  ;;  %v2885_v20 = vadd.f32 %v2884_v16, %v19751_v46  ;;  %v18732_v16 = vld [vmem:[%s24123_s4 + $0x56c] sm:$0xff]   ;;  %v18733_v17 = vld [vmem:[%s24123_s4 + $0x574] ss:$0 sps:$4 sm:$0xff]  }
 0x70d   :  { %v2354_v21 = vpop.f32.mrb[46].mxu0  ;;  %v20612_v9 = vpop.f32.mrb[18].mxu1 }
 0x70e   :  { %v2355_v22 = vpop.f32.mrb[47].mxu0  ;;  %v2888_v32 = vmax.f32 %v2885_v20, 0.0  ;;  %v3338_v21 = vpop.f32.mrb[19].mxu1 }
 0x710   :  { %v2890_v36 = vpack.c.bf16 %v2888_v32, %v2888_v32 }
 0x73f   :  { %v2578_v15 = vpop.f32.mrb[48].mxu0 }
 0x740   :  { %v20484_v24 = vadd.f32 %v2578_v15, %v2357_v19  ;;  %v2580_v25 = vpop.f32.mrb[49].mxu0  ;;  %v3223_v19 = vsel %vm87_vm0, %v18733_v17, 0  ;;  %v18755_v17 = vld [vmem:[%s24123_s4 + $0x61c] sm:$0xff]  }
 0x741   :  { %v2581_v27 = vpop.f32.mrb[50].mxu0 }
 0x742   :  { %v2582_v28 = vpop.f32.mrb[51].mxu0 }
 0x743   :  { %v3721_v28 = vpop.permute.xlu1 %3720 }
 0x744   :  { %14552 = vmatmul.mubr.msk.f32.vlgmr.msra.gmra.mrb[20].mxu1 %vm83_vm1, %v3721_v28 }
 0x745   :  { %18239 = vmatpush1.bf16.msra.mxu1 %v19610_v6  ;;  %4242 = vmatprep.mubr.f32.mxu1 %v19459_v8 }
 0x746   :  { %14634 = vmatprep.subr.msk.mxu1 %vm87_vm0, %v20408_v53 }
 0x747   :  { %v2655_v29 = vpop.f32.mrb[42].mxu0 }
 0x748   :  { %v2656_v4 = vadd.f32 %v2655_v29, %v19747_v45  ;;  %v2657_v30 = vpop.f32.mrb[43].mxu0 }
 0x749   :  { %v2658_v31 = vadd.f32 %v2657_v30, %v19751_v46  ;;  %14635 = vmatpush1.msk.msra.mxu1 %vm87_vm0, %v20415_v54 }
 0x74a   :  { %v2660_v33 = vmax.f32 %v2656_v4, 0.0  ;;  %18245 = vmatprep.subr.bf16.mxu1 %v19602_v3 }
 0x74b   :  { %v2661_v7 = vmax.f32 %v2658_v31, 0.0 }
 0x74c   :  { %v2662_v37 = vpack.c.bf16 %v2660_v33, %v2660_v33 }
 0x74d   :  { %v2663_v34 = vpack.c.bf16 %v2661_v7, %v2661_v7 }
 0x74f   :  { %14381 = vmatprep.mubr.msk.bf16.mxu0 %vm374_vm2, %v2663_v34 }
 0x750   :  { %2804 = vmatmul.mubr.bf16.vlgmr.msra.gmra.mrb[52].mxu0 %v2662_v37 }
 0x751   :  { %2999 = vmatpush1.bf16.msra.mxu0 %v18708_v35  ;;  %14423 = vmatprep.mubr.msk.bf16.mxu0 %vm374_vm2, %v2890_v36 }
 0x752   :  { %3000 = vmatprep.subr.bf16.mxu0 %v19461_v10 }
 0x755   :  { %3001 = vmatpush1.bf16.msra.mxu0 %v18709_v38  ;;  %v18734_v38 = vld [vmem:[%s24123_s4 + $0x578] sm:$0xff]  }
 0x756   :  { %3002 = vmatprep.subr.bf16.mxu0 %v19461_v10 }
 0x759   :  { %3003 = vmatpush1.bf16.msra.mxu0 %v18710_v39 }
 0x75a   :  { %3004 = vmatprep.subr.bf16.mxu0 %v19461_v10 }
 0x75d   :  { %3005 = vmatpush1.bf16.msra.mxu0 %v18711_v41 }
 0x75e   :  { %3006 = vmatprep.subr.bf16.mxu0 %v19461_v10 }
 0x761   :  { %3007 = vmatpush1.bf16.msra.mxu0 %v18712_v42  ;;  %v18735_v42 = vld [vmem:[%s24123_s4 + $0x580] sm:$0xff]  }
 0x762   :  { %3008 = vmatprep.subr.bf16.mxu0 %v19461_v10 }
 0x765   :  { %3009 = vmatpush1.bf16.msra.mxu0 %v18713_v43  ;;  %v18736_v43 = vld [vmem:[%s24123_s4 + $0x588] sm:$0xff]  }
 0x766   :  { %3010 = vmatprep.subr.bf16.mxu0 %v19461_v10 }
 0x769   :  { %3011 = vmatpush1.bf16.msra.mxu0 %v18714_v44  ;;  %v18737_v44 = vld [vmem:[%s24123_s4 + $0x590] sm:$0xff]  }
 0x76a   :  { %3012 = vmatprep.subr.bf16.mxu0 %v19461_v10 }
 0x76d   :  { %3013 = vmatpush1.bf16.msra.mxu0 %v18715_v47  ;;  %v18738_v47 = vld [vmem:[%s24123_s4 + $0x598] sm:$0xff]  }
 0x76e   :  { %3014 = vmatprep.subr.bf16.mxu0 %v19461_v10 }
 0x771   :  { %3015 = vmatpush1.bf16.msra.mxu0 %v18716_v48  ;;  %v18739_v48 = vld [vmem:[%s24123_s4 + $0x5a0] sm:$0xff]  }
 0x772   :  { %3016 = vmatprep.subr.bf16.mxu0 %v19461_v10 }
 0x775   :  { %3017 = vmatpush1.bf16.msra.mxu0 %v18717_v49  ;;  %v18740_v49 = vld [vmem:[%s24123_s4 + $0x5a8] sm:$0xff]  }
 0x776   :  { %3018 = vmatprep.subr.bf16.mxu0 %v19461_v10 }
 0x779   :  { %3019 = vmatpush1.bf16.msra.mxu0 %v18718_v50  ;;  %v18741_v50 = vld [vmem:[%s24123_s4 + $0x5b0] sm:$0xff]  }
 0x77a   :  { %3020 = vmatprep.subr.bf16.mxu0 %v19461_v10 }
 0x77d   :  { %3021 = vmatpush1.bf16.msra.mxu0 %v18719_v51  ;;  %v18742_v51 = vld [vmem:[%s24123_s4 + $0x5b8] sm:$0xff]  }
 0x77e   :  { %3022 = vmatprep.subr.bf16.mxu0 %v19461_v10 }
 0x781   :  { %3023 = vmatpush1.bf16.msra.mxu0 %v2996_v57  ;;  %v3337_v57 = vadd.f32 %v20612_v9, %v19747_v45  ;;  %v18757_v9 = vld [vmem:[%s24123_s4 + $0x62c] sm:$0xff]  }
 0x782   :  { %18217 = vmatprep.subr.bf16.mxu0 %v19602_v3 }
 0x784   :  { %3031 = vmatmul.mubr.bf16.vlgmr.msra.gmra.mrb[56].mxu0 %v2889_v58  ;;  %v18746_v58 = vld [vmem:[%s24123_s4 + $0x5d8] ss:$0 sps:$4 sm:$0xff]  }
 0x785   :  { %18219 = vmatpush1.bf16.msra.mxu0 %v19610_v6  ;;  %3107 = vmatprep.mubr.f32.mxu0 %v19459_v8 }
 0x786   :  { %14424 = vmatprep.subr.msk.mxu0 %vm87_vm0, %v20408_v53 }
 0x789   :  { %14425 = vmatpush1.msk.msra.mxu0 %vm87_vm0, %v20415_v54 }
 0x78a   :  { %3225 = vmatprep.subr.bf16.mxu0 %v19461_v10 }
 0x78c   :  { %14426 = vmatmul.mubr.msk.f32.vlgmr.msra.gmra.mrb[60].mxu0 %vm83_vm1, %v3040_v59  ;;  %v3341_v59 = vmax.f32 %v3337_v57, 0.0  ;;  %v18768_v57 = vld [vmem:[%s24123_s4 + $0x680] sm:$0xff]  }
 0x78d   :  { %3226 = vmatpush1.bf16.msra.mxu0 %v18721_v60  ;;  %v3450_v60 = vsel %vm87_vm0, %v18746_v58, 0  ;;  %v18769_v58 = vld [vmem:[%s24123_s4 + $0x688] sm:$0xff]  }
 0x78e   :  { %3227 = vmatprep.subr.bf16.mxu0 %v19461_v10 }
 0x791   :  { %3228 = vmatpush1.bf16.msra.mxu0 %v18722_v61  ;;  %v3343_v61 = vpack.c.bf16 %v3341_v59, %v3341_v59  ;;  %v18770_v59 = vld [vmem:[%s24123_s4 + $0x690] sm:$0xff]  }
 0x792   :  { %3229 = vmatprep.subr.bf16.mxu0 %v19461_v10 }
 0x795   :  { %3230 = vmatpush1.bf16.msra.mxu0 %v18723_v63  ;;  %v3494_v63 = vpop.permute.xlu0 %3493 }
 0x796   :  { %3231 = vmatprep.subr.bf16.mxu0 %v19461_v10 }
 0x799   :  { %3232 = vmatpush1.bf16.msra.mxu0 %v18724_v0  ;;  %v18747_v0 = vld [vmem:[%s24123_s4 + $0x5dc] sm:$0xff]  }
 0x79a   :  { %3233 = vmatprep.subr.bf16.mxu0 %v19461_v10 }
 0x79d   :  { %3234 = vmatpush1.bf16.msra.mxu0 %v18725_v1  ;;  %v20699_v1 = vld [vmem:[%s24147_s20] sm:$0x3] }
 0x79e   :  { %3235 = vmatprep.subr.bf16.mxu0 %v19461_v10  ;;  %3947 = vrot.lane.b32.xlu0 %v20699_v1, %s19476_s27  ;;  %s19480_s27 = smov 107  }
 0x79f   :  { %4174 = vrot.lane.b32.xlu1 %v20699_v1, %s19477_s25  ;;  %s19481_s25 = smov 106  }
 0x7a1   :  { %3236 = vmatpush1.bf16.msra.mxu0 %v18726_v2  ;;  %v18748_v2 = vld [vmem:[%s24123_s4 + $0x5e4] sm:$0xff]  }
 0x7a2   :  { %3237 = vmatprep.subr.bf16.mxu0 %v19461_v10  ;;  %4401 = vrot.lane.b32.xlu0 %v20699_v1, %s19478_s3  ;;  %s19482_s3 = smov 105  }
 0x7a3   :  { %4628 = vrot.lane.b32.xlu1 %v20699_v1, %s19479_s23  ;;  %s19483_s23 = smov 104  }
 0x7a5   :  { %3238 = vmatpush1.bf16.msra.mxu0 %v18727_v5  ;;  %v18749_v5 = vld [vmem:[%s24123_s4 + $0x5ec] sm:$0xff]  }
 0x7a6   :  { %3239 = vmatprep.subr.bf16.mxu0 %v19461_v10  ;;  %4855 = vrot.lane.b32.xlu0 %v20699_v1, %s19480_s27 }
 0x7a7   :  { %5082 = vrot.lane.b32.xlu1 %v20699_v1, %s19481_s25 }
 0x7a9   :  { %3240 = vmatpush1.bf16.msra.mxu0 %v18728_v11  ;;  %v18750_v11 = vld [vmem:[%s24123_s4 + $0x5f4] sm:$0xff]  }
 0x7aa   :  { %3241 = vmatprep.subr.bf16.mxu0 %v19461_v10  ;;  %5309 = vrot.lane.b32.xlu0 %v20699_v1, %s19482_s3  ;;  %s19484_s3 = smov 103  }
 0x7ab   :  { %5536 = vrot.lane.b32.xlu1 %v20699_v1, %s19483_s23  ;;  %s19487_s23 = smov 100  }
 0x7ad   :  { %3242 = vmatpush1.bf16.msra.mxu0 %v18729_v12  ;;  %v18751_v12 = vld [vmem:[%s24123_s4 + $0x5fc] sm:$0xff]  }
 0x7ae   :  { %3243 = vmatprep.subr.bf16.mxu0 %v19461_v10 }
 0x7b1   :  { %3244 = vmatpush1.bf16.msra.mxu0 %v18730_v13  ;;  %v18752_v13 = vld [vmem:[%s24123_s4 + $0x604] sm:$0xff]  }
 0x7b2   :  { %3245 = vmatprep.subr.bf16.mxu0 %v19461_v10 }
 0x7b5   :  { %3246 = vmatpush1.bf16.msra.mxu0 %v18731_v14  ;;  %v18753_v14 = vld [vmem:[%s24123_s4 + $0x60c] sm:$0xff]  }
 0x7b6   :  { %3247 = vmatprep.subr.bf16.mxu0 %v19461_v10 }
 0x7b9   :  { %3248 = vmatpush1.bf16.msra.mxu0 %v18732_v16  ;;  %v18754_v16 = vld [vmem:[%s24123_s4 + $0x614] sm:$0xff]  }
 0x7ba   :  { %3249 = vmatprep.subr.bf16.mxu0 %v19461_v10 }
 0x7bd   :  { %3250 = vmatpush1.bf16.msra.mxu0 %v3223_v19  ;;  %v18756_v19 = vld [vmem:[%s24123_s4 + $0x624] sm:$0xff]  }
 0x7be   :  { %3452 = vmatprep.subr.bf16.mxu0 %v19461_v10 }
 0x823   :  { %v2805_v22 = vpop.f32.mrb[52].mxu0 }
 0x824   :  { %v2811_v23 = vadd.f32 %v2805_v22, %v20484_v24  ;;  %v2807_v15 = vpop.f32.mrb[53].mxu0  ;;  %v3339_v24 = vadd.f32 %v3338_v21, %v19751_v46  ;;  %v18758_v21 = vld [vmem:[%s24123_s4 + $0x634] sm:$0xff]   ;;  %v18759_v22 = vld [vmem:[%s24123_s4 + $0x63c] ss:$0 sps:$4 sm:$0xff]  }
 0x825   :  { %v2808_v25 = vpop.f32.mrb[54].mxu0  ;;  %v20753_v15 = vpop.f32.mrb[20].mxu1 }
 0x826   :  { %v2809_v27 = vpop.f32.mrb[55].mxu0  ;;  %v3342_v34 = vmax.f32 %v3339_v24, 0.0  ;;  %v3792_v25 = vpop.f32.mrb[21].mxu1 }
 0x828   :  { %v3344_v39 = vpack.c.bf16 %v3342_v34, %v3342_v34 }
 0x857   :  { %v3032_v62 = vpop.f32.mrb[56].mxu0 }
 0x858   :  { %v20620_v20 = vadd.f32 %v3032_v62, %v2811_v23  ;;  %v3034_v29 = vpop.f32.mrb[57].mxu0  ;;  %v3677_v23 = vsel %vm87_vm0, %v18759_v22, 0  ;;  %v18781_v22 = vld [vmem:[%s24123_s4 + $0x6e4] sm:$0xff]  }
 0x859   :  { %v3035_v4 = vpop.f32.mrb[58].mxu0 }
 0x85a   :  { %v3036_v30 = vpop.f32.mrb[59].mxu0 }
 0x85b   :  { %v4175_v30 = vpop.permute.xlu1 %4174 }
 0x85c   :  { %14636 = vmatmul.mubr.msk.f32.vlgmr.msra.gmra.mrb[22].mxu1 %vm83_vm1, %v4175_v30 }
 0x85d   :  { %18247 = vmatpush1.bf16.msra.mxu1 %v19610_v6  ;;  %4696 = vmatprep.mubr.f32.mxu1 %v19459_v8 }
 0x85e   :  { %14718 = vmatprep.subr.msk.mxu1 %vm87_vm0, %v20408_v53 }
 0x85f   :  { %v3109_v31 = vpop.f32.mrb[60].mxu0 }
 0x860   :  { %v3110_v32 = vadd.f32 %v3109_v31, %v19747_v45  ;;  %v3111_v33 = vpop.f32.mrb[61].mxu0 }
 0x861   :  { %v3112_v7 = vadd.f32 %v3111_v33, %v19751_v46  ;;  %14719 = vmatpush1.msk.msra.mxu1 %vm87_vm0, %v20415_v54 }
 0x862   :  { %v3114_v35 = vmax.f32 %v3110_v32, 0.0  ;;  %18253 = vmatprep.subr.bf16.mxu1 %v19602_v3 }
 0x863   :  { %v3115_v36 = vmax.f32 %v3112_v7, 0.0 }
 0x864   :  { %v3116_v41 = vpack.c.bf16 %v3114_v35, %v3114_v35 }
 0x865   :  { %v3117_v37 = vpack.c.bf16 %v3115_v36, %v3115_v36 }
 0x867   :  { %14465 = vmatprep.mubr.msk.bf16.mxu0 %vm374_vm2, %v3117_v37 }
 0x868   :  { %3258 = vmatmul.mubr.bf16.vlgmr.msra.gmra.mrb[64].mxu0 %v3116_v41 }
 0x869   :  { %3453 = vmatpush1.bf16.msra.mxu0 %v18734_v38  ;;  %14507 = vmatprep.mubr.msk.bf16.mxu0 %vm374_vm2, %v3344_v39 }
 0x86a   :  { %3454 = vmatprep.subr.bf16.mxu0 %v19461_v10 }
 0x86d   :  { %3455 = vmatpush1.bf16.msra.mxu0 %v18735_v42 }
 0x86e   :  { %3456 = vmatprep.subr.bf16.mxu0 %v19461_v10 }
 0x871   :  { %3457 = vmatpush1.bf16.msra.mxu0 %v18736_v43  ;;  %v18760_v43 = vld [vmem:[%s24123_s4 + $0x640] sm:$0xff]  }
 0x872   :  { %3458 = vmatprep.subr.bf16.mxu0 %v19461_v10 }
 0x875   :  { %3459 = vmatpush1.bf16.msra.mxu0 %v18737_v44 }
 0x876   :  { %3460 = vmatprep.subr.bf16.mxu0 %v19461_v10 }
 0x879   :  { %3461 = vmatpush1.bf16.msra.mxu0 %v18738_v47 }
 0x87a   :  { %3462 = vmatprep.subr.bf16.mxu0 %v19461_v10 }
 0x87d   :  { %3463 = vmatpush1.bf16.msra.mxu0 %v18739_v48  ;;  %v18761_v48 = vld [vmem:[%s24123_s4 + $0x648] sm:$0xff]  }
 0x87e   :  { %3464 = vmatprep.subr.bf16.mxu0 %v19461_v10 }
 0x881   :  { %3465 = vmatpush1.bf16.msra.mxu0 %v18740_v49  ;;  %v18762_v49 = vld [vmem:[%s24123_s4 + $0x650] sm:$0xff]  }
 0x882   :  { %3466 = vmatprep.subr.bf16.mxu0 %v19461_v10 }
 0x885   :  { %3467 = vmatpush1.bf16.msra.mxu0 %v18741_v50  ;;  %v18763_v50 = vld [vmem:[%s24123_s4 + $0x658] sm:$0xff]  }
 0x886   :  { %3468 = vmatprep.subr.bf16.mxu0 %v19461_v10 }
 0x889   :  { %3469 = vmatpush1.bf16.msra.mxu0 %v18742_v51  ;;  %v18764_v51 = vld [vmem:[%s24123_s4 + $0x660] sm:$0xff]  }
 0x88a   :  { %3470 = vmatprep.subr.bf16.mxu0 %v19461_v10 }
 0x88d   :  { %3471 = vmatpush1.bf16.msra.mxu0 %v18743_v52  ;;  %v18765_v52 = vld [vmem:[%s24123_s4 + $0x668] sm:$0xff]  }
 0x88e   :  { %3472 = vmatprep.subr.bf16.mxu0 %v19461_v10 }
 0x891   :  { %3473 = vmatpush1.bf16.msra.mxu0 %v18744_v55  ;;  %v18766_v55 = vld [vmem:[%s24123_s4 + $0x670] sm:$0xff]  }
 0x892   :  { %3474 = vmatprep.subr.bf16.mxu0 %v19461_v10 }
 0x895   :  { %3475 = vmatpush1.bf16.msra.mxu0 %v18745_v56  ;;  %v18767_v56 = vld [vmem:[%s24123_s4 + $0x678] sm:$0xff]  }
 0x896   :  { %3476 = vmatprep.subr.bf16.mxu0 %v19461_v10 }
 0x899   :  { %3477 = vmatpush1.bf16.msra.mxu0 %v3450_v60  ;;  %v18771_v60 = vld [vmem:[%s24123_s4 + $0x698] sm:$0xff]  }
 0x89a   :  { %18225 = vmatprep.subr.bf16.mxu0 %v19602_v3 }
 0x89c   :  { %3485 = vmatmul.mubr.bf16.vlgmr.msra.gmra.mrb[68].mxu0 %v3343_v61  ;;  %v3791_v61 = vadd.f32 %v20753_v15, %v19747_v45  ;;  %v18783_v15 = vld [vmem:[%s24123_s4 + $0x6f4] sm:$0xff]  }
 0x89d   :  { %18227 = vmatpush1.bf16.msra.mxu0 %v19610_v6  ;;  %3561 = vmatprep.mubr.f32.mxu0 %v19459_v8 }
 0x89e   :  { %14508 = vmatprep.subr.msk.mxu0 %vm87_vm0, %v20408_v53 }
 0x8a1   :  { %14509 = vmatpush1.msk.msra.mxu0 %vm87_vm0, %v20415_v54 }
 0x8a2   :  { %3679 = vmatprep.subr.bf16.mxu0 %v19461_v10 }
 0x8a4   :  { %14510 = vmatmul.mubr.msk.f32.vlgmr.msra.gmra.mrb[62].mxu0 %vm83_vm1, %v3494_v63  ;;  %v18772_v63 = vld [vmem:[%s24123_s4 + $0x6a0] ss:$0 sps:$4 sm:$0xff]  }
 0x8a5   :  { %3680 = vmatpush1.bf16.msra.mxu0 %v18747_v0  ;;  %v3795_v0 = vmax.f32 %v3791_v61, 0.0  ;;  %v18796_v61 = vld [vmem:[%s24123_s4 + $0x758] sm:$0xff]  }
 0x8a6   :  { %3681 = vmatprep.subr.bf16.mxu0 %v19461_v10 }
 0x8a9   :  { %3682 = vmatpush1.bf16.msra.mxu0 %v18748_v2  ;;  %v3904_v2 = vsel %vm87_vm0, %v18772_v63, 0  ;;  %v18797_v63 = vld [vmem:[%s24123_s4 + $0x760] sm:$0xff]  }
 0x8aa   :  { %3683 = vmatprep.subr.bf16.mxu0 %v19461_v10 }
 0x8ad   :  { %3684 = vmatpush1.bf16.msra.mxu0 %v18749_v5  ;;  %v3797_v5 = vpack.c.bf16 %v3795_v0, %v3795_v0 }
 0x8ae   :  { %3685 = vmatprep.subr.bf16.mxu0 %v19461_v10 }
 0x8b1   :  { %3686 = vmatpush1.bf16.msra.mxu0 %v18750_v11  ;;  %v3948_v11 = vpop.permute.xlu0 %3947 }
 0x8b2   :  { %3687 = vmatprep.subr.bf16.mxu0 %v19461_v10 }
 0x8b5   :  { %3688 = vmatpush1.bf16.msra.mxu0 %v18751_v12  ;;  %v18773_v12 = vld [vmem:[%s24123_s4 + $0x6a4] sm:$0xff]  }
 0x8b6   :  { %3689 = vmatprep.subr.bf16.mxu0 %v19461_v10 }
 0x8b9   :  { %3690 = vmatpush1.bf16.msra.mxu0 %v18752_v13  ;;  %v18774_v13 = vld [vmem:[%s24123_s4 + $0x6ac] sm:$0xff]  }
 0x8ba   :  { %3691 = vmatprep.subr.bf16.mxu0 %v19461_v10 }
 0x8bd   :  { %3692 = vmatpush1.bf16.msra.mxu0 %v18753_v14  ;;  %v18775_v14 = vld [vmem:[%s24123_s4 + $0x6b4] sm:$0xff]  }
 0x8be   :  { %3693 = vmatprep.subr.bf16.mxu0 %v19461_v10 }
 0x8c1   :  { %3694 = vmatpush1.bf16.msra.mxu0 %v18754_v16  ;;  %v18776_v16 = vld [vmem:[%s24123_s4 + $0x6bc] sm:$0xff]  }
 0x8c2   :  { %3695 = vmatprep.subr.bf16.mxu0 %v19461_v10 }
 0x8c5   :  { %3696 = vmatpush1.bf16.msra.mxu0 %v18755_v17  ;;  %v18777_v17 = vld [vmem:[%s24123_s4 + $0x6c4] sm:$0xff]  }
 0x8c6   :  { %3697 = vmatprep.subr.bf16.mxu0 %v19461_v10 }
 0x8c9   :  { %3698 = vmatpush1.bf16.msra.mxu0 %v18756_v19  ;;  %v18778_v19 = vld [vmem:[%s24123_s4 + $0x6cc] sm:$0xff]  }
 0x8ca   :  { %3699 = vmatprep.subr.bf16.mxu0 %v19461_v10 }
 0x8cd   :  { %3700 = vmatpush1.bf16.msra.mxu0 %v18757_v9  ;;  %v18779_v9 = vld [vmem:[%s24123_s4 + $0x6d4] sm:$0xff]  }
 0x8ce   :  { %3701 = vmatprep.subr.bf16.mxu0 %v19461_v10 }
 0x8d1   :  { %3702 = vmatpush1.bf16.msra.mxu0 %v18758_v21  ;;  %v18780_v21 = vld [vmem:[%s24123_s4 + $0x6dc] sm:$0xff]  }
 0x8d2   :  { %3703 = vmatprep.subr.bf16.mxu0 %v19461_v10 }
 0x8d5   :  { %3704 = vmatpush1.bf16.msra.mxu0 %v3677_v23  ;;  %v18782_v23 = vld [vmem:[%s24123_s4 + $0x6ec] sm:$0xff]  }
 0x8d6   :  { %3906 = vmatprep.subr.bf16.mxu0 %v19461_v10 }
 0x93b   :  { %v3259_v27 = vpop.f32.mrb[64].mxu0 }
 0x93c   :  { %v3265_v28 = vadd.f32 %v3259_v27, %v20620_v20  ;;  %v3261_v62 = vpop.f32.mrb[65].mxu0  ;;  %v3793_v20 = vadd.f32 %v3792_v25, %v19751_v46  ;;  %v18784_v25 = vld [vmem:[%s24123_s4 + $0x6fc] sm:$0xff]   ;;  %v18785_v27 = vld [vmem:[%s24123_s4 + $0x704] ss:$0 sps:$4 sm:$0xff]  }
 0x93d   :  { %v3262_v29 = vpop.f32.mrb[66].mxu0  ;;  %v20889_v62 = vpop.f32.mrb[22].mxu1 }
 0x93e   :  { %v3263_v4 = vpop.f32.mrb[67].mxu0  ;;  %v3796_v38 = vmax.f32 %v3793_v20, 0.0  ;;  %v4246_v29 = vpop.f32.mrb[23].mxu1  ;;  %v4245_v0 = vadd.f32 %v20889_v62, %v19747_v45  ;;  %v18809_v62 = vld [vmem:[%s24123_s4 + $0x7bc] sm:$0xff]  }
 0x940   :  { %v3798_v44 = vpack.c.bf16 %v3796_v38, %v3796_v38 }
 0x96f   :  { %v3486_v24 = vpop.f32.mrb[68].mxu0 }
 0x970   :  { %v20761_v31 = vadd.f32 %v3486_v24, %v3265_v28  ;;  %v3488_v32 = vpop.f32.mrb[69].mxu0  ;;  %v4131_v28 = vsel %vm87_vm0, %v18785_v27, 0  ;;  %v18807_v27 = vld [vmem:[%s24123_s4 + $0x7ac] sm:$0xff]  }
 0x971   :  { %v3489_v33 = vpop.f32.mrb[70].mxu0 }
 0x972   :  { %v3490_v7 = vpop.f32.mrb[71].mxu0 }
 0x973   :  { %v4629_v7 = vpop.permute.xlu1 %4628 }
 0x974   :  { %14720 = vmatmul.mubr.msk.f32.vlgmr.msra.gmra.mrb[24].mxu1 %vm83_vm1, %v4629_v7 }
 0x975   :  { %18255 = vmatpush1.bf16.msra.mxu1 %v19610_v6  ;;  %5150 = vmatprep.mubr.f32.mxu1 %v19459_v8 }
 0x976   :  { %14802 = vmatprep.subr.msk.mxu1 %vm87_vm0, %v20408_v53 }
 0x977   :  { %v3563_v34 = vpop.f32.mrb[62].mxu0 }
 0x978   :  { %v3564_v35 = vadd.f32 %v3563_v34, %v19747_v45  ;;  %v3565_v36 = vpop.f32.mrb[63].mxu0 }
 0x979   :  { %v3566_v37 = vadd.f32 %v3565_v36, %v19751_v46  ;;  %14803 = vmatpush1.msk.msra.mxu1 %vm87_vm0, %v20415_v54 }
 0x97a   :  { %v3568_v39 = vmax.f32 %v3564_v35, 0.0  ;;  %18261 = vmatprep.subr.bf16.mxu1 %v19602_v3 }
 0x97b   :  { %v3569_v41 = vmax.f32 %v3566_v37, 0.0 }
 0x97c   :  { %v3570_v47 = vpack.c.bf16 %v3568_v39, %v3568_v39 }
 0x97d   :  { %v3571_v42 = vpack.c.bf16 %v3569_v41, %v3569_v41 }
 0x97f   :  { %14549 = vmatprep.mubr.msk.bf16.mxu0 %vm374_vm2, %v3571_v42 }
 0x980   :  { %3712 = vmatmul.mubr.bf16.vlgmr.msra.gmra.mrb[72].mxu0 %v3570_v47 }
 0x981   :  { %3907 = vmatpush1.bf16.msra.mxu0 %v18760_v43  ;;  %14591 = vmatprep.mubr.msk.bf16.mxu0 %vm374_vm2, %v3798_v44 }
 0x982   :  { %3908 = vmatprep.subr.bf16.mxu0 %v19461_v10 }
 0x985   :  { %3909 = vmatpush1.bf16.msra.mxu0 %v18761_v48  ;;  %v18786_v48 = vld [vmem:[%s24123_s4 + $0x708] sm:$0xff]  }
 0x986   :  { %3910 = vmatprep.subr.bf16.mxu0 %v19461_v10 }
 0x989   :  { %3911 = vmatpush1.bf16.msra.mxu0 %v18762_v49 }
 0x98a   :  { %3912 = vmatprep.subr.bf16.mxu0 %v19461_v10 }
 0x98d   :  { %3913 = vmatpush1.bf16.msra.mxu0 %v18763_v50  ;;  %v18787_v50 = vld [vmem:[%s24123_s4 + $0x710] sm:$0xff]  }
 0x98e   :  { %3914 = vmatprep.subr.bf16.mxu0 %v19461_v10 }
 0x991   :  { %3915 = vmatpush1.bf16.msra.mxu0 %v18764_v51  ;;  %v18788_v51 = vld [vmem:[%s24123_s4 + $0x718] sm:$0xff]  }
 0x992   :  { %3916 = vmatprep.subr.bf16.mxu0 %v19461_v10 }
 0x995   :  { %3917 = vmatpush1.bf16.msra.mxu0 %v18765_v52  ;;  %v18789_v52 = vld [vmem:[%s24123_s4 + $0x720] sm:$0xff]  }
 0x996   :  { %3918 = vmatprep.subr.bf16.mxu0 %v19461_v10 }
 0x999   :  { %3919 = vmatpush1.bf16.msra.mxu0 %v18766_v55  ;;  %v18790_v55 = vld [vmem:[%s24123_s4 + $0x728] sm:$0xff]  }
 0x99a   :  { %3920 = vmatprep.subr.bf16.mxu0 %v19461_v10 }
 0x99d   :  { %3921 = vmatpush1.bf16.msra.mxu0 %v18767_v56  ;;  %v18791_v56 = vld [vmem:[%s24123_s4 + $0x730] sm:$0xff]  }
 0x99e   :  { %3922 = vmatprep.subr.bf16.mxu0 %v19461_v10 }
 0x9a1   :  { %3923 = vmatpush1.bf16.msra.mxu0 %v18768_v57  ;;  %v18792_v57 = vld [vmem:[%s24123_s4 + $0x738] sm:$0xff]  }
 0x9a2   :  { %3924 = vmatprep.subr.bf16.mxu0 %v19461_v10 }
 0x9a5   :  { %3925 = vmatpush1.bf16.msra.mxu0 %v18769_v58  ;;  %v18793_v58 = vld [vmem:[%s24123_s4 + $0x740] sm:$0xff]  }
 0x9a6   :  { %3926 = vmatprep.subr.bf16.mxu0 %v19461_v10 }
 0x9a9   :  { %3927 = vmatpush1.bf16.msra.mxu0 %v18770_v59  ;;  %v18794_v59 = vld [vmem:[%s24123_s4 + $0x748] sm:$0xff]  }
 0x9aa   :  { %3928 = vmatprep.subr.bf16.mxu0 %v19461_v10 }
 0x9ad   :  { %3929 = vmatpush1.bf16.msra.mxu0 %v18771_v60  ;;  %v18795_v60 = vld [vmem:[%s24123_s4 + $0x750] sm:$0xff]  }
 0x9ae   :  { %3930 = vmatprep.subr.bf16.mxu0 %v19461_v10 }
 0x9b1   :  { %3931 = vmatpush1.bf16.msra.mxu0 %v3904_v2  ;;  %v18798_v2 = vld [vmem:[%s24123_s4 + $0x768] ss:$0 sps:$4 sm:$0xff]  }
 0x9b2   :  { %18233 = vmatprep.subr.bf16.mxu0 %v19602_v3 }
 0x9b4   :  { %3939 = vmatmul.mubr.bf16.vlgmr.msra.gmra.mrb[76].mxu0 %v3797_v5  ;;  %v4249_v5 = vmax.f32 %v4245_v0, 0.0  ;;  %v18820_v0 = vld [vmem:[%s24123_s4 + $0x810] sm:$0xff]  }
 0x9b5   :  { %18235 = vmatpush1.bf16.msra.mxu0 %v19610_v6  ;;  %4015 = vmatprep.mubr.f32.mxu0 %v19459_v8 }
 0x9b6   :  { %14592 = vmatprep.subr.msk.mxu0 %vm87_vm0, %v20408_v53 }
 0x9b9   :  { %14593 = vmatpush1.msk.msra.mxu0 %vm87_vm0, %v20415_v54 }
 0x9ba   :  { %4133 = vmatprep.subr.bf16.mxu0 %v19461_v10 }
 0x9bc   :  { %14594 = vmatmul.mubr.msk.f32.vlgmr.msra.gmra.mrb[80].mxu0 %vm83_vm1, %v3948_v11  ;;  %v4358_v11 = vsel %vm87_vm0, %v18798_v2, 0  ;;  %v18821_v2 = vld [vmem:[%s24123_s4 + $0x818] sm:$0xff]  }
 0x9bd   :  { %4134 = vmatpush1.bf16.msra.mxu0 %v18773_v12  ;;  %v4251_v12 = vpack.c.bf16 %v4249_v5, %v4249_v5  ;;  %v18822_v5 = vld [vmem:[%s24123_s4 + $0x820] sm:$0xff]  }
 0x9be   :  { %4135 = vmatprep.subr.bf16.mxu0 %v19461_v10 }
 0x9c1   :  { %4136 = vmatpush1.bf16.msra.mxu0 %v18774_v13  ;;  %v20967_v13 = vld [vmem:[%s24148_s13 + $0x28] sm:$0xf] }
 0x9c2   :  { %4137 = vmatprep.subr.bf16.mxu0 %v19461_v10 }
 0x9c5   :  { %4138 = vmatpush1.bf16.msra.mxu0 %v18775_v14  ;;  %v20974_v14 = vld [vmem:[%s24148_s13 + $0x20] sm:$0xf] }
 0x9c6   :  { %4139 = vmatprep.subr.bf16.mxu0 %v19461_v10 }
 0x9c9   :  { %4140 = vmatpush1.bf16.msra.mxu0 %v18776_v16  ;;  %v4402_v16 = vpop.permute.xlu0 %4401 }
 0x9ca   :  { %4141 = vmatprep.subr.bf16.mxu0 %v19461_v10 }
 0x9cd   :  { %4142 = vmatpush1.bf16.msra.mxu0 %v18777_v17  ;;  %v18799_v17 = vld [vmem:[%s24123_s4 + $0x76c] sm:$0xff]  }
 0x9ce   :  { %4143 = vmatprep.subr.bf16.mxu0 %v19461_v10 }
 0x9d1   :  { %4144 = vmatpush1.bf16.msra.mxu0 %v18778_v19  ;;  %v18800_v19 = vld [vmem:[%s24123_s4 + $0x774] sm:$0xff]  }
 0x9d2   :  { %4145 = vmatprep.subr.bf16.mxu0 %v19461_v10 }
 0x9d5   :  { %4146 = vmatpush1.bf16.msra.mxu0 %v18779_v9  ;;  %v18801_v9 = vld [vmem:[%s24123_s4 + $0x77c] sm:$0xff]  }
 0x9d6   :  { %4147 = vmatprep.subr.bf16.mxu0 %v19461_v10 }
 0x9d9   :  { %4148 = vmatpush1.bf16.msra.mxu0 %v18780_v21  ;;  %v18802_v21 = vld [vmem:[%s24123_s4 + $0x784] sm:$0xff]  }
 0x9da   :  { %4149 = vmatprep.subr.bf16.mxu0 %v19461_v10 }
 0x9dd   :  { %4150 = vmatpush1.bf16.msra.mxu0 %v18781_v22  ;;  %v18803_v22 = vld [vmem:[%s24123_s4 + $0x78c] sm:$0xff]  }
 0x9de   :  { %4151 = vmatprep.subr.bf16.mxu0 %v19461_v10 }
 0x9e1   :  { %4152 = vmatpush1.bf16.msra.mxu0 %v18782_v23  ;;  %v18804_v23 = vld [vmem:[%s24123_s4 + $0x794] sm:$0xff]  }
 0x9e2   :  { %4153 = vmatprep.subr.bf16.mxu0 %v19461_v10 }
 0x9e5   :  { %4154 = vmatpush1.bf16.msra.mxu0 %v18783_v15  ;;  %v18805_v15 = vld [vmem:[%s24123_s4 + $0x79c] sm:$0xff]  }
 0x9e6   :  { %4155 = vmatprep.subr.bf16.mxu0 %v19461_v10 }
 0x9e9   :  { %4156 = vmatpush1.bf16.msra.mxu0 %v18784_v25  ;;  %v18806_v25 = vld [vmem:[%s24123_s4 + $0x7a4] sm:$0xff]  }
 0x9ea   :  { %4157 = vmatprep.subr.bf16.mxu0 %v19461_v10 }
 0x9ed   :  { %4158 = vmatpush1.bf16.msra.mxu0 %v4131_v28  ;;  %v18808_v28 = vld [vmem:[%s24123_s4 + $0x7b4] sm:$0xff]  }
 0x9ee   :  { %4360 = vmatprep.subr.bf16.mxu0 %v19461_v10 }
 0xa53   :  { %v3713_v4 = vpop.f32.mrb[72].mxu0 }
 0xa54   :  { %v3719_v30 = vadd.f32 %v3713_v4, %v20761_v31  ;;  %v3715_v24 = vpop.f32.mrb[73].mxu0  ;;  %v4247_v31 = vadd.f32 %v4246_v29, %v19751_v46  ;;  %v18810_v29 = vld [vmem:[%s24123_s4 + $0x7c4] sm:$0xff]   ;;  %v18811_v4 = vld [vmem:[%s24123_s4 + $0x7cc] ss:$0 sps:$4 sm:$0xff]  }
 0xa55   :  { %v3716_v32 = vpop.f32.mrb[74].mxu0  ;;  %v21035_v24 = vpop.f32.mrb[24].mxu1 }
 0xa56   :  { %v3717_v33 = vpop.f32.mrb[75].mxu0  ;;  %v4250_v43 = vmax.f32 %v4247_v31, 0.0  ;;  %v4700_v32 = vpop.f32.mrb[25].mxu1 }
 0xa58   :  { %v4252_v49 = vpack.c.bf16 %v4250_v43, %v4250_v43 }
 0xa87   :  { %v3940_v20 = vpop.f32.mrb[76].mxu0 }
 0xa88   :  { %v20897_v34 = vadd.f32 %v3940_v20, %v3719_v30  ;;  %v3942_v35 = vpop.f32.mrb[77].mxu0  ;;  %v4585_v30 = vsel %vm87_vm0, %v18811_v4, 0  ;;  %v18833_v4 = vld [vmem:[%s24123_s4 + $0x874] sm:$0xff]  }
 0xa89   :  { %v3943_v36 = vpop.f32.mrb[78].mxu0 }
 0xa8a   :  { %v3944_v37 = vpop.f32.mrb[79].mxu0 }
 0xa8b   :  { %v5083_v37 = vpop.permute.xlu1 %5082 }
 0xa8c   :  { %14804 = vmatmul.mubr.msk.f32.vlgmr.msra.gmra.mrb[26].mxu1 %vm83_vm1, %v5083_v37 }
 0xa8d   :  { %18263 = vmatpush1.bf16.msra.mxu1 %v19610_v6  ;;  %5604 = vmatprep.mubr.f32.mxu1 %v19459_v8 }
 0xa8e   :  { %14886 = vmatprep.subr.msk.mxu1 %vm87_vm0, %v20967_v13 }
 0xa8f   :  { %v4017_v38 = vpop.f32.mrb[80].mxu0 }
 0xa90   :  { %v4018_v39 = vadd.f32 %v4017_v38, %v19747_v45  ;;  %v4019_v41 = vpop.f32.mrb[81].mxu0 }
 0xa91   :  { %v4020_v42 = vadd.f32 %v4019_v41, %v19751_v46  ;;  %14887 = vmatpush1.msk.msra.mxu1 %vm87_vm0, %v20974_v14 }
 0xa92   :  { %v4022_v53 = vmax.f32 %v4018_v39, 0.0  ;;  %18269 = vmatprep.subr.bf16.mxu1 %v19602_v3 }
 0xa93   :  { %v4023_v44 = vmax.f32 %v4020_v42, 0.0 }
 0xa94   :  { %v4024_v54 = vpack.c.bf16 %v4022_v53, %v4022_v53 }
 0xa95   :  { %v4025_v47 = vpack.c.bf16 %v4023_v44, %v4023_v44 }
 0xa97   :  { %14633 = vmatprep.mubr.msk.bf16.mxu0 %vm374_vm2, %v4025_v47 }
 0xa98   :  { %4166 = vmatmul.mubr.bf16.vlgmr.msra.gmra.mrb[84].mxu0 %v4024_v54 }
 0xa99   :  { %4361 = vmatpush1.bf16.msra.mxu0 %v18786_v48  ;;  %14675 = vmatprep.mubr.msk.bf16.mxu0 %vm374_vm2, %v4252_v49 }
 0xa9a   :  { %4362 = vmatprep.subr.bf16.mxu0 %v19461_v10 }
 0xa9d   :  { %4363 = vmatpush1.bf16.msra.mxu0 %v18787_v50 }
 0xa9e   :  { %4364 = vmatprep.subr.bf16.mxu0 %v19461_v10 }
 0xaa1   :  { %4365 = vmatpush1.bf16.msra.mxu0 %v18788_v51  ;;  %v18812_v51 = vld [vmem:[%s24123_s4 + $0x7d0] sm:$0xff]  }
 0xaa2   :  { %4366 = vmatprep.subr.bf16.mxu0 %v19461_v10 }
 0xaa5   :  { %4367 = vmatpush1.bf16.msra.mxu0 %v18789_v52 }
 0xaa6   :  { %4368 = vmatprep.subr.bf16.mxu0 %v19461_v10 }
 0xaa9   :  { %4369 = vmatpush1.bf16.msra.mxu0 %v18790_v55 }
 0xaaa   :  { %4370 = vmatprep.subr.bf16.mxu0 %v19461_v10 }
 0xaad   :  { %4371 = vmatpush1.bf16.msra.mxu0 %v18791_v56  ;;  %v18813_v56 = vld [vmem:[%s24123_s4 + $0x7d8] sm:$0xff]  }
 0xaae   :  { %4372 = vmatprep.subr.bf16.mxu0 %v19461_v10 }
 0xab1   :  { %4373 = vmatpush1.bf16.msra.mxu0 %v18792_v57  ;;  %v18814_v57 = vld [vmem:[%s24123_s4 + $0x7e0] sm:$0xff]  }
 0xab2   :  { %4374 = vmatprep.subr.bf16.mxu0 %v19461_v10 }
 0xab5   :  { %4375 = vmatpush1.bf16.msra.mxu0 %v18793_v58  ;;  %v18815_v58 = vld [vmem:[%s24123_s4 + $0x7e8] sm:$0xff]  }
 0xab6   :  { %4376 = vmatprep.subr.bf16.mxu0 %v19461_v10 }
 0xab9   :  { %4377 = vmatpush1.bf16.msra.mxu0 %v18794_v59  ;;  %v18816_v59 = vld [vmem:[%s24123_s4 + $0x7f0] sm:$0xff]  }
 0xaba   :  { %4378 = vmatprep.subr.bf16.mxu0 %v19461_v10 }
 0xabd   :  { %4379 = vmatpush1.bf16.msra.mxu0 %v18795_v60  ;;  %v18817_v60 = vld [vmem:[%s24123_s4 + $0x7f8] sm:$0xff]  }
 0xabe   :  { %4380 = vmatprep.subr.bf16.mxu0 %v19461_v10 }
 0xac1   :  { %4381 = vmatpush1.bf16.msra.mxu0 %v18796_v61  ;;  %v18818_v61 = vld [vmem:[%s24123_s4 + $0x800] sm:$0xff]  }
 0xac2   :  { %4382 = vmatprep.subr.bf16.mxu0 %v19461_v10 }
 0xac5   :  { %4383 = vmatpush1.bf16.msra.mxu0 %v18797_v63  ;;  %v18819_v63 = vld [vmem:[%s24123_s4 + $0x808] sm:$0xff]  }
 0xac6   :  { %4384 = vmatprep.subr.bf16.mxu0 %v19461_v10 }
 0xac9   :  { %4385 = vmatpush1.bf16.msra.mxu0 %v4358_v11  ;;  %v18823_v11 = vld [vmem:[%s24123_s4 + $0x828] sm:$0xff]  }
 0xaca   :  { %18241 = vmatprep.subr.bf16.mxu0 %v19602_v3 }
 0xacc   :  { %4393 = vmatmul.mubr.bf16.vlgmr.msra.gmra.mrb[88].mxu0 %v4251_v12  ;;  %v4699_v12 = vadd.f32 %v21035_v24, %v19747_v45  ;;  %v18835_v24 = vld [vmem:[%s24123_s4 + $0x884] sm:$0xff]  }
 0xacd   :  { %18243 = vmatpush1.bf16.msra.mxu0 %v19610_v6  ;;  %4469 = vmatprep.mubr.f32.mxu0 %v19459_v8 }
 0xace   :  { %14676 = vmatprep.subr.msk.mxu0 %vm87_vm0, %v20967_v13 }
 0xad1   :  { %14677 = vmatpush1.msk.msra.mxu0 %vm87_vm0, %v20974_v14 }
 0xad2   :  { %4587 = vmatprep.subr.bf16.mxu0 %v19461_v10 }
 0xad4   :  { %14678 = vmatmul.mubr.msk.f32.vlgmr.msra.gmra.mrb[82].mxu0 %vm83_vm1, %v4402_v16  ;;  %v18824_v16 = vld [vmem:[%s24123_s4 + $0x830] ss:$0 sps:$4 sm:$0xff]  }
 0xad5   :  { %4588 = vmatpush1.bf16.msra.mxu0 %v18799_v17  ;;  %v4703_v17 = vmax.f32 %v4699_v12, 0.0  ;;  %v18847_v12 = vld [vmem:[%s24123_s4 + $0x8e0] sm:$0xff]  }
 0xad6   :  { %4589 = vmatprep.subr.bf16.mxu0 %v19461_v10 }
 0xad9   :  { %4590 = vmatpush1.bf16.msra.mxu0 %v18800_v19  ;;  %v4812_v19 = vsel %vm87_vm0, %v18824_v16, 0  ;;  %v18848_v16 = vld [vmem:[%s24123_s4 + $0x8e8] sm:$0xff]  }
 0xada   :  { %4591 = vmatprep.subr.bf16.mxu0 %v19461_v10 }
 0xadd   :  { %4592 = vmatpush1.bf16.msra.mxu0 %v18801_v9  ;;  %v4705_v9 = vpack.c.bf16 %v4703_v17, %v4703_v17  ;;  %v18849_v17 = vld [vmem:[%s24123_s4 + $0x8f0] sm:$0xff]  }
 0xade   :  { %4593 = vmatprep.subr.bf16.mxu0 %v19461_v10 }
 0xae1   :  { %4594 = vmatpush1.bf16.msra.mxu0 %v18802_v21  ;;  %v4856_v21 = vpop.permute.xlu0 %4855 }
 0xae2   :  { %4595 = vmatprep.subr.bf16.mxu0 %v19461_v10 }
 0xae5   :  { %4596 = vmatpush1.bf16.msra.mxu0 %v18803_v22  ;;  %v18825_v22 = vld [vmem:[%s24123_s4 + $0x834] sm:$0xff]  }
 0xae6   :  { %4597 = vmatprep.subr.bf16.mxu0 %v19461_v10 }
 0xae9   :  { %4598 = vmatpush1.bf16.msra.mxu0 %v18804_v23  ;;  %v18826_v23 = vld [vmem:[%s24123_s4 + $0x83c] sm:$0xff]  }
 0xaea   :  { %4599 = vmatprep.subr.bf16.mxu0 %v19461_v10 }
 0xaed   :  { %4600 = vmatpush1.bf16.msra.mxu0 %v18805_v15  ;;  %v18827_v15 = vld [vmem:[%s24123_s4 + $0x844] sm:$0xff]  }
 0xaee   :  { %4601 = vmatprep.subr.bf16.mxu0 %v19461_v10 }
 0xaf1   :  { %4602 = vmatpush1.bf16.msra.mxu0 %v18806_v25  ;;  %v18828_v25 = vld [vmem:[%s24123_s4 + $0x84c] sm:$0xff]  }
 0xaf2   :  { %4603 = vmatprep.subr.bf16.mxu0 %v19461_v10 }
 0xaf5   :  { %4604 = vmatpush1.bf16.msra.mxu0 %v18807_v27  ;;  %v18829_v27 = vld [vmem:[%s24123_s4 + $0x854] sm:$0xff]  }
 0xaf6   :  { %4605 = vmatprep.subr.bf16.mxu0 %v19461_v10 }
 0xaf9   :  { %4606 = vmatpush1.bf16.msra.mxu0 %v18808_v28  ;;  %v18830_v28 = vld [vmem:[%s24123_s4 + $0x85c] sm:$0xff]  }
 0xafa   :  { %4607 = vmatprep.subr.bf16.mxu0 %v19461_v10 }
 0xafd   :  { %4608 = vmatpush1.bf16.msra.mxu0 %v18809_v62  ;;  %v18831_v62 = vld [vmem:[%s24123_s4 + $0x864] sm:$0xff]  }
 0xafe   :  { %4609 = vmatprep.subr.bf16.mxu0 %v19461_v10 }
 0xb01   :  { %4610 = vmatpush1.bf16.msra.mxu0 %v18810_v29  ;;  %v18832_v29 = vld [vmem:[%s24123_s4 + $0x86c] sm:$0xff]  }
 0xb02   :  { %4611 = vmatprep.subr.bf16.mxu0 %v19461_v10 }
 0xb05   :  { %4612 = vmatpush1.bf16.msra.mxu0 %v4585_v30  ;;  %v18834_v30 = vld [vmem:[%s24123_s4 + $0x87c] sm:$0xff]  }
 0xb06   :  { %4814 = vmatprep.subr.bf16.mxu0 %v19461_v10 }
 0xb6b   :  { %v4167_v33 = vpop.f32.mrb[84].mxu0 }
 0xb6c   :  { %v4173_v7 = vadd.f32 %v4167_v33, %v20897_v34  ;;  %v4169_v20 = vpop.f32.mrb[85].mxu0  ;;  %v4701_v34 = vadd.f32 %v4700_v32, %v19751_v46  ;;  %v18836_v32 = vld [vmem:[%s24123_s4 + $0x88c] sm:$0xff]   ;;  %v18837_v33 = vld [vmem:[%s24123_s4 + $0x894] ss:$0 sps:$4 sm:$0xff]  }
 0xb6d   :  { %v4170_v35 = vpop.f32.mrb[86].mxu0  ;;  %v21171_v20 = vpop.f32.mrb[26].mxu1 }
 0xb6e   :  { %v4171_v36 = vpop.f32.mrb[87].mxu0  ;;  %v4704_v48 = vmax.f32 %v4701_v34, 0.0  ;;  %v5154_v35 = vpop.f32.mrb[27].mxu1 }
 0xb70   :  { %v4706_v52 = vpack.c.bf16 %v4704_v48, %v4704_v48 }
 0xb9f   :  { %v4394_v31 = vpop.f32.mrb[88].mxu0 }
 0xba0   :  { %v21043_v38 = vadd.f32 %v4394_v31, %v4173_v7  ;;  %v4396_v39 = vpop.f32.mrb[89].mxu0  ;;  %v5039_v7 = vsel %vm87_vm0, %v18837_v33, 0  ;;  %v18859_v33 = vld [vmem:[%s24123_s4 + $0x93c] sm:$0xff]  }
 0xba1   :  { %v4397_v41 = vpop.f32.mrb[90].mxu0 }
 0xba2   :  { %v4398_v42 = vpop.f32.mrb[91].mxu0 }
 0xba3   :  { %v5537_v42 = vpop.permute.xlu1 %5536 }
 0xba4   :  { %14888 = vmatmul.mubr.msk.f32.vlgmr.msra.gmra.mrb[28].mxu1 %vm83_vm1, %v5537_v42 }
 0xba5   :  { %18271 = vmatpush1.bf16.msra.mxu1 %v19610_v6  ;;  %6058 = vmatprep.mubr.f32.mxu1 %v19459_v8 }
 0xba6   :  { %14970 = vmatprep.subr.msk.mxu1 %vm87_vm0, %v20967_v13 }
 0xba7   :  { %v4471_v43 = vpop.f32.mrb[82].mxu0 }
 0xba8   :  { %v4472_v53 = vadd.f32 %v4471_v43, %v19747_v45  ;;  %v4473_v44 = vpop.f32.mrb[83].mxu0 }
 0xba9   :  { %v4474_v47 = vadd.f32 %v4473_v44, %v19751_v46  ;;  %14971 = vmatpush1.msk.msra.mxu1 %vm87_vm0, %v20974_v14 }
 0xbaa   :  { %v4476_v49 = vmax.f32 %v4472_v53, 0.0  ;;  %18277 = vmatprep.subr.bf16.mxu1 %v19602_v3 }
 0xbab   :  { %v4477_v54 = vmax.f32 %v4474_v47, 0.0 }
 0xbac   :  { %v4478_v55 = vpack.c.bf16 %v4476_v49, %v4476_v49 }
 0xbad   :  { %v4479_v50 = vpack.c.bf16 %v4477_v54, %v4477_v54 }
 0xbaf   :  { %14717 = vmatprep.mubr.msk.bf16.mxu0 %vm374_vm2, %v4479_v50 }
 0xbb0   :  { %4620 = vmatmul.mubr.bf16.vlgmr.msra.gmra.mrb[92].mxu0 %v4478_v55 }
 0xbb1   :  { %4815 = vmatpush1.bf16.msra.mxu0 %v18812_v51  ;;  %14759 = vmatprep.mubr.msk.bf16.mxu0 %vm374_vm2, %v4706_v52 }
 0xbb2   :  { %4816 = vmatprep.subr.bf16.mxu0 %v19461_v10 }
 0xbb5   :  { %4817 = vmatpush1.bf16.msra.mxu0 %v18813_v56  ;;  %v18838_v56 = vld [vmem:[%s24123_s4 + $0x898] sm:$0xff]  }
 0xbb6   :  { %4818 = vmatprep.subr.bf16.mxu0 %v19461_v10 }
 0xbb9   :  { %4819 = vmatpush1.bf16.msra.mxu0 %v18814_v57 }
 0xbba   :  { %4820 = vmatprep.subr.bf16.mxu0 %v19461_v10 }
 0xbbd   :  { %4821 = vmatpush1.bf16.msra.mxu0 %v18815_v58 }
 0xbbe   :  { %4822 = vmatprep.subr.bf16.mxu0 %v19461_v10 }
 0xbc1   :  { %4823 = vmatpush1.bf16.msra.mxu0 %v18816_v59  ;;  %v18839_v59 = vld [vmem:[%s24123_s4 + $0x8a0] sm:$0xff]  }
 0xbc2   :  { %4824 = vmatprep.subr.bf16.mxu0 %v19461_v10 }
 0xbc5   :  { %4825 = vmatpush1.bf16.msra.mxu0 %v18817_v60  ;;  %v18840_v60 = vld [vmem:[%s24123_s4 + $0x8a8] sm:$0xff]  }
 0xbc6   :  { %4826 = vmatprep.subr.bf16.mxu0 %v19461_v10 }
 0xbc9   :  { %4827 = vmatpush1.bf16.msra.mxu0 %v18818_v61  ;;  %v18841_v61 = vld [vmem:[%s24123_s4 + $0x8b0] sm:$0xff]  }
 0xbca   :  { %4828 = vmatprep.subr.bf16.mxu0 %v19461_v10 }
 0xbcd   :  { %4829 = vmatpush1.bf16.msra.mxu0 %v18819_v63  ;;  %v18842_v63 = vld [vmem:[%s24123_s4 + $0x8b8] sm:$0xff]  }
 0xbce   :  { %4830 = vmatprep.subr.bf16.mxu0 %v19461_v10 }
 0xbd1   :  { %4831 = vmatpush1.bf16.msra.mxu0 %v18820_v0  ;;  %v18843_v0 = vld [vmem:[%s24123_s4 + $0x8c0] sm:$0xff]  }
 0xbd2   :  { %4832 = vmatprep.subr.bf16.mxu0 %v19461_v10 }
 0xbd5   :  { %4833 = vmatpush1.bf16.msra.mxu0 %v18821_v2  ;;  %v18844_v2 = vld [vmem:[%s24123_s4 + $0x8c8] sm:$0xff]  }
 0xbd6   :  { %4834 = vmatprep.subr.bf16.mxu0 %v19461_v10 }
 0xbd9   :  { %4835 = vmatpush1.bf16.msra.mxu0 %v18822_v5  ;;  %v18845_v5 = vld [vmem:[%s24123_s4 + $0x8d0] sm:$0xff]  }
 0xbda   :  { %4836 = vmatprep.subr.bf16.mxu0 %v19461_v10 }
 0xbdd   :  { %4837 = vmatpush1.bf16.msra.mxu0 %v18823_v11  ;;  %v18846_v11 = vld [vmem:[%s24123_s4 + $0x8d8] sm:$0xff]  }
 0xbde   :  { %4838 = vmatprep.subr.bf16.mxu0 %v19461_v10 }
 0xbe1   :  { %4839 = vmatpush1.bf16.msra.mxu0 %v4812_v19  ;;  %v5153_v19 = vadd.f32 %v21171_v20, %v19747_v45  ;;  %v18861_v20 = vld [vmem:[%s24123_s4 + $0x94c] sm:$0xff]  }
 0xbe2   :  { %18249 = vmatprep.subr.bf16.mxu0 %v19602_v3 }
 0xbe4   :  { %4847 = vmatmul.mubr.bf16.vlgmr.msra.gmra.mrb[96].mxu0 %v4705_v9  ;;  %v18850_v9 = vld [vmem:[%s24123_s4 + $0x8f8] ss:$0 sps:$4 sm:$0xff]  }
 0xbe5   :  { %18251 = vmatpush1.bf16.msra.mxu0 %v19610_v6  ;;  %4923 = vmatprep.mubr.f32.mxu0 %v19459_v8 }
 0xbe6   :  { %14760 = vmatprep.subr.msk.mxu0 %vm87_vm0, %v20967_v13 }
 0xbe9   :  { %14761 = vmatpush1.msk.msra.mxu0 %vm87_vm0, %v20974_v14 }
 0xbea   :  { %5041 = vmatprep.subr.bf16.mxu0 %v19461_v10 }
 0xbec   :  { %14762 = vmatmul.mubr.msk.f32.vlgmr.msra.gmra.mrb[100].mxu0 %vm83_vm1, %v4856_v21  ;;  %v5157_v21 = vmax.f32 %v5153_v19, 0.0  ;;  %v18872_v19 = vld [vmem:[%s24123_s4 + $0x9a0] sm:$0xff]  }
 0xbed   :  { %5042 = vmatpush1.bf16.msra.mxu0 %v18825_v22  ;;  %v5266_v22 = vsel %vm87_vm0, %v18850_v9, 0  ;;  %v18873_v9 = vld [vmem:[%s24123_s4 + $0x9a8] sm:$0xff]  }
 0xbee   :  { %5043 = vmatprep.subr.bf16.mxu0 %v19461_v10 }
 0xbf1   :  { %5044 = vmatpush1.bf16.msra.mxu0 %v18826_v23  ;;  %v5159_v23 = vpack.c.bf16 %v5157_v21, %v5157_v21  ;;  %v18874_v21 = vld [vmem:[%s24123_s4 + $0x9b0] sm:$0xff]  }
 0xbf2   :  { %5045 = vmatprep.subr.bf16.mxu0 %v19461_v10 }
 0xbf5   :  { %5046 = vmatpush1.bf16.msra.mxu0 %v18827_v15  ;;  %v5310_v15 = vpop.permute.xlu0 %5309 }
 0xbf6   :  { %5047 = vmatprep.subr.bf16.mxu0 %v19461_v10 }
 0xbf9   :  { %5048 = vmatpush1.bf16.msra.mxu0 %v18828_v25  ;;  %v18851_v25 = vld [vmem:[%s24123_s4 + $0x8fc] sm:$0xff]  }
 0xbfa   :  { %5049 = vmatprep.subr.bf16.mxu0 %v19461_v10 }
 0xbfd   :  { %5050 = vmatpush1.bf16.msra.mxu0 %v18829_v27  ;;  %v21258_v27 = vld [vmem:[%s24147_s20] sm:$0x3]  ;;  %s19488_s20 = smov 99  }
 0xbfe   :  { %5051 = vmatprep.subr.bf16.mxu0 %v19461_v10  ;;  %5763 = vrot.lane.b32.xlu0 %v21258_v27, %s19484_s3 }
 0xbff   :  { %5990 = vrot.lane.b32.xlu1 %v21258_v27, %s19485_s22 }
 0xc01   :  { %5052 = vmatpush1.bf16.msra.mxu0 %v18830_v28  ;;  %v18852_v28 = vld [vmem:[%s24123_s4 + $0x904] sm:$0xff]  }
 0xc02   :  { %5053 = vmatprep.subr.bf16.mxu0 %v19461_v10  ;;  %6217 = vrot.lane.b32.xlu0 %v21258_v27, %s19486_s1  ;;  %s19489_s1 = smov 98  }
 0xc03   :  { %6671 = vrot.lane.b32.xlu1 %v21258_v27, %s19488_s20 }
 0xc05   :  { %5054 = vmatpush1.bf16.msra.mxu0 %v18831_v62  ;;  %v18853_v62 = vld [vmem:[%s24123_s4 + $0x90c] sm:$0xff]  }
 0xc06   :  { %5055 = vmatprep.subr.bf16.mxu0 %v19461_v10  ;;  %6444 = vrot.lane.b32.xlu0 %v21258_v27, %s19487_s23 }
 0xc07   :  { %6898 = vrot.lane.b32.xlu1 %v21258_v27, %s19489_s1 }
 0xc09   :  { %5056 = vmatpush1.bf16.msra.mxu0 %v18832_v29  ;;  %v18854_v29 = vld [vmem:[%s24123_s4 + $0x914] sm:$0xff]  }
 0xc0a   :  { %5057 = vmatprep.subr.bf16.mxu0 %v19461_v10 }
 0xc0d   :  { %5058 = vmatpush1.bf16.msra.mxu0 %v18833_v4  ;;  %v18855_v4 = vld [vmem:[%s24123_s4 + $0x91c] sm:$0xff]  }
 0xc0e   :  { %5059 = vmatprep.subr.bf16.mxu0 %v19461_v10 }
 0xc11   :  { %5060 = vmatpush1.bf16.msra.mxu0 %v18834_v30  ;;  %v18856_v30 = vld [vmem:[%s24123_s4 + $0x924] sm:$0xff]  }
 0xc12   :  { %5061 = vmatprep.subr.bf16.mxu0 %v19461_v10 }
 0xc15   :  { %5062 = vmatpush1.bf16.msra.mxu0 %v18835_v24  ;;  %v18857_v24 = vld [vmem:[%s24123_s4 + $0x92c] sm:$0xff]  }
 0xc16   :  { %5063 = vmatprep.subr.bf16.mxu0 %v19461_v10 }
 0xc19   :  { %5064 = vmatpush1.bf16.msra.mxu0 %v18836_v32  ;;  %v18858_v32 = vld [vmem:[%s24123_s4 + $0x934] sm:$0xff]  }
 0xc1a   :  { %5065 = vmatprep.subr.bf16.mxu0 %v19461_v10 }
 0xc1d   :  { %5066 = vmatpush1.bf16.msra.mxu0 %v5039_v7  ;;  %v18860_v7 = vld [vmem:[%s24123_s4 + $0x944] sm:$0xff]  }
 0xc1e   :  { %5268 = vmatprep.subr.bf16.mxu0 %v19461_v10 }
 0xc83   :  { %v4621_v36 = vpop.f32.mrb[92].mxu0 }
 0xc84   :  { %v4627_v37 = vadd.f32 %v4621_v36, %v21043_v38  ;;  %v4623_v31 = vpop.f32.mrb[93].mxu0  ;;  %v5155_v38 = vadd.f32 %v5154_v35, %v19751_v46  ;;  %v18862_v35 = vld [vmem:[%s24123_s4 + $0x954] sm:$0xff]   ;;  %v18863_v36 = vld [vmem:[%s24123_s4 + $0x95c] ss:$0 sps:$4 sm:$0xff]  }
 0xc85   :  { %v4624_v39 = vpop.f32.mrb[94].mxu0  ;;  %v21312_v31 = vpop.f32.mrb[28].mxu1 }
 0xc86   :  { %v4625_v41 = vpop.f32.mrb[95].mxu0  ;;  %v5158_v50 = vmax.f32 %v5155_v38, 0.0  ;;  %v5608_v39 = vpop.f32.mrb[29].mxu1 }
 0xc88   :  { %v5160_v57 = vpack.c.bf16 %v5158_v50, %v5158_v50 }
 0xcb7   :  { %v4848_v1 = vpop.f32.mrb[96].mxu0 }
 0xcb8   :  { %v21179_v34 = vadd.f32 %v4848_v1, %v4627_v37  ;;  %v4850_v43 = vpop.f32.mrb[97].mxu0  ;;  %v5493_v37 = vsel %vm87_vm0, %v18863_v36, 0  ;;  %v18885_v36 = vld [vmem:[%s24123_s4 + $0xa04] sm:$0xff]  }
 0xcb9   :  { %v4851_v53 = vpop.f32.mrb[98].mxu0 }
 0xcba   :  { %v4852_v44 = vpop.f32.mrb[99].mxu0 }
 0xcbb   :  { %v5991_v44 = vpop.permute.xlu1 %5990 }
 0xcbc   :  { %14972 = vmatmul.mubr.msk.f32.vlgmr.msra.gmra.mrb[30].mxu1 %vm83_vm1, %v5991_v44 }
 0xcbd   :  { %18279 = vmatpush1.bf16.msra.mxu1 %v19610_v6  ;;  %6512 = vmatprep.mubr.f32.mxu1 %v19459_v8 }
 0xcbe   :  { %15054 = vmatprep.subr.msk.mxu1 %vm87_vm0, %v20967_v13 }
 0xcbf   :  { %v4925_v47 = vpop.f32.mrb[100].mxu0 }
 0xcc0   :  { %v4926_v48 = vadd.f32 %v4925_v47, %v19747_v45  ;;  %v4927_v49 = vpop.f32.mrb[101].mxu0 }
 0xcc1   :  { %v4928_v54 = vadd.f32 %v4927_v49, %v19751_v46  ;;  %15055 = vmatpush1.msk.msra.mxu1 %vm87_vm0, %v20974_v14 }
 0xcc2   :  { %v4930_v51 = vmax.f32 %v4926_v48, 0.0  ;;  %6630 = vmatprep.subr.bf16.mxu1 %v19461_v10 }
 0xcc3   :  { %v4931_v52 = vmax.f32 %v4928_v54, 0.0 }
 0xcc4   :  { %v4932_v58 = vpack.c.bf16 %v4930_v51, %v4930_v51 }
 0xcc5   :  { %v4933_v55 = vpack.c.bf16 %v4931_v52, %v4931_v52 }
 0xcc7   :  { %14801 = vmatprep.mubr.msk.bf16.mxu0 %vm374_vm2, %v4933_v55 }
 0xcc8   :  { %5074 = vmatmul.mubr.bf16.vlgmr.msra.gmra.mrb[104].mxu0 %v4932_v58 }
 0xcc9   :  { %5269 = vmatpush1.bf16.msra.mxu0 %v18838_v56  ;;  %14843 = vmatprep.mubr.msk.bf16.mxu0 %vm374_vm2, %v5160_v57 }
 0xcca   :  { %5270 = vmatprep.subr.bf16.mxu0 %v19461_v10 }
 0xccd   :  { %5271 = vmatpush1.bf16.msra.mxu0 %v18839_v59 }
 0xcce   :  { %5272 = vmatprep.subr.bf16.mxu0 %v19461_v10 }
 0xcd1   :  { %5273 = vmatpush1.bf16.msra.mxu0 %v18840_v60  ;;  %v18864_v60 = vld [vmem:[%s24123_s4 + $0x960] sm:$0xff]  }
 0xcd2   :  { %5274 = vmatprep.subr.bf16.mxu0 %v19461_v10 }
 0xcd5   :  { %5275 = vmatpush1.bf16.msra.mxu0 %v18841_v61 }
 0xcd6   :  { %5276 = vmatprep.subr.bf16.mxu0 %v19461_v10 }
 0xcd9   :  { %5277 = vmatpush1.bf16.msra.mxu0 %v18842_v63 }
 0xcda   :  { %5278 = vmatprep.subr.bf16.mxu0 %v19461_v10 }
 0xcdd   :  { %5279 = vmatpush1.bf16.msra.mxu0 %v18843_v0  ;;  %v18865_v0 = vld [vmem:[%s24123_s4 + $0x968] sm:$0xff]  }
 0xcde   :  { %5280 = vmatprep.subr.bf16.mxu0 %v19461_v10 }
 0xce1   :  { %5281 = vmatpush1.bf16.msra.mxu0 %v18844_v2  ;;  %v18866_v2 = vld [vmem:[%s24123_s4 + $0x970] sm:$0xff]  }
 0xce2   :  { %5282 = vmatprep.subr.bf16.mxu0 %v19461_v10 }
 0xce5   :  { %5283 = vmatpush1.bf16.msra.mxu0 %v18845_v5  ;;  %v18867_v5 = vld [vmem:[%s24123_s4 + $0x978] sm:$0xff]  }
 0xce6   :  { %5284 = vmatprep.subr.bf16.mxu0 %v19461_v10 }
 0xce9   :  { %5285 = vmatpush1.bf16.msra.mxu0 %v18846_v11  ;;  %v18868_v11 = vld [vmem:[%s24123_s4 + $0x980] sm:$0xff]  }
 0xcea   :  { %5286 = vmatprep.subr.bf16.mxu0 %v19461_v10 }
 0xced   :  { %5287 = vmatpush1.bf16.msra.mxu0 %v18847_v12  ;;  %v18869_v12 = vld [vmem:[%s24123_s4 + $0x988] sm:$0xff]  }
 0xcee   :  { %5288 = vmatprep.subr.bf16.mxu0 %v19461_v10 }
 0xcf1   :  { %5289 = vmatpush1.bf16.msra.mxu0 %v18848_v16  ;;  %v18870_v16 = vld [vmem:[%s24123_s4 + $0x990] sm:$0xff]  }
 0xcf2   :  { %5290 = vmatprep.subr.bf16.mxu0 %v19461_v10 }
 0xcf5   :  { %5291 = vmatpush1.bf16.msra.mxu0 %v18849_v17  ;;  %v18871_v17 = vld [vmem:[%s24123_s4 + $0x998] sm:$0xff]  }
 0xcf6   :  { %5292 = vmatprep.subr.bf16.mxu0 %v19461_v10 }
 0xcf9   :  { %5293 = vmatpush1.bf16.msra.mxu0 %v5266_v22  ;;  %v18875_v22 = vld [vmem:[%s24123_s4 + $0x9b8] sm:$0xff]  }
 0xcfa   :  { %18257 = vmatprep.subr.bf16.mxu0 %v19602_v3 }
 0xcfc   :  { %5301 = vmatmul.mubr.bf16.vlgmr.msra.gmra.mrb[108].mxu0 %v5159_v23  ;;  %v5607_v23 = vadd.f32 %v21312_v31, %v19747_v45  ;;  %v18887_v31 = vld [vmem:[%s24123_s4 + $0xa14] sm:$0xff]  }
 0xcfd   :  { %18259 = vmatpush1.bf16.msra.mxu0 %v19610_v6  ;;  %5377 = vmatprep.mubr.f32.mxu0 %v19459_v8 }
 0xcfe   :  { %14844 = vmatprep.subr.msk.mxu0 %vm87_vm0, %v20967_v13 }
 0xd01   :  { %14845 = vmatpush1.msk.msra.mxu0 %vm87_vm0, %v20974_v14 }
 0xd02   :  { %5495 = vmatprep.subr.bf16.mxu0 %v19461_v10 }
 0xd04   :  { %14846 = vmatmul.mubr.msk.f32.vlgmr.msra.gmra.mrb[102].mxu0 %vm83_vm1, %v5310_v15  ;;  %v18876_v15 = vld [vmem:[%s24123_s4 + $0x9c0] ss:$0 sps:$4 sm:$0xff]  }
 0xd05   :  { %5496 = vmatpush1.bf16.msra.mxu0 %v18851_v25  ;;  %v5611_v25 = vmax.f32 %v5607_v23, 0.0  ;;  %v18897_v23 = vld [vmem:[%s24123_s4 + $0xa60] sm:$0xff]  }
 0xd06   :  { %5497 = vmatprep.subr.bf16.mxu0 %v19461_v10 }
 0xd09   :  { %5498 = vmatpush1.bf16.msra.mxu0 %v18852_v28  ;;  %v5720_v28 = vsel %vm87_vm0, %v18876_v15, 0  ;;  %v18898_v15 = vld [vmem:[%s24123_s4 + $0xa68] sm:$0xff]  }
 0xd0a   :  { %5499 = vmatprep.subr.bf16.mxu0 %v19461_v10 }
 0xd0d   :  { %5500 = vmatpush1.bf16.msra.mxu0 %v18853_v62  ;;  %v5613_v62 = vpack.c.bf16 %v5611_v25, %v5611_v25  ;;  %v18899_v25 = vld [vmem:[%s24123_s4 + $0xa70] sm:$0xff]  }
 0xd0e   :  { %5501 = vmatprep.subr.bf16.mxu0 %v19461_v10 }
 0xd11   :  { %5502 = vmatpush1.bf16.msra.mxu0 %v18854_v29  ;;  %v5764_v29 = vpop.permute.xlu0 %5763 }
 0xd12   :  { %5503 = vmatprep.subr.bf16.mxu0 %v19461_v10 }
 0xd15   :  { %5504 = vmatpush1.bf16.msra.mxu0 %v18855_v4  ;;  %v18877_v4 = vld [vmem:[%s24123_s4 + $0x9c4] sm:$0xff]  }
 0xd16   :  { %5505 = vmatprep.subr.bf16.mxu0 %v19461_v10 }
 0xd19   :  { %5506 = vmatpush1.bf16.msra.mxu0 %v18856_v30  ;;  %v18878_v30 = vld [vmem:[%s24123_s4 + $0x9cc] sm:$0xff]  }
 0xd1a   :  { %5507 = vmatprep.subr.bf16.mxu0 %v19461_v10 }
 0xd1d   :  { %5508 = vmatpush1.bf16.msra.mxu0 %v18857_v24  ;;  %v18879_v24 = vld [vmem:[%s24123_s4 + $0x9d4] sm:$0xff]  }
 0xd1e   :  { %5509 = vmatprep.subr.bf16.mxu0 %v19461_v10 }
 0xd21   :  { %5510 = vmatpush1.bf16.msra.mxu0 %v18858_v32  ;;  %v18880_v32 = vld [vmem:[%s24123_s4 + $0x9dc] sm:$0xff]  }
 0xd22   :  { %5511 = vmatprep.subr.bf16.mxu0 %v19461_v10 }
 0xd25   :  { %5512 = vmatpush1.bf16.msra.mxu0 %v18859_v33  ;;  %v18881_v33 = vld [vmem:[%s24123_s4 + $0x9e4] sm:$0xff]  }
 0xd26   :  { %5513 = vmatprep.subr.bf16.mxu0 %v19461_v10 }
 0xd29   :  { %5514 = vmatpush1.bf16.msra.mxu0 %v18860_v7  ;;  %v18882_v7 = vld [vmem:[%s24123_s4 + $0x9ec] sm:$0xff]  }
 0xd2a   :  { %5515 = vmatprep.subr.bf16.mxu0 %v19461_v10 }
 0xd2d   :  { %5516 = vmatpush1.bf16.msra.mxu0 %v18861_v20  ;;  %v18883_v20 = vld [vmem:[%s24123_s4 + $0x9f4] sm:$0xff]  }
 0xd2e   :  { %5517 = vmatprep.subr.bf16.mxu0 %v19461_v10 }
 0xd31   :  { %5518 = vmatpush1.bf16.msra.mxu0 %v18862_v35  ;;  %v18884_v35 = vld [vmem:[%s24123_s4 + $0x9fc] sm:$0xff]  }
 0xd32   :  { %5519 = vmatprep.subr.bf16.mxu0 %v19461_v10 }
 0xd35   :  { %5520 = vmatpush1.bf16.msra.mxu0 %v5493_v37  ;;  %v18886_v37 = vld [vmem:[%s24123_s4 + $0xa0c] sm:$0xff]  }
 0xd36   :  { %5722 = vmatprep.subr.bf16.mxu0 %v19461_v10 }
 0xd9b   :  { %v5075_v41 = vpop.f32.mrb[104].mxu0 }
 0xd9c   :  { %v5081_v42 = vadd.f32 %v5075_v41, %v21179_v34  ;;  %v5077_v1 = vpop.f32.mrb[105].mxu0  ;;  %v5609_v34 = vadd.f32 %v5608_v39, %v19751_v46  ;;  %v18888_v39 = vld [vmem:[%s24123_s4 + $0xa1c] sm:$0xff]   ;;  %v18889_v41 = vld [vmem:[%s24123_s4 + $0xa24] ss:$0 sps:$4 sm:$0xff]  }
 0xd9d   :  { %v5078_v43 = vpop.f32.mrb[106].mxu0  ;;  %v21448_v1 = vpop.f32.mrb[30].mxu1 }
 0xd9e   :  { %v5079_v53 = vpop.f32.mrb[107].mxu0  ;;  %v5612_v56 = vmax.f32 %v5609_v34, 0.0  ;;  %v6062_v43 = vpop.f32.mrb[31].mxu1 }
 0xd9f   :  { %v21450_v53 = vpop.permute.xlu0 %6217 }
 0xda0   :  { %v5614_v61 = vpack.c.bf16 %v5612_v56, %v5612_v56 }
 0xdcf   :  { %v5302_v38 = vpop.f32.mrb[108].mxu0 }
 0xdd0   :  { %v21320_v47 = vadd.f32 %v5302_v38, %v5081_v42  ;;  %v5304_v48 = vpop.f32.mrb[109].mxu0  ;;  %v5947_v42 = vsel %vm87_vm0, %v18889_v41, 0  ;;  %v18913_v41 = vld [vmem:[%s24123_s4 + $0xab4] sm:$0xff]  }
 0xdd1   :  { %v5305_v49 = vpop.f32.mrb[110].mxu0 }
 0xdd2   :  { %v5306_v54 = vpop.f32.mrb[111].mxu0  ;;  %v6445_v49 = vpop.permute.xlu0 %6444 }
 0xdd3   :  { %15056 = vmatmul.mubr.msk.f32.vlgmr.msra.gmra.mrb[32].mxu1 %vm83_vm1, %v6445_v49  ;;  %v18921_v49 = vld [vmem:[%s24123_s4 + $0xad4] sm:$0xff]  }
 0xdd7   :  { %v5379_v50 = vpop.f32.mrb[102].mxu0 }
 0xdd8   :  { %v5380_v51 = vadd.f32 %v5379_v50, %v19747_v45  ;;  %v5381_v52 = vpop.f32.mrb[103].mxu0 }
 0xdd9   :  { %v5382_v55 = vadd.f32 %v5381_v52, %v19751_v46 }
 0xdda   :  { %v5384_v57 = vmax.f32 %v5380_v51, 0.0 }
 0xddb   :  { %v5385_v58 = vmax.f32 %v5382_v55, 0.0 }
 0xddc   :  { %v5386_v63 = vpack.c.bf16 %v5384_v57, %v5384_v57  ;;  %v6063_v57 = vadd.f32 %v6062_v43, %v19751_v46  ;;  %v18916_v43 = vld [vmem:[%s24123_s4 + $0xb20] sm:$0xff]  }
 0xddd   :  { %v5387_v59 = vpack.c.bf16 %v5385_v58, %v5385_v58 }
 0xddf   :  { %14885 = vmatprep.mubr.msk.bf16.mxu0 %vm374_vm2, %v5387_v59 }
 0xde0   :  { %5528 = vmatmul.mubr.bf16.vlgmr.msra.gmra.mrb[112].mxu0 %v5386_v63 }
 0xde1   :  { %5723 = vmatpush1.bf16.msra.mxu0 %v18864_v60  ;;  %14927 = vmatprep.mubr.msk.bf16.mxu0 %vm374_vm2, %v5614_v61  ;;  %v6066_v61 = vmax.f32 %v6063_v57, 0.0 }
 0xde2   :  { %5724 = vmatprep.subr.bf16.mxu0 %v19461_v10 }
 0xde5   :  { %5725 = vmatpush1.bf16.msra.mxu0 %v18865_v0 }
 0xde6   :  { %5726 = vmatprep.subr.bf16.mxu0 %v19461_v10 }
 0xde9   :  { %5727 = vmatpush1.bf16.msra.mxu0 %v18866_v2 }
 0xdea   :  { %5728 = vmatprep.subr.bf16.mxu0 %v19461_v10 }
 0xded   :  { %5729 = vmatpush1.bf16.msra.mxu0 %v18867_v5  ;;  %v18890_v5 = vld [vmem:[%s24123_s4 + $0xa28] sm:$0xff]  }
 0xdee   :  { %5730 = vmatprep.subr.bf16.mxu0 %v19461_v10 }
 0xdf1   :  { %5731 = vmatpush1.bf16.msra.mxu0 %v18868_v11  ;;  %v6068_v11 = vpack.c.bf16 %v6066_v61, %v6066_v61  ;;  %v18928_v61 = vld [vmem:[%s24123_s4 + $0xb50] ss:$0 sps:$4 sm:$0xff]  }
 0xdf2   :  { %5732 = vmatprep.subr.bf16.mxu0 %v19461_v10 }
 0xdf5   :  { %5733 = vmatpush1.bf16.msra.mxu0 %v18869_v12 }
 0xdf6   :  { %5734 = vmatprep.subr.bf16.mxu0 %v19461_v10 }
 0xdf9   :  { %5735 = vmatpush1.bf16.msra.mxu0 %v18870_v16  ;;  %v18891_v16 = vld [vmem:[%s24123_s4 + $0xa30] sm:$0xff]  }
 0xdfa   :  { %5736 = vmatprep.subr.bf16.mxu0 %v19461_v10 }
 0xdfd   :  { %5737 = vmatpush1.bf16.msra.mxu0 %v18871_v17  ;;  %v18892_v17 = vld [vmem:[%s24123_s4 + $0xa38] sm:$0xff]  }
 0xdfe   :  { %5738 = vmatprep.subr.bf16.mxu0 %v19461_v10 }
 0xe01   :  { %5739 = vmatpush1.bf16.msra.mxu0 %v18872_v19  ;;  %v18893_v19 = vld [vmem:[%s24123_s4 + $0xa40] sm:$0xff]  }
 0xe02   :  { %5740 = vmatprep.subr.bf16.mxu0 %v19461_v10 }
 0xe05   :  { %5741 = vmatpush1.bf16.msra.mxu0 %v18873_v9  ;;  %v18894_v9 = vld [vmem:[%s24123_s4 + $0xa48] sm:$0xff]  }
 0xe06   :  { %5742 = vmatprep.subr.bf16.mxu0 %v19461_v10 }
 0xe09   :  { %5743 = vmatpush1.bf16.msra.mxu0 %v18874_v21  ;;  %v18895_v21 = vld [vmem:[%s24123_s4 + $0xa50] sm:$0xff]  }
 0xe0a   :  { %5744 = vmatprep.subr.bf16.mxu0 %v19461_v10 }
 0xe0d   :  { %5745 = vmatpush1.bf16.msra.mxu0 %v18875_v22  ;;  %v18896_v22 = vld [vmem:[%s24123_s4 + $0xa58] sm:$0xff]  }
 0xe0e   :  { %5746 = vmatprep.subr.bf16.mxu0 %v19461_v10 }
 0xe11   :  { %5747 = vmatpush1.bf16.msra.mxu0 %v5720_v28  ;;  %v18900_v28 = vld [vmem:[%s24123_s4 + $0xa78] sm:$0xff]  }
 0xe12   :  { %18265 = vmatprep.subr.bf16.mxu0 %v19602_v3 }
 0xe14   :  { %5755 = vmatmul.mubr.bf16.vlgmr.msra.gmra.mrb[116].mxu0 %v5613_v62  ;;  %v18901_v62 = vld [vmem:[%s24123_s4 + $0xa80] sm:$0xff]  }
 0xe15   :  { %18267 = vmatpush1.bf16.msra.mxu0 %v19610_v6  ;;  %5831 = vmatprep.mubr.f32.mxu0 %v19459_v8 }
 0xe16   :  { %14928 = vmatprep.subr.msk.mxu0 %vm87_vm0, %v20967_v13 }
 0xe19   :  { %14929 = vmatpush1.msk.msra.mxu0 %vm87_vm0, %v20974_v14 }
 0xe1a   :  { %5949 = vmatprep.subr.bf16.mxu0 %v19461_v10 }
 0xe1c   :  { %14930 = vmatmul.mubr.msk.f32.vlgmr.msra.gmra.mrb[120].mxu0 %vm83_vm1, %v5764_v29  ;;  %v6061_v29 = vadd.f32 %v21448_v1, %v19747_v45  ;;  %v18915_v1 = vld [vmem:[%s24123_s4 + $0xabc] sm:$0xff]  }
 0xe1d   :  { %5950 = vmatpush1.bf16.msra.mxu0 %v18877_v4  ;;  %v18902_v4 = vld [vmem:[%s24123_s4 + $0xa88] ss:$0 sps:$4 sm:$0xff]  }
 0xe1e   :  { %5951 = vmatprep.subr.bf16.mxu0 %v19461_v10 }
 0xe21   :  { %5952 = vmatpush1.bf16.msra.mxu0 %v18878_v30  ;;  %v6065_v30 = vmax.f32 %v6061_v29, 0.0 }
 0xe22   :  { %5953 = vmatprep.subr.bf16.mxu0 %v19461_v10 }
 0xe25   :  { %5954 = vmatpush1.bf16.msra.mxu0 %v18879_v24  ;;  %v6174_v24 = vsel %vm87_vm0, %v18902_v4, 0 }
 0xe26   :  { %5955 = vmatprep.subr.bf16.mxu0 %v19461_v10 }
 0xe29   :  { %5956 = vmatpush1.bf16.msra.mxu0 %v18880_v32  ;;  %v6067_v32 = vpack.c.bf16 %v6065_v30, %v6065_v30 }
 0xe2a   :  { %5957 = vmatprep.subr.bf16.mxu0 %v19461_v10 }
 0xe2d   :  { %5958 = vmatpush1.bf16.msra.mxu0 %v18881_v33  ;;  %v18903_v33 = vld [vmem:[%s24123_s4 + $0xa8c] sm:$0xff]  }
 0xe2e   :  { %5959 = vmatprep.subr.bf16.mxu0 %v19461_v10 }
 0xe31   :  { %5960 = vmatpush1.bf16.msra.mxu0 %v18882_v7  ;;  %v18904_v7 = vld [vmem:[%s24123_s4 + $0xaf0] sm:$0xff]  }
 0xe32   :  { %5961 = vmatprep.subr.bf16.mxu0 %v19461_v10  ;;  %6631 = vmatpush1.bf16.msra.mxu1 %v18904_v7  ;;  %v6672_v7 = vpop.permute.xlu1 %6671 }
 0xe33   :  { %6632 = vmatprep.subr.bf16.mxu1 %v19461_v10 }
 0xe35   :  { %5962 = vmatpush1.bf16.msra.mxu0 %v18883_v20  ;;  %v18907_v20 = vld [vmem:[%s24123_s4 + $0xa9c] sm:$0xff]  }
 0xe36   :  { %5963 = vmatprep.subr.bf16.mxu0 %v19461_v10 }
 0xe39   :  { %5964 = vmatpush1.bf16.msra.mxu0 %v18884_v35  ;;  %v18908_v35 = vld [vmem:[%s24123_s4 + $0xb00] sm:$0xff]  }
 0xe3a   :  { %5965 = vmatprep.subr.bf16.mxu0 %v19461_v10 }
 0xe3d   :  { %5966 = vmatpush1.bf16.msra.mxu0 %v18885_v36  ;;  %v18909_v36 = vld [vmem:[%s24123_s4 + $0xaa4] sm:$0xff]  }
 0xe3e   :  { %5967 = vmatprep.subr.bf16.mxu0 %v19461_v10 }
 0xe41   :  { %5968 = vmatpush1.bf16.msra.mxu0 %v18886_v37  ;;  %v18910_v37 = vld [vmem:[%s24123_s4 + $0xb08] sm:$0xff]  }
 0xe42   :  { %5969 = vmatprep.subr.bf16.mxu0 %v19461_v10 }
 0xe45   :  { %5970 = vmatpush1.bf16.msra.mxu0 %v18887_v31  ;;  %v18911_v31 = vld [vmem:[%s24123_s4 + $0xaac] sm:$0xff]  }
 0xe46   :  { %5971 = vmatprep.subr.bf16.mxu0 %v19461_v10 }
 0xe49   :  { %5972 = vmatpush1.bf16.msra.mxu0 %v18888_v39  ;;  %v18912_v39 = vld [vmem:[%s24123_s4 + $0xb10] sm:$0xff]  }
 0xe4a   :  { %5973 = vmatprep.subr.bf16.mxu0 %v19461_v10 }
 0xe4d   :  { %5974 = vmatpush1.bf16.msra.mxu0 %v5947_v42  ;;  %v18914_v42 = vld [vmem:[%s24123_s4 + $0xb18] sm:$0xff]  }
 0xe4e   :  { %6176 = vmatprep.subr.bf16.mxu0 %v19461_v10 }
 0xeb3   :  { %v5529_v44 = vpop.f32.mrb[112].mxu0 }
 0xeb4   :  { %v5535_v38 = vadd.f32 %v5529_v44, %v21320_v47  ;;  %v5531_v48 = vpop.f32.mrb[113].mxu0  ;;  %v18918_v44 = vld [vmem:[%s24123_s4 + $0xb28] sm:$0xff]  }
 0xeb5   :  { %v5532_v54 = vpop.f32.mrb[114].mxu0  ;;  %v18920_v48 = vld [vmem:[%s24123_s4 + $0xb30] sm:$0xff]  }
 0xeb6   :  { %v5533_v34 = vpop.f32.mrb[115].mxu0  ;;  %v18922_v54 = vld [vmem:[%s24123_s4 + $0xb38] sm:$0xff]  }
 0xeb7   :  { %v18923_v34 = vld [vmem:[%s24123_s4 + $0xadc] sm:$0xff]  }
 0xee7   :  { %v5756_v50 = vpop.f32.mrb[116].mxu0 }
 0xee8   :  { %v21455_v51 = vadd.f32 %v5756_v50, %v5535_v38  ;;  %v5758_v52 = vpop.f32.mrb[117].mxu0  ;;  %v18919_v38 = vld [vmem:[%s24123_s4 + $0xacc] sm:$0xff]   ;;  %v18924_v50 = vld [vmem:[%s24123_s4 + $0xb40] sm:$0xff]  }
 0xee9   :  { %v5759_v55 = vpop.f32.mrb[118].mxu0  ;;  %v18925_v52 = vld [vmem:[%s24123_s4 + $0xae4] sm:$0xff]  }
 0xeea   :  { %v5760_v56 = vpop.f32.mrb[119].mxu0  ;;  %v6514_v55 = vpop.f32.mrb[32].mxu1 }
 0xeeb   :  { %v18926_v56 = vld [vmem:[%s24123_s4 + $0xb48] sm:$0xff]   ;;  %v6516_v57 = vpop.f32.mrb[33].mxu1 }
 0xeef   :  { %v5833_v58 = vpop.f32.mrb[120].mxu0 }
 0xef0   :  { %v5834_v47 = vadd.f32 %v5833_v58, %v19747_v45  ;;  %v5835_v59 = vpop.f32.mrb[121].mxu0  ;;  %v18927_v58 = vld [vmem:[%s24123_s4 + $0xaec] ss:$0 sps:$4 sm:$0xff]  }
 0xef1   :  { %v5836_v60 = vadd.f32 %v5835_v59, %v19751_v46  ;;  %v6515_v59 = vadd.f32 %v6514_v55, %v19747_v45  ;;  %v18946_v55 = vld [vmem:[%s24123_s4 + $0xbd8] sm:$0xff]  }
 0xef2   :  { %v5838_v63 = vmax.f32 %v5834_v47, 0.0  ;;  %v6517_v47 = vadd.f32 %v6516_v57, %v19751_v46  ;;  %v18948_v57 = vld [vmem:[%s24123_s4 + $0xbe8] sm:$0xff]  }
 0xef3   :  { %v5839_v0 = vmax.f32 %v5836_v60, 0.0  ;;  %v6401_v60 = vsel %vm87_vm0, %v18927_v58, 0  ;;  %v18949_v58 = vld [vmem:[%s24123_s4 + $0xbf0] sm:$0xff]  }
 0xef4   :  { %v5840_v12 = vpack.c.bf16 %v5838_v63, %v5838_v63  ;;  %v6520_v63 = vmax.f32 %v6517_v47, 0.0  ;;  %v18950_v47 = vld [vmem:[%s24123_s4 + $0xbf8] sm:$0xff]  }
 0xef5   :  { %v5841_v2 = vpack.c.bf16 %v5839_v0, %v5839_v0  ;;  %v6519_v0 = vmax.f32 %v6515_v59, 0.0 }
 0xef7   :  { %14969 = vmatprep.mubr.msk.bf16.mxu0 %vm374_vm2, %v5841_v2  ;;  %v6628_v2 = vsel %vm87_vm0, %v18928_v61, 0 }
 0xef8   :  { %5982 = vmatmul.mubr.bf16.vlgmr.msra.gmra.mrb[124].mxu0 %v5840_v12 }
 0xef9   :  { %6177 = vmatpush1.bf16.msra.mxu0 %v18890_v5  ;;  %15011 = vmatprep.mubr.msk.bf16.mxu0 %vm374_vm2, %v6068_v11  ;;  %v6522_v5 = vpack.c.bf16 %v6520_v63, %v6520_v63  ;;  %v6521_v11 = vpack.c.bf16 %v6519_v0, %v6519_v0 }
 0xefa   :  { %6178 = vmatprep.subr.bf16.mxu0 %v19461_v10 }
 0xefb   :  { %15095 = vmatprep.mubr.msk.bf16.mxu1 %vm374_vm2, %v6522_v5 }
 0xefd   :  { %6179 = vmatpush1.bf16.msra.mxu0 %v18891_v16 }
 0xefe   :  { %6180 = vmatprep.subr.bf16.mxu0 %v19461_v10 }
 0xf01   :  { %6181 = vmatpush1.bf16.msra.mxu0 %v18892_v17 }
 0xf02   :  { %6182 = vmatprep.subr.bf16.mxu0 %v19461_v10 }
 0xf05   :  { %6183 = vmatpush1.bf16.msra.mxu0 %v18893_v19 }
 0xf06   :  { %6184 = vmatprep.subr.bf16.mxu0 %v19461_v10 }
 0xf09   :  { %6185 = vmatpush1.bf16.msra.mxu0 %v18894_v9 }
 0xf0a   :  { %6186 = vmatprep.subr.bf16.mxu0 %v19461_v10 }
 0xf0d   :  { %6187 = vmatpush1.bf16.msra.mxu0 %v18895_v21 }
 0xf0e   :  { %6188 = vmatprep.subr.bf16.mxu0 %v19461_v10 }
 0xf11   :  { %6189 = vmatpush1.bf16.msra.mxu0 %v18896_v22 }
 0xf12   :  { %6190 = vmatprep.subr.bf16.mxu0 %v19461_v10 }
 0xf15   :  { %6191 = vmatpush1.bf16.msra.mxu0 %v18897_v23 }
 0xf16   :  { %6192 = vmatprep.subr.bf16.mxu0 %v19461_v10 }
 0xf19   :  { %6193 = vmatpush1.bf16.msra.mxu0 %v18898_v15 }
 0xf1a   :  { %6194 = vmatprep.subr.bf16.mxu0 %v19461_v10 }
 0xf1d   :  { %6195 = vmatpush1.bf16.msra.mxu0 %v18899_v25 }
 0xf1e   :  { %6196 = vmatprep.subr.bf16.mxu0 %v19461_v10 }
 0xf21   :  { %6197 = vmatpush1.bf16.msra.mxu0 %v18900_v28 }
 0xf22   :  { %6198 = vmatprep.subr.bf16.mxu0 %v19461_v10 }
 0xf25   :  { %6199 = vmatpush1.bf16.msra.mxu0 %v18901_v62 }
 0xf26   :  { %6200 = vmatprep.subr.bf16.mxu0 %v19461_v10 }
 0xf29   :  { %6201 = vmatpush1.bf16.msra.mxu0 %v6174_v24 }
 0xf2a   :  { %18273 = vmatprep.subr.bf16.mxu0 %v19602_v3 }
 0xf2c   :  { %6209 = vmatmul.mubr.bf16.vlgmr.msra.gmra.mrb[128].mxu0 %v6067_v32 }
 0xf2d   :  { %18275 = vmatpush1.bf16.msra.mxu0 %v19610_v6  ;;  %6285 = vmatprep.mubr.f32.mxu0 %v19459_v8 }
 0xf2e   :  { %15012 = vmatprep.subr.msk.mxu0 %vm87_vm0, %v20967_v13  ;;  %v18905_v13 = vld [vmem:[%s24123_s4 + $0xa94] sm:$0xff]  }
 0xf31   :  { %15013 = vmatpush1.msk.msra.mxu0 %vm87_vm0, %v20974_v14  ;;  %v18906_v14 = vld [vmem:[%s24123_s4 + $0xaf8] sm:$0xff]  }
 0xf32   :  { %6403 = vmatprep.subr.bf16.mxu0 %v19461_v10  ;;  %6633 = vmatpush1.bf16.msra.mxu1 %v18906_v14  ;;  %v18930_v14 = vld [vmem:[%s24123_s4 + $0xb5c] sm:$0xff]  }
 0xf33   :  { %6634 = vmatprep.subr.bf16.mxu1 %v19461_v10 }
 0xf34   :  { %15014 = vmatmul.mubr.msk.f32.vlgmr.msra.gmra.mrb[122].mxu0 %vm83_vm1, %v21450_v53  ;;  %v18917_v53 = vld [vmem:[%s24123_s4 + $0xac4] sm:$0xff]  }
 0xf35   :  { %6404 = vmatpush1.bf16.msra.mxu0 %v18903_v33  ;;  %v21654_v33 = vld [vmem:[%s24148_s13 + $0x20] sm:$0xf] }
 0xf36   :  { %6405 = vmatprep.subr.bf16.mxu0 %v19461_v10  ;;  %6635 = vmatpush1.bf16.msra.mxu1 %v18908_v35  ;;  %v18932_v35 = vld [vmem:[%s24123_s4 + $0xb6c] sm:$0xff]  }
 0xf37   :  { %6636 = vmatprep.subr.bf16.mxu1 %v19461_v10 }
 0xf39   :  { %6406 = vmatpush1.bf16.msra.mxu0 %v18905_v13  ;;  %v18929_v13 = vld [vmem:[%s24123_s4 + $0xb54] sm:$0xff]  }
 0xf3a   :  { %6407 = vmatprep.subr.bf16.mxu0 %v19461_v10  ;;  %6637 = vmatpush1.bf16.msra.mxu1 %v18910_v37  ;;  %v18934_v37 = vld [vmem:[%s24123_s4 + $0xb7c] sm:$0xff]  }
 0xf3b   :  { %6638 = vmatprep.subr.bf16.mxu1 %v19461_v10 }
 0xf3d   :  { %6408 = vmatpush1.bf16.msra.mxu0 %v18907_v20  ;;  %v18931_v20 = vld [vmem:[%s24123_s4 + $0xb64] sm:$0xff]  }
 0xf3e   :  { %6409 = vmatprep.subr.bf16.mxu0 %v19461_v10  ;;  %6639 = vmatpush1.bf16.msra.mxu1 %v18912_v39  ;;  %v18936_v39 = vld [vmem:[%s24123_s4 + $0xb8c] sm:$0xff]  }
 0xf3f   :  { %6640 = vmatprep.subr.bf16.mxu1 %v19461_v10 }
 0xf41   :  { %6410 = vmatpush1.bf16.msra.mxu0 %v18909_v36  ;;  %v18933_v36 = vld [vmem:[%s24123_s4 + $0xb74] sm:$0xff]  }
 0xf42   :  { %6411 = vmatprep.subr.bf16.mxu0 %v19461_v10  ;;  %6641 = vmatpush1.bf16.msra.mxu1 %v18914_v42  ;;  %v18938_v42 = vld [vmem:[%s24123_s4 + $0xb9c] sm:$0xff]  }
 0xf43   :  { %6642 = vmatprep.subr.bf16.mxu1 %v19461_v10 }
 0xf45   :  { %6412 = vmatpush1.bf16.msra.mxu0 %v18911_v31  ;;  %v18935_v31 = vld [vmem:[%s24123_s4 + $0xb84] sm:$0xff]  }
 0xf46   :  { %6413 = vmatprep.subr.bf16.mxu0 %v19461_v10  ;;  %6643 = vmatpush1.bf16.msra.mxu1 %v18916_v43  ;;  %v18939_v43 = vld [vmem:[%s24123_s4 + $0xba4] sm:$0xff]  }
 0xf47   :  { %6644 = vmatprep.subr.bf16.mxu1 %v19461_v10 }
 0xf49   :  { %6414 = vmatpush1.bf16.msra.mxu0 %v18913_v41  ;;  %v18937_v41 = vld [vmem:[%s24123_s4 + $0xb94] sm:$0xff]  }
 0xf4a   :  { %6415 = vmatprep.subr.bf16.mxu0 %v19461_v10  ;;  %6645 = vmatpush1.bf16.msra.mxu1 %v18918_v44 }
 0xf4b   :  { %6646 = vmatprep.subr.bf16.mxu1 %v19461_v10 }
 0xf4d   :  { %6416 = vmatpush1.bf16.msra.mxu0 %v18915_v1 }
 0xf4e   :  { %6417 = vmatprep.subr.bf16.mxu0 %v19461_v10  ;;  %6647 = vmatpush1.bf16.msra.mxu1 %v18920_v48  ;;  %v18940_v48 = vld [vmem:[%s24123_s4 + $0xbac] sm:$0xff]  }
 0xf4f   :  { %6648 = vmatprep.subr.bf16.mxu1 %v19461_v10 }
 0xf51   :  { %6418 = vmatpush1.bf16.msra.mxu0 %v18917_v53 }
 0xf52   :  { %6419 = vmatprep.subr.bf16.mxu0 %v19461_v10  ;;  %6649 = vmatpush1.bf16.msra.mxu1 %v18922_v54 }
 0xf53   :  { %6650 = vmatprep.subr.bf16.mxu1 %v19461_v10 }
 0xf55   :  { %6420 = vmatpush1.bf16.msra.mxu0 %v18919_v38 }
 0xf56   :  { %6421 = vmatprep.subr.bf16.mxu0 %v19461_v10  ;;  %6651 = vmatpush1.bf16.msra.mxu1 %v18924_v50  ;;  %v18943_v50 = vld [vmem:[%s24123_s4 + $0xbc0] sm:$0xff]  }
 0xf57   :  { %6652 = vmatprep.subr.bf16.mxu1 %v19461_v10 }
 0xf59   :  { %6422 = vmatpush1.bf16.msra.mxu0 %v18921_v49  ;;  %v18941_v49 = vld [vmem:[%s24123_s4 + $0xbb4] ss:$0 sps:$4 sm:$0xff]  }
 0xf5a   :  { %6423 = vmatprep.subr.bf16.mxu0 %v19461_v10  ;;  %6653 = vmatpush1.bf16.msra.mxu1 %v18926_v56  ;;  %v6855_v54 = vsel %vm87_vm0, %v18941_v49, 0  ;;  %v18947_v56 = vld [vmem:[%s24123_s4 + $0xbe0] sm:$0xff]  }
 0xf5b   :  { %6654 = vmatprep.subr.bf16.mxu1 %v19461_v10 }
 0xf5d   :  { %6424 = vmatpush1.bf16.msra.mxu0 %v18923_v34  ;;  %v18942_v34 = vld [vmem:[%s24123_s4 + $0xbb8] sm:$0xff]  }
 0xf5e   :  { %6425 = vmatprep.subr.bf16.mxu0 %v19461_v10  ;;  %6655 = vmatpush1.bf16.msra.mxu1 %v6628_v2 }
 0xf5f   :  { %7084 = vmatprep.subr.bf16.mxu1 %v19461_v10 }
 0xf61   :  { %6426 = vmatpush1.bf16.msra.mxu0 %v18925_v52  ;;  %6663 = vmatmul.mubr.bf16.vlgmr.msra.gmra.mrb[36].mxu1 %v6521_v11  ;;  %v18944_v52 = vld [vmem:[%s24123_s4 + $0xbc8] sm:$0xff]  }
 0xf62   :  { %6427 = vmatprep.subr.bf16.mxu0 %v19461_v10  ;;  %7085 = vmatpush1.bf16.msra.mxu1 %v18942_v34 }
 0xf63   :  { %7086 = vmatprep.subr.bf16.mxu1 %v19461_v10 }
 0xf65   :  { %6428 = vmatpush1.bf16.msra.mxu0 %v6401_v60 }
 0xf66   :  { %18281 = vmatprep.subr.bf16.mxu0 %v19602_v3  ;;  %7087 = vmatpush1.bf16.msra.mxu1 %v18943_v50  ;;  %v8301_v50 = vld [vmem:[%s24134_s15 + $0x8] sm:$0xff] }
 0xf67   :  { %7088 = vmatprep.subr.bf16.mxu1 %v19461_v10 }
 0xf6a   :  { %7089 = vmatpush1.bf16.msra.mxu1 %v18944_v52  ;;  %v8302_v52 = vld [vmem:[%s24134_s15 + $0x10] sm:$0xff] }
 0xf6b   :  { %7090 = vmatprep.subr.bf16.mxu1 %v19461_v10 }
 0xfcb   :  { %v5983_v12 = vpop.f32.mrb[124].mxu0 }
 0xfcc   :  { %v5989_v16 = vadd.f32 %v5983_v12, %v21455_v51  ;;  %v5985_v17 = vpop.f32.mrb[125].mxu0  ;;  %v21647_v51 = vld [vmem:[%s24148_s13 + $0x28] sm:$0xf] }
 0xfcd   :  { %v5986_v19 = vpop.f32.mrb[126].mxu0 }
 0xfce   :  { %v5987_v9 = vpop.f32.mrb[127].mxu0 }
 0xfff   :  { %v6210_v21 = vpop.f32.mrb[128].mxu0 }
0x1000   :  { %v21637_v22 = vadd.f32 %v6210_v21, %v5989_v16  ;;  %v6212_v23 = vpop.f32.mrb[129].mxu0 }
0x1001   :  { %v6213_v15 = vpop.f32.mrb[130].mxu0  ;;  %v18951_v23 = vld [vmem:[%s24123_s4 + $0xc00] sm:$0xff]  }
0x1002   :  { %v6214_v25 = vpop.f32.mrb[131].mxu0  ;;  %v18953_v15 = vld [vmem:[%s24123_s4 + $0xc10] sm:$0xff]  }
0x1003   :  { %v18954_v25 = vld [vmem:[%s24123_s4 + $0xc18] ss:$0 sps:$4 sm:$0xff]  }
0x1007   :  { %v6287_v28 = vpop.f32.mrb[122].mxu0 }
0x1008   :  { %v6288_v62 = vadd.f32 %v6287_v28, %v19747_v45  ;;  %v6289_v29 = vpop.f32.mrb[123].mxu0  ;;  %v7082_v28 = vsel %vm87_vm0, %v18954_v25, 0  ;;  %v18973_v25 = vld [vmem:[%s24127_s8 + $0x48] ss:$16 sps:$4 sm:$0xff]  }
0x1009   :  { %v6290_v4 = vadd.f32 %v6289_v29, %v19751_v46  ;;  %v7135_v29 = vld [vmem:[%s24125_s6 + $0x8] sm:$0xff] }
0x100a   :  { %v6292_v30 = vmax.f32 %v6288_v62, 0.0  ;;  %v7134_v62 = vld [vmem:[%s24125_s6] sm:$0xff] }
0x100b   :  { %v6293_v27 = vmax.f32 %v6290_v4, 0.0  ;;  %v7136_v4 = vld [vmem:[%s24125_s6 + $0x10] sm:$0xff] }
0x100c   :  { %v6294_v32 = vpack.c.bf16 %v6292_v30, %v6292_v30  ;;  %v19490_v30 = vmov 0.0|0.0  }
0x100d   :  { %v6295_v24 = vpack.c.bf16 %v6293_v27, %v6293_v27  ;;  %v18289_v27 = vpack.c.bf16 %v7135_v29, %v7134_v62  ;;  %v7231_v62 = vld [vmem:[%s24150_s30 + $0x20] sm:$0xff]  ;;  %v7232_v29 = vld [vmem:[%s24150_s30 + $0x28] sm:$0xff] }
0x100f   :  { %15053 = vmatprep.mubr.msk.bf16.mxu0 %vm374_vm2, %v6295_v24  ;;  %v7137_v24 = vld [vmem:[%s24125_s6 + $0x18] sm:$0xff] }
0x1010   :  { %6436 = vmatmul.mubr.bf16.vlgmr.msra.gmra.mrb[132].mxu0 %v6294_v32  ;;  %v18292_v32 = vpack.c.bf16 %v7137_v24, %v7136_v4  ;;  %v18976_v4 = vld [vmem:[%s24127_s8 + $0x68] ss:$16 sps:$4 sm:$0xff]   ;;  %v7242_v24 = vpack.c.bf16 %v7232_v29, %v7231_v62 }
0x1011   :  { %18283 = vmatpush1.bf16.msra.mxu0 %v19610_v6  ;;  %6739 = vmatprep.mubr.f32.mxu0 %v19459_v8  ;;  %v18997_v29 = vld [vmem:[%s24129_s10 + $0xc8] sm:$0xff]  }
0x1012   :  { %15096 = vmatprep.subr.msk.mxu0 %vm87_vm0, %v21647_v51 }
0x1015   :  { %15097 = vmatpush1.msk.msra.mxu0 %vm87_vm0, %v21654_v33 }
0x1016   :  { %6857 = vmatprep.subr.bf16.mxu0 %v19461_v10 }
0x1018   :  { %15098 = vmatmul.mubr.msk.f32.vlgmr.msra.gmra.mrb[136].mxu0 %vm83_vm1, %v6672_v7 }
0x1019   :  { %6858 = vmatpush1.bf16.msra.mxu0 %v18929_v13 }
0x101a   :  { %6859 = vmatprep.subr.bf16.mxu0 %v19461_v10 }
0x101d   :  { %6860 = vmatpush1.bf16.msra.mxu0 %v18930_v14 }
0x101e   :  { %6861 = vmatprep.subr.bf16.mxu0 %v19461_v10 }
0x1021   :  { %6862 = vmatpush1.bf16.msra.mxu0 %v18931_v20 }
0x1022   :  { %6863 = vmatprep.subr.bf16.mxu0 %v19461_v10 }
0x1025   :  { %6864 = vmatpush1.bf16.msra.mxu0 %v18932_v35 }
0x1026   :  { %6865 = vmatprep.subr.bf16.mxu0 %v19461_v10 }
0x1029   :  { %6866 = vmatpush1.bf16.msra.mxu0 %v18933_v36 }
0x102a   :  { %6867 = vmatprep.subr.bf16.mxu0 %v19461_v10 }
0x102d   :  { %6868 = vmatpush1.bf16.msra.mxu0 %v18934_v37 }
0x102e   :  { %6869 = vmatprep.subr.bf16.mxu0 %v19461_v10 }
0x1031   :  { %6870 = vmatpush1.bf16.msra.mxu0 %v18935_v31 }
0x1032   :  { %6871 = vmatprep.subr.bf16.mxu0 %v19461_v10 }
0x1034   :  { %v6664_v1 = vpop.f32.mrb[36].mxu1 }
0x1035   :  { %6872 = vmatpush1.bf16.msra.mxu0 %v18936_v39  ;;  %v6666_v53 = vpop.f32.mrb[37].mxu1 }
0x1036   :  { %6873 = vmatprep.subr.bf16.mxu0 %v19461_v10  ;;  %v6667_v44 = vpop.f32.mrb[38].mxu1 }
0x1037   :  { %v6668_v38 = vpop.f32.mrb[39].mxu1 }
0x1038   :  { %v15180_v38 = vld [vmem:[%s24124_s5] ss:$0 sm:$0xff] }
0x1039   :  { %6874 = vmatpush1.bf16.msra.mxu0 %v18937_v41 }
0x103a   :  { %6875 = vmatprep.subr.bf16.mxu0 %v19461_v10 }
0x103d   :  { %6876 = vmatpush1.bf16.msra.mxu0 %v18938_v42 }
0x103e   :  { %6877 = vmatprep.subr.bf16.mxu0 %v19461_v10 }
0x1041   :  { %6878 = vmatpush1.bf16.msra.mxu0 %v18939_v43  ;;  %v7139_v43 = vld [vmem:[%s24125_s6 + $0x28] sm:$0xff] }
0x1042   :  { %6879 = vmatprep.subr.bf16.mxu0 %v19461_v10 }
0x1045   :  { %6880 = vmatpush1.bf16.msra.mxu0 %v18940_v48 }
0x1046   :  { %6881 = vmatprep.subr.bf16.mxu0 %v19461_v10 }
0x1049   :  { %6882 = vmatpush1.bf16.msra.mxu0 %v6855_v54  ;;  %v8300_v54 = vld [vmem:[%s24134_s15] sm:$0xff] }
0x104a   :  { %18285 = vmatprep.subr.bf16.mxu0 %v19602_v3  ;;  %v18945_v3 = vld [vmem:[%s24123_s4 + $0xbd0] sm:$0xff]  }
0x104b   :  { %7091 = vmatpush1.bf16.msra.mxu1 %v18945_v3  ;;  %v8303_v3 = vld [vmem:[%s24134_s15 + $0x18] sm:$0xff] }
0x104c   :  { %7092 = vmatprep.subr.bf16.mxu1 %v19461_v10 }
0x104f   :  { %7093 = vmatpush1.bf16.msra.mxu1 %v18946_v55 }
0x1050   :  { %7094 = vmatprep.subr.bf16.mxu1 %v19461_v10 }
0x1053   :  { %7095 = vmatpush1.bf16.msra.mxu1 %v18947_v56 }
0x1054   :  { %7096 = vmatprep.subr.bf16.mxu1 %v19461_v10 }
0x1057   :  { %7097 = vmatpush1.bf16.msra.mxu1 %v18948_v57  ;;  %v18298_v57 = vpack.c.bf16 %v8301_v50, %v8300_v54  ;;  %v8306_v54 = vld [vmem:[%s24134_s15 + $0x30] sm:$0x3]  ;;  %v18990_v50 = vld [vmem:[%s24129_s10 + $0x28] sm:$0xff]  }
0x1058   :  { %7098 = vmatprep.subr.bf16.mxu1 %v19461_v10 }
0x105b   :  { %7099 = vmatpush1.bf16.msra.mxu1 %v18949_v58  ;;  %v18955_v58 = vld [vmem:[%s24127_s8] ss:$16 sps:$4 sm:$0xff]  }
0x105c   :  { %7100 = vmatprep.subr.bf16.mxu1 %v19461_v10 }
0x105f   :  { %7101 = vmatpush1.bf16.msra.mxu1 %v18950_v47 }
0x1060   :  { %7102 = vmatprep.subr.bf16.mxu1 %v19461_v10 }
0x1063   :  { %7103 = vmatpush1.bf16.msra.mxu1 %v18951_v23  ;;  %v18970_v23 = vld [vmem:[%s24127_s8 + $0x28] ss:$16 sps:$4 sm:$0xff]  }
0x1064   :  { %7104 = vmatprep.subr.bf16.mxu1 %v19461_v10 }
0x10e3   :  { %v6437_v59 = vpop.f32.mrb[132].mxu0 }
0x10e4   :  { %v6443_v60 = vadd.f32 %v6437_v59, %v21637_v22  ;;  %v6439_v61 = vpop.f32.mrb[133].mxu0  ;;  %v6899_v22 = vpop.permute.xlu1 %6898  ;;  %v18960_v59 = vld [vmem:[%s24127_s8 + $0x24] ss:$16 sps:$4 sm:$0xff]  }
0x10e5   :  { %v6440_v63 = vpop.f32.mrb[134].mxu0  ;;  %v18958_v61 = vld [vmem:[%s24127_s8 + $0x20] ss:$16 sps:$4 sm:$0xff]  }
0x10e6   :  { %v6670_v0 = vadd.f32 %v6664_v1, %v6443_v60  ;;  %v6441_v2 = vpop.f32.mrb[135].mxu0  ;;  %v7138_v1 = vld [vmem:[%s24125_s6 + $0x20] sm:$0xff]  ;;  %v18301_v60 = vpack.c.bf16 %v8303_v3, %v8302_v52  ;;  %v18991_v52 = vld [vmem:[%s24129_s10 + $0x70] sm:$0xff]  }
0x10e7   :  { %v18295_v53 = vpack.c.bf16 %v7139_v43, %v7138_v1  ;;  %v18963_v63 = vld [vmem:[%s24127_s8 + $0x44] ss:$16 sps:$4 sm:$0xff]  }
0x10e8   :  { %v18966_v2 = vld [vmem:[%s24127_s8 + $0x64] ss:$16 sps:$4 sm:$0xff]  }
0x10e9   :  { %v18983_v1 = vld [vmem:[%s24129_s10 + $0x50] sm:$0xff]  }
0x10ea   :  { %v18984_v43 = vld [vmem:[%s24129_s10 + $0x10] sm:$0xff]  }
0x10eb   :  { %v6741_v5 = vpop.f32.mrb[136].mxu0  ;;  %v18992_v3 = vld [vmem:[%s24129_s10 + $0x30] sm:$0xff]  }
0x10ec   :  { %v6742_v11 = vadd.f32 %v6741_v5, %v19747_v45  ;;  %v6743_v12 = vpop.f32.mrb[137].mxu0  ;;  %v18964_v5 = vld [vmem:[%s24127_s8 + $0x60] ss:$16 sps:$4 sm:$0xff]  }
0x10ed   :  { %v6744_v16 = vadd.f32 %v6743_v12, %v19751_v46  ;;  %v7228_v12 = vld [vmem:[%s24150_s30 + $0x8] sm:$0xff] }
0x10ee   :  { %v6746_v17 = vmax.f32 %v6742_v11, 0.0  ;;  %v7227_v11 = vld [vmem:[%s24150_s30] sm:$0xff] }
0x10ef   :  { %v6747_v19 = vmax.f32 %v6744_v16, 0.0  ;;  %v18969_v16 = vld [vmem:[%s24127_s8 + $0xc] ss:$16 sps:$4 sm:$0xff]  }
0x10f0   :  { %v6748_v21 = vpack.c.bf16 %v6746_v17, %v6746_v17  ;;  %v7240_v17 = vpack.c.bf16 %v7228_v12, %v7227_v11 }
0x10f1   :  { %v6749_v9 = vpack.c.bf16 %v6747_v19, %v6747_v19  ;;  %v18967_v19 = vld [vmem:[%s24127_s8 + $0x8] ss:$16 sps:$4 sm:$0xff]  }
0x10f3   :  { %15137 = vmatprep.mubr.msk.bf16.mxu0 %vm374_vm2, %v6749_v9  ;;  %v18972_v9 = vld [vmem:[%s24127_s8 + $0x2c] ss:$16 sps:$4 sm:$0xff]  }
0x10f4   :  { %6890 = vmatmul.mubr.bf16.vlgmr.msra.gmra.mrb[140].mxu0 %v6748_v21  ;;  %v7229_v21 = vld [vmem:[%s24150_s30 + $0x10] sm:$0xff] }
0x10f5   :  { %18287 = vmatpush1.bf16.msra.mxu0 %v19610_v6  ;;  %6966 = vmatprep.mubr.f32.mxu0 %v19459_v8  ;;  %v18952_v6 = vld [vmem:[%s24123_s4 + $0xc08] sm:$0xff]  }
0x10f6   :  { %15138 = vmatprep.subr.msk.mxu0 %vm87_vm0, %v21647_v51  ;;  %7105 = vmatpush1.bf16.msra.mxu1 %v18952_v6  ;;  %v18975_v6 = vld [vmem:[%s24127_s8 + $0x4c] ss:$16 sps:$4 sm:$0xff]  }
0x10f7   :  { %7106 = vmatprep.subr.bf16.mxu1 %v19461_v10 }
0x10f9   :  { %15139 = vmatpush1.msk.msra.mxu0 %vm87_vm0, %v21654_v33 }
0x10fa   :  { %7107 = vmatpush1.bf16.msra.mxu1 %v18953_v15  ;;  %18288 = vmatprep.subr.bf16.mxu0 %v19490_v30 }
0x10fb   :  { %7108 = vmatprep.subr.bf16.mxu1 %v19461_v10 }
0x10fc   :  { %15140 = vmatmul.mubr.msk.f32.vlgmr.msra.gmra.mrb[138].mxu0 %vm83_vm1, %v6899_v22  ;;  %v7230_v22 = vld [vmem:[%s24150_s30 + $0x18] sm:$0xff] }
0x10fd   :  { %18290 = vmatpush3.bf16.msra.mxu0 %v18289_v27  ;;  %17071 = vmatprep.mubr.msk.f32.mxu0 %vm19491_vm4, %v19459_v8  ;;  %v7241_v15 = vpack.c.bf16 %v7230_v22, %v7229_v21  ;;  %v18979_v27 = vld [vmem:[%s24129_s10 + $0x40] sm:$0xff]  }
0x10fe   :  { %7109 = vmatpush1.bf16.msra.mxu1 %v7082_v28  ;;  %18291 = vmatprep.subr.bf16.mxu0 %v19490_v30  ;;  %v18978_v28 = vld [vmem:[%s24127_s8 + $0x6c] ss:$16 sps:$4 sm:$0xff]  }
0x10ff   :  { %18297 = vmatprep.subr.bf16.mxu1 %v19490_v30 }
0x1101   :  { %18293 = vmatpush3.bf16.msra.mxu0 %v18292_v32  ;;  %v7233_v32 = vld [vmem:[%s24150_s30 + $0x30] sm:$0xff] }
0x1102   :  { %18294 = vmatprep.subr.bf16.mxu0 %v19490_v30 }
0x1105   :  { %18296 = vmatpush3.bf16.msra.mxu0 %v18295_v53  ;;  %v18985_v53 = vld [vmem:[%s24129_s10 + $0x58] sm:$0xff]  }
0x1106   :  { %17069 = vmatprep.subr.mxu0 %v19459_v8 }
0x11c7   :  { %v6891_v51 = vpop.f32.mrb[140].mxu0 }
0x11c8   :  { %v6897_v33 = vadd.f32 %v6891_v51, %v6670_v0  ;;  %v6893_v7 = vpop.f32.mrb[141].mxu0  ;;  %v18961_v0 = vld [vmem:[%s24127_s8 + $0x40] ss:$16 sps:$4 sm:$0xff]   ;;  %v7234_v51 = vld [vmem:[%s24150_s30 + $0x38] sm:$0xff] }
0x11c9   :  { %v6894_v13 = vpop.f32.mrb[142].mxu0  ;;  %v7235_v7 = vld [vmem:[%s24150_s30 + $0x40] sm:$0xff] }
0x11ca   :  { %v6895_v14 = vpop.f32.mrb[143].mxu0  ;;  %v7236_v13 = vld [vmem:[%s24150_s30 + $0x48] sm:$0xff] }
0x11cb   :  { %v7244_v14 = vpack.c.bf16 %v7236_v13, %v7235_v7 }
0x11cf   :  { %v6968_v20 = vpop.f32.mrb[138].mxu0 }
0x11d0   :  { %v6969_v35 = vadd.f32 %v6968_v20, %v19747_v45  ;;  %v6970_v36 = vpop.f32.mrb[139].mxu0  ;;  %v7140_v45 = vld [vmem:[%s24125_s6 + $0x30] sm:$0x3] }
0x11d1   :  { %v6971_v37 = vadd.f32 %v6970_v36, %v19751_v46  ;;  %v18957_v46 = vld [vmem:[%s24127_s8 + $0x4] ss:$16 sps:$4 sm:$0xff]   ;;  %17070 = vmatpush3.msk.msra.mxu0 %vm7152_vm3, %v7140_v45  ;;  %v18986_v45 = vld [vmem:[%s24129_s10 + $0x18] sm:$0xff]  }
0x11d2   :  { %v6973_v31 = vmax.f32 %v6969_v35, 0.0  ;;  %7387 = vmatprep.subr.bf16.mxu0 %v18957_v46  ;;  %v7237_v20 = vld [vmem:[%s24150_s30 + $0x50] sm:$0xff]  ;;  %v7238_v35 = vld [vmem:[%s24150_s30 + $0x58] sm:$0xff]  ;;  %v8304_v46 = vld [vmem:[%s24134_s15 + $0x20] sm:$0xff] }
0x11d3   :  { %v6974_v39 = vmax.f32 %v6971_v37, 0.0  ;;  %v7245_v36 = vpack.c.bf16 %v7238_v35, %v7237_v20  ;;  %v7239_v37 = vld [vmem:[%s24150_s30 + $0x60] sm:$0xf] }
0x11d4   :  { %v6975_v42 = vpack.c.bf16 %v6973_v31, %v6973_v31  ;;  %v7246_v31 = vpack.c.bf16 %v7239_v37, %v7239_v37 }
0x11d5   :  { %v6976_v41 = vpack.c.bf16 %v6974_v39, %v6974_v39  ;;  %v18980_v39 = vld [vmem:[%s24129_s10] sm:$0xff]  }
0x11d7   :  { %15179 = vmatprep.mubr.msk.bf16.mxu1 %vm374_vm2, %v6976_v41  ;;  %v18981_v41 = vld [vmem:[%s24129_s10 + $0x48] sm:$0xff]  }
0x11d8   :  { %7117 = vmatmul.mubr.bf16.vlgmr.msra.gmra.mrb[40].mxu1 %v6975_v42  ;;  %v18982_v42 = vld [vmem:[%s24129_s10 + $0x8] sm:$0xff]  }
0x11d9   :  { %17132 = vmatprep.mubr.msk.f32.mxu1 %vm19491_vm4, %v19459_v8  ;;  %18299 = vmatpush3.bf16.msra.mxu1 %v18298_v57  ;;  %v18995_v57 = vld [vmem:[%s24129_s10 + $0xc0] sm:$0xff]  }
0x11da   :  { %18300 = vmatprep.subr.bf16.mxu1 %v19490_v30 }
0x11dd   :  { %18302 = vmatpush3.bf16.msra.mxu1 %v18301_v60 }
0x11de   :  { %18303 = vmatprep.subr.bf16.mxu1 %v19490_v30 }
0x12ab   :  { %v7118_v44 = vpop.f32.mrb[40].mxu1 }
0x12ac   :  { %v7124_v48 = vadd.f32 %v7118_v44, %v6897_v33  ;;  %v7120_v49 = vpop.f32.mrb[41].mxu1  ;;  %v7243_v33 = vpack.c.bf16 %v7234_v51, %v7233_v32  ;;  %v8305_v44 = vld [vmem:[%s24134_s15 + $0x28] sm:$0xff] }
0x12ad   :  { %v7121_v34 = vpop.f32.mrb[42].mxu1  ;;  %v18988_v49 = vld [vmem:[%s24129_s10 + $0x20] sm:$0xff]  }
0x12ae   :  { %v7132_v55 = vadd.f32 %v15180_v38, %v7124_v48  ;;  %v7122_v56 = vpop.f32.mrb[43].mxu1  ;;  %v18987_v38 = vld [vmem:[%s24129_s10 + $0x60] sm:$0xff]   ;;  %v18304_v48 = vpack.c.bf16 %v8305_v44, %v8304_v46  ;;  %v18989_v34 = vld [vmem:[%s24129_s10 + $0x68] sm:$0xff]  }
0x12af   :  { %v18994_v56 = vld [vmem:[%s24129_s10 + $0x38] sm:$0xff]  }
0x12b0   :  { %v7133_v47 = vmax.f32 %v7132_v55, 0.0  ;;  %18305 = vmatpush3.bf16.msra.mxu1 %v18304_v48  ;;  %v18993_v55 = vld [vmem:[%s24129_s10 + $0x78] sm:$0xff]  }
0x12b1   :  { %17130 = vmatprep.subr.mxu1 %v19459_v8 }
0x12b2   :  { %17072 = vmatmul.mubr.msk.f32.vlgmr.msra.gmra.mrb[144].mxu0 %vm7148_vm5, %v7133_v47 }
0x12b3   :  { %7388 = vmatpush1.bf16.msra.mxu0 %v18955_v58  ;;  %7419 = vmatprep.mubr.bf16.mxu0 %v19461_v10  ;;  %v15181_v58 = vld [vmem:[%s24126_s7] ss:$0 sm:$0xff] }
0x12b4   :  { %7389 = vmatprep.subr.bf16.mxu0 %v18960_v59  ;;  %17131 = vmatpush3.msk.msra.mxu1 %vm7152_vm3, %v8306_v54  ;;  %v19003_v54 = vld [vmem:[%s24129_s10 + $0xe0] sm:$0xff]  }
0x12b5   :  { %17155 = vmatprep.subr.bf16.mxu1 %v19459_v8 }
0x12b7   :  { %7390 = vmatpush1.bf16.msra.mxu0 %v18958_v61 }
0x12b8   :  { %7391 = vmatprep.subr.bf16.mxu0 %v18963_v63 }
0x12bb   :  { %7392 = vmatpush1.bf16.msra.mxu0 %v18961_v0 }
0x12bc   :  { %7393 = vmatprep.subr.bf16.mxu0 %v18966_v2 }
0x12bf   :  { %7394 = vmatpush1.bf16.msra.mxu0 %v18964_v5 }
0x12c0   :  { %7488 = vmatprep.subr.bf16.mxu0 %v18969_v16 }
0x12c2   :  { %15200 = vmatmul.mubr.msk.bf16.vlgmr.msra.gmra.mrb[148].mxu0 %vm7365_vm6, %v7240_v17 }
0x12c3   :  { %7489 = vmatpush1.bf16.msra.mxu0 %v18967_v19  ;;  %7429 = vmatprep.mubr.bf16.mxu0 %v19461_v10 }
0x12c4   :  { %7490 = vmatprep.subr.bf16.mxu0 %v18972_v9 }
0x12c7   :  { %7491 = vmatpush1.bf16.msra.mxu0 %v18970_v23 }
0x12c8   :  { %7492 = vmatprep.subr.bf16.mxu0 %v18975_v6 }
0x12ca   :  { %15201 = vmatmul.mubr.msk.bf16.gmra.mrb[152].mxu0 %vm7365_vm6, %v7241_v15 }
0x12cb   :  { %7439 = vmatprep.mubr.bf16.mxu0 %v19461_v10  ;;  %7493 = vmatpush1.bf16.msra.mxu0 %v18973_v25  ;;  %v18996_v25 = vld [vmem:[%s24129_s10 + $0x80] sm:$0xff]  }
0x12cc   :  { %7494 = vmatprep.subr.bf16.mxu0 %v18978_v28 }
0x12cf   :  { %7495 = vmatpush1.bf16.msra.mxu0 %v18976_v4 }
0x12d0   :  { %16454 = vmatprep.subr.bf16.mxu0 %v18979_v27 }
0x12d2   :  { %15202 = vmatmul.mubr.msk.bf16.gmra.mrb[156].mxu0 %vm7365_vm6, %v7242_v24 }
0x12d3   :  { %7449 = vmatprep.mubr.bf16.mxu0 %v19461_v10 }
0x12da   :  { %15203 = vmatmul.mubr.msk.bf16.gmra.mrb[160].mxu0 %vm7365_vm6, %v7243_v33 }
0x12db   :  { %7459 = vmatprep.mubr.bf16.mxu0 %v19461_v10 }
0x12e2   :  { %15204 = vmatmul.mubr.msk.bf16.gmra.mrb[164].mxu0 %vm7365_vm6, %v7244_v14 }
0x12e3   :  { %7469 = vmatprep.mubr.bf16.mxu0 %v19461_v10 }
0x12ea   :  { %15205 = vmatmul.mubr.msk.bf16.gmra.mrb[168].mxu0 %vm7365_vm6, %v7245_v36 }
0x12eb   :  { %7479 = vmatprep.mubr.bf16.mxu0 %v19461_v10 }
0x12f2   :  { %15206 = vmatmul.mubr.msk.bf16.gmra.mrb[172].mxu0 %vm7365_vm6, %v7246_v31 }
0x12f3   :  { %7520 = vmatprep.mubr.bf16.mxu0 %v19461_v10 }
0x12fa   :  { %15207 = vmatmul.mubr.msk.bf16.vlgmr.msra.gmra.mrb[176].mxu0 %vm7365_vm6, %v7240_v17 }
0x12fb   :  { %7530 = vmatprep.mubr.bf16.mxu0 %v19461_v10  ;;  %16455 = vmatpush3.bf16.msra.mxu0 %v18980_v39  ;;  %v19000_v39 = vld [vmem:[%s24129_s10 + $0x90] sm:$0xff]  }
0x12fc   :  { %16456 = vmatprep.subr.bf16.mxu0 %v18981_v41 }
0x12ff   :  { %16457 = vmatpush3.bf16.msra.mxu0 %v18982_v42 }
0x1300   :  { %16458 = vmatprep.subr.bf16.mxu0 %v18983_v1  ;;  %v19001_v1 = vld [vmem:[%s24129_s10 + $0xd8] sm:$0xff]  }
0x1302   :  { %15208 = vmatmul.mubr.msk.bf16.gmra.mrb[180].mxu0 %vm7365_vm6, %v7241_v15 }
0x1303   :  { %7540 = vmatprep.mubr.bf16.mxu0 %v19461_v10  ;;  %16459 = vmatpush3.bf16.msra.mxu0 %v18984_v43 }
0x1304   :  { %16460 = vmatprep.subr.bf16.mxu0 %v18985_v53 }
0x1307   :  { %16461 = vmatpush3.bf16.msra.mxu0 %v18986_v45 }
0x1308   :  { %16462 = vmatprep.subr.bf16.mxu0 %v18987_v38  ;;  %v19002_v38 = vld [vmem:[%s24129_s10 + $0x98] sm:$0xff]  }
0x130a   :  { %15209 = vmatmul.mubr.msk.bf16.gmra.mrb[184].mxu0 %vm7365_vm6, %v7242_v24 }
0x130b   :  { %7550 = vmatprep.mubr.bf16.mxu0 %v19461_v10  ;;  %16463 = vmatpush3.bf16.msra.mxu0 %v18988_v49 }
0x130c   :  { %16464 = vmatprep.subr.bf16.mxu0 %v18989_v34 }
0x130f   :  { %16465 = vmatpush3.bf16.msra.mxu0 %v18990_v50 }
0x1310   :  { %16466 = vmatprep.subr.bf16.mxu0 %v18991_v52 }
0x1312   :  { %15210 = vmatmul.mubr.msk.bf16.gmra.mrb[188].mxu0 %vm7365_vm6, %v7243_v33  ;;  %v18998_v33 = vld [vmem:[%s24129_s10 + $0x88] sm:$0xff]  }
0x1313   :  { %7560 = vmatprep.mubr.bf16.mxu0 %v19461_v10  ;;  %16467 = vmatpush3.bf16.msra.mxu0 %v18992_v3 }
0x1314   :  { %16468 = vmatprep.subr.bf16.mxu0 %v18993_v55 }
0x1317   :  { %16469 = vmatpush3.bf16.msra.mxu0 %v18994_v56  ;;  %v19004_v56 = vld [vmem:[%s24129_s10 + $0xa0] sm:$0xff]  }
0x1318   :  { %16512 = vmatprep.subr.bf16.mxu0 %v18995_v57 }
0x131a   :  { %15211 = vmatmul.mubr.msk.bf16.gmra.mrb[192].mxu0 %vm7365_vm6, %v7244_v14  ;;  %v18999_v14 = vld [vmem:[%s24129_s10 + $0xd0] sm:$0xff]  }
0x131b   :  { %7570 = vmatprep.mubr.bf16.mxu0 %v19461_v10 }
0x1322   :  { %15212 = vmatmul.mubr.msk.bf16.gmra.mrb[196].mxu0 %vm7365_vm6, %v7245_v36 }
0x1323   :  { %7580 = vmatprep.mubr.bf16.mxu0 %v19461_v10  ;;  %v22015_v10 = vld [vmem:[%s24128_s9] sm:$0xf]  ;;  %s19492_s9 = smov [#allocation2]  }
0x1324   :  { %v22020_v63 = vrot.slane %v22015_v10, %v75_v26  ;;  %v22025_v0 = vrot.slane %v22015_v10, %v79_v40  ;;  %s13895_s23 = sshll.u32 %s19492_s9, 4  ;;  %s13896_s23 = int_to_ptr.vmem [resolvable:$true] %s13895_s23 }
0x1325   :  { %p19439_p1 = scmp.lt.s32.totalorder %s13896_s23, %s13896_s23 }
0x132a   :  { %15213 = vmatmul.mubr.msk.bf16.gmra.mrb[200].mxu0 %vm7365_vm6, %v7246_v31 }
0x1385   :  { %v7222_v47 = vpop.f32.mrb[144].mxu0 }
0x1386   :  { %v7223_v59 = vadd.f32 %v15181_v58, %v7222_v47  ;;  %v17073_v60 = vpop.f32.mrb[145].mxu0  ;;  %v19005_v47 = vld [vmem:[%s24129_s10 + $0xe8] sm:$0xff]  }
0x1388   :  { %v7226_v61 = vmax.f32 %v7223_v59, 0.0 }
0x138a   :  { %17133 = vmatmul.mubr.msk.f32.vlgmr.msra.gmra.mrb[34].mxu1 %vm7148_vm5, %v7226_v61 }
0x138b   :  { %17171 = vmatprep.mubr.msk.bf16.mxu1 %vm19491_vm4, %v19459_v8 }
0x1395   :  { %v7421_v2 = vpop.f32.mrb[148].mxu0 }
0x1396   :  { %v7422_v5 = vadd.f32 %v7421_v2, %v22020_v63  ;;  %v7423_v11 = vpop.f32.mrb[149].mxu0 }
0x1397   :  { %v7424_v12 = vadd.f32 %v7423_v11, %v22025_v0  ;;  %v7425_v16 = vpop.f32.mrb[150].mxu0  ;;  %v19006_v11 = vld [vmem:[%s24129_s10 + $0xa8] sm:$0xff]  }
0x1398   :  { %v7426_v17 = vadd.f32 %v7425_v16, %v22020_v63  ;;  %v7427_v19 = vpop.f32.mrb[151].mxu0  ;;  %v7589_v21 = vmax.f32 %v7422_v5, 0.0 }
0x1399   :  { %v7428_v9 = vadd.f32 %v7427_v19, %v22025_v0  ;;  %v7590_v22 = vmax.f32 %v7424_v12, 0.0 }
0x139a   :  { %v7593_v26 = vmax.f32 %v7426_v17, 0.0  ;;  %v19007_v17 = vld [vmem:[%s24129_s10 + $0xf0] sm:$0xff]  }
0x139b   :  { %v7594_v23 = vmax.f32 %v7428_v9, 0.0 }
0x139c   :  { %v7641_v6 = vpack.c.bf16 %v7593_v26, %v7589_v21 }
0x139d   :  { %v7642_v15 = vpack.c.bf16 %v7594_v23, %v7590_v22  ;;  %v7431_v40 = vpop.f32.mrb[152].mxu0  ;;  %v19008_v23 = vld [vmem:[%s24129_s10 + $0xb0] sm:$0xff]  }
0x139e   :  { %v7432_v28 = vadd.f32 %v7431_v40, %v22020_v63  ;;  %v7433_v62 = vpop.f32.mrb[153].mxu0  ;;  %v19009_v40 = vld [vmem:[%s24129_s10 + $0xf8] sm:$0xff]  }
0x139f   :  { %v7434_v4 = vadd.f32 %v7433_v62, %v22025_v0  ;;  %v7435_v27 = vpop.f32.mrb[154].mxu0  ;;  %7964 = vmatprep.mubr.bf16.mxu0 %v7642_v15 }
0x13a0   :  { %v7436_v24 = vadd.f32 %v7435_v27, %v22020_v63  ;;  %v7437_v32 = vpop.f32.mrb[155].mxu0  ;;  %7965 = vmatmul.mubr.bf16.vlgmr.msra.gmra.mrb[204].mxu0 %v7641_v6  ;;  %v7597_v7 = vmax.f32 %v7432_v28, 0.0  ;;  %v19010_v27 = vld [vmem:[%s24129_s10 + $0xb8] sm:$0xff]  }
0x13a1   :  { %v7438_v51 = vadd.f32 %v7437_v32, %v22025_v0  ;;  %16513 = vmatpush3.bf16.msra.mxu0 %v18996_v25  ;;  %v7598_v20 = vmax.f32 %v7434_v4, 0.0 }
0x13a2   :  { %v7601_v13 = vmax.f32 %v7436_v24, 0.0  ;;  %16514 = vmatprep.subr.bf16.mxu0 %v18997_v29 }
0x13a3   :  { %v7602_v35 = vmax.f32 %v7438_v51, 0.0 }
0x13a4   :  { %v7645_v36 = vpack.c.bf16 %v7601_v13, %v7597_v7 }
0x13a5   :  { %v7646_v37 = vpack.c.bf16 %v7602_v35, %v7598_v20  ;;  %v7441_v31 = vpop.f32.mrb[156].mxu0  ;;  %16515 = vmatpush3.bf16.msra.mxu0 %v18998_v33 }
0x13a6   :  { %v7442_v41 = vadd.f32 %v7441_v31, %v22020_v63  ;;  %v7443_v42 = vpop.f32.mrb[157].mxu0  ;;  %16516 = vmatprep.subr.bf16.mxu0 %v18999_v14 }
0x13a7   :  { %v7444_v43 = vadd.f32 %v7443_v42, %v22025_v0  ;;  %v7445_v53 = vpop.f32.mrb[158].mxu0  ;;  %7972 = vmatprep.mubr.bf16.mxu0 %v7646_v37 }
0x13a8   :  { %v7446_v45 = vadd.f32 %v7445_v53, %v22020_v63  ;;  %v7447_v46 = vpop.f32.mrb[159].mxu0  ;;  %7973 = vmatmul.mubr.bf16.gmra.mrb[208].mxu0 %v7645_v36  ;;  %v7605_v48 = vmax.f32 %v7442_v41, 0.0 }
0x13a9   :  { %v7448_v44 = vadd.f32 %v7447_v46, %v22025_v0  ;;  %16517 = vmatpush3.bf16.msra.mxu0 %v19000_v39  ;;  %v7606_v34 = vmax.f32 %v7444_v43, 0.0 }
0x13aa   :  { %v7609_v49 = vmax.f32 %v7446_v45, 0.0  ;;  %16518 = vmatprep.subr.bf16.mxu0 %v19001_v1 }
0x13ab   :  { %v7610_v50 = vmax.f32 %v7448_v44, 0.0 }
0x13ac   :  { %v7649_v52 = vpack.c.bf16 %v7609_v49, %v7605_v48  ;;  %v7275_v49 = vsub.s32 2, %v19653_v18 }
0x13ad   :  { %v7650_v3 = vpack.c.bf16 %v7610_v50, %v7606_v34  ;;  %v7451_v55 = vpop.f32.mrb[160].mxu0  ;;  %16519 = vmatpush3.bf16.msra.mxu0 %v19002_v38  ;;  %v7279_v50 = vsub.s32 3, %v19653_v18 }
0x13ae   :  { %v7452_v57 = vadd.f32 %v7451_v55, %v22020_v63  ;;  %v7453_v58 = vpop.f32.mrb[161].mxu0  ;;  %16520 = vmatprep.subr.bf16.mxu0 %v19003_v54 }
0x13af   :  { %v7454_v59 = vadd.f32 %v7453_v58, %v22025_v0  ;;  %v7455_v60 = vpop.f32.mrb[162].mxu0  ;;  %7980 = vmatprep.mubr.bf16.mxu0 %v7650_v3  ;;  %v22105_v58 = vrot.slane %v22015_v10, %v7279_v50 }
0x13b0   :  { %v7456_v61 = vadd.f32 %v7455_v60, %v22020_v63  ;;  %v7457_v2 = vpop.f32.mrb[163].mxu0  ;;  %7981 = vmatmul.mubr.bf16.gmra.mrb[212].mxu0 %v7649_v52  ;;  %v7613_v12 = vmax.f32 %v7452_v57, 0.0 }
0x13b1   :  { %v7458_v5 = vadd.f32 %v7457_v2, %v22025_v0  ;;  %16521 = vmatpush3.bf16.msra.mxu0 %v19004_v56  ;;  %v7614_v19 = vmax.f32 %v7454_v59, 0.0  ;;  %v22102_v56 = vrot.slane %v22015_v10, %v7275_v49 }
0x13b2   :  { %v7617_v16 = vmax.f32 %v7456_v61, 0.0  ;;  %16522 = vmatprep.subr.bf16.mxu0 %v19005_v47 }
0x13b3   :  { %v7618_v9 = vmax.f32 %v7458_v5, 0.0 }
0x13b4   :  { %v7653_v21 = vpack.c.bf16 %v7617_v16, %v7613_v12 }
0x13b5   :  { %v7654_v26 = vpack.c.bf16 %v7618_v9, %v7614_v19  ;;  %v7461_v22 = vpop.f32.mrb[164].mxu0  ;;  %16523 = vmatpush3.bf16.msra.mxu0 %v19006_v11 }
0x13b6   :  { %v7462_v6 = vadd.f32 %v7461_v22, %v22020_v63  ;;  %v7463_v15 = vpop.f32.mrb[165].mxu0  ;;  %16524 = vmatprep.subr.bf16.mxu0 %v19007_v17 }
0x13b7   :  { %v7464_v25 = vadd.f32 %v7463_v15, %v22025_v0  ;;  %v7465_v28 = vpop.f32.mrb[166].mxu0  ;;  %7988 = vmatprep.mubr.bf16.mxu0 %v7654_v26 }
0x13b8   :  { %v7466_v62 = vadd.f32 %v7465_v28, %v22020_v63  ;;  %v7467_v29 = vpop.f32.mrb[167].mxu0  ;;  %7989 = vmatmul.mubr.bf16.gmra.mrb[216].mxu0 %v7653_v21  ;;  %v7621_v24 = vmax.f32 %v7462_v6, 0.0 }
0x13b9   :  { %v7468_v4 = vadd.f32 %v7467_v29, %v22025_v0  ;;  %16525 = vmatpush3.bf16.msra.mxu0 %v19008_v23  ;;  %v7622_v51 = vmax.f32 %v7464_v25, 0.0 }
0x13ba   :  { %v7625_v32 = vmax.f32 %v7466_v62, 0.0  ;;  %16526 = vmatprep.subr.bf16.mxu0 %v19009_v40 }
0x13bb   :  { %v7626_v33 = vmax.f32 %v7468_v4, 0.0 }
0x13bc   :  { %v7657_v7 = vpack.c.bf16 %v7625_v32, %v7621_v24 }
0x13bd   :  { %v7658_v13 = vpack.c.bf16 %v7626_v33, %v7622_v51  ;;  %v7471_v14 = vpop.f32.mrb[168].mxu0  ;;  %16527 = vmatpush3.bf16.msra.mxu0 %v19010_v27 }
0x13be   :  { %v7472_v20 = vadd.f32 %v7471_v14, %v22020_v63  ;;  %v7473_v35 = vpop.f32.mrb[169].mxu0  ;;  %17074 = vmatprep.subr.bf16.mxu0 %v19459_v8 }
0x13bf   :  { %v7474_v36 = vadd.f32 %v7473_v35, %v22025_v0  ;;  %v7475_v37 = vpop.f32.mrb[170].mxu0  ;;  %7996 = vmatprep.mubr.bf16.mxu0 %v7658_v13 }
0x13c0   :  { %v7476_v31 = vadd.f32 %v7475_v37, %v22020_v63  ;;  %v7477_v39 = vpop.f32.mrb[171].mxu0  ;;  %7997 = vmatmul.mubr.bf16.gmra.mrb[220].mxu0 %v7657_v7  ;;  %v7629_v42 = vmax.f32 %v7472_v20, 0.0 }
0x13c1   :  { %v7478_v41 = vadd.f32 %v7477_v39, %v22025_v0  ;;  %v7630_v43 = vmax.f32 %v7474_v36, 0.0 }
0x13c2   :  { %v7633_v1 = vmax.f32 %v7476_v31, 0.0 }
0x13c3   :  { %v7634_v53 = vmax.f32 %v7478_v41, 0.0 }
0x13c4   :  { %v7661_v45 = vpack.c.bf16 %v7633_v1, %v7629_v42 }
0x13c5   :  { %v7662_v46 = vpack.c.bf16 %v7634_v53, %v7630_v43  ;;  %v7481_v44 = vpop.f32.mrb[172].mxu0 }
0x13c6   :  { %v7482_v38 = vadd.f32 %v7481_v44, %v22020_v63  ;;  %v7483_v48 = vpop.f32.mrb[173].mxu0 }
0x13c7   :  { %v7484_v54 = vadd.f32 %v7483_v48, %v22025_v0  ;;  %v7485_v34 = vpop.f32.mrb[174].mxu0  ;;  %8004 = vmatprep.mubr.bf16.mxu0 %v7662_v46 }
0x13c8   :  { %v7486_v52 = vpop.f32.mrb[175].mxu0  ;;  %8005 = vmatmul.mubr.bf16.gmra.mrb[224].mxu0 %v7661_v45  ;;  %v7637_v55 = vmax.f32 %v7482_v38, 0.0 }
0x13c9   :  { %v7638_v3 = vmax.f32 %v7484_v54, 0.0 }
0x13ca   :  { %v7665_v47 = vpack.c.bf16 %v7637_v55, %v7637_v55 }
0x13cb   :  { %v7666_v57 = vpack.c.bf16 %v7638_v3, %v7638_v3 }
0x13cd   :  { %v7522_v63 = vpop.f32.mrb[176].mxu0  ;;  %8012 = vmatprep.mubr.bf16.mxu0 %v7666_v57 }
0x13ce   :  { %v7523_v0 = vadd.f32 %v7522_v63, %v22102_v56  ;;  %v7524_v59 = vpop.f32.mrb[177].mxu0 }
0x13cf   :  { %v7525_v60 = vadd.f32 %v7524_v59, %v22105_v58  ;;  %v7526_v18 = vpop.f32.mrb[178].mxu0 }
0x13d0   :  { %v7527_v61 = vadd.f32 %v7526_v18, %v22102_v56  ;;  %v7528_v2 = vpop.f32.mrb[179].mxu0  ;;  %8013 = vmatmul.mubr.bf16.gmra.mrb[228].mxu0 %v7665_v47  ;;  %v7591_v11 = vmax.f32 %v7523_v0, 0.0 }
0x13d1   :  { %v7529_v5 = vadd.f32 %v7528_v2, %v22105_v58  ;;  %v7592_v16 = vmax.f32 %v7525_v60, 0.0 }
0x13d2   :  { %v7595_v12 = vmax.f32 %v7527_v61, 0.0 }
0x13d3   :  { %v7596_v10 = vmax.f32 %v7529_v5, 0.0 }
0x13d4   :  { %v7643_v17 = vpack.c.bf16 %v7595_v12, %v7591_v11 }
0x13d5   :  { %v7644_v19 = vpack.c.bf16 %v7596_v10, %v7592_v16  ;;  %v7532_v9 = vpop.f32.mrb[180].mxu0 }
0x13d6   :  { %v7533_v21 = vadd.f32 %v7532_v9, %v22102_v56  ;;  %v7534_v26 = vpop.f32.mrb[181].mxu0 }
0x13d7   :  { %v7535_v22 = vadd.f32 %v7534_v26, %v22105_v58  ;;  %v7536_v23 = vpop.f32.mrb[182].mxu0  ;;  %8052 = vmatprep.mubr.bf16.mxu0 %v7644_v19 }
0x13d8   :  { %v7599_v6 = vmax.f32 %v7533_v21, 0.0  ;;  %v7537_v15 = vadd.f32 %v7536_v23, %v22102_v56  ;;  %v7538_v40 = vpop.f32.mrb[183].mxu0  ;;  %8053 = vmatmul.mubr.bf16.vlgmr.msra.gmra.mrb[232].mxu0 %v7643_v17 }
0x13d9   :  { %v7600_v25 = vmax.f32 %v7535_v22, 0.0  ;;  %v7539_v28 = vadd.f32 %v7538_v40, %v22105_v58 }
0x13da   :  { %v7603_v62 = vmax.f32 %v7537_v15, 0.0 }
0x13db   :  { %v7604_v29 = vmax.f32 %v7539_v28, 0.0 }
0x13dc   :  { %v7647_v4 = vpack.c.bf16 %v7603_v62, %v7599_v6 }
0x13dd   :  { %v7648_v27 = vpack.c.bf16 %v7604_v29, %v7600_v25  ;;  %v7542_v24 = vpop.f32.mrb[184].mxu0 }
0x13de   :  { %v7543_v32 = vadd.f32 %v7542_v24, %v22102_v56  ;;  %v7544_v51 = vpop.f32.mrb[185].mxu0 }
0x13df   :  { %v7545_v33 = vadd.f32 %v7544_v51, %v22105_v58  ;;  %v7546_v7 = vpop.f32.mrb[186].mxu0  ;;  %8060 = vmatprep.mubr.bf16.mxu0 %v7648_v27 }
0x13e0   :  { %v7607_v13 = vmax.f32 %v7543_v32, 0.0  ;;  %v7547_v14 = vadd.f32 %v7546_v7, %v22102_v56  ;;  %v7548_v20 = vpop.f32.mrb[187].mxu0  ;;  %8061 = vmatmul.mubr.bf16.gmra.mrb[236].mxu0 %v7647_v4  ;;  %v19011_v7 = vld [vmem:[%s24131_s12] sm:$0xff]  }
0x13e1   :  { %v7608_v35 = vmax.f32 %v7545_v33, 0.0  ;;  %v7549_v36 = vadd.f32 %v7548_v20, %v22105_v58  ;;  %17075 = vmatpush3.bf16.msra.mxu0 %v19011_v7  ;;  %v19014_v20 = vld [vmem:[%s24131_s12 + $0x18] sm:$0xff]  }
0x13e2   :  { %v7611_v37 = vmax.f32 %v7547_v14, 0.0  ;;  %17076 = vmatprep.subr.bf16.mxu0 %v19459_v8 }
0x13e3   :  { %v7612_v31 = vmax.f32 %v7549_v36, 0.0  ;;  %v19016_v36 = vld [vmem:[%s24131_s12 + $0x28] sm:$0xff]  }
0x13e4   :  { %v7651_v39 = vpack.c.bf16 %v7611_v37, %v7607_v13  ;;  %v19017_v37 = vld [vmem:[%s24131_s12 + $0x30] sm:$0xff]  }
0x13e5   :  { %v7652_v41 = vpack.c.bf16 %v7612_v31, %v7608_v35  ;;  %v7552_v42 = vpop.f32.mrb[188].mxu0  ;;  %v19015_v35 = vld [vmem:[%s24131_s12 + $0x20] sm:$0xff]   ;;  %v19018_v31 = vld [vmem:[%s24131_s12 + $0x38] sm:$0xff]  }
0x13e6   :  { %v7553_v1 = vadd.f32 %v7552_v42, %v22102_v56  ;;  %v7554_v43 = vpop.f32.mrb[189].mxu0  ;;  %v19020_v42 = vld [vmem:[%s24133_s14 + $0x40] sm:$0xff]  }
0x13e7   :  { %v7555_v53 = vadd.f32 %v7554_v43, %v22105_v58  ;;  %v7556_v45 = vpop.f32.mrb[190].mxu0  ;;  %8068 = vmatprep.mubr.bf16.mxu0 %v7652_v41  ;;  %17156 = vmatpush3.bf16.msra.mxu1 %v19020_v42  ;;  %v19024_v43 = vld [vmem:[%s24133_s14 + $0x50] sm:$0xff]  }
0x13e8   :  { %v7615_v46 = vmax.f32 %v7553_v1, 0.0  ;;  %v7557_v44 = vadd.f32 %v7556_v45, %v22102_v56  ;;  %v7558_v38 = vpop.f32.mrb[191].mxu0  ;;  %8069 = vmatmul.mubr.bf16.gmra.mrb[240].mxu0 %v7651_v39  ;;  %v19022_v1 = vld [vmem:[%s24133_s14 + $0x48] sm:$0xff]   ;;  %17157 = vmatprep.subr.bf16.mxu1 %v19459_v8 }
0x13e9   :  { %v7616_v48 = vmax.f32 %v7555_v53, 0.0  ;;  %v7559_v49 = vadd.f32 %v7558_v38, %v22105_v58  ;;  %v19026_v53 = vld [vmem:[%s24133_s14 + $0x58] sm:$0xff]  }
0x13ea   :  { %v7619_v54 = vmax.f32 %v7557_v44, 0.0 }
0x13eb   :  { %v7620_v34 = vmax.f32 %v7559_v49, 0.0  ;;  %17158 = vmatpush3.bf16.msra.mxu1 %v19022_v1  ;;  %v19019_v1 = vld [vmem:[%s24133_s14] sm:$0xff]  }
0x13ec   :  { %v7655_v50 = vpack.c.bf16 %v7619_v54, %v7615_v46  ;;  %17159 = vmatprep.subr.bf16.mxu1 %v19459_v8 }
0x13ed   :  { %v7656_v52 = vpack.c.bf16 %v7620_v34, %v7616_v48  ;;  %v7562_v3 = vpop.f32.mrb[192].mxu0  ;;  %v19028_v48 = vld [vmem:[%s24133_s14 + $0x60] sm:$0xff]   ;;  %v19030_v34 = vld [vmem:[%s24133_s14 + $0x68] sm:$0xff]  }
0x13ee   :  { %v7563_v55 = vadd.f32 %v7562_v3, %v22102_v56  ;;  %v7564_v57 = vpop.f32.mrb[193].mxu0 }
0x13ef   :  { %v7565_v63 = vadd.f32 %v7564_v57, %v22105_v58  ;;  %v7566_v47 = vpop.f32.mrb[194].mxu0  ;;  %8076 = vmatprep.mubr.bf16.mxu0 %v7656_v52  ;;  %17160 = vmatpush3.bf16.msra.mxu1 %v19024_v43 }
0x13f0   :  { %v7623_v0 = vmax.f32 %v7563_v55, 0.0  ;;  %v7567_v59 = vadd.f32 %v7566_v47, %v22102_v56  ;;  %v7568_v60 = vpop.f32.mrb[195].mxu0  ;;  %8077 = vmatmul.mubr.bf16.gmra.mrb[244].mxu0 %v7655_v50  ;;  %17161 = vmatprep.subr.bf16.mxu1 %v19459_v8 }
0x13f1   :  { %v7624_v18 = vmax.f32 %v7565_v63, 0.0  ;;  %v7569_v61 = vadd.f32 %v7568_v60, %v22105_v58 }
0x13f2   :  { %v7627_v2 = vmax.f32 %v7567_v59, 0.0 }
0x13f3   :  { %v7628_v5 = vmax.f32 %v7569_v61, 0.0  ;;  %17162 = vmatpush3.bf16.msra.mxu1 %v19026_v53 }
0x13f4   :  { %v7659_v11 = vpack.c.bf16 %v7627_v2, %v7623_v0  ;;  %17163 = vmatprep.subr.bf16.mxu1 %v19459_v8 }
0x13f5   :  { %v7660_v12 = vpack.c.bf16 %v7628_v5, %v7624_v18  ;;  %v7572_v16 = vpop.f32.mrb[196].mxu0 }
0x13f6   :  { %v7573_v10 = vadd.f32 %v7572_v16, %v22102_v56  ;;  %v7574_v17 = vpop.f32.mrb[197].mxu0 }
0x13f7   :  { %v7575_v19 = vadd.f32 %v7574_v17, %v22105_v58  ;;  %v7576_v9 = vpop.f32.mrb[198].mxu0  ;;  %8084 = vmatprep.mubr.bf16.mxu0 %v7660_v12  ;;  %17164 = vmatpush3.bf16.msra.mxu1 %v19028_v48 }
0x13f8   :  { %v7631_v21 = vmax.f32 %v7573_v10, 0.0  ;;  %v7577_v26 = vadd.f32 %v7576_v9, %v22102_v56  ;;  %v7578_v22 = vpop.f32.mrb[199].mxu0  ;;  %8085 = vmatmul.mubr.bf16.gmra.mrb[248].mxu0 %v7659_v11  ;;  %17165 = vmatprep.subr.bf16.mxu1 %v19459_v8 }
0x13f9   :  { %v7632_v23 = vmax.f32 %v7575_v19, 0.0  ;;  %v7579_v6 = vadd.f32 %v7578_v22, %v22105_v58 }
0x13fa   :  { %v7635_v15 = vmax.f32 %v7577_v26, 0.0 }
0x13fb   :  { %v7636_v40 = vmax.f32 %v7579_v6, 0.0  ;;  %17166 = vmatpush3.bf16.msra.mxu1 %v19030_v34 }
0x13fc   :  { %v7663_v25 = vpack.c.bf16 %v7635_v15, %v7631_v21  ;;  %17167 = vmatprep.subr.bf16.mxu1 %v19459_v8 }
0x13fd   :  { %v7664_v28 = vpack.c.bf16 %v7636_v40, %v7632_v23  ;;  %v7582_v62 = vpop.f32.mrb[200].mxu0 }
0x13fe   :  { %v7583_v29 = vadd.f32 %v7582_v62, %v22102_v56  ;;  %v7584_v4 = vpop.f32.mrb[201].mxu0  ;;  %v19012_v56 = vld [vmem:[%s24131_s12 + $0x8] sm:$0xff]  }
0x13ff   :  { %8092 = vmatprep.mubr.bf16.mxu0 %v7664_v28  ;;  %v7585_v27 = vadd.f32 %v7584_v4, %v22105_v58  ;;  %v7586_v24 = vpop.f32.mrb[202].mxu0  ;;  %17077 = vmatpush3.bf16.msra.mxu0 %v19012_v56  ;;  %v19013_v58 = vld [vmem:[%s24131_s12 + $0x10] sm:$0xff]  }
0x1400   :  { %v7639_v32 = vmax.f32 %v7583_v29, 0.0  ;;  %8093 = vmatmul.mubr.bf16.gmra.mrb[252].mxu0 %v7663_v25  ;;  %v7587_v51 = vpop.f32.mrb[203].mxu0  ;;  %17078 = vmatprep.subr.bf16.mxu0 %v19459_v8 }
0x1401   :  { %v7640_v33 = vmax.f32 %v7585_v27, 0.0 }
0x1402   :  { %v7667_v14 = vpack.c.bf16 %v7639_v32, %v7639_v32  ;;  %v22214_v32 = vld [vmem:[%s24130_s11] ss:$0 sm:$0xff] }
0x1403   :  { %v7668_v13 = vpack.c.bf16 %v7640_v33, %v7640_v33  ;;  %17079 = vmatpush3.bf16.msra.mxu0 %v19013_v58 }
0x1404   :  { %17080 = vmatprep.subr.bf16.mxu0 %v19459_v8 }
0x1405   :  { %8100 = vmatprep.mubr.bf16.mxu0 %v7668_v13 }
0x1407   :  { %17081 = vmatpush3.bf16.msra.mxu0 %v19014_v20 }
0x1408   :  { %8101 = vmatmul.mubr.bf16.gmra.mrb[0].mxu0 %v7667_v14  ;;  %17082 = vmatprep.subr.bf16.mxu0 %v19459_v8 }
0x1409   :  { %17090 = vmatprep.mubr.msk.bf16.mxu0 %vm19491_vm4, %v19459_v8 }
0x140b   :  { %17083 = vmatpush3.bf16.msra.mxu0 %v19015_v35 }
0x140c   :  { %17084 = vmatprep.subr.bf16.mxu0 %v19459_v8 }
0x140f   :  { %17085 = vmatpush3.bf16.msra.mxu0 %v19016_v36 }
0x1410   :  { %17086 = vmatprep.subr.bf16.mxu0 %v19459_v8 }
0x1413   :  { %17087 = vmatpush3.bf16.msra.mxu0 %v19017_v37 }
0x1414   :  { %17088 = vmatprep.subr.bf16.mxu0 %v19459_v8 }
0x1417   :  { %17089 = vmatpush3.bf16.msra.mxu0 %v19018_v31 }
0x1418   :  { %17135 = vmatprep.subr.bf16.mxu0 %v19459_v8 }
0x145d   :  { %v22167_v39 = vpop.f32.mrb[34].mxu1 }
0x145e   :  { %v17134_v41 = vpop.f32.mrb[35].mxu1 }
0x1473   :  { %v16470_v45 = vpop.f32.mrb[204].mxu0 }
0x1474   :  { %v16471_v46 = vpop.f32.mrb[205].mxu0 }
0x1475   :  { %v16472_v44 = vadd.f32 %v16471_v46, %v16470_v45  ;;  %v16473_v38 = vpop.f32.mrb[206].mxu0 }
0x1476   :  { %v16474_v49 = vpop.f32.mrb[207].mxu0 }
0x1477   :  { %v16475_v54 = vadd.f32 %v16474_v49, %v16473_v38  ;;  %v7967_v7 = vadd.f32 %v16472_v44, %v22214_v32 }
0x1479   :  { %v7970_v58 = vadd.f32 %v16475_v54, %v22214_v32  ;;  %v19021_v54 = vld [vmem:[%s24133_s14 + $0x8] sm:$0xff]  }
0x147b   :  { %v16476_v50 = vpop.f32.mrb[208].mxu0 }
0x147c   :  { %v16477_v52 = vpop.f32.mrb[209].mxu0 }
0x147d   :  { %v16478_v3 = vadd.f32 %v16477_v52, %v16476_v50  ;;  %v16479_v55 = vpop.f32.mrb[210].mxu0 }
0x147e   :  { %v16480_v57 = vpop.f32.mrb[211].mxu0 }
0x147f   :  { %v16481_v63 = vadd.f32 %v16480_v57, %v16479_v55  ;;  %v7975_v43 = vadd.f32 %v16478_v3, %v22214_v32  ;;  %v19023_v57 = vld [vmem:[%s24133_s14 + $0x10] sm:$0xff]  }
0x1481   :  { %v7978_v38 = vadd.f32 %v16481_v63, %v22214_v32 }
0x1483   :  { %v16482_v47 = vpop.f32.mrb[212].mxu0 }
0x1484   :  { %v16483_v0 = vpop.f32.mrb[213].mxu0 }
0x1485   :  { %v22193_v59 = vadd.f32 %v16483_v0, %v16482_v47  ;;  %v16485_v60 = vpop.f32.mrb[214].mxu0 }
0x1486   :  { %v16486_v18 = vpop.f32.mrb[215].mxu0 }
0x1487   :  { %v22195_v61 = vadd.f32 %v16486_v18, %v16485_v60  ;;  %v7983_v63 = vadd.f32 %v22193_v59, %v22214_v32  ;;  %v19025_v59 = vld [vmem:[%s24133_s14 + $0x18] sm:$0xff]  }
0x148b   :  { %v16488_v2 = vpop.f32.mrb[216].mxu0 }
0x148c   :  { %v16489_v5 = vpop.f32.mrb[217].mxu0 }
0x148d   :  { %v22197_v11 = vadd.f32 %v16489_v5, %v16488_v2  ;;  %v16491_v12 = vpop.f32.mrb[218].mxu0  ;;  %v7986_v2 = vadd.f32 %v22195_v61, %v22214_v32  ;;  %v19027_v61 = vld [vmem:[%s24133_s14 + $0x20] sm:$0xff]  }
0x148e   :  { %v16492_v16 = vpop.f32.mrb[219].mxu0 }
0x148f   :  { %v22199_v10 = vadd.f32 %v16492_v16, %v16491_v12 }
0x1493   :  { %v16494_v17 = vpop.f32.mrb[220].mxu0 }
0x1494   :  { %v16495_v19 = vpop.f32.mrb[221].mxu0 }
0x1495   :  { %v22201_v9 = vadd.f32 %v16495_v19, %v16494_v17  ;;  %v16497_v21 = vpop.f32.mrb[222].mxu0 }
0x1496   :  { %v16498_v26 = vpop.f32.mrb[223].mxu0 }
0x1497   :  { %v22203_v22 = vadd.f32 %v16498_v26, %v16497_v21 }
0x149b   :  { %v16500_v23 = vpop.f32.mrb[224].mxu0 }
0x149c   :  { %v16501_v6 = vpop.f32.mrb[225].mxu0 }
0x149d   :  { %v22205_v15 = vadd.f32 %v16501_v6, %v16500_v23  ;;  %v16503_v40 = vpop.f32.mrb[226].mxu0  ;;  %v7991_v23 = vadd.f32 %v22197_v11, %v22214_v32  ;;  %v19029_v11 = vld [vmem:[%s24133_s14 + $0x28] sm:$0xff]  }
0x149e   :  { %v16504_v25 = vpop.f32.mrb[227].mxu0 }
0x149f   :  { %v22207_v28 = vadd.f32 %v16504_v25, %v16503_v40 }
0x14a3   :  { %v16506_v62 = vpop.f32.mrb[228].mxu0 }
0x14a4   :  { %v16507_v29 = vpop.f32.mrb[229].mxu0 }
0x14a5   :  { %v22209_v4 = vadd.f32 %v16507_v29, %v16506_v62  ;;  %v16509_v27 = vpop.f32.mrb[230].mxu0  ;;  %v7994_v29 = vadd.f32 %v22199_v10, %v22214_v32  ;;  %v7999_v10 = vadd.f32 %v22201_v9, %v22214_v32 }
0x14a6   :  { %v16510_v24 = vpop.f32.mrb[231].mxu0 }
0x14ab   :  { %v16528_v51 = vpop.f32.mrb[232].mxu0 }
0x14ac   :  { %v16529_v33 = vpop.f32.mrb[233].mxu0 }
0x14ad   :  { %v16530_v13 = vadd.f32 %v16529_v33, %v16528_v51  ;;  %v16531_v14 = vpop.f32.mrb[234].mxu0 }
0x14ae   :  { %v16532_v56 = vpop.f32.mrb[235].mxu0 }
0x14af   :  { %v8055_v20 = vadd.f32 %v16530_v13, %v7967_v7  ;;  %v16533_v35 = vadd.f32 %v16532_v56, %v16531_v14 }
0x14b1   :  { %v8058_v36 = vadd.f32 %v16533_v35, %v7970_v58  ;;  %v8108_v37 = vmax.f32 %v8055_v20, 0.0 }
0x14b3   :  { %v8109_v31 = vmax.f32 %v8058_v36, 0.0  ;;  %v16534_v41 = vpop.f32.mrb[236].mxu0  ;;  %v8002_v36 = vadd.f32 %v22203_v22, %v22214_v32  ;;  %v8010_v22 = vadd.f32 %v22207_v28, %v22214_v32 }
0x14b4   :  { %v16535_v42 = vpop.f32.mrb[237].mxu0 }
0x14b5   :  { %v8121_v53 = vpack.c.bf16 %v8109_v31, %v8108_v37  ;;  %v16536_v45 = vadd.f32 %v16535_v42, %v16534_v41  ;;  %v16537_v46 = vpop.f32.mrb[238].mxu0 }
0x14b6   :  { %v16538_v44 = vpop.f32.mrb[239].mxu0 }
0x14b7   :  { %v8063_v48 = vadd.f32 %v16536_v45, %v7975_v43  ;;  %v16539_v49 = vadd.f32 %v16538_v44, %v16537_v46  ;;  %17091 = vmatmul.mubr.bf16.vlgmr.msra.gmra.mrb[4].mxu0 %v8121_v53  ;;  %v8007_v53 = vadd.f32 %v22205_v15, %v22214_v32  ;;  %v8015_v15 = vadd.f32 %v22209_v4, %v22214_v32  ;;  %v19032_v4 = vld [vmem:[%s24133_s14 + $0x70] sm:$0xff]   ;;  %v19033_v32 = vld [vmem:[%s24133_s14 + $0x38] sm:$0xff]  }
0x14b8   :  { %17094 = vmatprep.mubr.msk.bf16.mxu0 %vm19491_vm4, %v19459_v8  ;;  %17136 = vmatpush3.bf16.msra.mxu0 %v19019_v1 }
0x14b9   :  { %v8066_v34 = vadd.f32 %v16539_v49, %v7978_v38  ;;  %17137 = vmatprep.subr.bf16.mxu0 %v19459_v8  ;;  %v8110_v50 = vmax.f32 %v8063_v48, 0.0  ;;  %17168 = vmatpush3.bf16.msra.mxu1 %v19032_v4  ;;  %v19047_v4 = vld [vmem:[%s24133_s14 + $0xe0] sm:$0xff]  }
0x14ba   :  { %17169 = vmatprep.subr.bf16.mxu1 %v19459_v8 }
0x14bb   :  { %v8111_v52 = vmax.f32 %v8066_v34, 0.0  ;;  %v16540_v3 = vpop.f32.mrb[240].mxu0 }
0x14bc   :  { %v16541_v55 = vpop.f32.mrb[241].mxu0  ;;  %17138 = vmatpush3.bf16.msra.mxu0 %v19021_v54 }
0x14bd   :  { %v8122_v47 = vpack.c.bf16 %v8111_v52, %v8110_v50  ;;  %v16542_v0 = vadd.f32 %v16541_v55, %v16540_v3  ;;  %v16543_v60 = vpop.f32.mrb[242].mxu0  ;;  %17139 = vmatprep.subr.bf16.mxu0 %v19459_v8 }
0x14be   :  { %v16544_v18 = vpop.f32.mrb[243].mxu0 }
0x14bf   :  { %v8071_v5 = vadd.f32 %v16542_v0, %v7983_v63  ;;  %v16545_v12 = vadd.f32 %v16544_v18, %v16543_v60  ;;  %17095 = vmatmul.mubr.bf16.gmra.mrb[8].mxu0 %v8122_v47  ;;  %v19031_v18 = vld [vmem:[%s24133_s14 + $0x30] sm:$0xff]  }
0x14c0   :  { %17098 = vmatprep.mubr.msk.bf16.mxu0 %vm19491_vm4, %v19459_v8  ;;  %17140 = vmatpush3.bf16.msra.mxu0 %v19023_v57 }
0x14c1   :  { %v8074_v16 = vadd.f32 %v16545_v12, %v7986_v2  ;;  %17141 = vmatprep.subr.bf16.mxu0 %v19459_v8  ;;  %v8112_v17 = vmax.f32 %v8071_v5, 0.0  ;;  %v19034_v2 = vld [vmem:[%s24133_s14 + $0x78] sm:$0xff]   ;;  %v22295_v5 = vld [vmem:[%s24151_s26] ss:$0 sm:$0xff] }
0x14c2   :  { %17170 = vmatpush3.bf16.msra.mxu1 %v19034_v2  ;;  %v19049_v2 = vld [vmem:[%s24133_s14 + $0xf0] sm:$0xff]  }
0x14c3   :  { %v8113_v19 = vmax.f32 %v8074_v16, 0.0  ;;  %v16546_v21 = vpop.f32.mrb[244].mxu0  ;;  %17175 = vmatprep.subr.bf16.mxu1 %v19459_v8 }
0x14c4   :  { %v16547_v26 = vpop.f32.mrb[245].mxu0  ;;  %17142 = vmatpush3.bf16.msra.mxu0 %v19025_v59 }
0x14c5   :  { %v8123_v6 = vpack.c.bf16 %v8113_v19, %v8112_v17  ;;  %v16548_v40 = vadd.f32 %v16547_v26, %v16546_v21  ;;  %v16549_v25 = vpop.f32.mrb[246].mxu0  ;;  %17143 = vmatprep.subr.bf16.mxu0 %v19459_v8 }
0x14c6   :  { %v16550_v62 = vpop.f32.mrb[247].mxu0 }
0x14c7   :  { %v8079_v27 = vadd.f32 %v16548_v40, %v7991_v23  ;;  %v16551_v24 = vadd.f32 %v16550_v62, %v16549_v25  ;;  %17099 = vmatmul.mubr.bf16.gmra.mrb[12].mxu0 %v8123_v6  ;;  %v19035_v23 = vld [vmem:[%s24133_s14 + $0x80] sm:$0xff]  }
0x14c8   :  { %17102 = vmatprep.mubr.msk.bf16.mxu0 %vm19491_vm4, %v19459_v8  ;;  %17144 = vmatpush3.bf16.msra.mxu0 %v19027_v61 }
0x14c9   :  { %v8082_v51 = vadd.f32 %v16551_v24, %v7994_v29  ;;  %17145 = vmatprep.subr.bf16.mxu0 %v19459_v8  ;;  %v8114_v33 = vmax.f32 %v8079_v27, 0.0  ;;  %v19036_v27 = vld [vmem:[%s24133_s14 + $0x88] sm:$0xff]  }
0x14cb   :  { %v8115_v7 = vmax.f32 %v8082_v51, 0.0  ;;  %v16552_v13 = vpop.f32.mrb[248].mxu0  ;;  %v19037_v51 = vld [vmem:[%s24133_s14 + $0x90] sm:$0xff]  }
0x14cc   :  { %v16553_v14 = vpop.f32.mrb[249].mxu0  ;;  %17146 = vmatpush3.bf16.msra.mxu0 %v19029_v11 }
0x14cd   :  { %v8124_v56 = vpack.c.bf16 %v8115_v7, %v8114_v33  ;;  %v16554_v58 = vadd.f32 %v16553_v14, %v16552_v13  ;;  %v16555_v20 = vpop.f32.mrb[250].mxu0  ;;  %17147 = vmatprep.subr.bf16.mxu0 %v19459_v8 }
0x14ce   :  { %v16556_v35 = vpop.f32.mrb[251].mxu0 }
0x14cf   :  { %v8087_v37 = vadd.f32 %v16554_v58, %v7999_v10  ;;  %v16557_v31 = vadd.f32 %v16556_v35, %v16555_v20  ;;  %17103 = vmatmul.mubr.bf16.gmra.mrb[16].mxu0 %v8124_v56  ;;  %v19038_v10 = vld [vmem:[%s24133_s14 + $0x98] sm:$0xff]   ;;  %v19039_v20 = vld [vmem:[%s24133_s14 + $0xa0] sm:$0xff]  }
0x14d0   :  { %17106 = vmatprep.mubr.msk.bf16.mxu0 %vm19491_vm4, %v19459_v8  ;;  %17148 = vmatpush3.bf16.msra.mxu0 %v19031_v18 }
0x14d1   :  { %v8090_v41 = vadd.f32 %v16557_v31, %v8002_v36  ;;  %v8116_v42 = vmax.f32 %v8087_v37, 0.0  ;;  %17149 = vmatprep.subr.bf16.mxu0 %v19459_v8 }
0x14d3   :  { %v8117_v1 = vmax.f32 %v8090_v41, 0.0  ;;  %v16558_v43 = vpop.f32.mrb[252].mxu0  ;;  %v19040_v41 = vld [vmem:[%s24133_s14 + $0xa8] sm:$0xff]  }
0x14d4   :  { %v16559_v9 = vpop.f32.mrb[253].mxu0  ;;  %17150 = vmatpush3.bf16.msra.mxu0 %v19033_v32  ;;  %v19048_v32 = vld [vmem:[%s24133_s14 + $0xe8] sm:$0xff]  }
0x14d5   :  { %v8125_v45 = vpack.c.bf16 %v8117_v1, %v8116_v42  ;;  %v16560_v46 = vadd.f32 %v16559_v9, %v16558_v43  ;;  %v16561_v44 = vpop.f32.mrb[254].mxu0  ;;  %18306 = vmatprep.subr.bf16.mxu0 %v19490_v30  ;;  %v19041_v43 = vld [vmem:[%s24133_s14 + $0xb0] sm:$0xff]  }
0x14d6   :  { %v16562_v38 = vpop.f32.mrb[255].mxu0 }
0x14d7   :  { %v8095_v48 = vadd.f32 %v16560_v46, %v8007_v53  ;;  %v16563_v49 = vadd.f32 %v16562_v38, %v16561_v44  ;;  %17107 = vmatmul.mubr.bf16.gmra.mrb[24].mxu0 %v8125_v45  ;;  %v19042_v44 = vld [vmem:[%s24133_s14 + $0xb8] sm:$0xff]  }
0x14d8   :  { %17110 = vmatprep.mubr.msk.bf16.mxu0 %vm19491_vm4, %v19459_v8 }
0x14d9   :  { %v8098_v54 = vadd.f32 %v16563_v49, %v8010_v22  ;;  %v8118_v34 = vmax.f32 %v8095_v48, 0.0  ;;  %v19043_v48 = vld [vmem:[%s24133_s14 + $0xc0] sm:$0xff]  }
0x14db   :  { %v8119_v50 = vmax.f32 %v8098_v54, 0.0  ;;  %v16564_v52 = vpop.f32.mrb[0].mxu0 }
0x14dc   :  { %v16565_v3 = vpop.f32.mrb[1].mxu0 }
0x14dd   :  { %v8126_v55 = vpack.c.bf16 %v8119_v50, %v8118_v34  ;;  %v16566_v57 = vadd.f32 %v16565_v3, %v16564_v52  ;;  %v16567_v63 = vpop.f32.mrb[2].mxu0  ;;  %v19044_v3 = vld [vmem:[%s24133_s14 + $0xc8] sm:$0xff]  }
0x14de   :  { %v16568_v47 = vpop.f32.mrb[3].mxu0 }
0x14df   :  { %v8103_v0 = vadd.f32 %v16566_v57, %v8015_v15  ;;  %17111 = vmatmul.mubr.bf16.gmra.mrb[28].mxu0 %v8126_v55  ;;  %v19045_v57 = vld [vmem:[%s24133_s14 + $0xd0] sm:$0xff]  }
0x14e0   :  { %17114 = vmatprep.mubr.msk.bf16.mxu0 %vm19491_vm4, %v19459_v8 }
0x14e1   :  { %v8120_v28 = vmax.f32 %v8103_v0, 0.0 }
0x14e3   :  { %v8127_v60 = vpack.c.bf16 %v8120_v28, %v8120_v28 }
0x14e7   :  { %17115 = vmatmul.mubr.bf16.gmra.mrb[20].mxu0 %v8127_v60  ;;  %v19046_v60 = vld [vmem:[%s24133_s14 + $0xd8] sm:$0xff]  }
0x14e8   :  { %17151 = vmatprep.mubr.msk.bf16.mxu0 %vm19491_vm4, %v19459_v8 }
0x158a   :  { %v8233_v12 = vpop.f32.mrb[4].mxu0 }
0x158b   :  { %v8234_v59 = vadd.f32 %v22295_v5, %v8233_v12  ;;  %v17092_v16 = vpop.f32.mrb[5].mxu0  ;;  %v19051_v12 = vld [vmem:[%s24133_s14 + $0x100] sm:$0xff]  }
0x158c   :  { %v8236_v17 = vpop.f32.mrb[6].mxu0  ;;  %v19052_v16 = vld [vmem:[%s24133_s14 + $0x108] sm:$0xff]  }
0x158d   :  { %v8287_v19 = vmax.f32 %v8234_v59, 0.0  ;;  %v22299_v21 = vadd.f32 %v22295_v5, %v8236_v17  ;;  %v17093_v26 = vpop.f32.mrb[7].mxu0  ;;  %v19053_v17 = vld [vmem:[%s24133_s14 + $0x110] sm:$0xff]  }
0x158e   :  { %v19055_v26 = vld [vmem:[%s24133_s14 + $0x120] sm:$0xff]  }
0x158f   :  { %v22301_v61 = vpack.c.bf16 %v8287_v19, %v8287_v19  ;;  %v19054_v19 = vld [vmem:[%s24133_s14 + $0x118] sm:$0xff]  }
0x1591   :  { %17152 = vmatmul.mubr.bf16.vlgmr.msra.gmra.mrb[32].mxu0 %v22301_v61  ;;  %v8514_v6 = vrot.slane %v22301_v61, 1  ;;  %v8622_v49 = vrot.slane %v22301_v61, 2  ;;  %v8730_v59 = vrot.slane %v22301_v61, 3  ;;  %v19056_v61 = vld [vmem:[%s24133_s14 + $0x128] sm:$0xff]  }
0x1592   :  { %v8241_v40 = vpop.f32.mrb[8].mxu0  ;;  %18161 = vmatprep.mubr.msk.f32.mxu0 %vm19491_vm4, %v19459_v8 }
0x1593   :  { %v22311_v25 = vadd.f32 %v22295_v5, %v8241_v40  ;;  %v17096_v62 = vpop.f32.mrb[9].mxu0  ;;  %17172 = vmatmul.mubr.bf16.vlgmr.msra.gmra.mrb[44].mxu1 %v8514_v6  ;;  %v19058_v6 = vld [vmem:[%s24133_s14 + $0x138] sm:$0xff]   ;;  %v8288_v40 = vmax.f32 %v22299_v21, 0.0  ;;  %v19061_v21 = vld [vmem:[%s24133_s14 + $0x150] sm:$0xff]  }
0x1594   :  { %17176 = vmatpush3.bf16.msra.mxu1 %v19035_v23  ;;  %v8244_v29 = vpop.f32.mrb[10].mxu0  ;;  %17191 = vmatprep.mubr.msk.bf16.mxu1 %vm19491_vm4, %v19459_v8  ;;  %v19057_v23 = vld [vmem:[%s24133_s14 + $0x130] sm:$0xff]   ;;  %v19059_v62 = vld [vmem:[%s24133_s14 + $0x140] sm:$0xff]  }
0x1595   :  { %v22319_v24 = vadd.f32 %v22295_v5, %v8244_v29  ;;  %v17097_v11 = vpop.f32.mrb[11].mxu0  ;;  %17177 = vmatprep.subr.bf16.mxu1 %v19459_v8  ;;  %v22447_v29 = vpack.c.bf16 %v8288_v40, %v8288_v40  ;;  %v19097_v40 = vld [vmem:[%s24133_s14 + $0x270] sm:$0xff]  }
0x1596   :  { %v19062_v11 = vld [vmem:[%s24133_s14 + $0x158] sm:$0xff]  }
0x1598   :  { %17178 = vmatpush3.bf16.msra.mxu1 %v19036_v27  ;;  %v19060_v27 = vld [vmem:[%s24133_s14 + $0x148] sm:$0xff]  }
0x1599   :  { %17179 = vmatprep.subr.bf16.mxu1 %v19459_v8 }
0x159a   :  { %v8249_v33 = vpop.f32.mrb[12].mxu0 }
0x159b   :  { %v22327_v7 = vadd.f32 %v22295_v5, %v8249_v33  ;;  %v17100_v13 = vpop.f32.mrb[13].mxu0  ;;  %v19064_v33 = vld [vmem:[%s24133_s14 + $0x168] sm:$0xff]  }
0x159c   :  { %17180 = vmatpush3.bf16.msra.mxu1 %v19037_v51  ;;  %v8252_v14 = vpop.f32.mrb[14].mxu0  ;;  %v19063_v51 = vld [vmem:[%s24133_s14 + $0x160] sm:$0xff]   ;;  %v19065_v13 = vld [vmem:[%s24133_s14 + $0x170] sm:$0xff]  }
0x159d   :  { %v22333_v56 = vadd.f32 %v22295_v5, %v8252_v14  ;;  %v17101_v58 = vpop.f32.mrb[15].mxu0  ;;  %17181 = vmatprep.subr.bf16.mxu1 %v19459_v8  ;;  %v19066_v14 = vld [vmem:[%s24133_s14 + $0x178] sm:$0xff]  }
0x159e   :  { %v8946_v58 = vrot.slane %v22447_v29, 1 }
0x15a0   :  { %17182 = vmatpush3.bf16.msra.mxu1 %v19038_v10  ;;  %v19067_v10 = vld [vmem:[%s24133_s14 + $0x180] sm:$0xff]  }
0x15a1   :  { %17183 = vmatprep.subr.bf16.mxu1 %v19459_v8 }
0x15a2   :  { %v8257_v35 = vpop.f32.mrb[16].mxu0 }
0x15a3   :  { %v22341_v36 = vadd.f32 %v22295_v5, %v8257_v35  ;;  %v17104_v37 = vpop.f32.mrb[17].mxu0  ;;  %v19069_v35 = vld [vmem:[%s24133_s14 + $0x190] sm:$0xff]  }
0x15a4   :  { %17184 = vmatpush3.bf16.msra.mxu1 %v19039_v20  ;;  %v8260_v31 = vpop.f32.mrb[18].mxu0  ;;  %v19068_v20 = vld [vmem:[%s24133_s14 + $0x188] sm:$0xff]   ;;  %v19070_v37 = vld [vmem:[%s24133_s14 + $0x198] sm:$0xff]  }
0x15a5   :  { %v22347_v42 = vadd.f32 %v22295_v5, %v8260_v31  ;;  %v17105_v1 = vpop.f32.mrb[19].mxu0  ;;  %17185 = vmatprep.subr.bf16.mxu1 %v19459_v8  ;;  %v19071_v31 = vld [vmem:[%s24133_s14 + $0x1a0] sm:$0xff]  }
0x15a6   :  { %v19073_v1 = vld [vmem:[%s24133_s14 + $0x1b0] sm:$0xff]  }
0x15a8   :  { %17186 = vmatpush3.bf16.msra.mxu1 %v19040_v41  ;;  %v19072_v41 = vld [vmem:[%s24133_s14 + $0x1a8] sm:$0xff]  }
0x15a9   :  { %17187 = vmatprep.subr.bf16.mxu1 %v19459_v8 }
0x15aa   :  { %v8265_v9 = vpop.f32.mrb[24].mxu0 }
0x15ab   :  { %v22355_v53 = vadd.f32 %v22295_v5, %v8265_v9  ;;  %v17108_v45 = vpop.f32.mrb[25].mxu0  ;;  %v19075_v9 = vld [vmem:[%s24133_s14 + $0x1c0] sm:$0xff]  }
0x15ac   :  { %17188 = vmatpush3.bf16.msra.mxu1 %v19041_v43  ;;  %v8268_v46 = vpop.f32.mrb[26].mxu0  ;;  %v19074_v43 = vld [vmem:[%s24133_s14 + $0x1b8] sm:$0xff]   ;;  %v9054_v45 = vrot.slane %v22447_v29, 2 }
0x15ad   :  { %v22361_v38 = vadd.f32 %v22295_v5, %v8268_v46  ;;  %v17109_v22 = vpop.f32.mrb[27].mxu0  ;;  %17189 = vmatprep.subr.bf16.mxu1 %v19459_v8  ;;  %v19076_v46 = vld [vmem:[%s24133_s14 + $0x1c8] sm:$0xff]  }
0x15ae   :  { %v19078_v22 = vld [vmem:[%s24133_s14 + $0x1d8] sm:$0xff]  }
0x15b0   :  { %17190 = vmatpush3.bf16.msra.mxu1 %v19042_v44  ;;  %v19077_v44 = vld [vmem:[%s24133_s14 + $0x1d0] sm:$0xff]  }
0x15b1   :  { %17195 = vmatprep.subr.bf16.mxu1 %v19459_v8 }
0x15b2   :  { %v8273_v54 = vpop.f32.mrb[28].mxu0 }
0x15b3   :  { %v22370_v34 = vadd.f32 %v22295_v5, %v8273_v54  ;;  %17192 = vmatmul.mubr.bf16.vlgmr.msra.gmra.mrb[44].mxu1 %v8622_v49  ;;  %v17112_v50 = vpop.f32.mrb[29].mxu0  ;;  %v19080_v49 = vld [vmem:[%s24133_s14 + $0x1e8] sm:$0xff]   ;;  %v19081_v54 = vld [vmem:[%s24133_s14 + $0x1f0] sm:$0xff]  }
0x15b4   :  { %17196 = vmatpush3.bf16.msra.mxu1 %v19043_v48  ;;  %v8276_v52 = vpop.f32.mrb[30].mxu0  ;;  %17211 = vmatprep.mubr.msk.bf16.mxu1 %vm19491_vm4, %v19459_v8  ;;  %v19079_v48 = vld [vmem:[%s24133_s14 + $0x1e0] sm:$0xff]   ;;  %v19082_v50 = vld [vmem:[%s24133_s14 + $0x1f8] sm:$0xff]  }
0x15b5   :  { %v22378_v15 = vadd.f32 %v22295_v5, %v8276_v52  ;;  %v17113_v55 = vpop.f32.mrb[31].mxu0  ;;  %17197 = vmatprep.subr.bf16.mxu1 %v19459_v8  ;;  %v19083_v52 = vld [vmem:[%s24133_s14 + $0x200] sm:$0xff]  }
0x15b6   :  { %v19084_v55 = vld [vmem:[%s24133_s14 + $0x208] sm:$0xff]  }
0x15b8   :  { %17198 = vmatpush3.bf16.msra.mxu1 %v19044_v3  ;;  %v9162_v3 = vrot.slane %v22447_v29, 3 }
0x15b9   :  { %17199 = vmatprep.subr.bf16.mxu1 %v19459_v8 }
0x15ba   :  { %v8281_v63 = vpop.f32.mrb[20].mxu0 }
0x15bb   :  { %v22386_v47 = vadd.f32 %v22295_v5, %v8281_v63  ;;  %v17116_v0 = vpop.f32.mrb[21].mxu0  ;;  %v19050_v5 = vld [vmem:[%s24133_s14 + $0xf8] sm:$0xff]  }
0x15bc   :  { %17200 = vmatpush3.bf16.msra.mxu1 %v19045_v57  ;;  %v8284_v28 = vpop.f32.mrb[22].mxu0  ;;  %v19085_v57 = vld [vmem:[%s24133_s14 + $0x210] sm:$0xff]   ;;  %v19086_v63 = vld [vmem:[%s24133_s14 + $0x218] sm:$0xff]   ;;  %v15256_v0 = vld [vmem:[%s24135_s16] ss:$0 sm:$0xff] }
0x15bd   :  { %v17117_v18 = vpop.f32.mrb[23].mxu0  ;;  %17201 = vmatprep.subr.bf16.mxu1 %v19459_v8  ;;  %v19087_v28 = vld [vmem:[%s24133_s14 + $0x220] sm:$0xff]  }
0x15c0   :  { %17202 = vmatpush3.bf16.msra.mxu1 %v19046_v60  ;;  %v8387_v60 = vadd.f32 %v15256_v0, %v22167_v39  ;;  %v19090_v39 = vld [vmem:[%s24133_s14 + $0x238] sm:$0xff]  }
0x15c1   :  { %17203 = vmatprep.subr.bf16.mxu1 %v19459_v8  ;;  %v19126_v0 = vld [vmem:[%s24133_s14 + $0x358] sm:$0xff]  }
0x15c4   :  { %17204 = vmatpush3.bf16.msra.mxu1 %v19047_v4  ;;  %v19088_v4 = vld [vmem:[%s24133_s14 + $0x228] sm:$0xff]  }
0x15c5   :  { %17205 = vmatprep.subr.bf16.mxu1 %v19459_v8 }
0x15c8   :  { %17206 = vmatpush3.bf16.msra.mxu1 %v19048_v32 }
0x15c9   :  { %17207 = vmatprep.subr.bf16.mxu1 %v19459_v8 }
0x15cc   :  { %17208 = vmatpush3.bf16.msra.mxu1 %v19049_v2 }
0x15cd   :  { %17209 = vmatprep.subr.bf16.mxu1 %v19459_v8 }
0x15d0   :  { %17210 = vmatpush3.bf16.msra.mxu1 %v19050_v5 }
0x15d1   :  { %17215 = vmatprep.subr.bf16.mxu1 %v19459_v8 }
0x15d3   :  { %17212 = vmatmul.mubr.bf16.vlgmr.msra.gmra.mrb[44].mxu1 %v8730_v59  ;;  %v19089_v59 = vld [vmem:[%s24133_s14 + $0x230] sm:$0xff]  }
0x15d4   :  { %17216 = vmatpush3.bf16.msra.mxu1 %v19051_v12  ;;  %17231 = vmatprep.mubr.msk.bf16.mxu1 %vm19491_vm4, %v19459_v8 }
0x15d5   :  { %17217 = vmatprep.subr.bf16.mxu1 %v19459_v8 }
0x15d8   :  { %17218 = vmatpush3.bf16.msra.mxu1 %v19052_v16  ;;  %v8289_v16 = vmax.f32 %v22311_v25, 0.0  ;;  %v19093_v25 = vld [vmem:[%s24133_s14 + $0x250] sm:$0xff]  }
0x15d9   :  { %17219 = vmatprep.subr.bf16.mxu1 %v19459_v8 }
0x15dc   :  { %17220 = vmatpush3.bf16.msra.mxu1 %v19053_v17  ;;  %v19091_v17 = vld [vmem:[%s24133_s14 + $0x240] sm:$0xff]  }
0x15dd   :  { %17221 = vmatprep.subr.bf16.mxu1 %v19459_v8 }
0x15e0   :  { %17222 = vmatpush3.bf16.msra.mxu1 %v19054_v19  ;;  %v22596_v19 = vpack.c.bf16 %v8289_v16, %v8289_v16  ;;  %v19135_v16 = vld [vmem:[%s24133_s14 + $0x3a0] sm:$0xff]  }
0x15e1   :  { %17223 = vmatprep.subr.bf16.mxu1 %v19459_v8 }
0x15e4   :  { %17224 = vmatpush3.bf16.msra.mxu1 %v19055_v26  ;;  %v19092_v26 = vld [vmem:[%s24133_s14 + $0x248] sm:$0xff]  }
0x15e5   :  { %17225 = vmatprep.subr.bf16.mxu1 %v19459_v8 }
0x15e8   :  { %17226 = vmatpush3.bf16.msra.mxu1 %v19056_v61  ;;  %v19094_v61 = vld [vmem:[%s24133_s14 + $0x258] sm:$0xff]  }
0x15e9   :  { %17227 = vmatprep.subr.bf16.mxu1 %v19459_v8 }
0x15ec   :  { %17228 = vmatpush3.bf16.msra.mxu1 %v19057_v23  ;;  %v19095_v23 = vld [vmem:[%s24133_s14 + $0x260] sm:$0xff]  }
0x15ed   :  { %17229 = vmatprep.subr.bf16.mxu1 %v19459_v8 }
0x15f0   :  { %17230 = vmatpush3.bf16.msra.mxu1 %v19058_v6  ;;  %v19096_v6 = vld [vmem:[%s24133_s14 + $0x268] sm:$0xff]  }
0x15f1   :  { %17235 = vmatprep.subr.bf16.mxu1 %v19459_v8 }
0x15f3   :  { %17232 = vmatmul.mubr.bf16.vlgmr.msra.gmra.mrb[44].mxu1 %v22447_v29  ;;  %v19099_v29 = vld [vmem:[%s24133_s14 + $0x280] sm:$0xff]  }
0x15f4   :  { %17236 = vmatpush3.bf16.msra.mxu1 %v19059_v62  ;;  %17251 = vmatprep.mubr.msk.bf16.mxu1 %vm19491_vm4, %v19459_v8  ;;  %v19098_v62 = vld [vmem:[%s24133_s14 + $0x278] sm:$0xff]  }
0x15f5   :  { %17237 = vmatprep.subr.bf16.mxu1 %v19459_v8 }
0x15f8   :  { %17238 = vmatpush3.bf16.msra.mxu1 %v19060_v27  ;;  %v9378_v27 = vrot.slane %v22596_v19, 1 }
0x15f9   :  { %17239 = vmatprep.subr.bf16.mxu1 %v19459_v8 }
0x15fc   :  { %17240 = vmatpush3.bf16.msra.mxu1 %v19061_v21  ;;  %v19100_v21 = vld [vmem:[%s24133_s14 + $0x288] sm:$0xff]  }
0x15fd   :  { %17241 = vmatprep.subr.bf16.mxu1 %v19459_v8 }
0x1600   :  { %17242 = vmatpush3.bf16.msra.mxu1 %v19062_v11  ;;  %v19101_v11 = vld [vmem:[%s24133_s14 + $0x290] sm:$0xff]  }
0x1601   :  { %17243 = vmatprep.subr.bf16.mxu1 %v19459_v8 }
0x1604   :  { %17244 = vmatpush3.bf16.msra.mxu1 %v19063_v51  ;;  %v19102_v51 = vld [vmem:[%s24133_s14 + $0x298] sm:$0xff]  }
0x1605   :  { %17245 = vmatprep.subr.bf16.mxu1 %v19459_v8 }
0x1608   :  { %17246 = vmatpush3.bf16.msra.mxu1 %v19064_v33  ;;  %v19103_v33 = vld [vmem:[%s24133_s14 + $0x2a0] sm:$0xff]  }
0x1609   :  { %17247 = vmatprep.subr.bf16.mxu1 %v19459_v8 }
0x160c   :  { %17248 = vmatpush3.bf16.msra.mxu1 %v19065_v13  ;;  %v19104_v13 = vld [vmem:[%s24133_s14 + $0x2a8] sm:$0xff]  }
0x160d   :  { %17249 = vmatprep.subr.bf16.mxu1 %v19459_v8 }
0x1610   :  { %17250 = vmatpush3.bf16.msra.mxu1 %v19066_v14  ;;  %v19105_v14 = vld [vmem:[%s24133_s14 + $0x2b0] sm:$0xff]  }
0x1611   :  { %17255 = vmatprep.subr.bf16.mxu1 %v19459_v8 }
0x1613   :  { %17252 = vmatmul.mubr.bf16.vlgmr.msra.gmra.mrb[44].mxu1 %v8946_v58  ;;  %v19107_v58 = vld [vmem:[%s24133_s14 + $0x2c0] sm:$0xff]  }
0x1614   :  { %17256 = vmatpush3.bf16.msra.mxu1 %v19067_v10  ;;  %17271 = vmatprep.mubr.msk.bf16.mxu1 %vm19491_vm4, %v19459_v8  ;;  %v19106_v10 = vld [vmem:[%s24133_s14 + $0x2b8] sm:$0xff]  }
0x1615   :  { %17257 = vmatprep.subr.bf16.mxu1 %v19459_v8 }
0x1618   :  { %17258 = vmatpush3.bf16.msra.mxu1 %v19068_v20  ;;  %v9486_v20 = vrot.slane %v22596_v19, 2 }
0x1619   :  { %17259 = vmatprep.subr.bf16.mxu1 %v19459_v8 }
0x161c   :  { %17260 = vmatpush3.bf16.msra.mxu1 %v19069_v35  ;;  %v19108_v35 = vld [vmem:[%s24133_s14 + $0x2c8] sm:$0xff]  }
0x161d   :  { %17261 = vmatprep.subr.bf16.mxu1 %v19459_v8 }
0x1620   :  { %17262 = vmatpush3.bf16.msra.mxu1 %v19070_v37  ;;  %v19109_v37 = vld [vmem:[%s24133_s14 + $0x2d0] sm:$0xff]  }
0x1621   :  { %17263 = vmatprep.subr.bf16.mxu1 %v19459_v8 }
0x1624   :  { %17264 = vmatpush3.bf16.msra.mxu1 %v19071_v31  ;;  %v19110_v31 = vld [vmem:[%s24133_s14 + $0x2d8] sm:$0xff]  }
0x1625   :  { %17265 = vmatprep.subr.bf16.mxu1 %v19459_v8 }
0x1628   :  { %17266 = vmatpush3.bf16.msra.mxu1 %v19072_v41  ;;  %v19111_v41 = vld [vmem:[%s24133_s14 + $0x2e0] sm:$0xff]  }
0x1629   :  { %17267 = vmatprep.subr.bf16.mxu1 %v19459_v8 }
0x162c   :  { %17268 = vmatpush3.bf16.msra.mxu1 %v19073_v1  ;;  %v19112_v1 = vld [vmem:[%s24133_s14 + $0x2e8] sm:$0xff]  }
0x162d   :  { %17269 = vmatprep.subr.bf16.mxu1 %v19459_v8 }
0x1630   :  { %17270 = vmatpush3.bf16.msra.mxu1 %v19074_v43  ;;  %v19113_v43 = vld [vmem:[%s24133_s14 + $0x2f0] sm:$0xff]  }
0x1631   :  { %17275 = vmatprep.subr.bf16.mxu1 %v19459_v8 }
0x1633   :  { %17272 = vmatmul.mubr.bf16.vlgmr.msra.gmra.mrb[44].mxu1 %v9054_v45  ;;  %v19115_v45 = vld [vmem:[%s24133_s14 + $0x300] sm:$0xff]  }
0x1634   :  { %17276 = vmatpush3.bf16.msra.mxu1 %v19075_v9  ;;  %17291 = vmatprep.mubr.msk.bf16.mxu1 %vm19491_vm4, %v19459_v8  ;;  %v19114_v9 = vld [vmem:[%s24133_s14 + $0x2f8] sm:$0xff]  }
0x1635   :  { %17277 = vmatprep.subr.bf16.mxu1 %v19459_v8 }
0x1638   :  { %17278 = vmatpush3.bf16.msra.mxu1 %v19076_v46  ;;  %v9594_v46 = vrot.slane %v22596_v19, 3 }
0x1639   :  { %17279 = vmatprep.subr.bf16.mxu1 %v19459_v8 }
0x163c   :  { %17280 = vmatpush3.bf16.msra.mxu1 %v19077_v44  ;;  %v19116_v44 = vld [vmem:[%s24133_s14 + $0x308] sm:$0xff]  }
0x163d   :  { %17281 = vmatprep.subr.bf16.mxu1 %v19459_v8 }
0x1640   :  { %17282 = vmatpush3.bf16.msra.mxu1 %v19078_v22  ;;  %v19117_v22 = vld [vmem:[%s24133_s14 + $0x310] sm:$0xff]  }
0x1641   :  { %17283 = vmatprep.subr.bf16.mxu1 %v19459_v8 }
0x1644   :  { %17284 = vmatpush3.bf16.msra.mxu1 %v19079_v48  ;;  %v19118_v48 = vld [vmem:[%s24133_s14 + $0x318] sm:$0xff]  }
0x1645   :  { %17285 = vmatprep.subr.bf16.mxu1 %v19459_v8 }
0x1648   :  { %17286 = vmatpush3.bf16.msra.mxu1 %v19080_v49  ;;  %v19119_v49 = vld [vmem:[%s24133_s14 + $0x320] sm:$0xff]  }
0x1649   :  { %17287 = vmatprep.subr.bf16.mxu1 %v19459_v8 }
0x164c   :  { %17288 = vmatpush3.bf16.msra.mxu1 %v19081_v54  ;;  %v19120_v54 = vld [vmem:[%s24133_s14 + $0x328] sm:$0xff]  }
0x164d   :  { %17289 = vmatprep.subr.bf16.mxu1 %v19459_v8 }
0x1650   :  { %17290 = vmatpush3.bf16.msra.mxu1 %v19082_v50  ;;  %v19121_v50 = vld [vmem:[%s24133_s14 + $0x330] sm:$0xff]  }
0x1651   :  { %17295 = vmatprep.subr.bf16.mxu1 %v19459_v8 }
0x1653   :  { %17292 = vmatmul.mubr.bf16.vlgmr.msra.gmra.mrb[44].mxu1 %v9162_v3  ;;  %v8290_v3 = vmax.f32 %v22319_v24, 0.0  ;;  %v19125_v24 = vld [vmem:[%s24133_s14 + $0x350] sm:$0xff]  }
0x1654   :  { %17296 = vmatpush3.bf16.msra.mxu1 %v19083_v52  ;;  %17311 = vmatprep.mubr.msk.bf16.mxu1 %vm19491_vm4, %v19459_v8  ;;  %v19122_v52 = vld [vmem:[%s24133_s14 + $0x338] sm:$0xff]  }
0x1655   :  { %17297 = vmatprep.subr.bf16.mxu1 %v19459_v8 }
0x1658   :  { %17298 = vmatpush3.bf16.msra.mxu1 %v19084_v55  ;;  %v19123_v55 = vld [vmem:[%s24133_s14 + $0x340] sm:$0xff]  }
0x1659   :  { %17299 = vmatprep.subr.bf16.mxu1 %v19459_v8 }
0x165c   :  { %17300 = vmatpush3.bf16.msra.mxu1 %v19085_v57  ;;  %v22739_v57 = vpack.c.bf16 %v8290_v3, %v8290_v3  ;;  %v19168_v3 = vld [vmem:[%s24133_s14 + $0x4a8] sm:$0xff]  }
0x165d   :  { %17301 = vmatprep.subr.bf16.mxu1 %v19459_v8 }
0x1660   :  { %17302 = vmatpush3.bf16.msra.mxu1 %v19086_v63  ;;  %v19124_v63 = vld [vmem:[%s24133_s14 + $0x348] sm:$0xff]  }
0x1661   :  { %17303 = vmatprep.subr.bf16.mxu1 %v19459_v8 }
0x1664   :  { %17304 = vmatpush3.bf16.msra.mxu1 %v19087_v28  ;;  %v8489_v18 = vpop.f32.mrb[32].mxu0  ;;  %v19127_v28 = vld [vmem:[%s24133_s14 + $0x360] sm:$0xff]  }
0x1665   :  { %v22581_v32 = vadd.f32 %v8489_v18, %v8387_v60  ;;  %v17153_v2 = vpop.f32.mrb[33].mxu0  ;;  %17305 = vmatprep.subr.bf16.mxu1 %v19459_v8  ;;  %v19128_v60 = vld [vmem:[%s24133_s14 + $0x368] sm:$0xff]   ;;  %v19129_v18 = vld [vmem:[%s24133_s14 + $0x370] sm:$0xff]  }
0x1666   :  { %v8492_v5 = vpop.f32.mrb[34].mxu0  ;;  %v19131_v2 = vld [vmem:[%s24133_s14 + $0x380] sm:$0xff]  }
0x1667   :  { %v17154_v12 = vpop.f32.mrb[35].mxu0  ;;  %v9810_v5 = vrot.slane %v22739_v57, 1 }
0x1668   :  { %17306 = vmatpush3.bf16.msra.mxu1 %v19088_v4  ;;  %v19130_v4 = vld [vmem:[%s24133_s14 + $0x378] sm:$0xff]   ;;  %v19132_v12 = vld [vmem:[%s24133_s14 + $0x388] sm:$0xff]  }
0x1669   :  { %17307 = vmatprep.subr.bf16.mxu1 %v19459_v8 }
0x166c   :  { %17308 = vmatpush3.bf16.msra.mxu1 %v19089_v59  ;;  %v19133_v59 = vld [vmem:[%s24133_s14 + $0x390] sm:$0xff]  }
0x166d   :  { %17309 = vmatprep.subr.bf16.mxu1 %v19459_v8 }
0x1670   :  { %17310 = vmatpush3.bf16.msra.mxu1 %v19090_v39  ;;  %v19134_v39 = vld [vmem:[%s24133_s14 + $0x398] sm:$0xff]  }
0x1671   :  { %17315 = vmatprep.subr.bf16.mxu1 %v19459_v8 }
0x1673   :  { %17312 = vmatmul.mubr.bf16.vlgmr.msra.gmra.mrb[44].mxu1 %v22596_v19  ;;  %v19137_v19 = vld [vmem:[%s24133_s14 + $0x3b0] sm:$0xff]  }
0x1674   :  { %17316 = vmatpush3.bf16.msra.mxu1 %v19091_v17  ;;  %17331 = vmatprep.mubr.msk.bf16.mxu1 %vm19491_vm4, %v19459_v8  ;;  %v19136_v17 = vld [vmem:[%s24133_s14 + $0x3a8] sm:$0xff]  }
0x1675   :  { %17317 = vmatprep.subr.bf16.mxu1 %v19459_v8 }
0x1678   :  { %17318 = vmatpush3.bf16.msra.mxu1 %v19092_v26  ;;  %v19138_v26 = vld [vmem:[%s24133_s14 + $0x3b8] sm:$0xff]  }
0x1679   :  { %17319 = vmatprep.subr.bf16.mxu1 %v19459_v8 }
0x167c   :  { %17320 = vmatpush3.bf16.msra.mxu1 %v19093_v25  ;;  %v19139_v25 = vld [vmem:[%s24133_s14 + $0x3c0] sm:$0xff]  }
0x167d   :  { %17321 = vmatprep.subr.bf16.mxu1 %v19459_v8 }
0x1680   :  { %17322 = vmatpush3.bf16.msra.mxu1 %v19094_v61  ;;  %v9918_v61 = vrot.slane %v22739_v57, 2 }
0x1681   :  { %17323 = vmatprep.subr.bf16.mxu1 %v19459_v8 }
0x1684   :  { %17324 = vmatpush3.bf16.msra.mxu1 %v19095_v23  ;;  %v19140_v23 = vld [vmem:[%s24133_s14 + $0x3c8] sm:$0xff]  }
0x1685   :  { %17325 = vmatprep.subr.bf16.mxu1 %v19459_v8 }
0x1688   :  { %17326 = vmatpush3.bf16.msra.mxu1 %v19096_v6  ;;  %v19141_v6 = vld [vmem:[%s24133_s14 + $0x3d0] sm:$0xff]  }
0x1689   :  { %17327 = vmatprep.subr.bf16.mxu1 %v19459_v8 }
0x168c   :  { %17328 = vmatpush3.bf16.msra.mxu1 %v19097_v40  ;;  %v19142_v40 = vld [vmem:[%s24133_s14 + $0x3d8] sm:$0xff]  }
0x168d   :  { %17329 = vmatprep.subr.bf16.mxu1 %v19459_v8 }
0x1690   :  { %17330 = vmatpush3.bf16.msra.mxu1 %v19098_v62  ;;  %v19143_v62 = vld [vmem:[%s24133_s14 + $0x3e0] sm:$0xff]  }
0x1691   :  { %17335 = vmatprep.subr.bf16.mxu1 %v19459_v8 }
0x1693   :  { %17332 = vmatmul.mubr.bf16.vlgmr.msra.gmra.mrb[44].mxu1 %v9378_v27  ;;  %v19145_v27 = vld [vmem:[%s24133_s14 + $0x3f0] sm:$0xff]  }
0x1694   :  { %17336 = vmatpush3.bf16.msra.mxu1 %v19099_v29  ;;  %17351 = vmatprep.mubr.msk.bf16.mxu1 %vm19491_vm4, %v19459_v8  ;;  %v19144_v29 = vld [vmem:[%s24133_s14 + $0x3e8] sm:$0xff]  }
0x1695   :  { %17337 = vmatprep.subr.bf16.mxu1 %v19459_v8 }
0x1698   :  { %17338 = vmatpush3.bf16.msra.mxu1 %v19100_v21  ;;  %v19146_v21 = vld [vmem:[%s24133_s14 + $0x3f8] sm:$0xff]  }
0x1699   :  { %17339 = vmatprep.subr.bf16.mxu1 %v19459_v8 }
0x169c   :  { %17340 = vmatpush3.bf16.msra.mxu1 %v19101_v11  ;;  %v19147_v11 = vld [vmem:[%s24133_s14 + $0x400] sm:$0xff]  }
0x169d   :  { %17341 = vmatprep.subr.bf16.mxu1 %v19459_v8 }
0x16a0   :  { %17342 = vmatpush3.bf16.msra.mxu1 %v19102_v51  ;;  %v10026_v51 = vrot.slane %v22739_v57, 3 }
0x16a1   :  { %17343 = vmatprep.subr.bf16.mxu1 %v19459_v8 }
0x16a4   :  { %17344 = vmatpush3.bf16.msra.mxu1 %v19103_v33  ;;  %v19148_v33 = vld [vmem:[%s24133_s14 + $0x408] sm:$0xff]  }
0x16a5   :  { %17345 = vmatprep.subr.bf16.mxu1 %v19459_v8 }
0x16a8   :  { %17346 = vmatpush3.bf16.msra.mxu1 %v19104_v13  ;;  %v19149_v13 = vld [vmem:[%s24133_s14 + $0x410] sm:$0xff]  }
0x16a9   :  { %17347 = vmatprep.subr.bf16.mxu1 %v19459_v8 }
0x16ac   :  { %17348 = vmatpush3.bf16.msra.mxu1 %v19105_v14  ;;  %v19150_v14 = vld [vmem:[%s24133_s14 + $0x418] sm:$0xff]  }
0x16ad   :  { %17349 = vmatprep.subr.bf16.mxu1 %v19459_v8 }
0x16b0   :  { %17350 = vmatpush3.bf16.msra.mxu1 %v19106_v10  ;;  %v19151_v10 = vld [vmem:[%s24133_s14 + $0x420] sm:$0xff]  }
0x16b1   :  { %17355 = vmatprep.subr.bf16.mxu1 %v19459_v8 }
0x16b3   :  { %17352 = vmatmul.mubr.bf16.vlgmr.msra.gmra.mrb[44].mxu1 %v9486_v20  ;;  %v19153_v20 = vld [vmem:[%s24133_s14 + $0x430] sm:$0xff]  }
0x16b4   :  { %17356 = vmatpush3.bf16.msra.mxu1 %v19107_v58  ;;  %17371 = vmatprep.mubr.msk.bf16.mxu1 %vm19491_vm4, %v19459_v8  ;;  %v19152_v58 = vld [vmem:[%s24133_s14 + $0x428] sm:$0xff]  }
0x16b5   :  { %17357 = vmatprep.subr.bf16.mxu1 %v19459_v8 }
0x16b8   :  { %17358 = vmatpush3.bf16.msra.mxu1 %v19108_v35  ;;  %v19154_v35 = vld [vmem:[%s24133_s14 + $0x438] sm:$0xff]  }
0x16b9   :  { %17359 = vmatprep.subr.bf16.mxu1 %v19459_v8 }
0x16bc   :  { %17360 = vmatpush3.bf16.msra.mxu1 %v19109_v37  ;;  %v8291_v37 = vmax.f32 %v22327_v7, 0.0  ;;  %v19157_v7 = vld [vmem:[%s24133_s14 + $0x450] sm:$0xff]  }
0x16bd   :  { %17361 = vmatprep.subr.bf16.mxu1 %v19459_v8 }
0x16c0   :  { %17362 = vmatpush3.bf16.msra.mxu1 %v19110_v31  ;;  %v19155_v31 = vld [vmem:[%s24133_s14 + $0x440] sm:$0xff]  }
0x16c1   :  { %17363 = vmatprep.subr.bf16.mxu1 %v19459_v8 }
0x16c4   :  { %17364 = vmatpush3.bf16.msra.mxu1 %v19111_v41  ;;  %v22882_v41 = vpack.c.bf16 %v8291_v37, %v8291_v37  ;;  %v19201_v37 = vld [vmem:[%s24133_s14 + $0x5b0] sm:$0xff]  }
0x16c5   :  { %17365 = vmatprep.subr.bf16.mxu1 %v19459_v8 }
0x16c8   :  { %17366 = vmatpush3.bf16.msra.mxu1 %v19112_v1  ;;  %v19156_v1 = vld [vmem:[%s24133_s14 + $0x448] sm:$0xff]  }
0x16c9   :  { %17367 = vmatprep.subr.bf16.mxu1 %v19459_v8 }
0x16cc   :  { %17368 = vmatpush3.bf16.msra.mxu1 %v19113_v43  ;;  %v19158_v43 = vld [vmem:[%s24133_s14 + $0x458] sm:$0xff]  }
0x16cd   :  { %17369 = vmatprep.subr.bf16.mxu1 %v19459_v8 }
0x16d0   :  { %17370 = vmatpush3.bf16.msra.mxu1 %v19114_v9  ;;  %v19159_v9 = vld [vmem:[%s24133_s14 + $0x460] sm:$0xff]  }
0x16d1   :  { %17375 = vmatprep.subr.bf16.mxu1 %v19459_v8 }
0x16d3   :  { %17372 = vmatmul.mubr.bf16.vlgmr.msra.gmra.mrb[44].mxu1 %v9594_v46  ;;  %v19161_v46 = vld [vmem:[%s24133_s14 + $0x470] sm:$0xff]  }
0x16d4   :  { %17376 = vmatpush3.bf16.msra.mxu1 %v19115_v45  ;;  %17391 = vmatprep.mubr.msk.bf16.mxu1 %vm19491_vm4, %v19459_v8  ;;  %v19160_v45 = vld [vmem:[%s24133_s14 + $0x468] sm:$0xff]  }
0x16d5   :  { %17377 = vmatprep.subr.bf16.mxu1 %v19459_v8 }
0x16d8   :  { %17378 = vmatpush3.bf16.msra.mxu1 %v19116_v44  ;;  %v19162_v44 = vld [vmem:[%s24133_s14 + $0x478] sm:$0xff]  }
0x16d9   :  { %17379 = vmatprep.subr.bf16.mxu1 %v19459_v8 }
0x16dc   :  { %17380 = vmatpush3.bf16.msra.mxu1 %v19117_v22  ;;  %v19163_v22 = vld [vmem:[%s24133_s14 + $0x480] sm:$0xff]  }
0x16dd   :  { %17381 = vmatprep.subr.bf16.mxu1 %v19459_v8 }
0x16e0   :  { %17382 = vmatpush3.bf16.msra.mxu1 %v19118_v48  ;;  %v10242_v48 = vrot.slane %v22882_v41, 1 }
0x16e1   :  { %17383 = vmatprep.subr.bf16.mxu1 %v19459_v8 }
0x16e4   :  { %17384 = vmatpush3.bf16.msra.mxu1 %v19119_v49  ;;  %v19164_v49 = vld [vmem:[%s24133_s14 + $0x488] sm:$0xff]  }
0x16e5   :  { %17385 = vmatprep.subr.bf16.mxu1 %v19459_v8 }
0x16e8   :  { %17386 = vmatpush3.bf16.msra.mxu1 %v19120_v54  ;;  %v19165_v54 = vld [vmem:[%s24133_s14 + $0x490] sm:$0xff]  }
0x16e9   :  { %17387 = vmatprep.subr.bf16.mxu1 %v19459_v8 }
0x16ec   :  { %17388 = vmatpush3.bf16.msra.mxu1 %v19121_v50  ;;  %v19166_v50 = vld [vmem:[%s24133_s14 + $0x498] sm:$0xff]  }
0x16ed   :  { %17389 = vmatprep.subr.bf16.mxu1 %v19459_v8 }
0x16f0   :  { %17390 = vmatpush3.bf16.msra.mxu1 %v19122_v52  ;;  %v19167_v52 = vld [vmem:[%s24133_s14 + $0x4a0] sm:$0xff]  }
0x16f1   :  { %17395 = vmatprep.subr.bf16.mxu1 %v19459_v8 }
0x16f3   :  { %17392 = vmatmul.mubr.bf16.vlgmr.msra.gmra.mrb[44].mxu1 %v22739_v57  ;;  %v19170_v57 = vld [vmem:[%s24133_s14 + $0x4b8] sm:$0xff]  }
0x16f4   :  { %17396 = vmatpush3.bf16.msra.mxu1 %v19123_v55  ;;  %17411 = vmatprep.mubr.msk.bf16.mxu1 %vm19491_vm4, %v19459_v8  ;;  %v19169_v55 = vld [vmem:[%s24133_s14 + $0x4b0] sm:$0xff]  }
0x16f5   :  { %17397 = vmatprep.subr.bf16.mxu1 %v19459_v8 }
0x16f8   :  { %17398 = vmatpush3.bf16.msra.mxu1 %v19124_v63  ;;  %v19171_v63 = vld [vmem:[%s24133_s14 + $0x4c0] sm:$0xff]  }
0x16f9   :  { %17399 = vmatprep.subr.bf16.mxu1 %v19459_v8 }
0x16fc   :  { %17400 = vmatpush3.bf16.msra.mxu1 %v19125_v24  ;;  %v10350_v24 = vrot.slane %v22882_v41, 2 }
0x16fd   :  { %17401 = vmatprep.subr.bf16.mxu1 %v19459_v8 }
0x1700   :  { %17402 = vmatpush3.bf16.msra.mxu1 %v19126_v0  ;;  %v19172_v0 = vld [vmem:[%s24133_s14 + $0x4c8] sm:$0xff]  }
0x1701   :  { %17403 = vmatprep.subr.bf16.mxu1 %v19459_v8 }
0x1704   :  { %17404 = vmatpush3.bf16.msra.mxu1 %v19127_v28  ;;  %v19173_v28 = vld [vmem:[%s24133_s14 + $0x4d0] sm:$0xff]  }
0x1705   :  { %17405 = vmatprep.subr.bf16.mxu1 %v19459_v8 }
0x1708   :  { %17406 = vmatpush3.bf16.msra.mxu1 %v19128_v60  ;;  %v19174_v60 = vld [vmem:[%s24133_s14 + $0x4d8] sm:$0xff]  }
0x1709   :  { %17407 = vmatprep.subr.bf16.mxu1 %v19459_v8 }
0x170c   :  { %17408 = vmatpush3.bf16.msra.mxu1 %v19129_v18  ;;  %v19175_v18 = vld [vmem:[%s24133_s14 + $0x4e0] sm:$0xff]  }
0x170d   :  { %17409 = vmatprep.subr.bf16.mxu1 %v19459_v8 }
0x1710   :  { %17410 = vmatpush3.bf16.msra.mxu1 %v19130_v4  ;;  %v19176_v4 = vld [vmem:[%s24133_s14 + $0x4e8] sm:$0xff]  }
0x1711   :  { %17415 = vmatprep.subr.bf16.mxu1 %v19459_v8 }
0x1713   :  { %17412 = vmatmul.mubr.bf16.vlgmr.msra.gmra.mrb[44].mxu1 %v9810_v5  ;;  %v19178_v5 = vld [vmem:[%s24133_s14 + $0x4f8] sm:$0xff]  }
0x1714   :  { %17416 = vmatpush3.bf16.msra.mxu1 %v19131_v2  ;;  %17431 = vmatprep.mubr.msk.bf16.mxu1 %vm19491_vm4, %v19459_v8  ;;  %v19177_v2 = vld [vmem:[%s24133_s14 + $0x4f0] sm:$0xff]  }
0x1715   :  { %17417 = vmatprep.subr.bf16.mxu1 %v19459_v8 }
0x1718   :  { %17418 = vmatpush3.bf16.msra.mxu1 %v19132_v12  ;;  %v19179_v12 = vld [vmem:[%s24133_s14 + $0x500] sm:$0xff]  }
0x1719   :  { %17419 = vmatprep.subr.bf16.mxu1 %v19459_v8 }
0x171c   :  { %17420 = vmatpush3.bf16.msra.mxu1 %v19133_v59  ;;  %v10458_v59 = vrot.slane %v22882_v41, 3 }
0x171d   :  { %17421 = vmatprep.subr.bf16.mxu1 %v19459_v8 }
0x1720   :  { %17422 = vmatpush3.bf16.msra.mxu1 %v19134_v39  ;;  %v19180_v39 = vld [vmem:[%s24133_s14 + $0x508] sm:$0xff]  }
0x1721   :  { %17423 = vmatprep.subr.bf16.mxu1 %v19459_v8 }
0x1724   :  { %17424 = vmatpush3.bf16.msra.mxu1 %v19135_v16  ;;  %v19181_v16 = vld [vmem:[%s24133_s14 + $0x510] sm:$0xff]  }
0x1725   :  { %17425 = vmatprep.subr.bf16.mxu1 %v19459_v8 }
0x1728   :  { %17426 = vmatpush3.bf16.msra.mxu1 %v19136_v17  ;;  %v19182_v17 = vld [vmem:[%s24133_s14 + $0x518] sm:$0xff]  }
0x1729   :  { %17427 = vmatprep.subr.bf16.mxu1 %v19459_v8 }
0x172c   :  { %17428 = vmatpush3.bf16.msra.mxu1 %v19137_v19  ;;  %v19183_v19 = vld [vmem:[%s24133_s14 + $0x520] sm:$0xff]  }
0x172d   :  { %17429 = vmatprep.subr.bf16.mxu1 %v19459_v8 }
0x1730   :  { %17430 = vmatpush3.bf16.msra.mxu1 %v19138_v26  ;;  %v19184_v26 = vld [vmem:[%s24133_s14 + $0x528] sm:$0xff]  }
0x1731   :  { %17435 = vmatprep.subr.bf16.mxu1 %v19459_v8 }
0x1733   :  { %17432 = vmatmul.mubr.bf16.vlgmr.msra.gmra.mrb[44].mxu1 %v9918_v61  ;;  %v19186_v61 = vld [vmem:[%s24133_s14 + $0x538] sm:$0xff]  }
0x1734   :  { %17436 = vmatpush3.bf16.msra.mxu1 %v19139_v25  ;;  %17451 = vmatprep.mubr.msk.bf16.mxu1 %vm19491_vm4, %v19459_v8  ;;  %v19185_v25 = vld [vmem:[%s24133_s14 + $0x530] sm:$0xff]  }
0x1735   :  { %17437 = vmatprep.subr.bf16.mxu1 %v19459_v8 }
0x1738   :  { %17438 = vmatpush3.bf16.msra.mxu1 %v19140_v23  ;;  %v8292_v23 = vmax.f32 %v22333_v56, 0.0  ;;  %v19189_v56 = vld [vmem:[%s24133_s14 + $0x550] sm:$0xff]  }
0x1739   :  { %17439 = vmatprep.subr.bf16.mxu1 %v19459_v8 }
0x173c   :  { %17440 = vmatpush3.bf16.msra.mxu1 %v19141_v6  ;;  %v19187_v6 = vld [vmem:[%s24133_s14 + $0x540] sm:$0xff]  }
0x173d   :  { %17441 = vmatprep.subr.bf16.mxu1 %v19459_v8 }
0x1740   :  { %17442 = vmatpush3.bf16.msra.mxu1 %v19142_v40  ;;  %v23025_v40 = vpack.c.bf16 %v8292_v23, %v8292_v23  ;;  %v19234_v23 = vld [vmem:[%s24133_s14 + $0x6b8] sm:$0xff]  }
0x1741   :  { %17443 = vmatprep.subr.bf16.mxu1 %v19459_v8 }
0x1744   :  { %17444 = vmatpush3.bf16.msra.mxu1 %v19143_v62  ;;  %v19188_v62 = vld [vmem:[%s24133_s14 + $0x548] sm:$0xff]  }
0x1745   :  { %17445 = vmatprep.subr.bf16.mxu1 %v19459_v8 }
0x1748   :  { %17446 = vmatpush3.bf16.msra.mxu1 %v19144_v29  ;;  %v19190_v29 = vld [vmem:[%s24133_s14 + $0x558] sm:$0xff]  }
0x1749   :  { %17447 = vmatprep.subr.bf16.mxu1 %v19459_v8 }
0x174c   :  { %17448 = vmatpush3.bf16.msra.mxu1 %v19145_v27  ;;  %v19191_v27 = vld [vmem:[%s24133_s14 + $0x560] sm:$0xff]  }
0x174d   :  { %17449 = vmatprep.subr.bf16.mxu1 %v19459_v8 }
0x1750   :  { %17450 = vmatpush3.bf16.msra.mxu1 %v19146_v21  ;;  %v19192_v21 = vld [vmem:[%s24133_s14 + $0x568] sm:$0xff]  }
0x1751   :  { %17455 = vmatprep.subr.bf16.mxu1 %v19459_v8 }
0x1753   :  { %17452 = vmatmul.mubr.bf16.vlgmr.msra.gmra.mrb[44].mxu1 %v10026_v51  ;;  %v19194_v51 = vld [vmem:[%s24133_s14 + $0x578] sm:$0xff]  }
0x1754   :  { %17456 = vmatpush3.bf16.msra.mxu1 %v19147_v11  ;;  %17471 = vmatprep.mubr.msk.bf16.mxu1 %vm19491_vm4, %v19459_v8  ;;  %v19193_v11 = vld [vmem:[%s24133_s14 + $0x570] sm:$0xff]  }
0x1755   :  { %17457 = vmatprep.subr.bf16.mxu1 %v19459_v8 }
0x1758   :  { %17458 = vmatpush3.bf16.msra.mxu1 %v19148_v33  ;;  %v19195_v33 = vld [vmem:[%s24133_s14 + $0x580] sm:$0xff]  }
0x1759   :  { %17459 = vmatprep.subr.bf16.mxu1 %v19459_v8 }
0x175c   :  { %17460 = vmatpush3.bf16.msra.mxu1 %v19149_v13  ;;  %v10674_v13 = vrot.slane %v23025_v40, 1 }
0x175d   :  { %17461 = vmatprep.subr.bf16.mxu1 %v19459_v8 }
0x1760   :  { %17462 = vmatpush3.bf16.msra.mxu1 %v19150_v14  ;;  %v19196_v14 = vld [vmem:[%s24133_s14 + $0x588] sm:$0xff]  }
0x1761   :  { %17463 = vmatprep.subr.bf16.mxu1 %v19459_v8 }
0x1764   :  { %17464 = vmatpush3.bf16.msra.mxu1 %v19151_v10  ;;  %v19197_v10 = vld [vmem:[%s24133_s14 + $0x590] sm:$0xff]  }
0x1765   :  { %17465 = vmatprep.subr.bf16.mxu1 %v19459_v8 }
0x1768   :  { %17466 = vmatpush3.bf16.msra.mxu1 %v19152_v58  ;;  %v19198_v58 = vld [vmem:[%s24133_s14 + $0x598] sm:$0xff]  }
0x1769   :  { %17467 = vmatprep.subr.bf16.mxu1 %v19459_v8 }
0x176c   :  { %17468 = vmatpush3.bf16.msra.mxu1 %v19153_v20  ;;  %v19199_v20 = vld [vmem:[%s24133_s14 + $0x5a0] sm:$0xff]  }
0x176d   :  { %17469 = vmatprep.subr.bf16.mxu1 %v19459_v8 }
0x1770   :  { %17470 = vmatpush3.bf16.msra.mxu1 %v19154_v35  ;;  %v19200_v35 = vld [vmem:[%s24133_s14 + $0x5a8] sm:$0xff]  }
0x1771   :  { %17475 = vmatprep.subr.bf16.mxu1 %v19459_v8 }
0x1773   :  { %17472 = vmatmul.mubr.bf16.vlgmr.msra.gmra.mrb[44].mxu1 %v22882_v41  ;;  %v19203_v41 = vld [vmem:[%s24133_s14 + $0x5c0] sm:$0xff]  }
0x1774   :  { %17476 = vmatpush3.bf16.msra.mxu1 %v19155_v31  ;;  %17491 = vmatprep.mubr.msk.bf16.mxu1 %vm19491_vm4, %v19459_v8  ;;  %v19202_v31 = vld [vmem:[%s24133_s14 + $0x5b8] sm:$0xff]  }
0x1775   :  { %17477 = vmatprep.subr.bf16.mxu1 %v19459_v8 }
0x1778   :  { %17478 = vmatpush3.bf16.msra.mxu1 %v19156_v1  ;;  %v10782_v1 = vrot.slane %v23025_v40, 2 }
0x1779   :  { %17479 = vmatprep.subr.bf16.mxu1 %v19459_v8 }
0x177c   :  { %17480 = vmatpush3.bf16.msra.mxu1 %v19157_v7  ;;  %v19204_v7 = vld [vmem:[%s24133_s14 + $0x5c8] sm:$0xff]  }
0x177d   :  { %17481 = vmatprep.subr.bf16.mxu1 %v19459_v8 }
0x1780   :  { %17482 = vmatpush3.bf16.msra.mxu1 %v19158_v43  ;;  %v19205_v43 = vld [vmem:[%s24133_s14 + $0x5d0] sm:$0xff]  }
0x1781   :  { %17483 = vmatprep.subr.bf16.mxu1 %v19459_v8 }
0x1784   :  { %17484 = vmatpush3.bf16.msra.mxu1 %v19159_v9  ;;  %v19206_v9 = vld [vmem:[%s24133_s14 + $0x5d8] sm:$0xff]  }
0x1785   :  { %17485 = vmatprep.subr.bf16.mxu1 %v19459_v8 }
0x1788   :  { %17486 = vmatpush3.bf16.msra.mxu1 %v19160_v45  ;;  %v19207_v45 = vld [vmem:[%s24133_s14 + $0x5e0] sm:$0xff]  }
0x1789   :  { %17487 = vmatprep.subr.bf16.mxu1 %v19459_v8 }
0x178c   :  { %17488 = vmatpush3.bf16.msra.mxu1 %v19161_v46  ;;  %v19208_v46 = vld [vmem:[%s24133_s14 + $0x5e8] sm:$0xff]  }
0x178d   :  { %17489 = vmatprep.subr.bf16.mxu1 %v19459_v8 }
0x1790   :  { %17490 = vmatpush3.bf16.msra.mxu1 %v19162_v44  ;;  %v19209_v44 = vld [vmem:[%s24133_s14 + $0x5f0] sm:$0xff]  }
0x1791   :  { %17495 = vmatprep.subr.bf16.mxu1 %v19459_v8 }
0x1793   :  { %17492 = vmatmul.mubr.bf16.vlgmr.msra.gmra.mrb[44].mxu1 %v10242_v48  ;;  %v19211_v48 = vld [vmem:[%s24133_s14 + $0x600] sm:$0xff]  }
0x1794   :  { %17496 = vmatpush3.bf16.msra.mxu1 %v19163_v22  ;;  %17511 = vmatprep.mubr.msk.bf16.mxu1 %vm19491_vm4, %v19459_v8  ;;  %v19210_v22 = vld [vmem:[%s24133_s14 + $0x5f8] sm:$0xff]  }
0x1795   :  { %17497 = vmatprep.subr.bf16.mxu1 %v19459_v8 }
0x1798   :  { %17498 = vmatpush3.bf16.msra.mxu1 %v19164_v49  ;;  %v10890_v49 = vrot.slane %v23025_v40, 3 }
0x1799   :  { %17499 = vmatprep.subr.bf16.mxu1 %v19459_v8 }
0x179c   :  { %17500 = vmatpush3.bf16.msra.mxu1 %v19165_v54  ;;  %v19212_v54 = vld [vmem:[%s24133_s14 + $0x608] sm:$0xff]  }
0x179d   :  { %17501 = vmatprep.subr.bf16.mxu1 %v19459_v8 }
0x17a0   :  { %17502 = vmatpush3.bf16.msra.mxu1 %v19166_v50  ;;  %v19213_v50 = vld [vmem:[%s24133_s14 + $0x610] sm:$0xff]  }
0x17a1   :  { %17503 = vmatprep.subr.bf16.mxu1 %v19459_v8 }
0x17a4   :  { %17504 = vmatpush3.bf16.msra.mxu1 %v19167_v52  ;;  %v19214_v52 = vld [vmem:[%s24133_s14 + $0x618] sm:$0xff]  }
0x17a5   :  { %17505 = vmatprep.subr.bf16.mxu1 %v19459_v8 }
0x17a8   :  { %17506 = vmatpush3.bf16.msra.mxu1 %v19168_v3  ;;  %v19215_v3 = vld [vmem:[%s24133_s14 + $0x620] sm:$0xff]  }
0x17a9   :  { %17507 = vmatprep.subr.bf16.mxu1 %v19459_v8 }
0x17ac   :  { %17508 = vmatpush3.bf16.msra.mxu1 %v19169_v55  ;;  %v19216_v55 = vld [vmem:[%s24133_s14 + $0x628] sm:$0xff]  }
0x17ad   :  { %17509 = vmatprep.subr.bf16.mxu1 %v19459_v8 }
0x17b0   :  { %17510 = vmatpush3.bf16.msra.mxu1 %v19170_v57  ;;  %v19217_v57 = vld [vmem:[%s24133_s14 + $0x630] sm:$0xff]  }
0x17b1   :  { %17515 = vmatprep.subr.bf16.mxu1 %v19459_v8 }
0x17b3   :  { %17512 = vmatmul.mubr.bf16.vlgmr.msra.gmra.mrb[44].mxu1 %v10350_v24  ;;  %v8293_v24 = vmax.f32 %v22341_v36, 0.0  ;;  %v19221_v36 = vld [vmem:[%s24133_s14 + $0x650] sm:$0xff]  }
0x17b4   :  { %17516 = vmatpush3.bf16.msra.mxu1 %v19171_v63  ;;  %17531 = vmatprep.mubr.msk.bf16.mxu1 %vm19491_vm4, %v19459_v8  ;;  %v19218_v63 = vld [vmem:[%s24133_s14 + $0x638] sm:$0xff]  }
0x17b5   :  { %17517 = vmatprep.subr.bf16.mxu1 %v19459_v8 }
0x17b8   :  { %17518 = vmatpush3.bf16.msra.mxu1 %v19172_v0  ;;  %v19219_v0 = vld [vmem:[%s24133_s14 + $0x640] sm:$0xff]  }
0x17b9   :  { %17519 = vmatprep.subr.bf16.mxu1 %v19459_v8 }
0x17bc   :  { %17520 = vmatpush3.bf16.msra.mxu1 %v19173_v28  ;;  %v23168_v28 = vpack.c.bf16 %v8293_v24, %v8293_v24  ;;  %v19267_v24 = vld [vmem:[%s24133_s14 + $0x7c0] sm:$0xff]  }
0x17bd   :  { %17521 = vmatprep.subr.bf16.mxu1 %v19459_v8 }
0x17c0   :  { %17522 = vmatpush3.bf16.msra.mxu1 %v19174_v60  ;;  %v19220_v60 = vld [vmem:[%s24133_s14 + $0x648] sm:$0xff]  }
0x17c1   :  { %17523 = vmatprep.subr.bf16.mxu1 %v19459_v8 }
0x17c4   :  { %17524 = vmatpush3.bf16.msra.mxu1 %v19175_v18  ;;  %v19222_v18 = vld [vmem:[%s24133_s14 + $0x658] sm:$0xff]  }
0x17c5   :  { %17525 = vmatprep.subr.bf16.mxu1 %v19459_v8 }
0x17c8   :  { %17526 = vmatpush3.bf16.msra.mxu1 %v19176_v4  ;;  %v19223_v4 = vld [vmem:[%s24133_s14 + $0x660] sm:$0xff]  }
0x17c9   :  { %17527 = vmatprep.subr.bf16.mxu1 %v19459_v8 }
0x17cc   :  { %17528 = vmatpush3.bf16.msra.mxu1 %v19177_v2  ;;  %v19224_v2 = vld [vmem:[%s24133_s14 + $0x668] sm:$0xff]  }
0x17cd   :  { %17529 = vmatprep.subr.bf16.mxu1 %v19459_v8 }
0x17d0   :  { %17530 = vmatpush3.bf16.msra.mxu1 %v19178_v5  ;;  %v19225_v5 = vld [vmem:[%s24133_s14 + $0x670] sm:$0xff]  }
0x17d1   :  { %17535 = vmatprep.subr.bf16.mxu1 %v19459_v8 }
0x17d3   :  { %17532 = vmatmul.mubr.bf16.vlgmr.msra.gmra.mrb[44].mxu1 %v10458_v59  ;;  %v19227_v59 = vld [vmem:[%s24133_s14 + $0x680] sm:$0xff]  }
0x17d4   :  { %17536 = vmatpush3.bf16.msra.mxu1 %v19179_v12  ;;  %17551 = vmatprep.mubr.msk.bf16.mxu1 %vm19491_vm4, %v19459_v8  ;;  %v19226_v12 = vld [vmem:[%s24133_s14 + $0x678] sm:$0xff]  }
0x17d5   :  { %17537 = vmatprep.subr.bf16.mxu1 %v19459_v8 }
0x17d8   :  { %17538 = vmatpush3.bf16.msra.mxu1 %v19180_v39  ;;  %v11106_v39 = vrot.slane %v23168_v28, 1 }
0x17d9   :  { %17539 = vmatprep.subr.bf16.mxu1 %v19459_v8 }
0x17dc   :  { %17540 = vmatpush3.bf16.msra.mxu1 %v19181_v16  ;;  %v19228_v16 = vld [vmem:[%s24133_s14 + $0x688] sm:$0xff]  }
0x17dd   :  { %17541 = vmatprep.subr.bf16.mxu1 %v19459_v8 }
0x17e0   :  { %17542 = vmatpush3.bf16.msra.mxu1 %v19182_v17  ;;  %v19229_v17 = vld [vmem:[%s24133_s14 + $0x690] sm:$0xff]  }
0x17e1   :  { %17543 = vmatprep.subr.bf16.mxu1 %v19459_v8 }
0x17e4   :  { %17544 = vmatpush3.bf16.msra.mxu1 %v19183_v19  ;;  %v19230_v19 = vld [vmem:[%s24133_s14 + $0x698] sm:$0xff]  }
0x17e5   :  { %17545 = vmatprep.subr.bf16.mxu1 %v19459_v8 }
0x17e8   :  { %17546 = vmatpush3.bf16.msra.mxu1 %v19184_v26  ;;  %v19231_v26 = vld [vmem:[%s24133_s14 + $0x6a0] sm:$0xff]  }
0x17e9   :  { %17547 = vmatprep.subr.bf16.mxu1 %v19459_v8 }
0x17ec   :  { %17548 = vmatpush3.bf16.msra.mxu1 %v19185_v25  ;;  %v19232_v25 = vld [vmem:[%s24133_s14 + $0x6a8] sm:$0xff]  }
0x17ed   :  { %17549 = vmatprep.subr.bf16.mxu1 %v19459_v8 }
0x17f0   :  { %17550 = vmatpush3.bf16.msra.mxu1 %v19186_v61  ;;  %v19233_v61 = vld [vmem:[%s24133_s14 + $0x6b0] sm:$0xff]  }
0x17f1   :  { %17555 = vmatprep.subr.bf16.mxu1 %v19459_v8 }
0x17f3   :  { %17552 = vmatmul.mubr.bf16.vlgmr.msra.gmra.mrb[44].mxu1 %v23025_v40  ;;  %v11214_v40 = vrot.slane %v23168_v28, 2 }
0x17f4   :  { %17556 = vmatpush3.bf16.msra.mxu1 %v19187_v6  ;;  %17571 = vmatprep.mubr.msk.bf16.mxu1 %vm19491_vm4, %v19459_v8  ;;  %v19235_v6 = vld [vmem:[%s24133_s14 + $0x6c0] sm:$0xff]  }
0x17f5   :  { %17557 = vmatprep.subr.bf16.mxu1 %v19459_v8 }
0x17f8   :  { %17558 = vmatpush3.bf16.msra.mxu1 %v19188_v62  ;;  %v19236_v62 = vld [vmem:[%s24133_s14 + $0x6c8] sm:$0xff]  }
0x17f9   :  { %17559 = vmatprep.subr.bf16.mxu1 %v19459_v8 }
0x17fc   :  { %17560 = vmatpush3.bf16.msra.mxu1 %v19189_v56  ;;  %v19237_v56 = vld [vmem:[%s24133_s14 + $0x6d0] sm:$0xff]  }
0x17fd   :  { %17561 = vmatprep.subr.bf16.mxu1 %v19459_v8 }
0x1800   :  { %17562 = vmatpush3.bf16.msra.mxu1 %v19190_v29  ;;  %v19238_v29 = vld [vmem:[%s24133_s14 + $0x6d8] sm:$0xff]  }
0x1801   :  { %17563 = vmatprep.subr.bf16.mxu1 %v19459_v8 }
0x1804   :  { %17564 = vmatpush3.bf16.msra.mxu1 %v19191_v27  ;;  %v19239_v27 = vld [vmem:[%s24133_s14 + $0x6e0] sm:$0xff]  }
0x1805   :  { %17565 = vmatprep.subr.bf16.mxu1 %v19459_v8 }
0x1808   :  { %17566 = vmatpush3.bf16.msra.mxu1 %v19192_v21  ;;  %v19240_v21 = vld [vmem:[%s24133_s14 + $0x6e8] sm:$0xff]  }
0x1809   :  { %17567 = vmatprep.subr.bf16.mxu1 %v19459_v8 }
0x180c   :  { %17568 = vmatpush3.bf16.msra.mxu1 %v19193_v11  ;;  %v19241_v11 = vld [vmem:[%s24133_s14 + $0x6f0] sm:$0xff]  }
0x180d   :  { %17569 = vmatprep.subr.bf16.mxu1 %v19459_v8 }
0x1810   :  { %17570 = vmatpush3.bf16.msra.mxu1 %v19194_v51  ;;  %v19242_v51 = vld [vmem:[%s24133_s14 + $0x6f8] sm:$0xff]  }
0x1811   :  { %17575 = vmatprep.subr.bf16.mxu1 %v19459_v8 }
0x1813   :  { %17572 = vmatmul.mubr.bf16.vlgmr.msra.gmra.mrb[44].mxu1 %v10674_v13  ;;  %v11322_v13 = vrot.slane %v23168_v28, 3 }
0x1814   :  { %17576 = vmatpush3.bf16.msra.mxu1 %v19195_v33  ;;  %17591 = vmatprep.mubr.msk.bf16.mxu1 %vm19491_vm4, %v19459_v8  ;;  %v19243_v33 = vld [vmem:[%s24133_s14 + $0x700] sm:$0xff]  }
0x1815   :  { %17577 = vmatprep.subr.bf16.mxu1 %v19459_v8 }
0x1818   :  { %17578 = vmatpush3.bf16.msra.mxu1 %v19196_v14  ;;  %v19244_v14 = vld [vmem:[%s24133_s14 + $0x708] sm:$0xff]  }
0x1819   :  { %17579 = vmatprep.subr.bf16.mxu1 %v19459_v8 }
0x181c   :  { %17580 = vmatpush3.bf16.msra.mxu1 %v19197_v10  ;;  %v19245_v10 = vld [vmem:[%s24133_s14 + $0x710] sm:$0xff]  }
0x181d   :  { %17581 = vmatprep.subr.bf16.mxu1 %v19459_v8 }
0x1820   :  { %17582 = vmatpush3.bf16.msra.mxu1 %v19198_v58  ;;  %v19246_v58 = vld [vmem:[%s24133_s14 + $0x718] sm:$0xff]  }
0x1821   :  { %17583 = vmatprep.subr.bf16.mxu1 %v19459_v8 }
0x1824   :  { %17584 = vmatpush3.bf16.msra.mxu1 %v19199_v20  ;;  %v19247_v20 = vld [vmem:[%s24133_s14 + $0x720] sm:$0xff]  }
0x1825   :  { %17585 = vmatprep.subr.bf16.mxu1 %v19459_v8 }
0x1828   :  { %17586 = vmatpush3.bf16.msra.mxu1 %v19200_v35  ;;  %v19248_v35 = vld [vmem:[%s24133_s14 + $0x728] sm:$0xff]  }
0x1829   :  { %17587 = vmatprep.subr.bf16.mxu1 %v19459_v8 }
0x182c   :  { %17588 = vmatpush3.bf16.msra.mxu1 %v19201_v37  ;;  %v19249_v37 = vld [vmem:[%s24133_s14 + $0x730] sm:$0xff]  }
0x182d   :  { %17589 = vmatprep.subr.bf16.mxu1 %v19459_v8 }
0x1830   :  { %17590 = vmatpush3.bf16.msra.mxu1 %v19202_v31  ;;  %v19250_v31 = vld [vmem:[%s24133_s14 + $0x738] sm:$0xff]  }
0x1831   :  { %17595 = vmatprep.subr.bf16.mxu1 %v19459_v8 }
0x1833   :  { %17592 = vmatmul.mubr.bf16.vlgmr.msra.gmra.mrb[44].mxu1 %v10782_v1  ;;  %v19251_v1 = vld [vmem:[%s24133_s14 + $0x740] sm:$0xff]  }
0x1834   :  { %17596 = vmatpush3.bf16.msra.mxu1 %v19203_v41  ;;  %17611 = vmatprep.mubr.msk.bf16.mxu1 %vm19491_vm4, %v19459_v8  ;;  %v8294_v41 = vmax.f32 %v22347_v42, 0.0  ;;  %v19253_v42 = vld [vmem:[%s24133_s14 + $0x750] sm:$0xff]  }
0x1835   :  { %17597 = vmatprep.subr.bf16.mxu1 %v19459_v8 }
0x1838   :  { %17598 = vmatpush3.bf16.msra.mxu1 %v19204_v7  ;;  %v23311_v7 = vpack.c.bf16 %v8294_v41, %v8294_v41 }
0x1839   :  { %17599 = vmatprep.subr.bf16.mxu1 %v19459_v8 }
0x183c   :  { %17600 = vmatpush3.bf16.msra.mxu1 %v19205_v43  ;;  %v19252_v43 = vld [vmem:[%s24133_s14 + $0x748] sm:$0xff]  }
0x183d   :  { %17601 = vmatprep.subr.bf16.mxu1 %v19459_v8 }
0x1840   :  { %17602 = vmatpush3.bf16.msra.mxu1 %v19206_v9  ;;  %v19254_v9 = vld [vmem:[%s24133_s14 + $0x758] sm:$0xff]  }
0x1841   :  { %17603 = vmatprep.subr.bf16.mxu1 %v19459_v8 }
0x1844   :  { %17604 = vmatpush3.bf16.msra.mxu1 %v19207_v45  ;;  %v19255_v45 = vld [vmem:[%s24133_s14 + $0x760] sm:$0xff]  }
0x1845   :  { %17605 = vmatprep.subr.bf16.mxu1 %v19459_v8 }
0x1848   :  { %17606 = vmatpush3.bf16.msra.mxu1 %v19208_v46  ;;  %v19256_v46 = vld [vmem:[%s24133_s14 + $0x768] sm:$0xff]  }
0x1849   :  { %17607 = vmatprep.subr.bf16.mxu1 %v19459_v8 }
0x184c   :  { %17608 = vmatpush3.bf16.msra.mxu1 %v19209_v44  ;;  %v19257_v44 = vld [vmem:[%s24133_s14 + $0x770] sm:$0xff]  }
0x184d   :  { %17609 = vmatprep.subr.bf16.mxu1 %v19459_v8 }
0x1850   :  { %17610 = vmatpush3.bf16.msra.mxu1 %v19210_v22  ;;  %v19258_v22 = vld [vmem:[%s24133_s14 + $0x778] sm:$0xff]  }
0x1851   :  { %17615 = vmatprep.subr.bf16.mxu1 %v19459_v8 }
0x1853   :  { %17612 = vmatmul.mubr.bf16.vlgmr.msra.gmra.mrb[44].mxu1 %v10890_v49  ;;  %v11538_v49 = vrot.slane %v23311_v7, 1 }
0x1854   :  { %17616 = vmatpush3.bf16.msra.mxu1 %v19211_v48  ;;  %17631 = vmatprep.mubr.msk.bf16.mxu1 %vm19491_vm4, %v19459_v8  ;;  %v19259_v48 = vld [vmem:[%s24133_s14 + $0x780] sm:$0xff]  }
0x1855   :  { %17617 = vmatprep.subr.bf16.mxu1 %v19459_v8 }
0x1858   :  { %17618 = vmatpush3.bf16.msra.mxu1 %v19212_v54  ;;  %v19260_v54 = vld [vmem:[%s24133_s14 + $0x788] sm:$0xff]  }
0x1859   :  { %17619 = vmatprep.subr.bf16.mxu1 %v19459_v8 }
0x185c   :  { %17620 = vmatpush3.bf16.msra.mxu1 %v19213_v50  ;;  %v19261_v50 = vld [vmem:[%s24133_s14 + $0x790] sm:$0xff]  }
0x185d   :  { %17621 = vmatprep.subr.bf16.mxu1 %v19459_v8 }
0x1860   :  { %17622 = vmatpush3.bf16.msra.mxu1 %v19214_v52  ;;  %v19262_v52 = vld [vmem:[%s24133_s14 + $0x798] sm:$0xff]  }
0x1861   :  { %17623 = vmatprep.subr.bf16.mxu1 %v19459_v8 }
0x1864   :  { %17624 = vmatpush3.bf16.msra.mxu1 %v19215_v3  ;;  %v19263_v3 = vld [vmem:[%s24133_s14 + $0x7a0] sm:$0xff]  }
0x1865   :  { %17625 = vmatprep.subr.bf16.mxu1 %v19459_v8 }
0x1868   :  { %17626 = vmatpush3.bf16.msra.mxu1 %v19216_v55  ;;  %v19264_v55 = vld [vmem:[%s24133_s14 + $0x7a8] sm:$0xff]  }
0x1869   :  { %17627 = vmatprep.subr.bf16.mxu1 %v19459_v8 }
0x186c   :  { %17628 = vmatpush3.bf16.msra.mxu1 %v19217_v57  ;;  %v19265_v57 = vld [vmem:[%s24133_s14 + $0x7b0] sm:$0xff]  }
0x186d   :  { %17629 = vmatprep.subr.bf16.mxu1 %v19459_v8 }
0x1870   :  { %17630 = vmatpush3.bf16.msra.mxu1 %v19218_v63  ;;  %v19266_v63 = vld [vmem:[%s24133_s14 + $0x7b8] sm:$0xff]  }
0x1871   :  { %17635 = vmatprep.subr.bf16.mxu1 %v19459_v8 }
0x1873   :  { %17632 = vmatmul.mubr.bf16.vlgmr.msra.gmra.mrb[44].mxu1 %v23168_v28  ;;  %v19268_v28 = vld [vmem:[%s24133_s14 + $0x7c8] sm:$0xff]  }
0x1874   :  { %17636 = vmatpush3.bf16.msra.mxu1 %v19219_v0  ;;  %17651 = vmatprep.mubr.msk.bf16.mxu1 %vm19491_vm4, %v19459_v8  ;;  %v11646_v0 = vrot.slane %v23311_v7, 2 }
0x1875   :  { %17637 = vmatprep.subr.bf16.mxu1 %v19459_v8 }
0x1878   :  { %17638 = vmatpush3.bf16.msra.mxu1 %v19220_v60  ;;  %v19269_v60 = vld [vmem:[%s24133_s14 + $0x7d0] sm:$0xff]  }
0x1879   :  { %17639 = vmatprep.subr.bf16.mxu1 %v19459_v8 }
0x187c   :  { %17640 = vmatpush3.bf16.msra.mxu1 %v19221_v36  ;;  %v19270_v36 = vld [vmem:[%s24133_s14 + $0x7d8] sm:$0xff]  }
0x187d   :  { %17641 = vmatprep.subr.bf16.mxu1 %v19459_v8 }
0x1880   :  { %17642 = vmatpush3.bf16.msra.mxu1 %v19222_v18  ;;  %v19271_v18 = vld [vmem:[%s24133_s14 + $0x7e0] sm:$0xff]  }
0x1881   :  { %17643 = vmatprep.subr.bf16.mxu1 %v19459_v8 }
0x1884   :  { %17644 = vmatpush3.bf16.msra.mxu1 %v19223_v4  ;;  %v19272_v4 = vld [vmem:[%s24133_s14 + $0x7e8] sm:$0xff]  }
0x1885   :  { %17645 = vmatprep.subr.bf16.mxu1 %v19459_v8 }
0x1888   :  { %17646 = vmatpush3.bf16.msra.mxu1 %v19224_v2  ;;  %v19273_v2 = vld [vmem:[%s24133_s14 + $0x7f0] sm:$0xff]  }
0x1889   :  { %17647 = vmatprep.subr.bf16.mxu1 %v19459_v8 }
0x188c   :  { %17648 = vmatpush3.bf16.msra.mxu1 %v19225_v5  ;;  %v19274_v5 = vld [vmem:[%s24133_s14 + $0x7f8] sm:$0xff]  }
0x188d   :  { %17649 = vmatprep.subr.bf16.mxu1 %v19459_v8 }
0x1890   :  { %17650 = vmatpush3.bf16.msra.mxu1 %v19226_v12  ;;  %v19275_v12 = vld [vmem:[%s24133_s14 + $0x800] sm:$0xff]  }
0x1891   :  { %17655 = vmatprep.subr.bf16.mxu1 %v19459_v8 }
0x1893   :  { %17652 = vmatmul.mubr.bf16.vlgmr.msra.gmra.mrb[44].mxu1 %v11106_v39  ;;  %v19276_v39 = vld [vmem:[%s24133_s14 + $0x808] sm:$0xff]  }
0x1894   :  { %17656 = vmatpush3.bf16.msra.mxu1 %v19227_v59  ;;  %17671 = vmatprep.mubr.msk.bf16.mxu1 %vm19491_vm4, %v19459_v8  ;;  %v11754_v59 = vrot.slane %v23311_v7, 3 }
0x1895   :  { %17657 = vmatprep.subr.bf16.mxu1 %v19459_v8 }
0x1898   :  { %17658 = vmatpush3.bf16.msra.mxu1 %v19228_v16  ;;  %v19277_v16 = vld [vmem:[%s24133_s14 + $0x810] sm:$0xff]  }
0x1899   :  { %17659 = vmatprep.subr.bf16.mxu1 %v19459_v8 }
0x189c   :  { %17660 = vmatpush3.bf16.msra.mxu1 %v19229_v17  ;;  %v19278_v17 = vld [vmem:[%s24133_s14 + $0x818] sm:$0xff]  }
0x189d   :  { %17661 = vmatprep.subr.bf16.mxu1 %v19459_v8 }
0x18a0   :  { %17662 = vmatpush3.bf16.msra.mxu1 %v19230_v19  ;;  %v19279_v19 = vld [vmem:[%s24133_s14 + $0x820] sm:$0xff]  }
0x18a1   :  { %17663 = vmatprep.subr.bf16.mxu1 %v19459_v8 }
0x18a4   :  { %17664 = vmatpush3.bf16.msra.mxu1 %v19231_v26  ;;  %v19280_v26 = vld [vmem:[%s24133_s14 + $0x828] sm:$0xff]  }
0x18a5   :  { %17665 = vmatprep.subr.bf16.mxu1 %v19459_v8 }
0x18a8   :  { %17666 = vmatpush3.bf16.msra.mxu1 %v19232_v25  ;;  %v19281_v25 = vld [vmem:[%s24133_s14 + $0x830] sm:$0xff]  }
0x18a9   :  { %17667 = vmatprep.subr.bf16.mxu1 %v19459_v8 }
0x18ac   :  { %17668 = vmatpush3.bf16.msra.mxu1 %v19233_v61  ;;  %v19282_v61 = vld [vmem:[%s24133_s14 + $0x838] sm:$0xff]  }
0x18ad   :  { %17669 = vmatprep.subr.bf16.mxu1 %v19459_v8 }
0x18b0   :  { %17670 = vmatpush3.bf16.msra.mxu1 %v19234_v23  ;;  %v8295_v23 = vmax.f32 %v22355_v53, 0.0  ;;  %v19285_v53 = vld [vmem:[%s24133_s14 + $0x850] sm:$0xff]  }
0x18b1   :  { %17675 = vmatprep.subr.bf16.mxu1 %v19459_v8 }
0x18b3   :  { %17672 = vmatmul.mubr.bf16.vlgmr.msra.gmra.mrb[44].mxu1 %v11214_v40  ;;  %v23454_v40 = vpack.c.bf16 %v8295_v23, %v8295_v23  ;;  %v19332_v23 = vld [vmem:[%s24133_s14 + $0x9c8] sm:$0xff]  }
0x18b4   :  { %17676 = vmatpush3.bf16.msra.mxu1 %v19235_v6  ;;  %17691 = vmatprep.mubr.msk.bf16.mxu1 %vm19491_vm4, %v19459_v8  ;;  %v19283_v6 = vld [vmem:[%s24133_s14 + $0x840] sm:$0xff]  }
0x18b5   :  { %17677 = vmatprep.subr.bf16.mxu1 %v19459_v8  ;;  %v12078_v41 = vrot.slane %v23454_v40, 2 }
0x18b8   :  { %17678 = vmatpush3.bf16.msra.mxu1 %v19236_v62  ;;  %v19284_v62 = vld [vmem:[%s24133_s14 + $0x848] sm:$0xff]  }
0x18b9   :  { %17679 = vmatprep.subr.bf16.mxu1 %v19459_v8 }
0x18bc   :  { %17680 = vmatpush3.bf16.msra.mxu1 %v19237_v56  ;;  %v19286_v56 = vld [vmem:[%s24133_s14 + $0x858] sm:$0xff]  }
0x18bd   :  { %17681 = vmatprep.subr.bf16.mxu1 %v19459_v8 }
0x18c0   :  { %17682 = vmatpush3.bf16.msra.mxu1 %v19238_v29  ;;  %v19287_v29 = vld [vmem:[%s24133_s14 + $0x860] sm:$0xff]  }
0x18c1   :  { %17683 = vmatprep.subr.bf16.mxu1 %v19459_v8 }
0x18c4   :  { %17684 = vmatpush3.bf16.msra.mxu1 %v19239_v27  ;;  %v19288_v27 = vld [vmem:[%s24133_s14 + $0x868] sm:$0xff]  }
0x18c5   :  { %17685 = vmatprep.subr.bf16.mxu1 %v19459_v8 }
0x18c8   :  { %17686 = vmatpush3.bf16.msra.mxu1 %v19240_v21  ;;  %v19289_v21 = vld [vmem:[%s24133_s14 + $0x870] sm:$0xff]  }
0x18c9   :  { %17687 = vmatprep.subr.bf16.mxu1 %v19459_v8 }
0x18cc   :  { %17688 = vmatpush3.bf16.msra.mxu1 %v19241_v11  ;;  %v19290_v11 = vld [vmem:[%s24133_s14 + $0x878] sm:$0xff]  }
0x18cd   :  { %17689 = vmatprep.subr.bf16.mxu1 %v19459_v8 }
0x18d0   :  { %17690 = vmatpush3.bf16.msra.mxu1 %v19242_v51  ;;  %v19291_v51 = vld [vmem:[%s24133_s14 + $0x880] sm:$0xff]  }
0x18d1   :  { %17695 = vmatprep.subr.bf16.mxu1 %v19459_v8 }
0x18d3   :  { %17692 = vmatmul.mubr.bf16.vlgmr.msra.gmra.mrb[44].mxu1 %v11322_v13  ;;  %v19292_v13 = vld [vmem:[%s24133_s14 + $0x888] sm:$0xff]  }
0x18d4   :  { %17696 = vmatpush3.bf16.msra.mxu1 %v19243_v33  ;;  %17711 = vmatprep.mubr.msk.bf16.mxu1 %vm19491_vm4, %v19459_v8  ;;  %v11970_v33 = vrot.slane %v23454_v40, 1 }
0x18d5   :  { %17697 = vmatprep.subr.bf16.mxu1 %v19459_v8 }
0x18d8   :  { %17698 = vmatpush3.bf16.msra.mxu1 %v19244_v14  ;;  %v19293_v14 = vld [vmem:[%s24133_s14 + $0x890] sm:$0xff]  }
0x18d9   :  { %17699 = vmatprep.subr.bf16.mxu1 %v19459_v8 }
0x18dc   :  { %17700 = vmatpush3.bf16.msra.mxu1 %v19245_v10  ;;  %v19294_v10 = vld [vmem:[%s24133_s14 + $0x898] sm:$0xff]  }
0x18dd   :  { %17701 = vmatprep.subr.bf16.mxu1 %v19459_v8 }
0x18e0   :  { %17702 = vmatpush3.bf16.msra.mxu1 %v19246_v58  ;;  %v19295_v58 = vld [vmem:[%s24133_s14 + $0x8a0] sm:$0xff]  }
0x18e1   :  { %17703 = vmatprep.subr.bf16.mxu1 %v19459_v8 }
0x18e4   :  { %17704 = vmatpush3.bf16.msra.mxu1 %v19247_v20  ;;  %v19296_v20 = vld [vmem:[%s24133_s14 + $0x8a8] sm:$0xff]  }
0x18e5   :  { %17705 = vmatprep.subr.bf16.mxu1 %v19459_v8 }
0x18e8   :  { %17706 = vmatpush3.bf16.msra.mxu1 %v19248_v35  ;;  %v19297_v35 = vld [vmem:[%s24133_s14 + $0x8b0] sm:$0xff]  }
0x18e9   :  { %17707 = vmatprep.subr.bf16.mxu1 %v19459_v8 }
0x18ec   :  { %17708 = vmatpush3.bf16.msra.mxu1 %v19249_v37  ;;  %v19298_v37 = vld [vmem:[%s24133_s14 + $0x8b8] sm:$0xff]  }
0x18ed   :  { %17709 = vmatprep.subr.bf16.mxu1 %v19459_v8 }
0x18f0   :  { %17710 = vmatpush3.bf16.msra.mxu1 %v19250_v31  ;;  %v19299_v31 = vld [vmem:[%s24133_s14 + $0x8c0] sm:$0xff]  }
0x18f1   :  { %17715 = vmatprep.subr.bf16.mxu1 %v19459_v8 }
0x18f3   :  { %17712 = vmatmul.mubr.bf16.vlgmr.msra.gmra.mrb[44].mxu1 %v23311_v7  ;;  %v19301_v7 = vld [vmem:[%s24133_s14 + $0x8d0] sm:$0xff]  }
0x18f4   :  { %17716 = vmatpush3.bf16.msra.mxu1 %v19251_v1  ;;  %17731 = vmatprep.mubr.msk.bf16.mxu1 %vm19491_vm4, %v19459_v8  ;;  %v19300_v1 = vld [vmem:[%s24133_s14 + $0x8c8] sm:$0xff]  }
0x18f5   :  { %17717 = vmatprep.subr.bf16.mxu1 %v19459_v8 }
0x18f8   :  { %17718 = vmatpush3.bf16.msra.mxu1 %v19252_v43  ;;  %v19302_v43 = vld [vmem:[%s24133_s14 + $0x8d8] sm:$0xff]  }
0x18f9   :  { %17719 = vmatprep.subr.bf16.mxu1 %v19459_v8 }
0x18fc   :  { %17720 = vmatpush3.bf16.msra.mxu1 %v19253_v42  ;;  %v19303_v42 = vld [vmem:[%s24133_s14 + $0x8e0] sm:$0xff]  }
0x18fd   :  { %17721 = vmatprep.subr.bf16.mxu1 %v19459_v8 }
0x1900   :  { %17722 = vmatpush3.bf16.msra.mxu1 %v19254_v9  ;;  %v19304_v9 = vld [vmem:[%s24133_s14 + $0x8e8] sm:$0xff]  }
0x1901   :  { %17723 = vmatprep.subr.bf16.mxu1 %v19459_v8 }
0x1904   :  { %17724 = vmatpush3.bf16.msra.mxu1 %v19255_v45  ;;  %v19305_v45 = vld [vmem:[%s24133_s14 + $0x8f0] sm:$0xff]  }
0x1905   :  { %17725 = vmatprep.subr.bf16.mxu1 %v19459_v8 }
0x1908   :  { %17726 = vmatpush3.bf16.msra.mxu1 %v19256_v46  ;;  %v19306_v46 = vld [vmem:[%s24133_s14 + $0x8f8] sm:$0xff]  }
0x1909   :  { %17727 = vmatprep.subr.bf16.mxu1 %v19459_v8 }
0x190c   :  { %17728 = vmatpush3.bf16.msra.mxu1 %v19257_v44  ;;  %v19307_v44 = vld [vmem:[%s24133_s14 + $0x900] sm:$0xff]  }
0x190d   :  { %17729 = vmatprep.subr.bf16.mxu1 %v19459_v8 }
0x1910   :  { %17730 = vmatpush3.bf16.msra.mxu1 %v19258_v22  ;;  %v12186_v22 = vrot.slane %v23454_v40, 3 }
0x1911   :  { %17735 = vmatprep.subr.bf16.mxu1 %v19459_v8 }
0x1913   :  { %17732 = vmatmul.mubr.bf16.vlgmr.msra.gmra.mrb[44].mxu1 %v11538_v49  ;;  %v19309_v49 = vld [vmem:[%s24133_s14 + $0x910] sm:$0xff]  }
0x1914   :  { %17736 = vmatpush3.bf16.msra.mxu1 %v19259_v48  ;;  %17751 = vmatprep.mubr.msk.bf16.mxu1 %vm19491_vm4, %v19459_v8  ;;  %v19308_v48 = vld [vmem:[%s24133_s14 + $0x908] sm:$0xff]  }
0x1915   :  { %17737 = vmatprep.subr.bf16.mxu1 %v19459_v8 }
0x1918   :  { %17738 = vmatpush3.bf16.msra.mxu1 %v19260_v54  ;;  %v19310_v54 = vld [vmem:[%s24133_s14 + $0x918] sm:$0xff]  }
0x1919   :  { %17739 = vmatprep.subr.bf16.mxu1 %v19459_v8 }
0x191c   :  { %17740 = vmatpush3.bf16.msra.mxu1 %v19261_v50  ;;  %v19311_v50 = vld [vmem:[%s24133_s14 + $0x920] sm:$0xff]  }
0x191d   :  { %17741 = vmatprep.subr.bf16.mxu1 %v19459_v8 }
0x1920   :  { %17742 = vmatpush3.bf16.msra.mxu1 %v19262_v52  ;;  %v19312_v52 = vld [vmem:[%s24133_s14 + $0x928] sm:$0xff]  }
0x1921   :  { %17743 = vmatprep.subr.bf16.mxu1 %v19459_v8 }
0x1924   :  { %17744 = vmatpush3.bf16.msra.mxu1 %v19263_v3  ;;  %v19313_v3 = vld [vmem:[%s24133_s14 + $0x930] sm:$0xff]  }
0x1925   :  { %17745 = vmatprep.subr.bf16.mxu1 %v19459_v8 }
0x1928   :  { %17746 = vmatpush3.bf16.msra.mxu1 %v19264_v55  ;;  %v19314_v55 = vld [vmem:[%s24133_s14 + $0x938] sm:$0xff]  }
0x1929   :  { %17747 = vmatprep.subr.bf16.mxu1 %v19459_v8 }
0x192c   :  { %17748 = vmatpush3.bf16.msra.mxu1 %v19265_v57  ;;  %v8296_v57 = vmax.f32 %v22361_v38, 0.0  ;;  %v19317_v38 = vld [vmem:[%s24133_s14 + $0x950] sm:$0xff]  }
0x192d   :  { %17749 = vmatprep.subr.bf16.mxu1 %v19459_v8 }
0x1930   :  { %17750 = vmatpush3.bf16.msra.mxu1 %v19266_v63  ;;  %v19315_v63 = vld [vmem:[%s24133_s14 + $0x940] sm:$0xff]  }
0x1931   :  { %17755 = vmatprep.subr.bf16.mxu1 %v19459_v8 }
0x1933   :  { %17752 = vmatmul.mubr.bf16.vlgmr.msra.gmra.mrb[44].mxu1 %v11646_v0  ;;  %v19316_v0 = vld [vmem:[%s24133_s14 + $0x948] sm:$0xff]  }
0x1934   :  { %17756 = vmatpush3.bf16.msra.mxu1 %v19267_v24  ;;  %17771 = vmatprep.mubr.msk.bf16.mxu1 %vm19491_vm4, %v19459_v8  ;;  %v23597_v24 = vpack.c.bf16 %v8296_v57, %v8296_v57  ;;  %v19365_v57 = vld [vmem:[%s24133_s14 + $0xad0] sm:$0xff]  }
0x1935   :  { %17757 = vmatprep.subr.bf16.mxu1 %v19459_v8 }
0x1938   :  { %17758 = vmatpush3.bf16.msra.mxu1 %v19268_v28  ;;  %v19318_v28 = vld [vmem:[%s24133_s14 + $0x958] sm:$0xff]  }
0x1939   :  { %17759 = vmatprep.subr.bf16.mxu1 %v19459_v8 }
0x193c   :  { %17760 = vmatpush3.bf16.msra.mxu1 %v19269_v60  ;;  %v19319_v60 = vld [vmem:[%s24133_s14 + $0x960] sm:$0xff]  }
0x193d   :  { %17761 = vmatprep.subr.bf16.mxu1 %v19459_v8 }
0x1940   :  { %17762 = vmatpush3.bf16.msra.mxu1 %v19270_v36  ;;  %v19320_v36 = vld [vmem:[%s24133_s14 + $0x968] sm:$0xff]  }
0x1941   :  { %17763 = vmatprep.subr.bf16.mxu1 %v19459_v8 }
0x1944   :  { %17764 = vmatpush3.bf16.msra.mxu1 %v19271_v18  ;;  %v19321_v18 = vld [vmem:[%s24133_s14 + $0x970] sm:$0xff]  }
0x1945   :  { %17765 = vmatprep.subr.bf16.mxu1 %v19459_v8 }
0x1948   :  { %17766 = vmatpush3.bf16.msra.mxu1 %v19272_v4  ;;  %v19322_v4 = vld [vmem:[%s24133_s14 + $0x978] sm:$0xff]  }
0x1949   :  { %17767 = vmatprep.subr.bf16.mxu1 %v19459_v8 }
0x194c   :  { %17768 = vmatpush3.bf16.msra.mxu1 %v19273_v2  ;;  %v19323_v2 = vld [vmem:[%s24133_s14 + $0x980] sm:$0xff]  }
0x194d   :  { %17769 = vmatprep.subr.bf16.mxu1 %v19459_v8 }
0x1950   :  { %17770 = vmatpush3.bf16.msra.mxu1 %v19274_v5  ;;  %v12402_v5 = vrot.slane %v23597_v24, 1 }
0x1951   :  { %17775 = vmatprep.subr.bf16.mxu1 %v19459_v8 }
0x1953   :  { %17772 = vmatmul.mubr.bf16.vlgmr.msra.gmra.mrb[44].mxu1 %v11754_v59  ;;  %v19325_v59 = vld [vmem:[%s24133_s14 + $0x990] sm:$0xff]  }
0x1954   :  { %17776 = vmatpush3.bf16.msra.mxu1 %v19275_v12  ;;  %17791 = vmatprep.mubr.msk.bf16.mxu1 %vm19491_vm4, %v19459_v8  ;;  %v19324_v12 = vld [vmem:[%s24133_s14 + $0x988] sm:$0xff]  }
0x1955   :  { %17777 = vmatprep.subr.bf16.mxu1 %v19459_v8 }
0x1958   :  { %17778 = vmatpush3.bf16.msra.mxu1 %v19276_v39  ;;  %v19326_v39 = vld [vmem:[%s24133_s14 + $0x998] sm:$0xff]  }
0x1959   :  { %17779 = vmatprep.subr.bf16.mxu1 %v19459_v8 }
0x195c   :  { %17780 = vmatpush3.bf16.msra.mxu1 %v19277_v16  ;;  %v19327_v16 = vld [vmem:[%s24133_s14 + $0x9a0] sm:$0xff]  }
0x195d   :  { %17781 = vmatprep.subr.bf16.mxu1 %v19459_v8 }
0x1960   :  { %17782 = vmatpush3.bf16.msra.mxu1 %v19278_v17  ;;  %v19328_v17 = vld [vmem:[%s24133_s14 + $0x9a8] sm:$0xff]  }
0x1961   :  { %17783 = vmatprep.subr.bf16.mxu1 %v19459_v8 }
0x1964   :  { %17784 = vmatpush3.bf16.msra.mxu1 %v19279_v19  ;;  %v19329_v19 = vld [vmem:[%s24133_s14 + $0x9b0] sm:$0xff]  }
0x1965   :  { %17785 = vmatprep.subr.bf16.mxu1 %v19459_v8 }
0x1968   :  { %17786 = vmatpush3.bf16.msra.mxu1 %v19280_v26  ;;  %v19330_v26 = vld [vmem:[%s24133_s14 + $0x9b8] sm:$0xff]  }
0x1969   :  { %17787 = vmatprep.subr.bf16.mxu1 %v19459_v8 }
0x196c   :  { %17788 = vmatpush3.bf16.msra.mxu1 %v19281_v25  ;;  %v19331_v25 = vld [vmem:[%s24133_s14 + $0x9c0] sm:$0xff]  }
0x196d   :  { %17789 = vmatprep.subr.bf16.mxu1 %v19459_v8 }
0x1970   :  { %17790 = vmatpush3.bf16.msra.mxu1 %v19282_v61  ;;  %v12510_v61 = vrot.slane %v23597_v24, 2 }
0x1971   :  { %17795 = vmatprep.subr.bf16.mxu1 %v19459_v8 }
0x1973   :  { %17792 = vmatmul.mubr.bf16.vlgmr.msra.gmra.mrb[44].mxu1 %v23454_v40  ;;  %v19334_v40 = vld [vmem:[%s24133_s14 + $0x9d8] sm:$0xff]  }
0x1974   :  { %17796 = vmatpush3.bf16.msra.mxu1 %v19283_v6  ;;  %17811 = vmatprep.mubr.msk.bf16.mxu1 %vm19491_vm4, %v19459_v8  ;;  %v19333_v6 = vld [vmem:[%s24133_s14 + $0x9d0] sm:$0xff]  }
0x1975   :  { %17797 = vmatprep.subr.bf16.mxu1 %v19459_v8 }
0x1978   :  { %17798 = vmatpush3.bf16.msra.mxu1 %v19284_v62  ;;  %v19335_v62 = vld [vmem:[%s24133_s14 + $0x9e0] sm:$0xff]  }
0x1979   :  { %17799 = vmatprep.subr.bf16.mxu1 %v19459_v8 }
0x197c   :  { %17800 = vmatpush3.bf16.msra.mxu1 %v19285_v53  ;;  %v19336_v53 = vld [vmem:[%s24133_s14 + $0x9e8] sm:$0xff]  }
0x197d   :  { %17801 = vmatprep.subr.bf16.mxu1 %v19459_v8 }
0x1980   :  { %17802 = vmatpush3.bf16.msra.mxu1 %v19286_v56  ;;  %v19337_v56 = vld [vmem:[%s24133_s14 + $0x9f0] sm:$0xff]  }
0x1981   :  { %17803 = vmatprep.subr.bf16.mxu1 %v19459_v8 }
0x1984   :  { %17804 = vmatpush3.bf16.msra.mxu1 %v19287_v29  ;;  %v19338_v29 = vld [vmem:[%s24133_s14 + $0x9f8] sm:$0xff]  }
0x1985   :  { %17805 = vmatprep.subr.bf16.mxu1 %v19459_v8 }
0x1988   :  { %17806 = vmatpush3.bf16.msra.mxu1 %v19288_v27  ;;  %v19339_v27 = vld [vmem:[%s24133_s14 + $0xa00] sm:$0xff]  }
0x1989   :  { %17807 = vmatprep.subr.bf16.mxu1 %v19459_v8 }
0x198c   :  { %17808 = vmatpush3.bf16.msra.mxu1 %v19289_v21  ;;  %v12618_v21 = vrot.slane %v23597_v24, 3 }
0x198d   :  { %17809 = vmatprep.subr.bf16.mxu1 %v19459_v8 }
0x1990   :  { %17810 = vmatpush3.bf16.msra.mxu1 %v19290_v11  ;;  %v19340_v11 = vld [vmem:[%s24133_s14 + $0xa08] sm:$0xff]  }
0x1991   :  { %17815 = vmatprep.subr.bf16.mxu1 %v19459_v8 }
0x1993   :  { %17812 = vmatmul.mubr.bf16.vlgmr.msra.gmra.mrb[44].mxu1 %v11970_v33  ;;  %v19342_v33 = vld [vmem:[%s24133_s14 + $0xa18] sm:$0xff]  }
0x1994   :  { %17816 = vmatpush3.bf16.msra.mxu1 %v19291_v51  ;;  %17831 = vmatprep.mubr.msk.bf16.mxu1 %vm19491_vm4, %v19459_v8  ;;  %v19341_v51 = vld [vmem:[%s24133_s14 + $0xa10] sm:$0xff]  }
0x1995   :  { %17817 = vmatprep.subr.bf16.mxu1 %v19459_v8 }
0x1998   :  { %17818 = vmatpush3.bf16.msra.mxu1 %v19292_v13  ;;  %v19343_v13 = vld [vmem:[%s24133_s14 + $0xa20] sm:$0xff]  }
0x1999   :  { %17819 = vmatprep.subr.bf16.mxu1 %v19459_v8 }
0x199c   :  { %17820 = vmatpush3.bf16.msra.mxu1 %v19293_v14  ;;  %v19344_v14 = vld [vmem:[%s24133_s14 + $0xa28] sm:$0xff]  }
0x199d   :  { %17821 = vmatprep.subr.bf16.mxu1 %v19459_v8 }
0x19a0   :  { %17822 = vmatpush3.bf16.msra.mxu1 %v19294_v10  ;;  %v19345_v10 = vld [vmem:[%s24133_s14 + $0xa30] sm:$0xff]  }
0x19a1   :  { %17823 = vmatprep.subr.bf16.mxu1 %v19459_v8 }
0x19a4   :  { %17824 = vmatpush3.bf16.msra.mxu1 %v19295_v58  ;;  %v19346_v58 = vld [vmem:[%s24133_s14 + $0xa38] sm:$0xff]  }
0x19a5   :  { %17825 = vmatprep.subr.bf16.mxu1 %v19459_v8 }
0x19a8   :  { %17826 = vmatpush3.bf16.msra.mxu1 %v19296_v20  ;;  %v8297_v20 = vmax.f32 %v22370_v34, 0.0  ;;  %v19349_v34 = vld [vmem:[%s24133_s14 + $0xa50] sm:$0xff]  }
0x19a9   :  { %17827 = vmatprep.subr.bf16.mxu1 %v19459_v8 }
0x19ac   :  { %17828 = vmatpush3.bf16.msra.mxu1 %v19297_v35  ;;  %v19347_v35 = vld [vmem:[%s24133_s14 + $0xa40] sm:$0xff]  }
0x19ad   :  { %17829 = vmatprep.subr.bf16.mxu1 %v19459_v8 }
0x19b0   :  { %17830 = vmatpush3.bf16.msra.mxu1 %v19298_v37  ;;  %v23740_v37 = vpack.c.bf16 %v8297_v20, %v8297_v20  ;;  %v13796_v20 = vld [vmem:[%s24136_s17 + $0x30] sm:$0xff] }
0x19b1   :  { %17835 = vmatprep.subr.bf16.mxu1 %v19459_v8 }
0x19b3   :  { %17832 = vmatmul.mubr.bf16.vlgmr.msra.gmra.mrb[44].mxu1 %v12078_v41  ;;  %v19350_v41 = vld [vmem:[%s24133_s14 + $0xa58] sm:$0xff]  }
0x19b4   :  { %17836 = vmatpush3.bf16.msra.mxu1 %v19299_v31  ;;  %17851 = vmatprep.mubr.msk.bf16.mxu1 %vm19491_vm4, %v19459_v8  ;;  %v19348_v31 = vld [vmem:[%s24133_s14 + $0xa48] sm:$0xff]  }
0x19b5   :  { %17837 = vmatprep.subr.bf16.mxu1 %v19459_v8 }
0x19b8   :  { %17838 = vmatpush3.bf16.msra.mxu1 %v19300_v1  ;;  %v19351_v1 = vld [vmem:[%s24133_s14 + $0xa60] sm:$0xff]  }
0x19b9   :  { %17839 = vmatprep.subr.bf16.mxu1 %v19459_v8 }
0x19bc   :  { %17840 = vmatpush3.bf16.msra.mxu1 %v19301_v7  ;;  %v19352_v7 = vld [vmem:[%s24133_s14 + $0xa68] sm:$0xff]  }
0x19bd   :  { %17841 = vmatprep.subr.bf16.mxu1 %v19459_v8 }
0x19c0   :  { %17842 = vmatpush3.bf16.msra.mxu1 %v19302_v43  ;;  %v19353_v43 = vld [vmem:[%s24133_s14 + $0xa70] sm:$0xff]  }
0x19c1   :  { %17843 = vmatprep.subr.bf16.mxu1 %v19459_v8 }
0x19c4   :  { %17844 = vmatpush3.bf16.msra.mxu1 %v19303_v42  ;;  %v19354_v42 = vld [vmem:[%s24133_s14 + $0xa78] sm:$0xff]  }
0x19c5   :  { %17845 = vmatprep.subr.bf16.mxu1 %v19459_v8 }
0x19c8   :  { %17846 = vmatpush3.bf16.msra.mxu1 %v19304_v9  ;;  %v19355_v9 = vld [vmem:[%s24133_s14 + $0xa80] sm:$0xff]  }
0x19c9   :  { %17847 = vmatprep.subr.bf16.mxu1 %v19459_v8 }
0x19cc   :  { %17848 = vmatpush3.bf16.msra.mxu1 %v19305_v45  ;;  %v12834_v45 = vrot.slane %v23740_v37, 1 }
0x19cd   :  { %17849 = vmatprep.subr.bf16.mxu1 %v19459_v8 }
0x19d0   :  { %17850 = vmatpush3.bf16.msra.mxu1 %v19306_v46  ;;  %v19356_v46 = vld [vmem:[%s24133_s14 + $0xa88] sm:$0xff]  }
0x19d1   :  { %17855 = vmatprep.subr.bf16.mxu1 %v19459_v8 }
0x19d3   :  { %17852 = vmatmul.mubr.bf16.vlgmr.msra.gmra.mrb[44].mxu1 %v12186_v22  ;;  %v19358_v22 = vld [vmem:[%s24133_s14 + $0xa98] sm:$0xff]  }
0x19d4   :  { %17856 = vmatpush3.bf16.msra.mxu1 %v19307_v44  ;;  %17871 = vmatprep.mubr.msk.bf16.mxu1 %vm19491_vm4, %v19459_v8  ;;  %v19357_v44 = vld [vmem:[%s24133_s14 + $0xa90] sm:$0xff]  }
0x19d5   :  { %17857 = vmatprep.subr.bf16.mxu1 %v19459_v8 }
0x19d8   :  { %17858 = vmatpush3.bf16.msra.mxu1 %v19308_v48  ;;  %v19359_v48 = vld [vmem:[%s24133_s14 + $0xaa0] sm:$0xff]  }
0x19d9   :  { %17859 = vmatprep.subr.bf16.mxu1 %v19459_v8 }
0x19dc   :  { %17860 = vmatpush3.bf16.msra.mxu1 %v19309_v49  ;;  %v19360_v49 = vld [vmem:[%s24133_s14 + $0xaa8] sm:$0xff]  }
0x19dd   :  { %17861 = vmatprep.subr.bf16.mxu1 %v19459_v8 }
0x19e0   :  { %17862 = vmatpush3.bf16.msra.mxu1 %v19310_v54  ;;  %v19361_v54 = vld [vmem:[%s24133_s14 + $0xab0] sm:$0xff]  }
0x19e1   :  { %17863 = vmatprep.subr.bf16.mxu1 %v19459_v8 }
0x19e4   :  { %17864 = vmatpush3.bf16.msra.mxu1 %v19311_v50  ;;  %v19362_v50 = vld [vmem:[%s24133_s14 + $0xab8] sm:$0xff]  }
0x19e5   :  { %17865 = vmatprep.subr.bf16.mxu1 %v19459_v8 }
0x19e8   :  { %17866 = vmatpush3.bf16.msra.mxu1 %v19312_v52  ;;  %v19363_v52 = vld [vmem:[%s24133_s14 + $0xac0] sm:$0xff]  }
0x19e9   :  { %17867 = vmatprep.subr.bf16.mxu1 %v19459_v8 }
0x19ec   :  { %17868 = vmatpush3.bf16.msra.mxu1 %v19313_v3  ;;  %v12942_v3 = vrot.slane %v23740_v37, 2 }
0x19ed   :  { %17869 = vmatprep.subr.bf16.mxu1 %v19459_v8 }
0x19f0   :  { %17870 = vmatpush3.bf16.msra.mxu1 %v19314_v55  ;;  %v19364_v55 = vld [vmem:[%s24133_s14 + $0xac8] sm:$0xff]  }
0x19f1   :  { %17875 = vmatprep.subr.bf16.mxu1 %v19459_v8 }
0x19f3   :  { %17872 = vmatmul.mubr.bf16.vlgmr.msra.gmra.mrb[44].mxu1 %v23597_v24  ;;  %v19367_v24 = vld [vmem:[%s24133_s14 + $0xae0] sm:$0xff]  }
0x19f4   :  { %17876 = vmatpush3.bf16.msra.mxu1 %v19315_v63  ;;  %17891 = vmatprep.mubr.msk.bf16.mxu1 %vm19491_vm4, %v19459_v8  ;;  %v19366_v63 = vld [vmem:[%s24133_s14 + $0xad8] sm:$0xff]  }
0x19f5   :  { %17877 = vmatprep.subr.bf16.mxu1 %v19459_v8 }
0x19f8   :  { %17878 = vmatpush3.bf16.msra.mxu1 %v19316_v0  ;;  %v19368_v0 = vld [vmem:[%s24133_s14 + $0xae8] sm:$0xff]  }
0x19f9   :  { %17879 = vmatprep.subr.bf16.mxu1 %v19459_v8 }
0x19fc   :  { %17880 = vmatpush3.bf16.msra.mxu1 %v19317_v38  ;;  %v19369_v38 = vld [vmem:[%s24133_s14 + $0xaf0] sm:$0xff]  }
0x19fd   :  { %17881 = vmatprep.subr.bf16.mxu1 %v19459_v8 }
0x1a00   :  { %17882 = vmatpush3.bf16.msra.mxu1 %v19318_v28  ;;  %v19370_v28 = vld [vmem:[%s24133_s14 + $0xaf8] sm:$0xff]  }
0x1a01   :  { %17883 = vmatprep.subr.bf16.mxu1 %v19459_v8 }
0x1a04   :  { %17884 = vmatpush3.bf16.msra.mxu1 %v19319_v60  ;;  %v19371_v60 = vld [vmem:[%s24133_s14 + $0xb00] sm:$0xff]  }
0x1a05   :  { %17885 = vmatprep.subr.bf16.mxu1 %v19459_v8 }
0x1a08   :  { %17886 = vmatpush3.bf16.msra.mxu1 %v19320_v36  ;;  %v13050_v36 = vrot.slane %v23740_v37, 3 }
0x1a09   :  { %17887 = vmatprep.subr.bf16.mxu1 %v19459_v8 }
0x1a0c   :  { %17888 = vmatpush3.bf16.msra.mxu1 %v19321_v18  ;;  %v19372_v18 = vld [vmem:[%s24133_s14 + $0xb08] sm:$0xff]  }
0x1a0d   :  { %17889 = vmatprep.subr.bf16.mxu1 %v19459_v8 }
0x1a10   :  { %17890 = vmatpush3.bf16.msra.mxu1 %v19322_v4  ;;  %v19373_v4 = vld [vmem:[%s24133_s14 + $0xb10] sm:$0xff]  }
0x1a11   :  { %17895 = vmatprep.subr.bf16.mxu1 %v19459_v8 }
0x1a13   :  { %17892 = vmatmul.mubr.bf16.vlgmr.msra.gmra.mrb[44].mxu1 %v12402_v5  ;;  %v19375_v5 = vld [vmem:[%s24133_s14 + $0xb20] sm:$0xff]  }
0x1a14   :  { %17896 = vmatpush3.bf16.msra.mxu1 %v19323_v2  ;;  %17911 = vmatprep.mubr.msk.bf16.mxu1 %vm19491_vm4, %v19459_v8  ;;  %v19374_v2 = vld [vmem:[%s24133_s14 + $0xb18] sm:$0xff]  }
0x1a15   :  { %17897 = vmatprep.subr.bf16.mxu1 %v19459_v8 }
0x1a18   :  { %17898 = vmatpush3.bf16.msra.mxu1 %v19324_v12  ;;  %v19376_v12 = vld [vmem:[%s24133_s14 + $0xb28] sm:$0xff]  }
0x1a19   :  { %17899 = vmatprep.subr.bf16.mxu1 %v19459_v8 }
0x1a1c   :  { %17900 = vmatpush3.bf16.msra.mxu1 %v19325_v59  ;;  %v19377_v59 = vld [vmem:[%s24133_s14 + $0xb30] sm:$0xff]  }
0x1a1d   :  { %17901 = vmatprep.subr.bf16.mxu1 %v19459_v8 }
0x1a20   :  { %17902 = vmatpush3.bf16.msra.mxu1 %v19326_v39  ;;  %v19378_v39 = vld [vmem:[%s24133_s14 + $0xb38] sm:$0xff]  }
0x1a21   :  { %17903 = vmatprep.subr.bf16.mxu1 %v19459_v8 }
0x1a24   :  { %17904 = vmatpush3.bf16.msra.mxu1 %v19327_v16  ;;  %v8298_v16 = vmax.f32 %v22378_v15, 0.0  ;;  %v19381_v15 = vld [vmem:[%s24133_s14 + $0xb50] sm:$0xff]  }
0x1a25   :  { %17905 = vmatprep.subr.bf16.mxu1 %v19459_v8 }
0x1a28   :  { %17906 = vmatpush3.bf16.msra.mxu1 %v19328_v17  ;;  %v19379_v17 = vld [vmem:[%s24133_s14 + $0xb40] sm:$0xff]  }
0x1a29   :  { %17907 = vmatprep.subr.bf16.mxu1 %v19459_v8 }
0x1a2c   :  { %17908 = vmatpush3.bf16.msra.mxu1 %v19329_v19  ;;  %v23883_v19 = vpack.c.bf16 %v8298_v16, %v8298_v16 }
0x1a2d   :  { %17909 = vmatprep.subr.bf16.mxu1 %v19459_v8 }
0x1a30   :  { %17910 = vmatpush3.bf16.msra.mxu1 %v19330_v26  ;;  %v19380_v26 = vld [vmem:[%s24133_s14 + $0xb48] sm:$0xff]  }
0x1a31   :  { %17915 = vmatprep.subr.bf16.mxu1 %v19459_v8 }
0x1a33   :  { %17912 = vmatmul.mubr.bf16.vlgmr.msra.gmra.mrb[44].mxu1 %v12510_v61  ;;  %v19383_v61 = vld [vmem:[%s24133_s14 + $0xb60] sm:$0xff]  }
0x1a34   :  { %17916 = vmatpush3.bf16.msra.mxu1 %v19331_v25  ;;  %17931 = vmatprep.mubr.msk.bf16.mxu1 %vm19491_vm4, %v19459_v8  ;;  %v19382_v25 = vld [vmem:[%s24133_s14 + $0xb58] sm:$0xff]  }
0x1a35   :  { %17917 = vmatprep.subr.bf16.mxu1 %v19459_v8 }
0x1a38   :  { %17918 = vmatpush3.bf16.msra.mxu1 %v19332_v23  ;;  %v19384_v23 = vld [vmem:[%s24133_s14 + $0xb68] sm:$0xff]  }
0x1a39   :  { %17919 = vmatprep.subr.bf16.mxu1 %v19459_v8 }
0x1a3c   :  { %17920 = vmatpush3.bf16.msra.mxu1 %v19333_v6  ;;  %v19385_v6 = vld [vmem:[%s24133_s14 + $0xb70] sm:$0xff]  }
0x1a3d   :  { %17921 = vmatprep.subr.bf16.mxu1 %v19459_v8 }
0x1a40   :  { %17922 = vmatpush3.bf16.msra.mxu1 %v19334_v40  ;;  %v19386_v40 = vld [vmem:[%s24133_s14 + $0xb78] sm:$0xff]  }
0x1a41   :  { %17923 = vmatprep.subr.bf16.mxu1 %v19459_v8 }
0x1a44   :  { %17924 = vmatpush3.bf16.msra.mxu1 %v19335_v62  ;;  %v19387_v62 = vld [vmem:[%s24133_s14 + $0xb80] sm:$0xff]  }
0x1a45   :  { %17925 = vmatprep.subr.bf16.mxu1 %v19459_v8 }
0x1a48   :  { %17926 = vmatpush3.bf16.msra.mxu1 %v19336_v53  ;;  %v13266_v53 = vrot.slane %v23883_v19, 1 }
0x1a49   :  { %17927 = vmatprep.subr.bf16.mxu1 %v19459_v8 }
0x1a4c   :  { %17928 = vmatpush3.bf16.msra.mxu1 %v19337_v56  ;;  %v13790_v56 = vld [vmem:[%s24136_s17] sm:$0xff] }
0x1a4d   :  { %17929 = vmatprep.subr.bf16.mxu1 %v19459_v8 }
0x1a50   :  { %17930 = vmatpush3.bf16.msra.mxu1 %v19338_v29  ;;  %v13791_v29 = vld [vmem:[%s24136_s17 + $0x8] sm:$0xff] }
0x1a51   :  { %17935 = vmatprep.subr.bf16.mxu1 %v19459_v8 }
0x1a53   :  { %17932 = vmatmul.mubr.bf16.vlgmr.msra.gmra.mrb[44].mxu1 %v12618_v21  ;;  %v19388_v21 = vld [vmem:[%s24133_s14 + $0xb88] sm:$0xff]  }
0x1a54   :  { %17936 = vmatpush3.bf16.msra.mxu1 %v19339_v27  ;;  %17951 = vmatprep.mubr.msk.bf16.mxu1 %vm19491_vm4, %v19459_v8  ;;  %v13792_v27 = vld [vmem:[%s24136_s17 + $0x10] sm:$0xff] }
0x1a55   :  { %17937 = vmatprep.subr.bf16.mxu1 %v19459_v8 }
0x1a58   :  { %17938 = vmatpush3.bf16.msra.mxu1 %v19340_v11  ;;  %v18307_v11 = vpack.c.bf16 %v13791_v29, %v13790_v56 }
0x1a59   :  { %17939 = vmatprep.subr.bf16.mxu1 %v19459_v8 }
0x1a5a   :  { %18308 = vmatpush3.bf16.msra.mxu0 %v18307_v11 }
0x1a5b   :  { %18309 = vmatprep.subr.bf16.mxu0 %v19490_v30 }
0x1a5c   :  { %17940 = vmatpush3.bf16.msra.mxu1 %v19341_v51  ;;  %v13793_v51 = vld [vmem:[%s24136_s17 + $0x18] sm:$0xff] }
0x1a5d   :  { %17941 = vmatprep.subr.bf16.mxu1 %v19459_v8 }
0x1a60   :  { %17942 = vmatpush3.bf16.msra.mxu1 %v19342_v33  ;;  %v18310_v33 = vpack.c.bf16 %v13793_v51, %v13792_v27 }
0x1a61   :  { %17943 = vmatprep.subr.bf16.mxu1 %v19459_v8 }
0x1a62   :  { %18311 = vmatpush3.bf16.msra.mxu0 %v18310_v33 }
0x1a63   :  { %18312 = vmatprep.subr.bf16.mxu0 %v19490_v30 }
0x1a64   :  { %17944 = vmatpush3.bf16.msra.mxu1 %v19343_v13  ;;  %v13794_v13 = vld [vmem:[%s24136_s17 + $0x20] sm:$0xff] }
0x1a65   :  { %17945 = vmatprep.subr.bf16.mxu1 %v19459_v8 }
0x1a68   :  { %17946 = vmatpush3.bf16.msra.mxu1 %v19344_v14  ;;  %v13795_v14 = vld [vmem:[%s24136_s17 + $0x28] sm:$0xff] }
0x1a69   :  { %17947 = vmatprep.subr.bf16.mxu1 %v19459_v8 }
0x1a6c   :  { %17948 = vmatpush3.bf16.msra.mxu1 %v19345_v10  ;;  %v19389_v10 = vld [vmem:[%s24133_s14 + $0xb90] sm:$0xff]  }
0x1a6d   :  { %17949 = vmatprep.subr.bf16.mxu1 %v19459_v8 }
0x1a70   :  { %17950 = vmatpush3.bf16.msra.mxu1 %v19346_v58  ;;  %v18313_v58 = vpack.c.bf16 %v13795_v14, %v13794_v13 }
0x1a71   :  { %17955 = vmatprep.subr.bf16.mxu1 %v19459_v8 }
0x1a72   :  { %18314 = vmatpush3.bf16.msra.mxu0 %v18313_v58 }
0x1a73   :  { %17952 = vmatmul.mubr.bf16.vlgmr.msra.gmra.mrb[44].mxu1 %v23740_v37  ;;  %v19390_v37 = vld [vmem:[%s24133_s14 + $0xb98] sm:$0xff]   ;;  %18315 = vmatprep.subr.bf16.mxu0 %v19490_v30 }
0x1a74   :  { %17956 = vmatpush3.bf16.msra.mxu1 %v19347_v35  ;;  %17971 = vmatprep.mubr.msk.bf16.mxu1 %vm19491_vm4, %v19459_v8  ;;  %v13797_v35 = vld [vmem:[%s24136_s17 + $0x38] sm:$0xff] }
0x1a75   :  { %17957 = vmatprep.subr.bf16.mxu1 %v19459_v8 }
0x1a78   :  { %17958 = vmatpush3.bf16.msra.mxu1 %v19348_v31  ;;  %v18316_v31 = vpack.c.bf16 %v13797_v35, %v13796_v20 }
0x1a79   :  { %17959 = vmatprep.subr.bf16.mxu1 %v19459_v8 }
0x1a7a   :  { %18317 = vmatpush3.bf16.msra.mxu0 %v18316_v31 }
0x1a7b   :  { %18318 = vmatprep.subr.bf16.mxu0 %v19490_v30 }
0x1a7c   :  { %17960 = vmatpush3.bf16.msra.mxu1 %v19349_v34  ;;  %v13798_v34 = vld [vmem:[%s24136_s17 + $0x40] sm:$0xff] }
0x1a7d   :  { %17961 = vmatprep.subr.bf16.mxu1 %v19459_v8 }
0x1a80   :  { %17962 = vmatpush3.bf16.msra.mxu1 %v19350_v41  ;;  %v13799_v41 = vld [vmem:[%s24136_s17 + $0x48] sm:$0xff] }
0x1a81   :  { %17963 = vmatprep.subr.bf16.mxu1 %v19459_v8 }
0x1a84   :  { %17964 = vmatpush3.bf16.msra.mxu1 %v19351_v1  ;;  %v19391_v1 = vld [vmem:[%s24133_s14 + $0xba0] sm:$0xff]  }
0x1a85   :  { %17965 = vmatprep.subr.bf16.mxu1 %v19459_v8 }
0x1a88   :  { %17966 = vmatpush3.bf16.msra.mxu1 %v19352_v7  ;;  %v18319_v7 = vpack.c.bf16 %v13799_v41, %v13798_v34 }
0x1a89   :  { %17967 = vmatprep.subr.bf16.mxu1 %v19459_v8 }
0x1a8a   :  { %18320 = vmatpush3.bf16.msra.mxu0 %v18319_v7 }
0x1a8b   :  { %18321 = vmatprep.subr.bf16.mxu0 %v19490_v30  ;;  %v13374_v30 = vrot.slane %v23883_v19, 2 }
0x1a8c   :  { %17968 = vmatpush3.bf16.msra.mxu1 %v19353_v43  ;;  %v19392_v43 = vld [vmem:[%s24133_s14 + $0xba8] sm:$0xff]  }
0x1a8d   :  { %17969 = vmatprep.subr.bf16.mxu1 %v19459_v8 }
0x1a90   :  { %17970 = vmatpush3.bf16.msra.mxu1 %v19354_v42  ;;  %v19393_v42 = vld [vmem:[%s24133_s14 + $0xbb0] sm:$0xff]  }
0x1a91   :  { %17975 = vmatprep.subr.bf16.mxu1 %v19459_v8 }
0x1a93   :  { %17972 = vmatmul.mubr.bf16.vlgmr.msra.gmra.mrb[44].mxu1 %v12834_v45  ;;  %v19395_v45 = vld [vmem:[%s24133_s14 + $0xbc0] sm:$0xff]  }
0x1a94   :  { %17976 = vmatpush3.bf16.msra.mxu1 %v19355_v9  ;;  %17991 = vmatprep.mubr.msk.bf16.mxu1 %vm19491_vm4, %v19459_v8  ;;  %v19394_v9 = vld [vmem:[%s24133_s14 + $0xbb8] sm:$0xff]  }
0x1a95   :  { %17977 = vmatprep.subr.bf16.mxu1 %v19459_v8 }
0x1a98   :  { %17978 = vmatpush3.bf16.msra.mxu1 %v19356_v46  ;;  %v19396_v46 = vld [vmem:[%s24133_s14 + $0xbc8] sm:$0xff]  }
0x1a99   :  { %17979 = vmatprep.subr.bf16.mxu1 %v19459_v8 }
0x1a9c   :  { %17980 = vmatpush3.bf16.msra.mxu1 %v19357_v44  ;;  %v19397_v44 = vld [vmem:[%s24133_s14 + $0xbd0] sm:$0xff]  }
0x1a9d   :  { %17981 = vmatprep.subr.bf16.mxu1 %v19459_v8 }
0x1aa0   :  { %17982 = vmatpush3.bf16.msra.mxu1 %v19358_v22  ;;  %v19398_v22 = vld [vmem:[%s24133_s14 + $0xbd8] sm:$0xff]  }
0x1aa1   :  { %17983 = vmatprep.subr.bf16.mxu1 %v19459_v8 }
0x1aa4   :  { %17984 = vmatpush3.bf16.msra.mxu1 %v19359_v48  ;;  %v19399_v48 = vld [vmem:[%s24133_s14 + $0xbe0] sm:$0xff]  }
0x1aa5   :  { %17985 = vmatprep.subr.bf16.mxu1 %v19459_v8 }
0x1aa8   :  { %17986 = vmatpush3.bf16.msra.mxu1 %v19360_v49  ;;  %v19400_v49 = vld [vmem:[%s24133_s14 + $0xbe8] sm:$0xff]  }
0x1aa9   :  { %17987 = vmatprep.subr.bf16.mxu1 %v19459_v8 }
0x1aac   :  { %17988 = vmatpush3.bf16.msra.mxu1 %v19361_v54  ;;  %v19401_v54 = vld [vmem:[%s24133_s14 + $0xbf0] sm:$0xff]  }
0x1aad   :  { %17989 = vmatprep.subr.bf16.mxu1 %v19459_v8 }
0x1ab0   :  { %17990 = vmatpush3.bf16.msra.mxu1 %v19362_v50  ;;  %v19402_v50 = vld [vmem:[%s24133_s14 + $0xbf8] sm:$0xff]  }
0x1ab1   :  { %17995 = vmatprep.subr.bf16.mxu1 %v19459_v8 }
0x1ab3   :  { %17992 = vmatmul.mubr.bf16.vlgmr.msra.gmra.mrb[44].mxu1 %v12942_v3  ;;  %v13482_v3 = vrot.slane %v23883_v19, 3 }
0x1ab4   :  { %17996 = vmatpush3.bf16.msra.mxu1 %v19363_v52  ;;  %18011 = vmatprep.mubr.msk.bf16.mxu1 %vm19491_vm4, %v19459_v8  ;;  %v19403_v52 = vld [vmem:[%s24133_s14 + $0xc00] sm:$0xff]  }
0x1ab5   :  { %17997 = vmatprep.subr.bf16.mxu1 %v19459_v8 }
0x1ab8   :  { %17998 = vmatpush3.bf16.msra.mxu1 %v19364_v55  ;;  %v19404_v55 = vld [vmem:[%s24133_s14 + $0xc08] sm:$0xff]  }
0x1ab9   :  { %17999 = vmatprep.subr.bf16.mxu1 %v19459_v8 }
0x1abc   :  { %18000 = vmatpush3.bf16.msra.mxu1 %v19365_v57  ;;  %v19405_v57 = vld [vmem:[%s24133_s14 + $0xc10] sm:$0xff]  }
0x1abd   :  { %18001 = vmatprep.subr.bf16.mxu1 %v19459_v8 }
0x1ac0   :  { %18002 = vmatpush3.bf16.msra.mxu1 %v19366_v63  ;;  %v19406_v63 = vld [vmem:[%s24133_s14 + $0xc18] sm:$0xff]  }
0x1ac1   :  { %18003 = vmatprep.subr.bf16.mxu1 %v19459_v8 }
0x1ac4   :  { %18004 = vmatpush3.bf16.msra.mxu1 %v19367_v24  ;;  %v19407_v24 = vld [vmem:[%s24133_s14 + $0xc20] sm:$0xff]  }
0x1ac5   :  { %18005 = vmatprep.subr.bf16.mxu1 %v19459_v8 }
0x1ac8   :  { %18006 = vmatpush3.bf16.msra.mxu1 %v19368_v0  ;;  %v19408_v0 = vld [vmem:[%s24133_s14 + $0xc28] sm:$0xff]  }
0x1ac9   :  { %18007 = vmatprep.subr.bf16.mxu1 %v19459_v8 }
0x1acc   :  { %18008 = vmatpush3.bf16.msra.mxu1 %v19369_v38  ;;  %v19409_v38 = vld [vmem:[%s24133_s14 + $0xc30] sm:$0xff]  }
0x1acd   :  { %18009 = vmatprep.subr.bf16.mxu1 %v19459_v8 }
0x1ad0   :  { %18010 = vmatpush3.bf16.msra.mxu1 %v19370_v28  ;;  %v19410_v28 = vld [vmem:[%s24133_s14 + $0xc38] sm:$0xff]  }
0x1ad1   :  { %18015 = vmatprep.subr.bf16.mxu1 %v19459_v8 }
0x1ad3   :  { %18012 = vmatmul.mubr.bf16.vlgmr.msra.gmra.mrb[44].mxu1 %v13050_v36  ;;  %v19411_v36 = vld [vmem:[%s24133_s14 + $0xc40] sm:$0xff]  }
0x1ad4   :  { %18016 = vmatpush3.bf16.msra.mxu1 %v19371_v60  ;;  %18031 = vmatprep.mubr.msk.bf16.mxu1 %vm19491_vm4, %v19459_v8  ;;  %v8299_v60 = vmax.f32 %v22386_v47, 0.0  ;;  %v19413_v47 = vld [vmem:[%s24133_s14 + $0xc50] sm:$0xff]  }
0x1ad5   :  { %18017 = vmatprep.subr.bf16.mxu1 %v19459_v8 }
0x1ad8   :  { %18018 = vmatpush3.bf16.msra.mxu1 %v19372_v18  ;;  %v13573_v18 = vpack.c.bf16 %v8299_v60, %v8299_v60 }
0x1ad9   :  { %18019 = vmatprep.subr.bf16.mxu1 %v19459_v8 }
0x1ada   :  { %v13698_v16 = vrot.slane %v13573_v18, 1 }
0x1adc   :  { %18020 = vmatpush3.bf16.msra.mxu1 %v19373_v4  ;;  %v19412_v4 = vld [vmem:[%s24133_s14 + $0xc48] sm:$0xff]  }
0x1add   :  { %18021 = vmatprep.subr.bf16.mxu1 %v19459_v8 }
0x1ae0   :  { %18022 = vmatpush3.bf16.msra.mxu1 %v19374_v2  ;;  %v19414_v2 = vld [vmem:[%s24133_s14 + $0xc58] sm:$0xff]  }
0x1ae1   :  { %18023 = vmatprep.subr.bf16.mxu1 %v19459_v8 }
0x1ae4   :  { %18024 = vmatpush3.bf16.msra.mxu1 %v19375_v5  ;;  %v19415_v5 = vld [vmem:[%s24133_s14 + $0xc60] sm:$0xff]  }
0x1ae5   :  { %18025 = vmatprep.subr.bf16.mxu1 %v19459_v8 }
0x1ae8   :  { %18026 = vmatpush3.bf16.msra.mxu1 %v19376_v12  ;;  %v19416_v12 = vld [vmem:[%s24133_s14 + $0xc68] sm:$0xff]  }
0x1ae9   :  { %18027 = vmatprep.subr.bf16.mxu1 %v19459_v8 }
0x1aec   :  { %18028 = vmatpush3.bf16.msra.mxu1 %v19377_v59  ;;  %v19417_v59 = vld [vmem:[%s24133_s14 + $0xc70] sm:$0xff]  }
0x1aed   :  { %18029 = vmatprep.subr.bf16.mxu1 %v19459_v8 }
0x1af0   :  { %18030 = vmatpush3.bf16.msra.mxu1 %v19378_v39  ;;  %v19418_v39 = vld [vmem:[%s24133_s14 + $0xc78] sm:$0xff]  }
0x1af1   :  { %18035 = vmatprep.subr.bf16.mxu1 %v19459_v8 }
0x1af3   :  { %18032 = vmatmul.mubr.bf16.vlgmr.msra.gmra.mrb[44].mxu1 %v23883_v19  ;;  %v13801_v19 = vld [vmem:[%s24136_s17 + $0x58] sm:$0xff] }
0x1af4   :  { %18036 = vmatpush3.bf16.msra.mxu1 %v19379_v17  ;;  %18051 = vmatprep.mubr.msk.bf16.mxu1 %vm19491_vm4, %v19459_v8  ;;  %v13800_v17 = vld [vmem:[%s24136_s17 + $0x50] sm:$0xff] }
0x1af5   :  { %18037 = vmatprep.subr.bf16.mxu1 %v19459_v8 }
0x1af8   :  { %18038 = vmatpush3.bf16.msra.mxu1 %v19380_v26  ;;  %v18322_v26 = vpack.c.bf16 %v13801_v19, %v13800_v17 }
0x1af9   :  { %18039 = vmatprep.subr.bf16.mxu1 %v19459_v8 }
0x1afa   :  { %18323 = vmatpush3.bf16.msra.mxu0 %v18322_v26 }
0x1afb   :  { %18159 = vmatprep.subr.mxu0 %v19459_v8 }
0x1afc   :  { %18040 = vmatpush3.bf16.msra.mxu1 %v19381_v15  ;;  %v13802_v15 = vld [vmem:[%s24136_s17 + $0x60] sm:$0xf]  ;;  %s19434_s17 = scalar_lea.vmem %s13896_s23, 32 }
0x1afd   :  { %18041 = vmatprep.subr.bf16.mxu1 %v19459_v8  ;;  %p19435_p0 = scmp.ne.s32.totalorder %s13896_s23, %s19434_s17  ;;  %p19440_p2 = scmp.lt.s32.totalorder %s19434_s17, %s19434_s17 }
0x1afe   :  { %18160 = vmatpush3.msk.msra.mxu0 %vm87_vm0, %v13802_v15 }
0x1aff   :  { %p19441_p3 = por %p19440_p2, %p19439_p1 }
0x1b00   :  { %18042 = vmatpush3.bf16.msra.mxu1 %v19382_v25 }
0x1b01   :  { %18043 = vmatprep.subr.bf16.mxu1 %v19459_v8  ;;  %p19442_p4 = pnand %p19441_p3, %p19435_p0 }
0x1b04   :  { %18044 = vmatpush3.bf16.msra.mxu1 %v19383_v61 }
0x1b05   :  { %18045 = vmatprep.subr.bf16.mxu1 %v19459_v8 }
0x1b08   :  { %18046 = vmatpush3.bf16.msra.mxu1 %v19384_v23 }
0x1b09   :  { %18047 = vmatprep.subr.bf16.mxu1 %v19459_v8 }
0x1b0c   :  { %18048 = vmatpush3.bf16.msra.mxu1 %v19385_v6 }
0x1b0d   :  { %18049 = vmatprep.subr.bf16.mxu1 %v19459_v8 }
0x1b10   :  { %18050 = vmatpush3.bf16.msra.mxu1 %v19386_v40 }
0x1b11   :  { %18055 = vmatprep.subr.bf16.mxu1 %v19459_v8 }
0x1b13   :  { %18052 = vmatmul.mubr.bf16.vlgmr.msra.gmra.mrb[44].mxu1 %v13266_v53  ;;  %v16443_v53 = vld [vmem:[%s24137_s18] ss:$0 sm:$0xff] }
0x1b14   :  { %18056 = vmatpush3.bf16.msra.mxu1 %v19387_v62  ;;  %18071 = vmatprep.mubr.msk.bf16.mxu1 %vm19491_vm4, %v19459_v8 }
0x1b15   :  { %18057 = vmatprep.subr.bf16.mxu1 %v19459_v8 }
0x1b18   :  { %18058 = vmatpush3.bf16.msra.mxu1 %v19388_v21 }
0x1b19   :  { %18059 = vmatprep.subr.bf16.mxu1 %v19459_v8 }
0x1b1c   :  { %18060 = vmatpush3.bf16.msra.mxu1 %v19389_v10 }
0x1b1d   :  { %18061 = vmatprep.subr.bf16.mxu1 %v19459_v8 }
0x1b20   :  { %18062 = vmatpush3.bf16.msra.mxu1 %v19390_v37 }
0x1b21   :  { %18063 = vmatprep.subr.bf16.mxu1 %v19459_v8 }
0x1b24   :  { %18064 = vmatpush3.bf16.msra.mxu1 %v19391_v1 }
0x1b25   :  { %18065 = vmatprep.subr.bf16.mxu1 %v19459_v8 }
0x1b28   :  { %18066 = vmatpush3.bf16.msra.mxu1 %v19392_v43 }
0x1b29   :  { %18067 = vmatprep.subr.bf16.mxu1 %v19459_v8 }
0x1b2c   :  { %18068 = vmatpush3.bf16.msra.mxu1 %v19393_v42 }
0x1b2d   :  { %18069 = vmatprep.subr.bf16.mxu1 %v19459_v8 }
0x1b30   :  { %18070 = vmatpush3.bf16.msra.mxu1 %v19394_v9 }
0x1b31   :  { %18075 = vmatprep.subr.bf16.mxu1 %v19459_v8 }
0x1b33   :  { %18072 = vmatmul.mubr.bf16.vlgmr.msra.gmra.mrb[44].mxu1 %v13374_v30 }
0x1b34   :  { %18076 = vmatpush3.bf16.msra.mxu1 %v19395_v45  ;;  %18091 = vmatprep.mubr.msk.bf16.mxu1 %vm19491_vm4, %v19459_v8 }
0x1b35   :  { %18077 = vmatprep.subr.bf16.mxu1 %v19459_v8 }
0x1b38   :  { %18078 = vmatpush3.bf16.msra.mxu1 %v19396_v46 }
0x1b39   :  { %18079 = vmatprep.subr.bf16.mxu1 %v19459_v8 }
0x1b3c   :  { %18080 = vmatpush3.bf16.msra.mxu1 %v19397_v44 }
0x1b3d   :  { %18081 = vmatprep.subr.bf16.mxu1 %v19459_v8 }
0x1b40   :  { %18082 = vmatpush3.bf16.msra.mxu1 %v19398_v22 }
0x1b41   :  { %18083 = vmatprep.subr.bf16.mxu1 %v19459_v8 }
0x1b44   :  { %18084 = vmatpush3.bf16.msra.mxu1 %v19399_v48 }
0x1b45   :  { %18085 = vmatprep.subr.bf16.mxu1 %v19459_v8 }
0x1b48   :  { %18086 = vmatpush3.bf16.msra.mxu1 %v19400_v49 }
0x1b49   :  { %18087 = vmatprep.subr.bf16.mxu1 %v19459_v8 }
0x1b4c   :  { %18088 = vmatpush3.bf16.msra.mxu1 %v19401_v54 }
0x1b4d   :  { %18089 = vmatprep.subr.bf16.mxu1 %v19459_v8 }
0x1b50   :  { %18090 = vmatpush3.bf16.msra.mxu1 %v19402_v50 }
0x1b51   :  { %18095 = vmatprep.subr.bf16.mxu1 %v19459_v8 }
0x1b53   :  { %18092 = vmatmul.mubr.bf16.vlgmr.msra.gmra.mrb[44].mxu1 %v13482_v3 }
0x1b54   :  { %18096 = vmatpush3.bf16.msra.mxu1 %v19403_v52  ;;  %18111 = vmatprep.mubr.msk.bf16.mxu1 %vm19491_vm4, %v19459_v8 }
0x1b55   :  { %18097 = vmatprep.subr.bf16.mxu1 %v19459_v8 }
0x1b58   :  { %18098 = vmatpush3.bf16.msra.mxu1 %v19404_v55 }
0x1b59   :  { %18099 = vmatprep.subr.bf16.mxu1 %v19459_v8 }
0x1b5c   :  { %18100 = vmatpush3.bf16.msra.mxu1 %v19405_v57 }
0x1b5d   :  { %18101 = vmatprep.subr.bf16.mxu1 %v19459_v8 }
0x1b60   :  { %18102 = vmatpush3.bf16.msra.mxu1 %v19406_v63 }
0x1b61   :  { %18103 = vmatprep.subr.bf16.mxu1 %v19459_v8 }
0x1b64   :  { %18104 = vmatpush3.bf16.msra.mxu1 %v19407_v24 }
0x1b65   :  { %18105 = vmatprep.subr.bf16.mxu1 %v19459_v8 }
0x1b68   :  { %18106 = vmatpush3.bf16.msra.mxu1 %v19408_v0 }
0x1b69   :  { %18107 = vmatprep.subr.bf16.mxu1 %v19459_v8 }
0x1b6c   :  { %18108 = vmatpush3.bf16.msra.mxu1 %v19409_v38 }
0x1b6d   :  { %18109 = vmatprep.subr.bf16.mxu1 %v19459_v8 }
0x1b70   :  { %18110 = vmatpush3.bf16.msra.mxu1 %v19410_v28 }
0x1b71   :  { %18115 = vmatprep.subr.bf16.mxu1 %v19459_v8 }
0x1b73   :  { %18112 = vmatmul.mubr.bf16.vlgmr.msra.gmra.mrb[44].mxu1 %v13573_v18 }
0x1b74   :  { %18116 = vmatpush3.bf16.msra.mxu1 %v19411_v36  ;;  %18131 = vmatprep.mubr.msk.bf16.mxu1 %vm19491_vm4, %v19459_v8 }
0x1b75   :  { %18117 = vmatprep.subr.bf16.mxu1 %v19459_v8 }
0x1b78   :  { %18118 = vmatpush3.bf16.msra.mxu1 %v19412_v4 }
0x1b79   :  { %18119 = vmatprep.subr.bf16.mxu1 %v19459_v8 }
0x1b7c   :  { %18120 = vmatpush3.bf16.msra.mxu1 %v19413_v47 }
0x1b7d   :  { %18121 = vmatprep.subr.bf16.mxu1 %v19459_v8 }
0x1b80   :  { %18122 = vmatpush3.bf16.msra.mxu1 %v19414_v2 }
0x1b81   :  { %18123 = vmatprep.subr.bf16.mxu1 %v19459_v8 }
0x1b84   :  { %18124 = vmatpush3.bf16.msra.mxu1 %v19415_v5 }
0x1b85   :  { %18125 = vmatprep.subr.bf16.mxu1 %v19459_v8 }
0x1b88   :  { %18126 = vmatpush3.bf16.msra.mxu1 %v19416_v12 }
0x1b89   :  { %18127 = vmatprep.subr.bf16.mxu1 %v19459_v8 }
0x1b8c   :  { %18128 = vmatpush3.bf16.msra.mxu1 %v19417_v59 }
0x1b8d   :  { %18129 = vmatprep.subr.bf16.mxu1 %v19459_v8 }
0x1b90   :  { %18130 = vmatpush3.bf16.msra.mxu1 %v19418_v39 }
0x1b93   :  { %18132 = vmatmul.mubr.bf16.vlgmr.msra.gmra.mrb[44].mxu1 %v13698_v16 }
0x1c66   :  { %v13782_v25 = vpop.f32.mrb[44].mxu1 }
0x1c67   :  { %v18324_v61 = vadd.f32 %v13782_v25, %v22581_v32  ;;  %v18133_v23 = vpop.f32.mrb[45].mxu1 }
0x1c68   :  { %v13785_v6 = vpop.f32.mrb[46].mxu1 }
0x1c69   :  { %v13789_v40 = vmax.f32 %v18324_v61, 0.0  ;;  %v18134_v62 = vpop.f32.mrb[47].mxu1 }
0x1c6b   :  { %18162 = vmatmul.mubr.msk.f32.vlgmr.msra.gmra.mrb[146].mxu0 %vm13810_vm7, %v13789_v40 }
0x1d3e   :  { %v13883_v8 = vpop.f32.mrb[146].mxu0 }
0x1d3f   :  { %v13884_v56 = vadd.f32 %v16443_v53, %v13883_v8  ;;  %v18163_v29 = vpop.f32.mrb[147].mxu0 }
0x1d41   :  { %13888 = vst.msk [vmem:[#allocation2] sm:$0x3] %vm13887_vm8, %v13884_v56 }
0x1d42   :  { %19445 = shalt.err (!%p19442_p4)
}
0x1d43   :  { %s19446_s25 = scalar_lea.hbm %s24138_s19, 32 }
0x1d44   :  { %p19447_p5 = scmp.ne.s32.totalorder %s24138_s19, %s19446_s25  ;;  %p19450_p6 = scmp.lt.u32.totalorder %s19446_s25, %s24138_s19 }
0x1d46   :  { %p19452_p7 = pnand %p19450_p6, %p19447_p5 }
0x1d48   :  { %19455 = shalt.err (!%p19452_p7)
}
0x1d49   :  { %13898 = dma.vmem_to_hbm [thread:$0]  %s13896_s23, 32, %s24138_s19, [#allocation3]  }
0x1d4a   :  { %19456 = dma.done.wait [#allocation3], 32  }
0x1d4b   :  { %19457 = vsyncadd [#allocation3], 4294967264 }
0x1d4c   :  { %13902 = vsyncpa [#allocation3], 1 }

</bundles_post_ra>
